<compile_context>
chip_gen: v5e
topology: v5e:2x2
jax: 0.10.0
libtpu: 0.0.40
codegen_flags: <defaults>
</compile_context>

<pallas_src>
import math

import jax
import jax.numpy as jnp
from jax.experimental import pallas as pl
from jax.experimental.pallas import tpu as pltpu

# ---- norse LIFParameters defaults ------------------------------------------
DT = 1e-3
TAU_SYN_INV = 1.0 / 5e-3   # 200.0
TAU_MEM_INV = 1.0 / 1e-2   # 100.0
V_LEAK = 0.0
V_TH = 1.0
V_RESET = 0.0

# ---- PoissonEncoder / network sizes ----------------------------------------
F_MAX = 1000.0
SEQ_LEN = 10
IN_FEATURES = 12
HID0 = 6
HID1 = 1

TB = 128  # batch lane tile (one full vreg lane width)


def snn_kernel(x_ref, rand_ref, w_in0_ref, w_rec0_ref, w_in1_ref, w_rec1_ref,
               out_ref):
    # x_ref      : (12, TB)          VMEM  input rates, batch on lanes
    # rand_ref   : (12, T, TB)       VMEM  uniforms, batch on lanes
    # w_in0_ref  : (72,)             SMEM  l0 input weights, row-major (out, in)
    # w_rec0_ref : (36,)             SMEM  l0 recurrent weights, row-major
    # w_in1_ref  : (6,)              SMEM  l1 input weights
    # w_rec1_ref : (1,)              SMEM  l1 recurrent weight
    # out_ref    : (1, TB)           VMEM  l1 spikes at final time step
    f32 = jnp.float32
    tb = out_ref.shape[-1]
    n_steps = rand_ref.shape[1]

    c_mem = f32(DT * TAU_MEM_INV)           # 0.1
    c_syn_keep = f32(1.0 - DT * TAU_SYN_INV)  # 0.8
    enc_scale = f32(DT * F_MAX)             # 1.0

    # ---- read all weights once as SMEM scalars (hoisted) -------------------
    w_in0 = [[w_in0_ref[o * IN_FEATURES + i] for i in range(IN_FEATURES)]
             for o in range(HID0)]
    w_rec0 = [[w_rec0_ref[o * HID0 + j] for j in range(HID0)]
              for o in range(HID0)]
    w_in1 = [w_in1_ref[j] for j in range(HID0)]
    w_rec1 = w_rec1_ref[0]

    # ---- hoisted Poisson encoding + layer-0 feed-forward currents ----------
    # inp0[o] : (T, TB) input-current contribution to neuron o at every step,
    # computed off the serial recurrence with VPU scalar-broadcast FMAs.
    x_enc = x_ref[...] * enc_scale                                  # (12, TB)
    inp0 = [jnp.zeros((n_steps, tb), f32) for _ in range(HID0)]
    for i in range(IN_FEATURES):
        enc_i = x_enc[i:i + 1, :]                                   # (1, TB)
        spikes_i = (rand_ref[i] < enc_i).astype(f32)                # (T, TB)
        for o in range(HID0):
            inp0[o] = inp0[o] + w_in0[o][i] * spikes_i

    # ---- serial 10-step recurrence (static unroll, pure VPU) ---------------
    z0 = [jnp.zeros((1, tb), f32) for _ in range(HID0)]
    v0 = [jnp.zeros((1, tb), f32) for _ in range(HID0)]   # v_leak == 0
    i0 = [jnp.zeros((1, tb), f32) for _ in range(HID0)]
    z1 = jnp.zeros((1, tb), f32)
    v1 = jnp.zeros((1, tb), f32)
    i1 = jnp.zeros((1, tb), f32)

    for t in range(n_steps):
        # layer 0 LIF dynamics (decay with old i, threshold, reset)
        z0_new, v0_new, i0_dec = [], [], []
        for o in range(HID0):
            v_dec = v0[o] + c_mem * ((V_LEAK - v0[o]) + i0[o])
            i_dec = i0[o] * c_syn_keep
            z_n = (v_dec > V_TH).astype(f32)
            v_n = (1.0 - z_n) * v_dec + z_n * V_RESET
            z0_new.append(z_n)
            v0_new.append(v_n)
            i0_dec.append(i_dec)

        # layer 0 synaptic input: hoisted feed-forward slice + recurrent FMAs
        # (recurrence uses the PREVIOUS step's layer-0 spikes, as in norse)
        i0_new = []
        for o in range(HID0):
            acc = i0_dec[o] + inp0[o][t:t + 1, :]
            for j in range(HID0):
                acc = acc + w_rec0[o][j] * z0[j]
            i0_new.append(acc)

        # layer 1 LIF dynamics
        v1_dec = v1 + c_mem * ((V_LEAK - v1) + i1)
        i1_dec = i1 * c_syn_keep
        z1_new = (v1_dec > V_TH).astype(f32)
        v1_new = (1.0 - z1_new) * v1_dec + z1_new * V_RESET

        # layer 1 synaptic input: 6 FMAs over the CURRENT layer-0 spikes
        # (replaces the former lane reduction) + recurrent term
        acc1 = i1_dec + w_rec1 * z1
        for j in range(HID0):
            acc1 = acc1 + w_in1[j] * z0_new[j]

        z0, v0, i0 = z0_new, v0_new, i0_new
        z1, v1, i1 = z1_new, v1_new, acc1

    out_ref[...] = z1  # layer-1 spikes of the final time step (lane-dense)


def snn_forward(x, rand, w_in0, w_rec0, w_in1, w_rec1):
    """x: (B,12) rates, rand: (T,B,12) uniforms; weights in PyTorch (out,in)."""
    batch = x.shape[0]
    b_pad = ((batch + TB - 1) // TB) * TB
    n_blocks = b_pad // TB

    # ---- batch-on-lanes layout, padded to the lane tile ---------------------
    x_t = jnp.zeros((IN_FEATURES, b_pad), jnp.float32)
    x_t = x_t.at[:, :batch].set(jnp.transpose(x).astype(jnp.float32))
    # padded batch entries: rand=1, x=0  ->  (1 < 0) is False -> no spikes
    rand_t = jnp.ones((IN_FEATURES, SEQ_LEN, b_pad), jnp.float32)
    rand_t = rand_t.at[:, :, :batch].set(
        jnp.transpose(rand, (2, 0, 1)).astype(jnp.float32))

    smem = pl.BlockSpec(memory_space=pltpu.MemorySpace.SMEM)

    out_pad = pl.pallas_call(
        snn_kernel,
        out_shape=jax.ShapeDtypeStruct((HID1, b_pad), jnp.float32),
        grid=(n_blocks,),
        in_specs=[
            pl.BlockSpec((IN_FEATURES, TB), lambda b: (0, b)),
            pl.BlockSpec((IN_FEATURES, SEQ_LEN, TB), lambda b: (0, 0, b)),
            smem, smem, smem, smem,
        ],
        out_specs=pl.BlockSpec((HID1, TB), lambda b: (0, b)),
        compiler_params=pltpu.CompilerParams(
            dimension_semantics=("parallel",)),
    )(
        x_t,
        rand_t,
        jnp.reshape(w_in0.astype(jnp.float32), (-1,)),    # (72,)
        jnp.reshape(w_rec0.astype(jnp.float32), (-1,)),   # (36,)
        jnp.reshape(w_in1.astype(jnp.float32), (-1,)),    # (6,)
        jnp.reshape(w_rec1.astype(jnp.float32), (-1,)),   # (1,)
    )
    # back to the PyTorch (B, 1) layout, dropping batch padding
    return jnp.transpose(out_pad[:, :batch])


def snn_reference(x, rand, w_in0, w_rec0, w_in1, w_rec1):
    """Pure-JAX reference mirroring the kernel arithmetic (batch-major)."""
    f32 = jnp.float32
    batch = x.shape[0]
    c_mem = f32(DT * TAU_MEM_INV)
    c_syn_keep = f32(1.0 - DT * TAU_SYN_INV)
    enc_scale = f32(DT * F_MAX)
    x = x.astype(f32)
    rand = rand.astype(f32)

    x_enc = x * enc_scale                                           # (B, 12)
    inp0 = [jnp.zeros((SEQ_LEN, batch), f32) for _ in range(HID0)]
    for i in range(IN_FEATURES):
        spikes_i = (rand[:, :, i] < x_enc[None, :, i]).astype(f32)  # (T, B)
        for o in range(HID0):
            inp0[o] = inp0[o] + w_in0[o, i] * spikes_i

    z0 = [jnp.zeros((batch,), f32) for _ in range(HID0)]
    v0 = [jnp.zeros((batch,), f32) for _ in range(HID0)]
    i0 = [jnp.zeros((batch,), f32) for _ in range(HID0)]
    z1 = jnp.zeros((batch,), f32)
    v1 = jnp.zeros((batch,), f32)
    i1 = jnp.zeros((batch,), f32)

    for t in range(SEQ_LEN):
        z0n, v0n, i0d = [], [], []
        for o in range(HID0):
            v_dec = v0[o] + c_mem * ((V_LEAK - v0[o]) + i0[o])
            i_dec = i0[o] * c_syn_keep
            z_n = (v_dec > V_TH).astype(f32)
            v_n = (1.0 - z_n) * v_dec + z_n * V_RESET
            z0n.append(z_n)
            v0n.append(v_n)
            i0d.append(i_dec)
        i0n = []
        for o in range(HID0):
            acc = i0d[o] + inp0[o][t]
            for j in range(HID0):
                acc = acc + w_rec0[o, j] * z0[j]
            i0n.append(acc)
        v1_dec = v1 + c_mem * ((V_LEAK - v1) + i1)
        i1_dec = i1 * c_syn_keep
        z1n = (v1_dec > V_TH).astype(f32)
        v1n = (1.0 - z1n) * v1_dec + z1n * V_RESET
        acc1 = i1_dec + w_rec1[0, 0] * z1
        for j in range(HID0):
            acc1 = acc1 + w_in1[0, j] * z0n[j]
        z0, v0, i0 = z0n, v0n, i0n
        z1, v1, i1 = z1n, v1n, acc1
    return z1[:, None]                                              # (B, 1)


if __name__ == "__main__":
    key = jax.random.PRNGKey(0)
    kx, kr, k0, k1, k2, k3 = jax.random.split(key, 6)

    B = 8
    # Input rates in [0, 1] (Poisson spike probability = dt*f_max*x = x).
    x = jax.random.uniform(kx, (B, IN_FEATURES), dtype=jnp.float32)
    # Uniform randoms replacing torch.rand inside poisson_encode (deterministic).
    rand = jax.random.uniform(kr, (SEQ_LEN, B, IN_FEATURES), dtype=jnp.float32)

    # Deterministic weight init matching norse SNNRecurrentCell:
    #   randn(hidden, input) * sqrt(2 / hidden)
    w_in0 = jax.random.normal(k0, (HID0, IN_FEATURES), jnp.float32) * math.sqrt(2.0 / HID0)
    w_rec0 = jax.random.normal(k1, (HID0, HID0), jnp.float32) * math.sqrt(2.0 / HID0)
    w_in1 = jax.random.normal(k2, (HID1, HID0), jnp.float32) * math.sqrt(2.0 / HID1)
    w_rec1 = jax.random.normal(k3, (HID1, HID1), jnp.float32) * math.sqrt(2.0 / HID1)

    out = jax.block_until_ready(snn_forward(x, rand, w_in0, w_rec0, w_in1, w_rec1))
    assert out.shape == (B, HID1) and out.dtype == jnp.float32

    ref = jax.block_until_ready(snn_reference(x, rand, w_in0, w_rec0, w_in1, w_rec1))
    assert jnp.allclose(out, ref, atol=1e-6), (out, ref)

    print("KERNEL_OK")
</pallas_src>

<mosaic_0001>
module attributes {stable_mosaic.version = 11 : i64} {
  func.func @snn_kernel(%arg0: i32, %arg1: memref<12x128xf32, #tpu.memory_space<vmem>>, %arg2: memref<12x10x128xf32, #tpu.memory_space<vmem>>, %arg3: memref<72xf32, #tpu.memory_space<smem>>, %arg4: memref<36xf32, #tpu.memory_space<smem>>, %arg5: memref<6xf32, #tpu.memory_space<smem>>, %arg6: memref<1xf32, #tpu.memory_space<smem>>, %arg7: memref<1x128xf32, #tpu.memory_space<vmem>>) attributes {dimension_semantics = [#tpu.dimension_semantics<parallel>], iteration_bounds = array<i64: 1>, scalar_prefetch = 0 : i64, scratch_operands = 0 : i64, tpu.core_type = #tpu.core_type<tc>, window_params = [{transform_indices = @transform_0, window_bounds = array<i64: 12, 128>}, {transform_indices = @transform_1, window_bounds = array<i64: 12, 10, 128>}, {transform_indices = @transform_2, window_bounds = array<i64: 72>}, {transform_indices = @transform_3, window_bounds = array<i64: 36>}, {transform_indices = @transform_4, window_bounds = array<i64: 6>}, {transform_indices = @transform_5, window_bounds = array<i64: 1>}, {transform_indices = @transform_6, window_bounds = array<i64: 1, 128>}]} {
    %c0 = arith.constant 0 : index
    %0 = memref.load %arg3[%c0] : memref<72xf32, #tpu.memory_space<smem>>
    %c1 = arith.constant 1 : index
    %1 = memref.load %arg3[%c1] : memref<72xf32, #tpu.memory_space<smem>>
    %c2 = arith.constant 2 : index
    %2 = memref.load %arg3[%c2] : memref<72xf32, #tpu.memory_space<smem>>
    %c3 = arith.constant 3 : index
    %3 = memref.load %arg3[%c3] : memref<72xf32, #tpu.memory_space<smem>>
    %c4 = arith.constant 4 : index
    %4 = memref.load %arg3[%c4] : memref<72xf32, #tpu.memory_space<smem>>
    %c5 = arith.constant 5 : index
    %5 = memref.load %arg3[%c5] : memref<72xf32, #tpu.memory_space<smem>>
    %c6 = arith.constant 6 : index
    %6 = memref.load %arg3[%c6] : memref<72xf32, #tpu.memory_space<smem>>
    %c7 = arith.constant 7 : index
    %7 = memref.load %arg3[%c7] : memref<72xf32, #tpu.memory_space<smem>>
    %c8 = arith.constant 8 : index
    %8 = memref.load %arg3[%c8] : memref<72xf32, #tpu.memory_space<smem>>
    %c9 = arith.constant 9 : index
    %9 = memref.load %arg3[%c9] : memref<72xf32, #tpu.memory_space<smem>>
    %c10 = arith.constant 10 : index
    %10 = memref.load %arg3[%c10] : memref<72xf32, #tpu.memory_space<smem>>
    %c11 = arith.constant 11 : index
    %11 = memref.load %arg3[%c11] : memref<72xf32, #tpu.memory_space<smem>>
    %c12 = arith.constant 12 : index
    %12 = memref.load %arg3[%c12] : memref<72xf32, #tpu.memory_space<smem>>
    %c13 = arith.constant 13 : index
    %13 = memref.load %arg3[%c13] : memref<72xf32, #tpu.memory_space<smem>>
    %c14 = arith.constant 14 : index
    %14 = memref.load %arg3[%c14] : memref<72xf32, #tpu.memory_space<smem>>
    %c15 = arith.constant 15 : index
    %15 = memref.load %arg3[%c15] : memref<72xf32, #tpu.memory_space<smem>>
    %c16 = arith.constant 16 : index
    %16 = memref.load %arg3[%c16] : memref<72xf32, #tpu.memory_space<smem>>
    %c17 = arith.constant 17 : index
    %17 = memref.load %arg3[%c17] : memref<72xf32, #tpu.memory_space<smem>>
    %c18 = arith.constant 18 : index
    %18 = memref.load %arg3[%c18] : memref<72xf32, #tpu.memory_space<smem>>
    %c19 = arith.constant 19 : index
    %19 = memref.load %arg3[%c19] : memref<72xf32, #tpu.memory_space<smem>>
    %c20 = arith.constant 20 : index
    %20 = memref.load %arg3[%c20] : memref<72xf32, #tpu.memory_space<smem>>
    %c21 = arith.constant 21 : index
    %21 = memref.load %arg3[%c21] : memref<72xf32, #tpu.memory_space<smem>>
    %c22 = arith.constant 22 : index
    %22 = memref.load %arg3[%c22] : memref<72xf32, #tpu.memory_space<smem>>
    %c23 = arith.constant 23 : index
    %23 = memref.load %arg3[%c23] : memref<72xf32, #tpu.memory_space<smem>>
    %c24 = arith.constant 24 : index
    %24 = memref.load %arg3[%c24] : memref<72xf32, #tpu.memory_space<smem>>
    %c25 = arith.constant 25 : index
    %25 = memref.load %arg3[%c25] : memref<72xf32, #tpu.memory_space<smem>>
    %c26 = arith.constant 26 : index
    %26 = memref.load %arg3[%c26] : memref<72xf32, #tpu.memory_space<smem>>
    %c27 = arith.constant 27 : index
    %27 = memref.load %arg3[%c27] : memref<72xf32, #tpu.memory_space<smem>>
    %c28 = arith.constant 28 : index
    %28 = memref.load %arg3[%c28] : memref<72xf32, #tpu.memory_space<smem>>
    %c29 = arith.constant 29 : index
    %29 = memref.load %arg3[%c29] : memref<72xf32, #tpu.memory_space<smem>>
    %c30 = arith.constant 30 : index
    %30 = memref.load %arg3[%c30] : memref<72xf32, #tpu.memory_space<smem>>
    %c31 = arith.constant 31 : index
    %31 = memref.load %arg3[%c31] : memref<72xf32, #tpu.memory_space<smem>>
    %c32 = arith.constant 32 : index
    %32 = memref.load %arg3[%c32] : memref<72xf32, #tpu.memory_space<smem>>
    %c33 = arith.constant 33 : index
    %33 = memref.load %arg3[%c33] : memref<72xf32, #tpu.memory_space<smem>>
    %c34 = arith.constant 34 : index
    %34 = memref.load %arg3[%c34] : memref<72xf32, #tpu.memory_space<smem>>
    %c35 = arith.constant 35 : index
    %35 = memref.load %arg3[%c35] : memref<72xf32, #tpu.memory_space<smem>>
    %c36 = arith.constant 36 : index
    %36 = memref.load %arg3[%c36] : memref<72xf32, #tpu.memory_space<smem>>
    %c37 = arith.constant 37 : index
    %37 = memref.load %arg3[%c37] : memref<72xf32, #tpu.memory_space<smem>>
    %c38 = arith.constant 38 : index
    %38 = memref.load %arg3[%c38] : memref<72xf32, #tpu.memory_space<smem>>
    %c39 = arith.constant 39 : index
    %39 = memref.load %arg3[%c39] : memref<72xf32, #tpu.memory_space<smem>>
    %c40 = arith.constant 40 : index
    %40 = memref.load %arg3[%c40] : memref<72xf32, #tpu.memory_space<smem>>
    %c41 = arith.constant 41 : index
    %41 = memref.load %arg3[%c41] : memref<72xf32, #tpu.memory_space<smem>>
    %c42 = arith.constant 42 : index
    %42 = memref.load %arg3[%c42] : memref<72xf32, #tpu.memory_space<smem>>
    %c43 = arith.constant 43 : index
    %43 = memref.load %arg3[%c43] : memref<72xf32, #tpu.memory_space<smem>>
    %c44 = arith.constant 44 : index
    %44 = memref.load %arg3[%c44] : memref<72xf32, #tpu.memory_space<smem>>
    %c45 = arith.constant 45 : index
    %45 = memref.load %arg3[%c45] : memref<72xf32, #tpu.memory_space<smem>>
    %c46 = arith.constant 46 : index
    %46 = memref.load %arg3[%c46] : memref<72xf32, #tpu.memory_space<smem>>
    %c47 = arith.constant 47 : index
    %47 = memref.load %arg3[%c47] : memref<72xf32, #tpu.memory_space<smem>>
    %c48 = arith.constant 48 : index
    %48 = memref.load %arg3[%c48] : memref<72xf32, #tpu.memory_space<smem>>
    %c49 = arith.constant 49 : index
    %49 = memref.load %arg3[%c49] : memref<72xf32, #tpu.memory_space<smem>>
    %c50 = arith.constant 50 : index
    %50 = memref.load %arg3[%c50] : memref<72xf32, #tpu.memory_space<smem>>
    %c51 = arith.constant 51 : index
    %51 = memref.load %arg3[%c51] : memref<72xf32, #tpu.memory_space<smem>>
    %c52 = arith.constant 52 : index
    %52 = memref.load %arg3[%c52] : memref<72xf32, #tpu.memory_space<smem>>
    %c53 = arith.constant 53 : index
    %53 = memref.load %arg3[%c53] : memref<72xf32, #tpu.memory_space<smem>>
    %c54 = arith.constant 54 : index
    %54 = memref.load %arg3[%c54] : memref<72xf32, #tpu.memory_space<smem>>
    %c55 = arith.constant 55 : index
    %55 = memref.load %arg3[%c55] : memref<72xf32, #tpu.memory_space<smem>>
    %c56 = arith.constant 56 : index
    %56 = memref.load %arg3[%c56] : memref<72xf32, #tpu.memory_space<smem>>
    %c57 = arith.constant 57 : index
    %57 = memref.load %arg3[%c57] : memref<72xf32, #tpu.memory_space<smem>>
    %c58 = arith.constant 58 : index
    %58 = memref.load %arg3[%c58] : memref<72xf32, #tpu.memory_space<smem>>
    %c59 = arith.constant 59 : index
    %59 = memref.load %arg3[%c59] : memref<72xf32, #tpu.memory_space<smem>>
    %c60 = arith.constant 60 : index
    %60 = memref.load %arg3[%c60] : memref<72xf32, #tpu.memory_space<smem>>
    %c61 = arith.constant 61 : index
    %61 = memref.load %arg3[%c61] : memref<72xf32, #tpu.memory_space<smem>>
    %c62 = arith.constant 62 : index
    %62 = memref.load %arg3[%c62] : memref<72xf32, #tpu.memory_space<smem>>
    %c63 = arith.constant 63 : index
    %63 = memref.load %arg3[%c63] : memref<72xf32, #tpu.memory_space<smem>>
    %c64 = arith.constant 64 : index
    %64 = memref.load %arg3[%c64] : memref<72xf32, #tpu.memory_space<smem>>
    %c65 = arith.constant 65 : index
    %65 = memref.load %arg3[%c65] : memref<72xf32, #tpu.memory_space<smem>>
    %c66 = arith.constant 66 : index
    %66 = memref.load %arg3[%c66] : memref<72xf32, #tpu.memory_space<smem>>
    %c67 = arith.constant 67 : index
    %67 = memref.load %arg3[%c67] : memref<72xf32, #tpu.memory_space<smem>>
    %c68 = arith.constant 68 : index
    %68 = memref.load %arg3[%c68] : memref<72xf32, #tpu.memory_space<smem>>
    %c69 = arith.constant 69 : index
    %69 = memref.load %arg3[%c69] : memref<72xf32, #tpu.memory_space<smem>>
    %c70 = arith.constant 70 : index
    %70 = memref.load %arg3[%c70] : memref<72xf32, #tpu.memory_space<smem>>
    %c71 = arith.constant 71 : index
    %71 = memref.load %arg3[%c71] : memref<72xf32, #tpu.memory_space<smem>>
    %c0_0 = arith.constant 0 : index
    %72 = memref.load %arg4[%c0_0] : memref<36xf32, #tpu.memory_space<smem>>
    %c1_1 = arith.constant 1 : index
    %73 = memref.load %arg4[%c1_1] : memref<36xf32, #tpu.memory_space<smem>>
    %c2_2 = arith.constant 2 : index
    %74 = memref.load %arg4[%c2_2] : memref<36xf32, #tpu.memory_space<smem>>
    %c3_3 = arith.constant 3 : index
    %75 = memref.load %arg4[%c3_3] : memref<36xf32, #tpu.memory_space<smem>>
    %c4_4 = arith.constant 4 : index
    %76 = memref.load %arg4[%c4_4] : memref<36xf32, #tpu.memory_space<smem>>
    %c5_5 = arith.constant 5 : index
    %77 = memref.load %arg4[%c5_5] : memref<36xf32, #tpu.memory_space<smem>>
    %c6_6 = arith.constant 6 : index
    %78 = memref.load %arg4[%c6_6] : memref<36xf32, #tpu.memory_space<smem>>
    %c7_7 = arith.constant 7 : index
    %79 = memref.load %arg4[%c7_7] : memref<36xf32, #tpu.memory_space<smem>>
    %c8_8 = arith.constant 8 : index
    %80 = memref.load %arg4[%c8_8] : memref<36xf32, #tpu.memory_space<smem>>
    %c9_9 = arith.constant 9 : index
    %81 = memref.load %arg4[%c9_9] : memref<36xf32, #tpu.memory_space<smem>>
    %c10_10 = arith.constant 10 : index
    %82 = memref.load %arg4[%c10_10] : memref<36xf32, #tpu.memory_space<smem>>
    %c11_11 = arith.constant 11 : index
    %83 = memref.load %arg4[%c11_11] : memref<36xf32, #tpu.memory_space<smem>>
    %c12_12 = arith.constant 12 : index
    %84 = memref.load %arg4[%c12_12] : memref<36xf32, #tpu.memory_space<smem>>
    %c13_13 = arith.constant 13 : index
    %85 = memref.load %arg4[%c13_13] : memref<36xf32, #tpu.memory_space<smem>>
    %c14_14 = arith.constant 14 : index
    %86 = memref.load %arg4[%c14_14] : memref<36xf32, #tpu.memory_space<smem>>
    %c15_15 = arith.constant 15 : index
    %87 = memref.load %arg4[%c15_15] : memref<36xf32, #tpu.memory_space<smem>>
    %c16_16 = arith.constant 16 : index
    %88 = memref.load %arg4[%c16_16] : memref<36xf32, #tpu.memory_space<smem>>
    %c17_17 = arith.constant 17 : index
    %89 = memref.load %arg4[%c17_17] : memref<36xf32, #tpu.memory_space<smem>>
    %c18_18 = arith.constant 18 : index
    %90 = memref.load %arg4[%c18_18] : memref<36xf32, #tpu.memory_space<smem>>
    %c19_19 = arith.constant 19 : index
    %91 = memref.load %arg4[%c19_19] : memref<36xf32, #tpu.memory_space<smem>>
    %c20_20 = arith.constant 20 : index
    %92 = memref.load %arg4[%c20_20] : memref<36xf32, #tpu.memory_space<smem>>
    %c21_21 = arith.constant 21 : index
    %93 = memref.load %arg4[%c21_21] : memref<36xf32, #tpu.memory_space<smem>>
    %c22_22 = arith.constant 22 : index
    %94 = memref.load %arg4[%c22_22] : memref<36xf32, #tpu.memory_space<smem>>
    %c23_23 = arith.constant 23 : index
    %95 = memref.load %arg4[%c23_23] : memref<36xf32, #tpu.memory_space<smem>>
    %c24_24 = arith.constant 24 : index
    %96 = memref.load %arg4[%c24_24] : memref<36xf32, #tpu.memory_space<smem>>
    %c25_25 = arith.constant 25 : index
    %97 = memref.load %arg4[%c25_25] : memref<36xf32, #tpu.memory_space<smem>>
    %c26_26 = arith.constant 26 : index
    %98 = memref.load %arg4[%c26_26] : memref<36xf32, #tpu.memory_space<smem>>
    %c27_27 = arith.constant 27 : index
    %99 = memref.load %arg4[%c27_27] : memref<36xf32, #tpu.memory_space<smem>>
    %c28_28 = arith.constant 28 : index
    %100 = memref.load %arg4[%c28_28] : memref<36xf32, #tpu.memory_space<smem>>
    %c29_29 = arith.constant 29 : index
    %101 = memref.load %arg4[%c29_29] : memref<36xf32, #tpu.memory_space<smem>>
    %c30_30 = arith.constant 30 : index
    %102 = memref.load %arg4[%c30_30] : memref<36xf32, #tpu.memory_space<smem>>
    %c31_31 = arith.constant 31 : index
    %103 = memref.load %arg4[%c31_31] : memref<36xf32, #tpu.memory_space<smem>>
    %c32_32 = arith.constant 32 : index
    %104 = memref.load %arg4[%c32_32] : memref<36xf32, #tpu.memory_space<smem>>
    %c33_33 = arith.constant 33 : index
    %105 = memref.load %arg4[%c33_33] : memref<36xf32, #tpu.memory_space<smem>>
    %c34_34 = arith.constant 34 : index
    %106 = memref.load %arg4[%c34_34] : memref<36xf32, #tpu.memory_space<smem>>
    %c35_35 = arith.constant 35 : index
    %107 = memref.load %arg4[%c35_35] : memref<36xf32, #tpu.memory_space<smem>>
    %c0_36 = arith.constant 0 : index
    %108 = memref.load %arg5[%c0_36] : memref<6xf32, #tpu.memory_space<smem>>
    %c1_37 = arith.constant 1 : index
    %109 = memref.load %arg5[%c1_37] : memref<6xf32, #tpu.memory_space<smem>>
    %c2_38 = arith.constant 2 : index
    %110 = memref.load %arg5[%c2_38] : memref<6xf32, #tpu.memory_space<smem>>
    %c3_39 = arith.constant 3 : index
    %111 = memref.load %arg5[%c3_39] : memref<6xf32, #tpu.memory_space<smem>>
    %c4_40 = arith.constant 4 : index
    %112 = memref.load %arg5[%c4_40] : memref<6xf32, #tpu.memory_space<smem>>
    %c5_41 = arith.constant 5 : index
    %113 = memref.load %arg5[%c5_41] : memref<6xf32, #tpu.memory_space<smem>>
    %c0_42 = arith.constant 0 : index
    %114 = memref.load %arg6[%c0_42] : memref<1xf32, #tpu.memory_space<smem>>
    %c0_43 = arith.constant 0 : index
    %c0_44 = arith.constant 0 : index
    %115 = vector.load %arg1[%c0_43, %c0_44] : memref<12x128xf32, #tpu.memory_space<vmem>>, vector<12x128xf32>
    %cst = arith.constant 1.000000e+00 : f32
    %116 = vector.broadcast %cst : f32 to vector<12x128xf32>
    %117 = arith.mulf %115, %116 : vector<12x128xf32>
    %cst_45 = arith.constant 0.000000e+00 : f32
    %118 = vector.broadcast %cst_45 : f32 to vector<10x128xf32>
    %cst_46 = arith.constant 0.000000e+00 : f32
    %119 = vector.broadcast %cst_46 : f32 to vector<10x128xf32>
    %cst_47 = arith.constant 0.000000e+00 : f32
    %120 = vector.broadcast %cst_47 : f32 to vector<10x128xf32>
    %cst_48 = arith.constant 0.000000e+00 : f32
    %121 = vector.broadcast %cst_48 : f32 to vector<10x128xf32>
    %cst_49 = arith.constant 0.000000e+00 : f32
    %122 = vector.broadcast %cst_49 : f32 to vector<10x128xf32>
    %cst_50 = arith.constant 0.000000e+00 : f32
    %123 = vector.broadcast %cst_50 : f32 to vector<10x128xf32>
    %124 = vector.extract_strided_slice %117 {offsets = [0, 0], sizes = [1, 128], strides = [1, 1]} : vector<12x128xf32> to vector<1x128xf32>
    %c0_51 = arith.constant 0 : index
    %c0_52 = arith.constant 0 : index
    %c0_53 = arith.constant 0 : index
    %125 = vector.load %arg2[%c0_51, %c0_52, %c0_53] : memref<12x10x128xf32, #tpu.memory_space<vmem>>, vector<1x10x128xf32>
    %126 = vector.shape_cast %125 : vector<1x10x128xf32> to vector<10x128xf32>
    %127 = vector.broadcast %124 : vector<1x128xf32> to vector<10x128xf32>
    %128 = arith.cmpf olt, %126, %127 : vector<10x128xf32>
    %129 = arith.extui %128 : vector<10x128xi1> to vector<10x128xi32>
    %130 = arith.sitofp %129 : vector<10x128xi32> to vector<10x128xf32>
    %131 = vector.broadcast %0 : f32 to vector<10x128xf32>
    %132 = arith.mulf %131, %130 : vector<10x128xf32>
    %133 = arith.addf %118, %132 : vector<10x128xf32>
    %134 = vector.broadcast %12 : f32 to vector<10x128xf32>
    %135 = arith.mulf %134, %130 : vector<10x128xf32>
    %136 = arith.addf %119, %135 : vector<10x128xf32>
    %137 = vector.broadcast %24 : f32 to vector<10x128xf32>
    %138 = arith.mulf %137, %130 : vector<10x128xf32>
    %139 = arith.addf %120, %138 : vector<10x128xf32>
    %140 = vector.broadcast %36 : f32 to vector<10x128xf32>
    %141 = arith.mulf %140, %130 : vector<10x128xf32>
    %142 = arith.addf %121, %141 : vector<10x128xf32>
    %143 = vector.broadcast %48 : f32 to vector<10x128xf32>
    %144 = arith.mulf %143, %130 : vector<10x128xf32>
    %145 = arith.addf %122, %144 : vector<10x128xf32>
    %146 = vector.broadcast %60 : f32 to vector<10x128xf32>
    %147 = arith.mulf %146, %130 : vector<10x128xf32>
    %148 = arith.addf %123, %147 : vector<10x128xf32>
    %149 = vector.extract_strided_slice %117 {offsets = [1, 0], sizes = [1, 128], strides = [1, 1]} : vector<12x128xf32> to vector<1x128xf32>
    %c1_54 = arith.constant 1 : index
    %c0_55 = arith.constant 0 : index
    %c0_56 = arith.constant 0 : index
    %150 = vector.load %arg2[%c1_54, %c0_55, %c0_56] : memref<12x10x128xf32, #tpu.memory_space<vmem>>, vector<1x10x128xf32>
    %151 = vector.shape_cast %150 : vector<1x10x128xf32> to vector<10x128xf32>
    %152 = vector.broadcast %149 : vector<1x128xf32> to vector<10x128xf32>
    %153 = arith.cmpf olt, %151, %152 : vector<10x128xf32>
    %154 = arith.extui %153 : vector<10x128xi1> to vector<10x128xi32>
    %155 = arith.sitofp %154 : vector<10x128xi32> to vector<10x128xf32>
    %156 = vector.broadcast %1 : f32 to vector<10x128xf32>
    %157 = arith.mulf %156, %155 : vector<10x128xf32>
    %158 = arith.addf %133, %157 : vector<10x128xf32>
    %159 = vector.broadcast %13 : f32 to vector<10x128xf32>
    %160 = arith.mulf %159, %155 : vector<10x128xf32>
    %161 = arith.addf %136, %160 : vector<10x128xf32>
    %162 = vector.broadcast %25 : f32 to vector<10x128xf32>
    %163 = arith.mulf %162, %155 : vector<10x128xf32>
    %164 = arith.addf %139, %163 : vector<10x128xf32>
    %165 = vector.broadcast %37 : f32 to vector<10x128xf32>
    %166 = arith.mulf %165, %155 : vector<10x128xf32>
    %167 = arith.addf %142, %166 : vector<10x128xf32>
    %168 = vector.broadcast %49 : f32 to vector<10x128xf32>
    %169 = arith.mulf %168, %155 : vector<10x128xf32>
    %170 = arith.addf %145, %169 : vector<10x128xf32>
    %171 = vector.broadcast %61 : f32 to vector<10x128xf32>
    %172 = arith.mulf %171, %155 : vector<10x128xf32>
    %173 = arith.addf %148, %172 : vector<10x128xf32>
    %174 = vector.extract_strided_slice %117 {offsets = [2, 0], sizes = [1, 128], strides = [1, 1]} : vector<12x128xf32> to vector<1x128xf32>
    %c2_57 = arith.constant 2 : index
    %c0_58 = arith.constant 0 : index
    %c0_59 = arith.constant 0 : index
    %175 = vector.load %arg2[%c2_57, %c0_58, %c0_59] : memref<12x10x128xf32, #tpu.memory_space<vmem>>, vector<1x10x128xf32>
    %176 = vector.shape_cast %175 : vector<1x10x128xf32> to vector<10x128xf32>
    %177 = vector.broadcast %174 : vector<1x128xf32> to vector<10x128xf32>
    %178 = arith.cmpf olt, %176, %177 : vector<10x128xf32>
    %179 = arith.extui %178 : vector<10x128xi1> to vector<10x128xi32>
    %180 = arith.sitofp %179 : vector<10x128xi32> to vector<10x128xf32>
    %181 = vector.broadcast %2 : f32 to vector<10x128xf32>
    %182 = arith.mulf %181, %180 : vector<10x128xf32>
    %183 = arith.addf %158, %182 : vector<10x128xf32>
    %184 = vector.broadcast %14 : f32 to vector<10x128xf32>
    %185 = arith.mulf %184, %180 : vector<10x128xf32>
    %186 = arith.addf %161, %185 : vector<10x128xf32>
    %187 = vector.broadcast %26 : f32 to vector<10x128xf32>
    %188 = arith.mulf %187, %180 : vector<10x128xf32>
    %189 = arith.addf %164, %188 : vector<10x128xf32>
    %190 = vector.broadcast %38 : f32 to vector<10x128xf32>
    %191 = arith.mulf %190, %180 : vector<10x128xf32>
    %192 = arith.addf %167, %191 : vector<10x128xf32>
    %193 = vector.broadcast %50 : f32 to vector<10x128xf32>
    %194 = arith.mulf %193, %180 : vector<10x128xf32>
    %195 = arith.addf %170, %194 : vector<10x128xf32>
    %196 = vector.broadcast %62 : f32 to vector<10x128xf32>
    %197 = arith.mulf %196, %180 : vector<10x128xf32>
    %198 = arith.addf %173, %197 : vector<10x128xf32>
    %199 = vector.extract_strided_slice %117 {offsets = [3, 0], sizes = [1, 128], strides = [1, 1]} : vector<12x128xf32> to vector<1x128xf32>
    %c3_60 = arith.constant 3 : index
    %c0_61 = arith.constant 0 : index
    %c0_62 = arith.constant 0 : index
    %200 = vector.load %arg2[%c3_60, %c0_61, %c0_62] : memref<12x10x128xf32, #tpu.memory_space<vmem>>, vector<1x10x128xf32>
    %201 = vector.shape_cast %200 : vector<1x10x128xf32> to vector<10x128xf32>
    %202 = vector.broadcast %199 : vector<1x128xf32> to vector<10x128xf32>
    %203 = arith.cmpf olt, %201, %202 : vector<10x128xf32>
    %204 = arith.extui %203 : vector<10x128xi1> to vector<10x128xi32>
    %205 = arith.sitofp %204 : vector<10x128xi32> to vector<10x128xf32>
    %206 = vector.broadcast %3 : f32 to vector<10x128xf32>
    %207 = arith.mulf %206, %205 : vector<10x128xf32>
    %208 = arith.addf %183, %207 : vector<10x128xf32>
    %209 = vector.broadcast %15 : f32 to vector<10x128xf32>
    %210 = arith.mulf %209, %205 : vector<10x128xf32>
    %211 = arith.addf %186, %210 : vector<10x128xf32>
    %212 = vector.broadcast %27 : f32 to vector<10x128xf32>
    %213 = arith.mulf %212, %205 : vector<10x128xf32>
    %214 = arith.addf %189, %213 : vector<10x128xf32>
    %215 = vector.broadcast %39 : f32 to vector<10x128xf32>
    %216 = arith.mulf %215, %205 : vector<10x128xf32>
    %217 = arith.addf %192, %216 : vector<10x128xf32>
    %218 = vector.broadcast %51 : f32 to vector<10x128xf32>
    %219 = arith.mulf %218, %205 : vector<10x128xf32>
    %220 = arith.addf %195, %219 : vector<10x128xf32>
    %221 = vector.broadcast %63 : f32 to vector<10x128xf32>
    %222 = arith.mulf %221, %205 : vector<10x128xf32>
    %223 = arith.addf %198, %222 : vector<10x128xf32>
    %224 = vector.extract_strided_slice %117 {offsets = [4, 0], sizes = [1, 128], strides = [1, 1]} : vector<12x128xf32> to vector<1x128xf32>
    %c4_63 = arith.constant 4 : index
    %c0_64 = arith.constant 0 : index
    %c0_65 = arith.constant 0 : index
    %225 = vector.load %arg2[%c4_63, %c0_64, %c0_65] : memref<12x10x128xf32, #tpu.memory_space<vmem>>, vector<1x10x128xf32>
    %226 = vector.shape_cast %225 : vector<1x10x128xf32> to vector<10x128xf32>
    %227 = vector.broadcast %224 : vector<1x128xf32> to vector<10x128xf32>
    %228 = arith.cmpf olt, %226, %227 : vector<10x128xf32>
    %229 = arith.extui %228 : vector<10x128xi1> to vector<10x128xi32>
    %230 = arith.sitofp %229 : vector<10x128xi32> to vector<10x128xf32>
    %231 = vector.broadcast %4 : f32 to vector<10x128xf32>
    %232 = arith.mulf %231, %230 : vector<10x128xf32>
    %233 = arith.addf %208, %232 : vector<10x128xf32>
    %234 = vector.broadcast %16 : f32 to vector<10x128xf32>
    %235 = arith.mulf %234, %230 : vector<10x128xf32>
    %236 = arith.addf %211, %235 : vector<10x128xf32>
    %237 = vector.broadcast %28 : f32 to vector<10x128xf32>
    %238 = arith.mulf %237, %230 : vector<10x128xf32>
    %239 = arith.addf %214, %238 : vector<10x128xf32>
    %240 = vector.broadcast %40 : f32 to vector<10x128xf32>
    %241 = arith.mulf %240, %230 : vector<10x128xf32>
    %242 = arith.addf %217, %241 : vector<10x128xf32>
    %243 = vector.broadcast %52 : f32 to vector<10x128xf32>
    %244 = arith.mulf %243, %230 : vector<10x128xf32>
    %245 = arith.addf %220, %244 : vector<10x128xf32>
    %246 = vector.broadcast %64 : f32 to vector<10x128xf32>
    %247 = arith.mulf %246, %230 : vector<10x128xf32>
    %248 = arith.addf %223, %247 : vector<10x128xf32>
    %249 = vector.extract_strided_slice %117 {offsets = [5, 0], sizes = [1, 128], strides = [1, 1]} : vector<12x128xf32> to vector<1x128xf32>
    %c5_66 = arith.constant 5 : index
    %c0_67 = arith.constant 0 : index
    %c0_68 = arith.constant 0 : index
    %250 = vector.load %arg2[%c5_66, %c0_67, %c0_68] : memref<12x10x128xf32, #tpu.memory_space<vmem>>, vector<1x10x128xf32>
    %251 = vector.shape_cast %250 : vector<1x10x128xf32> to vector<10x128xf32>
    %252 = vector.broadcast %249 : vector<1x128xf32> to vector<10x128xf32>
    %253 = arith.cmpf olt, %251, %252 : vector<10x128xf32>
    %254 = arith.extui %253 : vector<10x128xi1> to vector<10x128xi32>
    %255 = arith.sitofp %254 : vector<10x128xi32> to vector<10x128xf32>
    %256 = vector.broadcast %5 : f32 to vector<10x128xf32>
    %257 = arith.mulf %256, %255 : vector<10x128xf32>
    %258 = arith.addf %233, %257 : vector<10x128xf32>
    %259 = vector.broadcast %17 : f32 to vector<10x128xf32>
    %260 = arith.mulf %259, %255 : vector<10x128xf32>
    %261 = arith.addf %236, %260 : vector<10x128xf32>
    %262 = vector.broadcast %29 : f32 to vector<10x128xf32>
    %263 = arith.mulf %262, %255 : vector<10x128xf32>
    %264 = arith.addf %239, %263 : vector<10x128xf32>
    %265 = vector.broadcast %41 : f32 to vector<10x128xf32>
    %266 = arith.mulf %265, %255 : vector<10x128xf32>
    %267 = arith.addf %242, %266 : vector<10x128xf32>
    %268 = vector.broadcast %53 : f32 to vector<10x128xf32>
    %269 = arith.mulf %268, %255 : vector<10x128xf32>
    %270 = arith.addf %245, %269 : vector<10x128xf32>
    %271 = vector.broadcast %65 : f32 to vector<10x128xf32>
    %272 = arith.mulf %271, %255 : vector<10x128xf32>
    %273 = arith.addf %248, %272 : vector<10x128xf32>
    %274 = vector.extract_strided_slice %117 {offsets = [6, 0], sizes = [1, 128], strides = [1, 1]} : vector<12x128xf32> to vector<1x128xf32>
    %c6_69 = arith.constant 6 : index
    %c0_70 = arith.constant 0 : index
    %c0_71 = arith.constant 0 : index
    %275 = vector.load %arg2[%c6_69, %c0_70, %c0_71] : memref<12x10x128xf32, #tpu.memory_space<vmem>>, vector<1x10x128xf32>
    %276 = vector.shape_cast %275 : vector<1x10x128xf32> to vector<10x128xf32>
    %277 = vector.broadcast %274 : vector<1x128xf32> to vector<10x128xf32>
    %278 = arith.cmpf olt, %276, %277 : vector<10x128xf32>
    %279 = arith.extui %278 : vector<10x128xi1> to vector<10x128xi32>
    %280 = arith.sitofp %279 : vector<10x128xi32> to vector<10x128xf32>
    %281 = vector.broadcast %6 : f32 to vector<10x128xf32>
    %282 = arith.mulf %281, %280 : vector<10x128xf32>
    %283 = arith.addf %258, %282 : vector<10x128xf32>
    %284 = vector.broadcast %18 : f32 to vector<10x128xf32>
    %285 = arith.mulf %284, %280 : vector<10x128xf32>
    %286 = arith.addf %261, %285 : vector<10x128xf32>
    %287 = vector.broadcast %30 : f32 to vector<10x128xf32>
    %288 = arith.mulf %287, %280 : vector<10x128xf32>
    %289 = arith.addf %264, %288 : vector<10x128xf32>
    %290 = vector.broadcast %42 : f32 to vector<10x128xf32>
    %291 = arith.mulf %290, %280 : vector<10x128xf32>
    %292 = arith.addf %267, %291 : vector<10x128xf32>
    %293 = vector.broadcast %54 : f32 to vector<10x128xf32>
    %294 = arith.mulf %293, %280 : vector<10x128xf32>
    %295 = arith.addf %270, %294 : vector<10x128xf32>
    %296 = vector.broadcast %66 : f32 to vector<10x128xf32>
    %297 = arith.mulf %296, %280 : vector<10x128xf32>
    %298 = arith.addf %273, %297 : vector<10x128xf32>
    %299 = vector.extract_strided_slice %117 {offsets = [7, 0], sizes = [1, 128], strides = [1, 1]} : vector<12x128xf32> to vector<1x128xf32>
    %c7_72 = arith.constant 7 : index
    %c0_73 = arith.constant 0 : index
    %c0_74 = arith.constant 0 : index
    %300 = vector.load %arg2[%c7_72, %c0_73, %c0_74] : memref<12x10x128xf32, #tpu.memory_space<vmem>>, vector<1x10x128xf32>
    %301 = vector.shape_cast %300 : vector<1x10x128xf32> to vector<10x128xf32>
    %302 = vector.broadcast %299 : vector<1x128xf32> to vector<10x128xf32>
    %303 = arith.cmpf olt, %301, %302 : vector<10x128xf32>
    %304 = arith.extui %303 : vector<10x128xi1> to vector<10x128xi32>
    %305 = arith.sitofp %304 : vector<10x128xi32> to vector<10x128xf32>
    %306 = vector.broadcast %7 : f32 to vector<10x128xf32>
    %307 = arith.mulf %306, %305 : vector<10x128xf32>
    %308 = arith.addf %283, %307 : vector<10x128xf32>
    %309 = vector.broadcast %19 : f32 to vector<10x128xf32>
    %310 = arith.mulf %309, %305 : vector<10x128xf32>
    %311 = arith.addf %286, %310 : vector<10x128xf32>
    %312 = vector.broadcast %31 : f32 to vector<10x128xf32>
    %313 = arith.mulf %312, %305 : vector<10x128xf32>
    %314 = arith.addf %289, %313 : vector<10x128xf32>
    %315 = vector.broadcast %43 : f32 to vector<10x128xf32>
    %316 = arith.mulf %315, %305 : vector<10x128xf32>
    %317 = arith.addf %292, %316 : vector<10x128xf32>
    %318 = vector.broadcast %55 : f32 to vector<10x128xf32>
    %319 = arith.mulf %318, %305 : vector<10x128xf32>
    %320 = arith.addf %295, %319 : vector<10x128xf32>
    %321 = vector.broadcast %67 : f32 to vector<10x128xf32>
    %322 = arith.mulf %321, %305 : vector<10x128xf32>
    %323 = arith.addf %298, %322 : vector<10x128xf32>
    %324 = vector.extract_strided_slice %117 {offsets = [8, 0], sizes = [1, 128], strides = [1, 1]} : vector<12x128xf32> to vector<1x128xf32>
    %c8_75 = arith.constant 8 : index
    %c0_76 = arith.constant 0 : index
    %c0_77 = arith.constant 0 : index
    %325 = vector.load %arg2[%c8_75, %c0_76, %c0_77] : memref<12x10x128xf32, #tpu.memory_space<vmem>>, vector<1x10x128xf32>
    %326 = vector.shape_cast %325 : vector<1x10x128xf32> to vector<10x128xf32>
    %327 = vector.broadcast %324 : vector<1x128xf32> to vector<10x128xf32>
    %328 = arith.cmpf olt, %326, %327 : vector<10x128xf32>
    %329 = arith.extui %328 : vector<10x128xi1> to vector<10x128xi32>
    %330 = arith.sitofp %329 : vector<10x128xi32> to vector<10x128xf32>
    %331 = vector.broadcast %8 : f32 to vector<10x128xf32>
    %332 = arith.mulf %331, %330 : vector<10x128xf32>
    %333 = arith.addf %308, %332 : vector<10x128xf32>
    %334 = vector.broadcast %20 : f32 to vector<10x128xf32>
    %335 = arith.mulf %334, %330 : vector<10x128xf32>
    %336 = arith.addf %311, %335 : vector<10x128xf32>
    %337 = vector.broadcast %32 : f32 to vector<10x128xf32>
    %338 = arith.mulf %337, %330 : vector<10x128xf32>
    %339 = arith.addf %314, %338 : vector<10x128xf32>
    %340 = vector.broadcast %44 : f32 to vector<10x128xf32>
    %341 = arith.mulf %340, %330 : vector<10x128xf32>
    %342 = arith.addf %317, %341 : vector<10x128xf32>
    %343 = vector.broadcast %56 : f32 to vector<10x128xf32>
    %344 = arith.mulf %343, %330 : vector<10x128xf32>
    %345 = arith.addf %320, %344 : vector<10x128xf32>
    %346 = vector.broadcast %68 : f32 to vector<10x128xf32>
    %347 = arith.mulf %346, %330 : vector<10x128xf32>
    %348 = arith.addf %323, %347 : vector<10x128xf32>
    %349 = vector.extract_strided_slice %117 {offsets = [9, 0], sizes = [1, 128], strides = [1, 1]} : vector<12x128xf32> to vector<1x128xf32>
    %c9_78 = arith.constant 9 : index
    %c0_79 = arith.constant 0 : index
    %c0_80 = arith.constant 0 : index
    %350 = vector.load %arg2[%c9_78, %c0_79, %c0_80] : memref<12x10x128xf32, #tpu.memory_space<vmem>>, vector<1x10x128xf32>
    %351 = vector.shape_cast %350 : vector<1x10x128xf32> to vector<10x128xf32>
    %352 = vector.broadcast %349 : vector<1x128xf32> to vector<10x128xf32>
    %353 = arith.cmpf olt, %351, %352 : vector<10x128xf32>
    %354 = arith.extui %353 : vector<10x128xi1> to vector<10x128xi32>
    %355 = arith.sitofp %354 : vector<10x128xi32> to vector<10x128xf32>
    %356 = vector.broadcast %9 : f32 to vector<10x128xf32>
    %357 = arith.mulf %356, %355 : vector<10x128xf32>
    %358 = arith.addf %333, %357 : vector<10x128xf32>
    %359 = vector.broadcast %21 : f32 to vector<10x128xf32>
    %360 = arith.mulf %359, %355 : vector<10x128xf32>
    %361 = arith.addf %336, %360 : vector<10x128xf32>
    %362 = vector.broadcast %33 : f32 to vector<10x128xf32>
    %363 = arith.mulf %362, %355 : vector<10x128xf32>
    %364 = arith.addf %339, %363 : vector<10x128xf32>
    %365 = vector.broadcast %45 : f32 to vector<10x128xf32>
    %366 = arith.mulf %365, %355 : vector<10x128xf32>
    %367 = arith.addf %342, %366 : vector<10x128xf32>
    %368 = vector.broadcast %57 : f32 to vector<10x128xf32>
    %369 = arith.mulf %368, %355 : vector<10x128xf32>
    %370 = arith.addf %345, %369 : vector<10x128xf32>
    %371 = vector.broadcast %69 : f32 to vector<10x128xf32>
    %372 = arith.mulf %371, %355 : vector<10x128xf32>
    %373 = arith.addf %348, %372 : vector<10x128xf32>
    %374 = vector.extract_strided_slice %117 {offsets = [10, 0], sizes = [1, 128], strides = [1, 1]} : vector<12x128xf32> to vector<1x128xf32>
    %c10_81 = arith.constant 10 : index
    %c0_82 = arith.constant 0 : index
    %c0_83 = arith.constant 0 : index
    %375 = vector.load %arg2[%c10_81, %c0_82, %c0_83] : memref<12x10x128xf32, #tpu.memory_space<vmem>>, vector<1x10x128xf32>
    %376 = vector.shape_cast %375 : vector<1x10x128xf32> to vector<10x128xf32>
    %377 = vector.broadcast %374 : vector<1x128xf32> to vector<10x128xf32>
    %378 = arith.cmpf olt, %376, %377 : vector<10x128xf32>
    %379 = arith.extui %378 : vector<10x128xi1> to vector<10x128xi32>
    %380 = arith.sitofp %379 : vector<10x128xi32> to vector<10x128xf32>
    %381 = vector.broadcast %10 : f32 to vector<10x128xf32>
    %382 = arith.mulf %381, %380 : vector<10x128xf32>
    %383 = arith.addf %358, %382 : vector<10x128xf32>
    %384 = vector.broadcast %22 : f32 to vector<10x128xf32>
    %385 = arith.mulf %384, %380 : vector<10x128xf32>
    %386 = arith.addf %361, %385 : vector<10x128xf32>
    %387 = vector.broadcast %34 : f32 to vector<10x128xf32>
    %388 = arith.mulf %387, %380 : vector<10x128xf32>
    %389 = arith.addf %364, %388 : vector<10x128xf32>
    %390 = vector.broadcast %46 : f32 to vector<10x128xf32>
    %391 = arith.mulf %390, %380 : vector<10x128xf32>
    %392 = arith.addf %367, %391 : vector<10x128xf32>
    %393 = vector.broadcast %58 : f32 to vector<10x128xf32>
    %394 = arith.mulf %393, %380 : vector<10x128xf32>
    %395 = arith.addf %370, %394 : vector<10x128xf32>
    %396 = vector.broadcast %70 : f32 to vector<10x128xf32>
    %397 = arith.mulf %396, %380 : vector<10x128xf32>
    %398 = arith.addf %373, %397 : vector<10x128xf32>
    %399 = vector.extract_strided_slice %117 {offsets = [11, 0], sizes = [1, 128], strides = [1, 1]} : vector<12x128xf32> to vector<1x128xf32>
    %c11_84 = arith.constant 11 : index
    %c0_85 = arith.constant 0 : index
    %c0_86 = arith.constant 0 : index
    %400 = vector.load %arg2[%c11_84, %c0_85, %c0_86] : memref<12x10x128xf32, #tpu.memory_space<vmem>>, vector<1x10x128xf32>
    %401 = vector.shape_cast %400 : vector<1x10x128xf32> to vector<10x128xf32>
    %402 = vector.broadcast %399 : vector<1x128xf32> to vector<10x128xf32>
    %403 = arith.cmpf olt, %401, %402 : vector<10x128xf32>
    %404 = arith.extui %403 : vector<10x128xi1> to vector<10x128xi32>
    %405 = arith.sitofp %404 : vector<10x128xi32> to vector<10x128xf32>
    %406 = vector.broadcast %11 : f32 to vector<10x128xf32>
    %407 = arith.mulf %406, %405 : vector<10x128xf32>
    %408 = arith.addf %383, %407 : vector<10x128xf32>
    %409 = vector.broadcast %23 : f32 to vector<10x128xf32>
    %410 = arith.mulf %409, %405 : vector<10x128xf32>
    %411 = arith.addf %386, %410 : vector<10x128xf32>
    %412 = vector.broadcast %35 : f32 to vector<10x128xf32>
    %413 = arith.mulf %412, %405 : vector<10x128xf32>
    %414 = arith.addf %389, %413 : vector<10x128xf32>
    %415 = vector.broadcast %47 : f32 to vector<10x128xf32>
    %416 = arith.mulf %415, %405 : vector<10x128xf32>
    %417 = arith.addf %392, %416 : vector<10x128xf32>
    %418 = vector.broadcast %59 : f32 to vector<10x128xf32>
    %419 = arith.mulf %418, %405 : vector<10x128xf32>
    %420 = arith.addf %395, %419 : vector<10x128xf32>
    %421 = vector.broadcast %71 : f32 to vector<10x128xf32>
    %422 = arith.mulf %421, %405 : vector<10x128xf32>
    %423 = arith.addf %398, %422 : vector<10x128xf32>
    %cst_87 = arith.constant 0.000000e+00 : f32
    %424 = vector.broadcast %cst_87 : f32 to vector<1x128xf32>
    %cst_88 = arith.constant 0.000000e+00 : f32
    %425 = vector.broadcast %cst_88 : f32 to vector<1x128xf32>
    %cst_89 = arith.constant 0.000000e+00 : f32
    %426 = vector.broadcast %cst_89 : f32 to vector<1x128xf32>
    %cst_90 = arith.constant 0.000000e+00 : f32
    %427 = vector.broadcast %cst_90 : f32 to vector<1x128xf32>
    %cst_91 = arith.constant 0.000000e+00 : f32
    %428 = vector.broadcast %cst_91 : f32 to vector<1x128xf32>
    %cst_92 = arith.constant 0.000000e+00 : f32
    %429 = vector.broadcast %cst_92 : f32 to vector<1x128xf32>
    %cst_93 = arith.constant 0.000000e+00 : f32
    %430 = vector.broadcast %cst_93 : f32 to vector<1x128xf32>
    %cst_94 = arith.constant 0.000000e+00 : f32
    %431 = vector.broadcast %cst_94 : f32 to vector<1x128xf32>
    %cst_95 = arith.constant 0.000000e+00 : f32
    %432 = vector.broadcast %cst_95 : f32 to vector<1x128xf32>
    %cst_96 = arith.constant 0.000000e+00 : f32
    %433 = vector.broadcast %cst_96 : f32 to vector<1x128xf32>
    %cst_97 = arith.constant 0.000000e+00 : f32
    %434 = vector.broadcast %cst_97 : f32 to vector<1x128xf32>
    %cst_98 = arith.constant 0.000000e+00 : f32
    %435 = vector.broadcast %cst_98 : f32 to vector<1x128xf32>
    %cst_99 = arith.constant 0.000000e+00 : f32
    %436 = vector.broadcast %cst_99 : f32 to vector<1x128xf32>
    %cst_100 = arith.constant 0.000000e+00 : f32
    %437 = vector.broadcast %cst_100 : f32 to vector<1x128xf32>
    %cst_101 = arith.constant 0.000000e+00 : f32
    %438 = vector.broadcast %cst_101 : f32 to vector<1x128xf32>
    %cst_102 = arith.constant 0.000000e+00 : f32
    %439 = vector.broadcast %cst_102 : f32 to vector<1x128xf32>
    %cst_103 = arith.constant 0.000000e+00 : f32
    %440 = vector.broadcast %cst_103 : f32 to vector<1x128xf32>
    %cst_104 = arith.constant 0.000000e+00 : f32
    %441 = vector.broadcast %cst_104 : f32 to vector<1x128xf32>
    %cst_105 = arith.constant 0.000000e+00 : f32
    %442 = vector.broadcast %cst_105 : f32 to vector<1x128xf32>
    %cst_106 = arith.constant 0.000000e+00 : f32
    %443 = vector.broadcast %cst_106 : f32 to vector<1x128xf32>
    %cst_107 = arith.constant 0.000000e+00 : f32
    %444 = vector.broadcast %cst_107 : f32 to vector<1x128xf32>
    %cst_108 = arith.constant 0.000000e+00 : f32
    %445 = vector.broadcast %cst_108 : f32 to vector<1x128xf32>
    %446 = arith.subf %445, %430 : vector<1x128xf32>
    %447 = arith.addf %446, %436 : vector<1x128xf32>
    %cst_109 = arith.constant 1.000000e-01 : f32
    %448 = vector.broadcast %cst_109 : f32 to vector<1x128xf32>
    %449 = arith.mulf %448, %447 : vector<1x128xf32>
    %450 = arith.addf %430, %449 : vector<1x128xf32>
    %cst_110 = arith.constant 8.000000e-01 : f32
    %451 = vector.broadcast %cst_110 : f32 to vector<1x128xf32>
    %452 = arith.mulf %436, %451 : vector<1x128xf32>
    %cst_111 = arith.constant 1.000000e+00 : f32
    %453 = vector.broadcast %cst_111 : f32 to vector<1x128xf32>
    %454 = arith.cmpf ogt, %450, %453 : vector<1x128xf32>
    %455 = arith.extui %454 : vector<1x128xi1> to vector<1x128xi32>
    %456 = arith.sitofp %455 : vector<1x128xi32> to vector<1x128xf32>
    %cst_112 = arith.constant 1.000000e+00 : f32
    %457 = vector.broadcast %cst_112 : f32 to vector<1x128xf32>
    %458 = arith.subf %457, %456 : vector<1x128xf32>
    %459 = arith.mulf %458, %450 : vector<1x128xf32>
    %cst_113 = arith.constant 0.000000e+00 : f32
    %460 = vector.broadcast %cst_113 : f32 to vector<1x128xf32>
    %461 = arith.mulf %456, %460 : vector<1x128xf32>
    %462 = arith.addf %459, %461 : vector<1x128xf32>
    %cst_114 = arith.constant 0.000000e+00 : f32
    %463 = vector.broadcast %cst_114 : f32 to vector<1x128xf32>
    %464 = arith.subf %463, %431 : vector<1x128xf32>
    %465 = arith.addf %464, %437 : vector<1x128xf32>
    %cst_115 = arith.constant 1.000000e-01 : f32
    %466 = vector.broadcast %cst_115 : f32 to vector<1x128xf32>
    %467 = arith.mulf %466, %465 : vector<1x128xf32>
    %468 = arith.addf %431, %467 : vector<1x128xf32>
    %cst_116 = arith.constant 8.000000e-01 : f32
    %469 = vector.broadcast %cst_116 : f32 to vector<1x128xf32>
    %470 = arith.mulf %437, %469 : vector<1x128xf32>
    %cst_117 = arith.constant 1.000000e+00 : f32
    %471 = vector.broadcast %cst_117 : f32 to vector<1x128xf32>
    %472 = arith.cmpf ogt, %468, %471 : vector<1x128xf32>
    %473 = arith.extui %472 : vector<1x128xi1> to vector<1x128xi32>
    %474 = arith.sitofp %473 : vector<1x128xi32> to vector<1x128xf32>
    %cst_118 = arith.constant 1.000000e+00 : f32
    %475 = vector.broadcast %cst_118 : f32 to vector<1x128xf32>
    %476 = arith.subf %475, %474 : vector<1x128xf32>
    %477 = arith.mulf %476, %468 : vector<1x128xf32>
    %cst_119 = arith.constant 0.000000e+00 : f32
    %478 = vector.broadcast %cst_119 : f32 to vector<1x128xf32>
    %479 = arith.mulf %474, %478 : vector<1x128xf32>
    %480 = arith.addf %477, %479 : vector<1x128xf32>
    %cst_120 = arith.constant 0.000000e+00 : f32
    %481 = vector.broadcast %cst_120 : f32 to vector<1x128xf32>
    %482 = arith.subf %481, %432 : vector<1x128xf32>
    %483 = arith.addf %482, %438 : vector<1x128xf32>
    %cst_121 = arith.constant 1.000000e-01 : f32
    %484 = vector.broadcast %cst_121 : f32 to vector<1x128xf32>
    %485 = arith.mulf %484, %483 : vector<1x128xf32>
    %486 = arith.addf %432, %485 : vector<1x128xf32>
    %cst_122 = arith.constant 8.000000e-01 : f32
    %487 = vector.broadcast %cst_122 : f32 to vector<1x128xf32>
    %488 = arith.mulf %438, %487 : vector<1x128xf32>
    %cst_123 = arith.constant 1.000000e+00 : f32
    %489 = vector.broadcast %cst_123 : f32 to vector<1x128xf32>
    %490 = arith.cmpf ogt, %486, %489 : vector<1x128xf32>
    %491 = arith.extui %490 : vector<1x128xi1> to vector<1x128xi32>
    %492 = arith.sitofp %491 : vector<1x128xi32> to vector<1x128xf32>
    %cst_124 = arith.constant 1.000000e+00 : f32
    %493 = vector.broadcast %cst_124 : f32 to vector<1x128xf32>
    %494 = arith.subf %493, %492 : vector<1x128xf32>
    %495 = arith.mulf %494, %486 : vector<1x128xf32>
    %cst_125 = arith.constant 0.000000e+00 : f32
    %496 = vector.broadcast %cst_125 : f32 to vector<1x128xf32>
    %497 = arith.mulf %492, %496 : vector<1x128xf32>
    %498 = arith.addf %495, %497 : vector<1x128xf32>
    %cst_126 = arith.constant 0.000000e+00 : f32
    %499 = vector.broadcast %cst_126 : f32 to vector<1x128xf32>
    %500 = arith.subf %499, %433 : vector<1x128xf32>
    %501 = arith.addf %500, %439 : vector<1x128xf32>
    %cst_127 = arith.constant 1.000000e-01 : f32
    %502 = vector.broadcast %cst_127 : f32 to vector<1x128xf32>
    %503 = arith.mulf %502, %501 : vector<1x128xf32>
    %504 = arith.addf %433, %503 : vector<1x128xf32>
    %cst_128 = arith.constant 8.000000e-01 : f32
    %505 = vector.broadcast %cst_128 : f32 to vector<1x128xf32>
    %506 = arith.mulf %439, %505 : vector<1x128xf32>
    %cst_129 = arith.constant 1.000000e+00 : f32
    %507 = vector.broadcast %cst_129 : f32 to vector<1x128xf32>
    %508 = arith.cmpf ogt, %504, %507 : vector<1x128xf32>
    %509 = arith.extui %508 : vector<1x128xi1> to vector<1x128xi32>
    %510 = arith.sitofp %509 : vector<1x128xi32> to vector<1x128xf32>
    %cst_130 = arith.constant 1.000000e+00 : f32
    %511 = vector.broadcast %cst_130 : f32 to vector<1x128xf32>
    %512 = arith.subf %511, %510 : vector<1x128xf32>
    %513 = arith.mulf %512, %504 : vector<1x128xf32>
    %cst_131 = arith.constant 0.000000e+00 : f32
    %514 = vector.broadcast %cst_131 : f32 to vector<1x128xf32>
    %515 = arith.mulf %510, %514 : vector<1x128xf32>
    %516 = arith.addf %513, %515 : vector<1x128xf32>
    %cst_132 = arith.constant 0.000000e+00 : f32
    %517 = vector.broadcast %cst_132 : f32 to vector<1x128xf32>
    %518 = arith.subf %517, %434 : vector<1x128xf32>
    %519 = arith.addf %518, %440 : vector<1x128xf32>
    %cst_133 = arith.constant 1.000000e-01 : f32
    %520 = vector.broadcast %cst_133 : f32 to vector<1x128xf32>
    %521 = arith.mulf %520, %519 : vector<1x128xf32>
    %522 = arith.addf %434, %521 : vector<1x128xf32>
    %cst_134 = arith.constant 8.000000e-01 : f32
    %523 = vector.broadcast %cst_134 : f32 to vector<1x128xf32>
    %524 = arith.mulf %440, %523 : vector<1x128xf32>
    %cst_135 = arith.constant 1.000000e+00 : f32
    %525 = vector.broadcast %cst_135 : f32 to vector<1x128xf32>
    %526 = arith.cmpf ogt, %522, %525 : vector<1x128xf32>
    %527 = arith.extui %526 : vector<1x128xi1> to vector<1x128xi32>
    %528 = arith.sitofp %527 : vector<1x128xi32> to vector<1x128xf32>
    %cst_136 = arith.constant 1.000000e+00 : f32
    %529 = vector.broadcast %cst_136 : f32 to vector<1x128xf32>
    %530 = arith.subf %529, %528 : vector<1x128xf32>
    %531 = arith.mulf %530, %522 : vector<1x128xf32>
    %cst_137 = arith.constant 0.000000e+00 : f32
    %532 = vector.broadcast %cst_137 : f32 to vector<1x128xf32>
    %533 = arith.mulf %528, %532 : vector<1x128xf32>
    %534 = arith.addf %531, %533 : vector<1x128xf32>
    %cst_138 = arith.constant 0.000000e+00 : f32
    %535 = vector.broadcast %cst_138 : f32 to vector<1x128xf32>
    %536 = arith.subf %535, %435 : vector<1x128xf32>
    %537 = arith.addf %536, %441 : vector<1x128xf32>
    %cst_139 = arith.constant 1.000000e-01 : f32
    %538 = vector.broadcast %cst_139 : f32 to vector<1x128xf32>
    %539 = arith.mulf %538, %537 : vector<1x128xf32>
    %540 = arith.addf %435, %539 : vector<1x128xf32>
    %cst_140 = arith.constant 8.000000e-01 : f32
    %541 = vector.broadcast %cst_140 : f32 to vector<1x128xf32>
    %542 = arith.mulf %441, %541 : vector<1x128xf32>
    %cst_141 = arith.constant 1.000000e+00 : f32
    %543 = vector.broadcast %cst_141 : f32 to vector<1x128xf32>
    %544 = arith.cmpf ogt, %540, %543 : vector<1x128xf32>
    %545 = arith.extui %544 : vector<1x128xi1> to vector<1x128xi32>
    %546 = arith.sitofp %545 : vector<1x128xi32> to vector<1x128xf32>
    %cst_142 = arith.constant 1.000000e+00 : f32
    %547 = vector.broadcast %cst_142 : f32 to vector<1x128xf32>
    %548 = arith.subf %547, %546 : vector<1x128xf32>
    %549 = arith.mulf %548, %540 : vector<1x128xf32>
    %cst_143 = arith.constant 0.000000e+00 : f32
    %550 = vector.broadcast %cst_143 : f32 to vector<1x128xf32>
    %551 = arith.mulf %546, %550 : vector<1x128xf32>
    %552 = arith.addf %549, %551 : vector<1x128xf32>
    %553 = vector.extract_strided_slice %408 {offsets = [0, 0], sizes = [1, 128], strides = [1, 1]} : vector<10x128xf32> to vector<1x128xf32>
    %554 = arith.addf %452, %553 : vector<1x128xf32>
    %555 = vector.broadcast %72 : f32 to vector<1x128xf32>
    %556 = arith.mulf %555, %424 : vector<1x128xf32>
    %557 = arith.addf %554, %556 : vector<1x128xf32>
    %558 = vector.broadcast %73 : f32 to vector<1x128xf32>
    %559 = arith.mulf %558, %425 : vector<1x128xf32>
    %560 = arith.addf %557, %559 : vector<1x128xf32>
    %561 = vector.broadcast %74 : f32 to vector<1x128xf32>
    %562 = arith.mulf %561, %426 : vector<1x128xf32>
    %563 = arith.addf %560, %562 : vector<1x128xf32>
    %564 = vector.broadcast %75 : f32 to vector<1x128xf32>
    %565 = arith.mulf %564, %427 : vector<1x128xf32>
    %566 = arith.addf %563, %565 : vector<1x128xf32>
    %567 = vector.broadcast %76 : f32 to vector<1x128xf32>
    %568 = arith.mulf %567, %428 : vector<1x128xf32>
    %569 = arith.addf %566, %568 : vector<1x128xf32>
    %570 = vector.broadcast %77 : f32 to vector<1x128xf32>
    %571 = arith.mulf %570, %429 : vector<1x128xf32>
    %572 = arith.addf %569, %571 : vector<1x128xf32>
    %573 = vector.extract_strided_slice %411 {offsets = [0, 0], sizes = [1, 128], strides = [1, 1]} : vector<10x128xf32> to vector<1x128xf32>
    %574 = arith.addf %470, %573 : vector<1x128xf32>
    %575 = vector.broadcast %78 : f32 to vector<1x128xf32>
    %576 = arith.mulf %575, %424 : vector<1x128xf32>
    %577 = arith.addf %574, %576 : vector<1x128xf32>
    %578 = vector.broadcast %79 : f32 to vector<1x128xf32>
    %579 = arith.mulf %578, %425 : vector<1x128xf32>
    %580 = arith.addf %577, %579 : vector<1x128xf32>
    %581 = vector.broadcast %80 : f32 to vector<1x128xf32>
    %582 = arith.mulf %581, %426 : vector<1x128xf32>
    %583 = arith.addf %580, %582 : vector<1x128xf32>
    %584 = vector.broadcast %81 : f32 to vector<1x128xf32>
    %585 = arith.mulf %584, %427 : vector<1x128xf32>
    %586 = arith.addf %583, %585 : vector<1x128xf32>
    %587 = vector.broadcast %82 : f32 to vector<1x128xf32>
    %588 = arith.mulf %587, %428 : vector<1x128xf32>
    %589 = arith.addf %586, %588 : vector<1x128xf32>
    %590 = vector.broadcast %83 : f32 to vector<1x128xf32>
    %591 = arith.mulf %590, %429 : vector<1x128xf32>
    %592 = arith.addf %589, %591 : vector<1x128xf32>
    %593 = vector.extract_strided_slice %414 {offsets = [0, 0], sizes = [1, 128], strides = [1, 1]} : vector<10x128xf32> to vector<1x128xf32>
    %594 = arith.addf %488, %593 : vector<1x128xf32>
    %595 = vector.broadcast %84 : f32 to vector<1x128xf32>
    %596 = arith.mulf %595, %424 : vector<1x128xf32>
    %597 = arith.addf %594, %596 : vector<1x128xf32>
    %598 = vector.broadcast %85 : f32 to vector<1x128xf32>
    %599 = arith.mulf %598, %425 : vector<1x128xf32>
    %600 = arith.addf %597, %599 : vector<1x128xf32>
    %601 = vector.broadcast %86 : f32 to vector<1x128xf32>
    %602 = arith.mulf %601, %426 : vector<1x128xf32>
    %603 = arith.addf %600, %602 : vector<1x128xf32>
    %604 = vector.broadcast %87 : f32 to vector<1x128xf32>
    %605 = arith.mulf %604, %427 : vector<1x128xf32>
    %606 = arith.addf %603, %605 : vector<1x128xf32>
    %607 = vector.broadcast %88 : f32 to vector<1x128xf32>
    %608 = arith.mulf %607, %428 : vector<1x128xf32>
    %609 = arith.addf %606, %608 : vector<1x128xf32>
    %610 = vector.broadcast %89 : f32 to vector<1x128xf32>
    %611 = arith.mulf %610, %429 : vector<1x128xf32>
    %612 = arith.addf %609, %611 : vector<1x128xf32>
    %613 = vector.extract_strided_slice %417 {offsets = [0, 0], sizes = [1, 128], strides = [1, 1]} : vector<10x128xf32> to vector<1x128xf32>
    %614 = arith.addf %506, %613 : vector<1x128xf32>
    %615 = vector.broadcast %90 : f32 to vector<1x128xf32>
    %616 = arith.mulf %615, %424 : vector<1x128xf32>
    %617 = arith.addf %614, %616 : vector<1x128xf32>
    %618 = vector.broadcast %91 : f32 to vector<1x128xf32>
    %619 = arith.mulf %618, %425 : vector<1x128xf32>
    %620 = arith.addf %617, %619 : vector<1x128xf32>
    %621 = vector.broadcast %92 : f32 to vector<1x128xf32>
    %622 = arith.mulf %621, %426 : vector<1x128xf32>
    %623 = arith.addf %620, %622 : vector<1x128xf32>
    %624 = vector.broadcast %93 : f32 to vector<1x128xf32>
    %625 = arith.mulf %624, %427 : vector<1x128xf32>
    %626 = arith.addf %623, %625 : vector<1x128xf32>
    %627 = vector.broadcast %94 : f32 to vector<1x128xf32>
    %628 = arith.mulf %627, %428 : vector<1x128xf32>
    %629 = arith.addf %626, %628 : vector<1x128xf32>
    %630 = vector.broadcast %95 : f32 to vector<1x128xf32>
    %631 = arith.mulf %630, %429 : vector<1x128xf32>
    %632 = arith.addf %629, %631 : vector<1x128xf32>
    %633 = vector.extract_strided_slice %420 {offsets = [0, 0], sizes = [1, 128], strides = [1, 1]} : vector<10x128xf32> to vector<1x128xf32>
    %634 = arith.addf %524, %633 : vector<1x128xf32>
    %635 = vector.broadcast %96 : f32 to vector<1x128xf32>
    %636 = arith.mulf %635, %424 : vector<1x128xf32>
    %637 = arith.addf %634, %636 : vector<1x128xf32>
    %638 = vector.broadcast %97 : f32 to vector<1x128xf32>
    %639 = arith.mulf %638, %425 : vector<1x128xf32>
    %640 = arith.addf %637, %639 : vector<1x128xf32>
    %641 = vector.broadcast %98 : f32 to vector<1x128xf32>
    %642 = arith.mulf %641, %426 : vector<1x128xf32>
    %643 = arith.addf %640, %642 : vector<1x128xf32>
    %644 = vector.broadcast %99 : f32 to vector<1x128xf32>
    %645 = arith.mulf %644, %427 : vector<1x128xf32>
    %646 = arith.addf %643, %645 : vector<1x128xf32>
    %647 = vector.broadcast %100 : f32 to vector<1x128xf32>
    %648 = arith.mulf %647, %428 : vector<1x128xf32>
    %649 = arith.addf %646, %648 : vector<1x128xf32>
    %650 = vector.broadcast %101 : f32 to vector<1x128xf32>
    %651 = arith.mulf %650, %429 : vector<1x128xf32>
    %652 = arith.addf %649, %651 : vector<1x128xf32>
    %653 = vector.extract_strided_slice %423 {offsets = [0, 0], sizes = [1, 128], strides = [1, 1]} : vector<10x128xf32> to vector<1x128xf32>
    %654 = arith.addf %542, %653 : vector<1x128xf32>
    %655 = vector.broadcast %102 : f32 to vector<1x128xf32>
    %656 = arith.mulf %655, %424 : vector<1x128xf32>
    %657 = arith.addf %654, %656 : vector<1x128xf32>
    %658 = vector.broadcast %103 : f32 to vector<1x128xf32>
    %659 = arith.mulf %658, %425 : vector<1x128xf32>
    %660 = arith.addf %657, %659 : vector<1x128xf32>
    %661 = vector.broadcast %104 : f32 to vector<1x128xf32>
    %662 = arith.mulf %661, %426 : vector<1x128xf32>
    %663 = arith.addf %660, %662 : vector<1x128xf32>
    %664 = vector.broadcast %105 : f32 to vector<1x128xf32>
    %665 = arith.mulf %664, %427 : vector<1x128xf32>
    %666 = arith.addf %663, %665 : vector<1x128xf32>
    %667 = vector.broadcast %106 : f32 to vector<1x128xf32>
    %668 = arith.mulf %667, %428 : vector<1x128xf32>
    %669 = arith.addf %666, %668 : vector<1x128xf32>
    %670 = vector.broadcast %107 : f32 to vector<1x128xf32>
    %671 = arith.mulf %670, %429 : vector<1x128xf32>
    %672 = arith.addf %669, %671 : vector<1x128xf32>
    %cst_144 = arith.constant 0.000000e+00 : f32
    %673 = vector.broadcast %cst_144 : f32 to vector<1x128xf32>
    %674 = arith.subf %673, %443 : vector<1x128xf32>
    %675 = arith.addf %674, %444 : vector<1x128xf32>
    %cst_145 = arith.constant 1.000000e-01 : f32
    %676 = vector.broadcast %cst_145 : f32 to vector<1x128xf32>
    %677 = arith.mulf %676, %675 : vector<1x128xf32>
    %678 = arith.addf %443, %677 : vector<1x128xf32>
    %cst_146 = arith.constant 8.000000e-01 : f32
    %679 = vector.broadcast %cst_146 : f32 to vector<1x128xf32>
    %680 = arith.mulf %444, %679 : vector<1x128xf32>
    %cst_147 = arith.constant 1.000000e+00 : f32
    %681 = vector.broadcast %cst_147 : f32 to vector<1x128xf32>
    %682 = arith.cmpf ogt, %678, %681 : vector<1x128xf32>
    %683 = arith.extui %682 : vector<1x128xi1> to vector<1x128xi32>
    %684 = arith.sitofp %683 : vector<1x128xi32> to vector<1x128xf32>
    %cst_148 = arith.constant 1.000000e+00 : f32
    %685 = vector.broadcast %cst_148 : f32 to vector<1x128xf32>
    %686 = arith.subf %685, %684 : vector<1x128xf32>
    %687 = arith.mulf %686, %678 : vector<1x128xf32>
    %cst_149 = arith.constant 0.000000e+00 : f32
    %688 = vector.broadcast %cst_149 : f32 to vector<1x128xf32>
    %689 = arith.mulf %684, %688 : vector<1x128xf32>
    %690 = arith.addf %687, %689 : vector<1x128xf32>
    %691 = vector.broadcast %114 : f32 to vector<1x128xf32>
    %692 = arith.mulf %691, %442 : vector<1x128xf32>
    %693 = arith.addf %680, %692 : vector<1x128xf32>
    %694 = vector.broadcast %108 : f32 to vector<1x128xf32>
    %695 = arith.mulf %694, %456 : vector<1x128xf32>
    %696 = arith.addf %693, %695 : vector<1x128xf32>
    %697 = vector.broadcast %109 : f32 to vector<1x128xf32>
    %698 = arith.mulf %697, %474 : vector<1x128xf32>
    %699 = arith.addf %696, %698 : vector<1x128xf32>
    %700 = vector.broadcast %110 : f32 to vector<1x128xf32>
    %701 = arith.mulf %700, %492 : vector<1x128xf32>
    %702 = arith.addf %699, %701 : vector<1x128xf32>
    %703 = vector.broadcast %111 : f32 to vector<1x128xf32>
    %704 = arith.mulf %703, %510 : vector<1x128xf32>
    %705 = arith.addf %702, %704 : vector<1x128xf32>
    %706 = vector.broadcast %112 : f32 to vector<1x128xf32>
    %707 = arith.mulf %706, %528 : vector<1x128xf32>
    %708 = arith.addf %705, %707 : vector<1x128xf32>
    %709 = vector.broadcast %113 : f32 to vector<1x128xf32>
    %710 = arith.mulf %709, %546 : vector<1x128xf32>
    %711 = arith.addf %708, %710 : vector<1x128xf32>
    %cst_150 = arith.constant 0.000000e+00 : f32
    %712 = vector.broadcast %cst_150 : f32 to vector<1x128xf32>
    %713 = arith.subf %712, %462 : vector<1x128xf32>
    %714 = arith.addf %713, %572 : vector<1x128xf32>
    %cst_151 = arith.constant 1.000000e-01 : f32
    %715 = vector.broadcast %cst_151 : f32 to vector<1x128xf32>
    %716 = arith.mulf %715, %714 : vector<1x128xf32>
    %717 = arith.addf %462, %716 : vector<1x128xf32>
    %cst_152 = arith.constant 8.000000e-01 : f32
    %718 = vector.broadcast %cst_152 : f32 to vector<1x128xf32>
    %719 = arith.mulf %572, %718 : vector<1x128xf32>
    %cst_153 = arith.constant 1.000000e+00 : f32
    %720 = vector.broadcast %cst_153 : f32 to vector<1x128xf32>
    %721 = arith.cmpf ogt, %717, %720 : vector<1x128xf32>
    %722 = arith.extui %721 : vector<1x128xi1> to vector<1x128xi32>
    %723 = arith.sitofp %722 : vector<1x128xi32> to vector<1x128xf32>
    %cst_154 = arith.constant 1.000000e+00 : f32
    %724 = vector.broadcast %cst_154 : f32 to vector<1x128xf32>
    %725 = arith.subf %724, %723 : vector<1x128xf32>
    %726 = arith.mulf %725, %717 : vector<1x128xf32>
    %cst_155 = arith.constant 0.000000e+00 : f32
    %727 = vector.broadcast %cst_155 : f32 to vector<1x128xf32>
    %728 = arith.mulf %723, %727 : vector<1x128xf32>
    %729 = arith.addf %726, %728 : vector<1x128xf32>
    %cst_156 = arith.constant 0.000000e+00 : f32
    %730 = vector.broadcast %cst_156 : f32 to vector<1x128xf32>
    %731 = arith.subf %730, %480 : vector<1x128xf32>
    %732 = arith.addf %731, %592 : vector<1x128xf32>
    %cst_157 = arith.constant 1.000000e-01 : f32
    %733 = vector.broadcast %cst_157 : f32 to vector<1x128xf32>
    %734 = arith.mulf %733, %732 : vector<1x128xf32>
    %735 = arith.addf %480, %734 : vector<1x128xf32>
    %cst_158 = arith.constant 8.000000e-01 : f32
    %736 = vector.broadcast %cst_158 : f32 to vector<1x128xf32>
    %737 = arith.mulf %592, %736 : vector<1x128xf32>
    %cst_159 = arith.constant 1.000000e+00 : f32
    %738 = vector.broadcast %cst_159 : f32 to vector<1x128xf32>
    %739 = arith.cmpf ogt, %735, %738 : vector<1x128xf32>
    %740 = arith.extui %739 : vector<1x128xi1> to vector<1x128xi32>
    %741 = arith.sitofp %740 : vector<1x128xi32> to vector<1x128xf32>
    %cst_160 = arith.constant 1.000000e+00 : f32
    %742 = vector.broadcast %cst_160 : f32 to vector<1x128xf32>
    %743 = arith.subf %742, %741 : vector<1x128xf32>
    %744 = arith.mulf %743, %735 : vector<1x128xf32>
    %cst_161 = arith.constant 0.000000e+00 : f32
    %745 = vector.broadcast %cst_161 : f32 to vector<1x128xf32>
    %746 = arith.mulf %741, %745 : vector<1x128xf32>
    %747 = arith.addf %744, %746 : vector<1x128xf32>
    %cst_162 = arith.constant 0.000000e+00 : f32
    %748 = vector.broadcast %cst_162 : f32 to vector<1x128xf32>
    %749 = arith.subf %748, %498 : vector<1x128xf32>
    %750 = arith.addf %749, %612 : vector<1x128xf32>
    %cst_163 = arith.constant 1.000000e-01 : f32
    %751 = vector.broadcast %cst_163 : f32 to vector<1x128xf32>
    %752 = arith.mulf %751, %750 : vector<1x128xf32>
    %753 = arith.addf %498, %752 : vector<1x128xf32>
    %cst_164 = arith.constant 8.000000e-01 : f32
    %754 = vector.broadcast %cst_164 : f32 to vector<1x128xf32>
    %755 = arith.mulf %612, %754 : vector<1x128xf32>
    %cst_165 = arith.constant 1.000000e+00 : f32
    %756 = vector.broadcast %cst_165 : f32 to vector<1x128xf32>
    %757 = arith.cmpf ogt, %753, %756 : vector<1x128xf32>
    %758 = arith.extui %757 : vector<1x128xi1> to vector<1x128xi32>
    %759 = arith.sitofp %758 : vector<1x128xi32> to vector<1x128xf32>
    %cst_166 = arith.constant 1.000000e+00 : f32
    %760 = vector.broadcast %cst_166 : f32 to vector<1x128xf32>
    %761 = arith.subf %760, %759 : vector<1x128xf32>
    %762 = arith.mulf %761, %753 : vector<1x128xf32>
    %cst_167 = arith.constant 0.000000e+00 : f32
    %763 = vector.broadcast %cst_167 : f32 to vector<1x128xf32>
    %764 = arith.mulf %759, %763 : vector<1x128xf32>
    %765 = arith.addf %762, %764 : vector<1x128xf32>
    %cst_168 = arith.constant 0.000000e+00 : f32
    %766 = vector.broadcast %cst_168 : f32 to vector<1x128xf32>
    %767 = arith.subf %766, %516 : vector<1x128xf32>
    %768 = arith.addf %767, %632 : vector<1x128xf32>
    %cst_169 = arith.constant 1.000000e-01 : f32
    %769 = vector.broadcast %cst_169 : f32 to vector<1x128xf32>
    %770 = arith.mulf %769, %768 : vector<1x128xf32>
    %771 = arith.addf %516, %770 : vector<1x128xf32>
    %cst_170 = arith.constant 8.000000e-01 : f32
    %772 = vector.broadcast %cst_170 : f32 to vector<1x128xf32>
    %773 = arith.mulf %632, %772 : vector<1x128xf32>
    %cst_171 = arith.constant 1.000000e+00 : f32
    %774 = vector.broadcast %cst_171 : f32 to vector<1x128xf32>
    %775 = arith.cmpf ogt, %771, %774 : vector<1x128xf32>
    %776 = arith.extui %775 : vector<1x128xi1> to vector<1x128xi32>
    %777 = arith.sitofp %776 : vector<1x128xi32> to vector<1x128xf32>
    %cst_172 = arith.constant 1.000000e+00 : f32
    %778 = vector.broadcast %cst_172 : f32 to vector<1x128xf32>
    %779 = arith.subf %778, %777 : vector<1x128xf32>
    %780 = arith.mulf %779, %771 : vector<1x128xf32>
    %cst_173 = arith.constant 0.000000e+00 : f32
    %781 = vector.broadcast %cst_173 : f32 to vector<1x128xf32>
    %782 = arith.mulf %777, %781 : vector<1x128xf32>
    %783 = arith.addf %780, %782 : vector<1x128xf32>
    %cst_174 = arith.constant 0.000000e+00 : f32
    %784 = vector.broadcast %cst_174 : f32 to vector<1x128xf32>
    %785 = arith.subf %784, %534 : vector<1x128xf32>
    %786 = arith.addf %785, %652 : vector<1x128xf32>
    %cst_175 = arith.constant 1.000000e-01 : f32
    %787 = vector.broadcast %cst_175 : f32 to vector<1x128xf32>
    %788 = arith.mulf %787, %786 : vector<1x128xf32>
    %789 = arith.addf %534, %788 : vector<1x128xf32>
    %cst_176 = arith.constant 8.000000e-01 : f32
    %790 = vector.broadcast %cst_176 : f32 to vector<1x128xf32>
    %791 = arith.mulf %652, %790 : vector<1x128xf32>
    %cst_177 = arith.constant 1.000000e+00 : f32
    %792 = vector.broadcast %cst_177 : f32 to vector<1x128xf32>
    %793 = arith.cmpf ogt, %789, %792 : vector<1x128xf32>
    %794 = arith.extui %793 : vector<1x128xi1> to vector<1x128xi32>
    %795 = arith.sitofp %794 : vector<1x128xi32> to vector<1x128xf32>
    %cst_178 = arith.constant 1.000000e+00 : f32
    %796 = vector.broadcast %cst_178 : f32 to vector<1x128xf32>
    %797 = arith.subf %796, %795 : vector<1x128xf32>
    %798 = arith.mulf %797, %789 : vector<1x128xf32>
    %cst_179 = arith.constant 0.000000e+00 : f32
    %799 = vector.broadcast %cst_179 : f32 to vector<1x128xf32>
    %800 = arith.mulf %795, %799 : vector<1x128xf32>
    %801 = arith.addf %798, %800 : vector<1x128xf32>
    %cst_180 = arith.constant 0.000000e+00 : f32
    %802 = vector.broadcast %cst_180 : f32 to vector<1x128xf32>
    %803 = arith.subf %802, %552 : vector<1x128xf32>
    %804 = arith.addf %803, %672 : vector<1x128xf32>
    %cst_181 = arith.constant 1.000000e-01 : f32
    %805 = vector.broadcast %cst_181 : f32 to vector<1x128xf32>
    %806 = arith.mulf %805, %804 : vector<1x128xf32>
    %807 = arith.addf %552, %806 : vector<1x128xf32>
    %cst_182 = arith.constant 8.000000e-01 : f32
    %808 = vector.broadcast %cst_182 : f32 to vector<1x128xf32>
    %809 = arith.mulf %672, %808 : vector<1x128xf32>
    %cst_183 = arith.constant 1.000000e+00 : f32
    %810 = vector.broadcast %cst_183 : f32 to vector<1x128xf32>
    %811 = arith.cmpf ogt, %807, %810 : vector<1x128xf32>
    %812 = arith.extui %811 : vector<1x128xi1> to vector<1x128xi32>
    %813 = arith.sitofp %812 : vector<1x128xi32> to vector<1x128xf32>
    %cst_184 = arith.constant 1.000000e+00 : f32
    %814 = vector.broadcast %cst_184 : f32 to vector<1x128xf32>
    %815 = arith.subf %814, %813 : vector<1x128xf32>
    %816 = arith.mulf %815, %807 : vector<1x128xf32>
    %cst_185 = arith.constant 0.000000e+00 : f32
    %817 = vector.broadcast %cst_185 : f32 to vector<1x128xf32>
    %818 = arith.mulf %813, %817 : vector<1x128xf32>
    %819 = arith.addf %816, %818 : vector<1x128xf32>
    %820 = vector.extract_strided_slice %408 {offsets = [1, 0], sizes = [1, 128], strides = [1, 1]} : vector<10x128xf32> to vector<1x128xf32>
    %821 = arith.addf %719, %820 : vector<1x128xf32>
    %822 = vector.broadcast %72 : f32 to vector<1x128xf32>
    %823 = arith.mulf %822, %456 : vector<1x128xf32>
    %824 = arith.addf %821, %823 : vector<1x128xf32>
    %825 = vector.broadcast %73 : f32 to vector<1x128xf32>
    %826 = arith.mulf %825, %474 : vector<1x128xf32>
    %827 = arith.addf %824, %826 : vector<1x128xf32>
    %828 = vector.broadcast %74 : f32 to vector<1x128xf32>
    %829 = arith.mulf %828, %492 : vector<1x128xf32>
    %830 = arith.addf %827, %829 : vector<1x128xf32>
    %831 = vector.broadcast %75 : f32 to vector<1x128xf32>
    %832 = arith.mulf %831, %510 : vector<1x128xf32>
    %833 = arith.addf %830, %832 : vector<1x128xf32>
    %834 = vector.broadcast %76 : f32 to vector<1x128xf32>
    %835 = arith.mulf %834, %528 : vector<1x128xf32>
    %836 = arith.addf %833, %835 : vector<1x128xf32>
    %837 = vector.broadcast %77 : f32 to vector<1x128xf32>
    %838 = arith.mulf %837, %546 : vector<1x128xf32>
    %839 = arith.addf %836, %838 : vector<1x128xf32>
    %840 = vector.extract_strided_slice %411 {offsets = [1, 0], sizes = [1, 128], strides = [1, 1]} : vector<10x128xf32> to vector<1x128xf32>
    %841 = arith.addf %737, %840 : vector<1x128xf32>
    %842 = vector.broadcast %78 : f32 to vector<1x128xf32>
    %843 = arith.mulf %842, %456 : vector<1x128xf32>
    %844 = arith.addf %841, %843 : vector<1x128xf32>
    %845 = vector.broadcast %79 : f32 to vector<1x128xf32>
    %846 = arith.mulf %845, %474 : vector<1x128xf32>
    %847 = arith.addf %844, %846 : vector<1x128xf32>
    %848 = vector.broadcast %80 : f32 to vector<1x128xf32>
    %849 = arith.mulf %848, %492 : vector<1x128xf32>
    %850 = arith.addf %847, %849 : vector<1x128xf32>
    %851 = vector.broadcast %81 : f32 to vector<1x128xf32>
    %852 = arith.mulf %851, %510 : vector<1x128xf32>
    %853 = arith.addf %850, %852 : vector<1x128xf32>
    %854 = vector.broadcast %82 : f32 to vector<1x128xf32>
    %855 = arith.mulf %854, %528 : vector<1x128xf32>
    %856 = arith.addf %853, %855 : vector<1x128xf32>
    %857 = vector.broadcast %83 : f32 to vector<1x128xf32>
    %858 = arith.mulf %857, %546 : vector<1x128xf32>
    %859 = arith.addf %856, %858 : vector<1x128xf32>
    %860 = vector.extract_strided_slice %414 {offsets = [1, 0], sizes = [1, 128], strides = [1, 1]} : vector<10x128xf32> to vector<1x128xf32>
    %861 = arith.addf %755, %860 : vector<1x128xf32>
    %862 = vector.broadcast %84 : f32 to vector<1x128xf32>
    %863 = arith.mulf %862, %456 : vector<1x128xf32>
    %864 = arith.addf %861, %863 : vector<1x128xf32>
    %865 = vector.broadcast %85 : f32 to vector<1x128xf32>
    %866 = arith.mulf %865, %474 : vector<1x128xf32>
    %867 = arith.addf %864, %866 : vector<1x128xf32>
    %868 = vector.broadcast %86 : f32 to vector<1x128xf32>
    %869 = arith.mulf %868, %492 : vector<1x128xf32>
    %870 = arith.addf %867, %869 : vector<1x128xf32>
    %871 = vector.broadcast %87 : f32 to vector<1x128xf32>
    %872 = arith.mulf %871, %510 : vector<1x128xf32>
    %873 = arith.addf %870, %872 : vector<1x128xf32>
    %874 = vector.broadcast %88 : f32 to vector<1x128xf32>
    %875 = arith.mulf %874, %528 : vector<1x128xf32>
    %876 = arith.addf %873, %875 : vector<1x128xf32>
    %877 = vector.broadcast %89 : f32 to vector<1x128xf32>
    %878 = arith.mulf %877, %546 : vector<1x128xf32>
    %879 = arith.addf %876, %878 : vector<1x128xf32>
    %880 = vector.extract_strided_slice %417 {offsets = [1, 0], sizes = [1, 128], strides = [1, 1]} : vector<10x128xf32> to vector<1x128xf32>
    %881 = arith.addf %773, %880 : vector<1x128xf32>
    %882 = vector.broadcast %90 : f32 to vector<1x128xf32>
    %883 = arith.mulf %882, %456 : vector<1x128xf32>
    %884 = arith.addf %881, %883 : vector<1x128xf32>
    %885 = vector.broadcast %91 : f32 to vector<1x128xf32>
    %886 = arith.mulf %885, %474 : vector<1x128xf32>
    %887 = arith.addf %884, %886 : vector<1x128xf32>
    %888 = vector.broadcast %92 : f32 to vector<1x128xf32>
    %889 = arith.mulf %888, %492 : vector<1x128xf32>
    %890 = arith.addf %887, %889 : vector<1x128xf32>
    %891 = vector.broadcast %93 : f32 to vector<1x128xf32>
    %892 = arith.mulf %891, %510 : vector<1x128xf32>
    %893 = arith.addf %890, %892 : vector<1x128xf32>
    %894 = vector.broadcast %94 : f32 to vector<1x128xf32>
    %895 = arith.mulf %894, %528 : vector<1x128xf32>
    %896 = arith.addf %893, %895 : vector<1x128xf32>
    %897 = vector.broadcast %95 : f32 to vector<1x128xf32>
    %898 = arith.mulf %897, %546 : vector<1x128xf32>
    %899 = arith.addf %896, %898 : vector<1x128xf32>
    %900 = vector.extract_strided_slice %420 {offsets = [1, 0], sizes = [1, 128], strides = [1, 1]} : vector<10x128xf32> to vector<1x128xf32>
    %901 = arith.addf %791, %900 : vector<1x128xf32>
    %902 = vector.broadcast %96 : f32 to vector<1x128xf32>
    %903 = arith.mulf %902, %456 : vector<1x128xf32>
    %904 = arith.addf %901, %903 : vector<1x128xf32>
    %905 = vector.broadcast %97 : f32 to vector<1x128xf32>
    %906 = arith.mulf %905, %474 : vector<1x128xf32>
    %907 = arith.addf %904, %906 : vector<1x128xf32>
    %908 = vector.broadcast %98 : f32 to vector<1x128xf32>
    %909 = arith.mulf %908, %492 : vector<1x128xf32>
    %910 = arith.addf %907, %909 : vector<1x128xf32>
    %911 = vector.broadcast %99 : f32 to vector<1x128xf32>
    %912 = arith.mulf %911, %510 : vector<1x128xf32>
    %913 = arith.addf %910, %912 : vector<1x128xf32>
    %914 = vector.broadcast %100 : f32 to vector<1x128xf32>
    %915 = arith.mulf %914, %528 : vector<1x128xf32>
    %916 = arith.addf %913, %915 : vector<1x128xf32>
    %917 = vector.broadcast %101 : f32 to vector<1x128xf32>
    %918 = arith.mulf %917, %546 : vector<1x128xf32>
    %919 = arith.addf %916, %918 : vector<1x128xf32>
    %920 = vector.extract_strided_slice %423 {offsets = [1, 0], sizes = [1, 128], strides = [1, 1]} : vector<10x128xf32> to vector<1x128xf32>
    %921 = arith.addf %809, %920 : vector<1x128xf32>
    %922 = vector.broadcast %102 : f32 to vector<1x128xf32>
    %923 = arith.mulf %922, %456 : vector<1x128xf32>
    %924 = arith.addf %921, %923 : vector<1x128xf32>
    %925 = vector.broadcast %103 : f32 to vector<1x128xf32>
    %926 = arith.mulf %925, %474 : vector<1x128xf32>
    %927 = arith.addf %924, %926 : vector<1x128xf32>
    %928 = vector.broadcast %104 : f32 to vector<1x128xf32>
    %929 = arith.mulf %928, %492 : vector<1x128xf32>
    %930 = arith.addf %927, %929 : vector<1x128xf32>
    %931 = vector.broadcast %105 : f32 to vector<1x128xf32>
    %932 = arith.mulf %931, %510 : vector<1x128xf32>
    %933 = arith.addf %930, %932 : vector<1x128xf32>
    %934 = vector.broadcast %106 : f32 to vector<1x128xf32>
    %935 = arith.mulf %934, %528 : vector<1x128xf32>
    %936 = arith.addf %933, %935 : vector<1x128xf32>
    %937 = vector.broadcast %107 : f32 to vector<1x128xf32>
    %938 = arith.mulf %937, %546 : vector<1x128xf32>
    %939 = arith.addf %936, %938 : vector<1x128xf32>
    %cst_186 = arith.constant 0.000000e+00 : f32
    %940 = vector.broadcast %cst_186 : f32 to vector<1x128xf32>
    %941 = arith.subf %940, %690 : vector<1x128xf32>
    %942 = arith.addf %941, %711 : vector<1x128xf32>
    %cst_187 = arith.constant 1.000000e-01 : f32
    %943 = vector.broadcast %cst_187 : f32 to vector<1x128xf32>
    %944 = arith.mulf %943, %942 : vector<1x128xf32>
    %945 = arith.addf %690, %944 : vector<1x128xf32>
    %cst_188 = arith.constant 8.000000e-01 : f32
    %946 = vector.broadcast %cst_188 : f32 to vector<1x128xf32>
    %947 = arith.mulf %711, %946 : vector<1x128xf32>
    %cst_189 = arith.constant 1.000000e+00 : f32
    %948 = vector.broadcast %cst_189 : f32 to vector<1x128xf32>
    %949 = arith.cmpf ogt, %945, %948 : vector<1x128xf32>
    %950 = arith.extui %949 : vector<1x128xi1> to vector<1x128xi32>
    %951 = arith.sitofp %950 : vector<1x128xi32> to vector<1x128xf32>
    %cst_190 = arith.constant 1.000000e+00 : f32
    %952 = vector.broadcast %cst_190 : f32 to vector<1x128xf32>
    %953 = arith.subf %952, %951 : vector<1x128xf32>
    %954 = arith.mulf %953, %945 : vector<1x128xf32>
    %cst_191 = arith.constant 0.000000e+00 : f32
    %955 = vector.broadcast %cst_191 : f32 to vector<1x128xf32>
    %956 = arith.mulf %951, %955 : vector<1x128xf32>
    %957 = arith.addf %954, %956 : vector<1x128xf32>
    %958 = vector.broadcast %114 : f32 to vector<1x128xf32>
    %959 = arith.mulf %958, %684 : vector<1x128xf32>
    %960 = arith.addf %947, %959 : vector<1x128xf32>
    %961 = vector.broadcast %108 : f32 to vector<1x128xf32>
    %962 = arith.mulf %961, %723 : vector<1x128xf32>
    %963 = arith.addf %960, %962 : vector<1x128xf32>
    %964 = vector.broadcast %109 : f32 to vector<1x128xf32>
    %965 = arith.mulf %964, %741 : vector<1x128xf32>
    %966 = arith.addf %963, %965 : vector<1x128xf32>
    %967 = vector.broadcast %110 : f32 to vector<1x128xf32>
    %968 = arith.mulf %967, %759 : vector<1x128xf32>
    %969 = arith.addf %966, %968 : vector<1x128xf32>
    %970 = vector.broadcast %111 : f32 to vector<1x128xf32>
    %971 = arith.mulf %970, %777 : vector<1x128xf32>
    %972 = arith.addf %969, %971 : vector<1x128xf32>
    %973 = vector.broadcast %112 : f32 to vector<1x128xf32>
    %974 = arith.mulf %973, %795 : vector<1x128xf32>
    %975 = arith.addf %972, %974 : vector<1x128xf32>
    %976 = vector.broadcast %113 : f32 to vector<1x128xf32>
    %977 = arith.mulf %976, %813 : vector<1x128xf32>
    %978 = arith.addf %975, %977 : vector<1x128xf32>
    %cst_192 = arith.constant 0.000000e+00 : f32
    %979 = vector.broadcast %cst_192 : f32 to vector<1x128xf32>
    %980 = arith.subf %979, %729 : vector<1x128xf32>
    %981 = arith.addf %980, %839 : vector<1x128xf32>
    %cst_193 = arith.constant 1.000000e-01 : f32
    %982 = vector.broadcast %cst_193 : f32 to vector<1x128xf32>
    %983 = arith.mulf %982, %981 : vector<1x128xf32>
    %984 = arith.addf %729, %983 : vector<1x128xf32>
    %cst_194 = arith.constant 8.000000e-01 : f32
    %985 = vector.broadcast %cst_194 : f32 to vector<1x128xf32>
    %986 = arith.mulf %839, %985 : vector<1x128xf32>
    %cst_195 = arith.constant 1.000000e+00 : f32
    %987 = vector.broadcast %cst_195 : f32 to vector<1x128xf32>
    %988 = arith.cmpf ogt, %984, %987 : vector<1x128xf32>
    %989 = arith.extui %988 : vector<1x128xi1> to vector<1x128xi32>
    %990 = arith.sitofp %989 : vector<1x128xi32> to vector<1x128xf32>
    %cst_196 = arith.constant 1.000000e+00 : f32
    %991 = vector.broadcast %cst_196 : f32 to vector<1x128xf32>
    %992 = arith.subf %991, %990 : vector<1x128xf32>
    %993 = arith.mulf %992, %984 : vector<1x128xf32>
    %cst_197 = arith.constant 0.000000e+00 : f32
    %994 = vector.broadcast %cst_197 : f32 to vector<1x128xf32>
    %995 = arith.mulf %990, %994 : vector<1x128xf32>
    %996 = arith.addf %993, %995 : vector<1x128xf32>
    %cst_198 = arith.constant 0.000000e+00 : f32
    %997 = vector.broadcast %cst_198 : f32 to vector<1x128xf32>
    %998 = arith.subf %997, %747 : vector<1x128xf32>
    %999 = arith.addf %998, %859 : vector<1x128xf32>
    %cst_199 = arith.constant 1.000000e-01 : f32
    %1000 = vector.broadcast %cst_199 : f32 to vector<1x128xf32>
    %1001 = arith.mulf %1000, %999 : vector<1x128xf32>
    %1002 = arith.addf %747, %1001 : vector<1x128xf32>
    %cst_200 = arith.constant 8.000000e-01 : f32
    %1003 = vector.broadcast %cst_200 : f32 to vector<1x128xf32>
    %1004 = arith.mulf %859, %1003 : vector<1x128xf32>
    %cst_201 = arith.constant 1.000000e+00 : f32
    %1005 = vector.broadcast %cst_201 : f32 to vector<1x128xf32>
    %1006 = arith.cmpf ogt, %1002, %1005 : vector<1x128xf32>
    %1007 = arith.extui %1006 : vector<1x128xi1> to vector<1x128xi32>
    %1008 = arith.sitofp %1007 : vector<1x128xi32> to vector<1x128xf32>
    %cst_202 = arith.constant 1.000000e+00 : f32
    %1009 = vector.broadcast %cst_202 : f32 to vector<1x128xf32>
    %1010 = arith.subf %1009, %1008 : vector<1x128xf32>
    %1011 = arith.mulf %1010, %1002 : vector<1x128xf32>
    %cst_203 = arith.constant 0.000000e+00 : f32
    %1012 = vector.broadcast %cst_203 : f32 to vector<1x128xf32>
    %1013 = arith.mulf %1008, %1012 : vector<1x128xf32>
    %1014 = arith.addf %1011, %1013 : vector<1x128xf32>
    %cst_204 = arith.constant 0.000000e+00 : f32
    %1015 = vector.broadcast %cst_204 : f32 to vector<1x128xf32>
    %1016 = arith.subf %1015, %765 : vector<1x128xf32>
    %1017 = arith.addf %1016, %879 : vector<1x128xf32>
    %cst_205 = arith.constant 1.000000e-01 : f32
    %1018 = vector.broadcast %cst_205 : f32 to vector<1x128xf32>
    %1019 = arith.mulf %1018, %1017 : vector<1x128xf32>
    %1020 = arith.addf %765, %1019 : vector<1x128xf32>
    %cst_206 = arith.constant 8.000000e-01 : f32
    %1021 = vector.broadcast %cst_206 : f32 to vector<1x128xf32>
    %1022 = arith.mulf %879, %1021 : vector<1x128xf32>
    %cst_207 = arith.constant 1.000000e+00 : f32
    %1023 = vector.broadcast %cst_207 : f32 to vector<1x128xf32>
    %1024 = arith.cmpf ogt, %1020, %1023 : vector<1x128xf32>
    %1025 = arith.extui %1024 : vector<1x128xi1> to vector<1x128xi32>
    %1026 = arith.sitofp %1025 : vector<1x128xi32> to vector<1x128xf32>
    %cst_208 = arith.constant 1.000000e+00 : f32
    %1027 = vector.broadcast %cst_208 : f32 to vector<1x128xf32>
    %1028 = arith.subf %1027, %1026 : vector<1x128xf32>
    %1029 = arith.mulf %1028, %1020 : vector<1x128xf32>
    %cst_209 = arith.constant 0.000000e+00 : f32
    %1030 = vector.broadcast %cst_209 : f32 to vector<1x128xf32>
    %1031 = arith.mulf %1026, %1030 : vector<1x128xf32>
    %1032 = arith.addf %1029, %1031 : vector<1x128xf32>
    %cst_210 = arith.constant 0.000000e+00 : f32
    %1033 = vector.broadcast %cst_210 : f32 to vector<1x128xf32>
    %1034 = arith.subf %1033, %783 : vector<1x128xf32>
    %1035 = arith.addf %1034, %899 : vector<1x128xf32>
    %cst_211 = arith.constant 1.000000e-01 : f32
    %1036 = vector.broadcast %cst_211 : f32 to vector<1x128xf32>
    %1037 = arith.mulf %1036, %1035 : vector<1x128xf32>
    %1038 = arith.addf %783, %1037 : vector<1x128xf32>
    %cst_212 = arith.constant 8.000000e-01 : f32
    %1039 = vector.broadcast %cst_212 : f32 to vector<1x128xf32>
    %1040 = arith.mulf %899, %1039 : vector<1x128xf32>
    %cst_213 = arith.constant 1.000000e+00 : f32
    %1041 = vector.broadcast %cst_213 : f32 to vector<1x128xf32>
    %1042 = arith.cmpf ogt, %1038, %1041 : vector<1x128xf32>
    %1043 = arith.extui %1042 : vector<1x128xi1> to vector<1x128xi32>
    %1044 = arith.sitofp %1043 : vector<1x128xi32> to vector<1x128xf32>
    %cst_214 = arith.constant 1.000000e+00 : f32
    %1045 = vector.broadcast %cst_214 : f32 to vector<1x128xf32>
    %1046 = arith.subf %1045, %1044 : vector<1x128xf32>
    %1047 = arith.mulf %1046, %1038 : vector<1x128xf32>
    %cst_215 = arith.constant 0.000000e+00 : f32
    %1048 = vector.broadcast %cst_215 : f32 to vector<1x128xf32>
    %1049 = arith.mulf %1044, %1048 : vector<1x128xf32>
    %1050 = arith.addf %1047, %1049 : vector<1x128xf32>
    %cst_216 = arith.constant 0.000000e+00 : f32
    %1051 = vector.broadcast %cst_216 : f32 to vector<1x128xf32>
    %1052 = arith.subf %1051, %801 : vector<1x128xf32>
    %1053 = arith.addf %1052, %919 : vector<1x128xf32>
    %cst_217 = arith.constant 1.000000e-01 : f32
    %1054 = vector.broadcast %cst_217 : f32 to vector<1x128xf32>
    %1055 = arith.mulf %1054, %1053 : vector<1x128xf32>
    %1056 = arith.addf %801, %1055 : vector<1x128xf32>
    %cst_218 = arith.constant 8.000000e-01 : f32
    %1057 = vector.broadcast %cst_218 : f32 to vector<1x128xf32>
    %1058 = arith.mulf %919, %1057 : vector<1x128xf32>
    %cst_219 = arith.constant 1.000000e+00 : f32
    %1059 = vector.broadcast %cst_219 : f32 to vector<1x128xf32>
    %1060 = arith.cmpf ogt, %1056, %1059 : vector<1x128xf32>
    %1061 = arith.extui %1060 : vector<1x128xi1> to vector<1x128xi32>
    %1062 = arith.sitofp %1061 : vector<1x128xi32> to vector<1x128xf32>
    %cst_220 = arith.constant 1.000000e+00 : f32
    %1063 = vector.broadcast %cst_220 : f32 to vector<1x128xf32>
    %1064 = arith.subf %1063, %1062 : vector<1x128xf32>
    %1065 = arith.mulf %1064, %1056 : vector<1x128xf32>
    %cst_221 = arith.constant 0.000000e+00 : f32
    %1066 = vector.broadcast %cst_221 : f32 to vector<1x128xf32>
    %1067 = arith.mulf %1062, %1066 : vector<1x128xf32>
    %1068 = arith.addf %1065, %1067 : vector<1x128xf32>
    %cst_222 = arith.constant 0.000000e+00 : f32
    %1069 = vector.broadcast %cst_222 : f32 to vector<1x128xf32>
    %1070 = arith.subf %1069, %819 : vector<1x128xf32>
    %1071 = arith.addf %1070, %939 : vector<1x128xf32>
    %cst_223 = arith.constant 1.000000e-01 : f32
    %1072 = vector.broadcast %cst_223 : f32 to vector<1x128xf32>
    %1073 = arith.mulf %1072, %1071 : vector<1x128xf32>
    %1074 = arith.addf %819, %1073 : vector<1x128xf32>
    %cst_224 = arith.constant 8.000000e-01 : f32
    %1075 = vector.broadcast %cst_224 : f32 to vector<1x128xf32>
    %1076 = arith.mulf %939, %1075 : vector<1x128xf32>
    %cst_225 = arith.constant 1.000000e+00 : f32
    %1077 = vector.broadcast %cst_225 : f32 to vector<1x128xf32>
    %1078 = arith.cmpf ogt, %1074, %1077 : vector<1x128xf32>
    %1079 = arith.extui %1078 : vector<1x128xi1> to vector<1x128xi32>
    %1080 = arith.sitofp %1079 : vector<1x128xi32> to vector<1x128xf32>
    %cst_226 = arith.constant 1.000000e+00 : f32
    %1081 = vector.broadcast %cst_226 : f32 to vector<1x128xf32>
    %1082 = arith.subf %1081, %1080 : vector<1x128xf32>
    %1083 = arith.mulf %1082, %1074 : vector<1x128xf32>
    %cst_227 = arith.constant 0.000000e+00 : f32
    %1084 = vector.broadcast %cst_227 : f32 to vector<1x128xf32>
    %1085 = arith.mulf %1080, %1084 : vector<1x128xf32>
    %1086 = arith.addf %1083, %1085 : vector<1x128xf32>
    %1087 = vector.extract_strided_slice %408 {offsets = [2, 0], sizes = [1, 128], strides = [1, 1]} : vector<10x128xf32> to vector<1x128xf32>
    %1088 = arith.addf %986, %1087 : vector<1x128xf32>
    %1089 = vector.broadcast %72 : f32 to vector<1x128xf32>
    %1090 = arith.mulf %1089, %723 : vector<1x128xf32>
    %1091 = arith.addf %1088, %1090 : vector<1x128xf32>
    %1092 = vector.broadcast %73 : f32 to vector<1x128xf32>
    %1093 = arith.mulf %1092, %741 : vector<1x128xf32>
    %1094 = arith.addf %1091, %1093 : vector<1x128xf32>
    %1095 = vector.broadcast %74 : f32 to vector<1x128xf32>
    %1096 = arith.mulf %1095, %759 : vector<1x128xf32>
    %1097 = arith.addf %1094, %1096 : vector<1x128xf32>
    %1098 = vector.broadcast %75 : f32 to vector<1x128xf32>
    %1099 = arith.mulf %1098, %777 : vector<1x128xf32>
    %1100 = arith.addf %1097, %1099 : vector<1x128xf32>
    %1101 = vector.broadcast %76 : f32 to vector<1x128xf32>
    %1102 = arith.mulf %1101, %795 : vector<1x128xf32>
    %1103 = arith.addf %1100, %1102 : vector<1x128xf32>
    %1104 = vector.broadcast %77 : f32 to vector<1x128xf32>
    %1105 = arith.mulf %1104, %813 : vector<1x128xf32>
    %1106 = arith.addf %1103, %1105 : vector<1x128xf32>
    %1107 = vector.extract_strided_slice %411 {offsets = [2, 0], sizes = [1, 128], strides = [1, 1]} : vector<10x128xf32> to vector<1x128xf32>
    %1108 = arith.addf %1004, %1107 : vector<1x128xf32>
    %1109 = vector.broadcast %78 : f32 to vector<1x128xf32>
    %1110 = arith.mulf %1109, %723 : vector<1x128xf32>
    %1111 = arith.addf %1108, %1110 : vector<1x128xf32>
    %1112 = vector.broadcast %79 : f32 to vector<1x128xf32>
    %1113 = arith.mulf %1112, %741 : vector<1x128xf32>
    %1114 = arith.addf %1111, %1113 : vector<1x128xf32>
    %1115 = vector.broadcast %80 : f32 to vector<1x128xf32>
    %1116 = arith.mulf %1115, %759 : vector<1x128xf32>
    %1117 = arith.addf %1114, %1116 : vector<1x128xf32>
    %1118 = vector.broadcast %81 : f32 to vector<1x128xf32>
    %1119 = arith.mulf %1118, %777 : vector<1x128xf32>
    %1120 = arith.addf %1117, %1119 : vector<1x128xf32>
    %1121 = vector.broadcast %82 : f32 to vector<1x128xf32>
    %1122 = arith.mulf %1121, %795 : vector<1x128xf32>
    %1123 = arith.addf %1120, %1122 : vector<1x128xf32>
    %1124 = vector.broadcast %83 : f32 to vector<1x128xf32>
    %1125 = arith.mulf %1124, %813 : vector<1x128xf32>
    %1126 = arith.addf %1123, %1125 : vector<1x128xf32>
    %1127 = vector.extract_strided_slice %414 {offsets = [2, 0], sizes = [1, 128], strides = [1, 1]} : vector<10x128xf32> to vector<1x128xf32>
    %1128 = arith.addf %1022, %1127 : vector<1x128xf32>
    %1129 = vector.broadcast %84 : f32 to vector<1x128xf32>
    %1130 = arith.mulf %1129, %723 : vector<1x128xf32>
    %1131 = arith.addf %1128, %1130 : vector<1x128xf32>
    %1132 = vector.broadcast %85 : f32 to vector<1x128xf32>
    %1133 = arith.mulf %1132, %741 : vector<1x128xf32>
    %1134 = arith.addf %1131, %1133 : vector<1x128xf32>
    %1135 = vector.broadcast %86 : f32 to vector<1x128xf32>
    %1136 = arith.mulf %1135, %759 : vector<1x128xf32>
    %1137 = arith.addf %1134, %1136 : vector<1x128xf32>
    %1138 = vector.broadcast %87 : f32 to vector<1x128xf32>
    %1139 = arith.mulf %1138, %777 : vector<1x128xf32>
    %1140 = arith.addf %1137, %1139 : vector<1x128xf32>
    %1141 = vector.broadcast %88 : f32 to vector<1x128xf32>
    %1142 = arith.mulf %1141, %795 : vector<1x128xf32>
    %1143 = arith.addf %1140, %1142 : vector<1x128xf32>
    %1144 = vector.broadcast %89 : f32 to vector<1x128xf32>
    %1145 = arith.mulf %1144, %813 : vector<1x128xf32>
    %1146 = arith.addf %1143, %1145 : vector<1x128xf32>
    %1147 = vector.extract_strided_slice %417 {offsets = [2, 0], sizes = [1, 128], strides = [1, 1]} : vector<10x128xf32> to vector<1x128xf32>
    %1148 = arith.addf %1040, %1147 : vector<1x128xf32>
    %1149 = vector.broadcast %90 : f32 to vector<1x128xf32>
    %1150 = arith.mulf %1149, %723 : vector<1x128xf32>
    %1151 = arith.addf %1148, %1150 : vector<1x128xf32>
    %1152 = vector.broadcast %91 : f32 to vector<1x128xf32>
    %1153 = arith.mulf %1152, %741 : vector<1x128xf32>
    %1154 = arith.addf %1151, %1153 : vector<1x128xf32>
    %1155 = vector.broadcast %92 : f32 to vector<1x128xf32>
    %1156 = arith.mulf %1155, %759 : vector<1x128xf32>
    %1157 = arith.addf %1154, %1156 : vector<1x128xf32>
    %1158 = vector.broadcast %93 : f32 to vector<1x128xf32>
    %1159 = arith.mulf %1158, %777 : vector<1x128xf32>
    %1160 = arith.addf %1157, %1159 : vector<1x128xf32>
    %1161 = vector.broadcast %94 : f32 to vector<1x128xf32>
    %1162 = arith.mulf %1161, %795 : vector<1x128xf32>
    %1163 = arith.addf %1160, %1162 : vector<1x128xf32>
    %1164 = vector.broadcast %95 : f32 to vector<1x128xf32>
    %1165 = arith.mulf %1164, %813 : vector<1x128xf32>
    %1166 = arith.addf %1163, %1165 : vector<1x128xf32>
    %1167 = vector.extract_strided_slice %420 {offsets = [2, 0], sizes = [1, 128], strides = [1, 1]} : vector<10x128xf32> to vector<1x128xf32>
    %1168 = arith.addf %1058, %1167 : vector<1x128xf32>
    %1169 = vector.broadcast %96 : f32 to vector<1x128xf32>
    %1170 = arith.mulf %1169, %723 : vector<1x128xf32>
    %1171 = arith.addf %1168, %1170 : vector<1x128xf32>
    %1172 = vector.broadcast %97 : f32 to vector<1x128xf32>
    %1173 = arith.mulf %1172, %741 : vector<1x128xf32>
    %1174 = arith.addf %1171, %1173 : vector<1x128xf32>
    %1175 = vector.broadcast %98 : f32 to vector<1x128xf32>
    %1176 = arith.mulf %1175, %759 : vector<1x128xf32>
    %1177 = arith.addf %1174, %1176 : vector<1x128xf32>
    %1178 = vector.broadcast %99 : f32 to vector<1x128xf32>
    %1179 = arith.mulf %1178, %777 : vector<1x128xf32>
    %1180 = arith.addf %1177, %1179 : vector<1x128xf32>
    %1181 = vector.broadcast %100 : f32 to vector<1x128xf32>
    %1182 = arith.mulf %1181, %795 : vector<1x128xf32>
    %1183 = arith.addf %1180, %1182 : vector<1x128xf32>
    %1184 = vector.broadcast %101 : f32 to vector<1x128xf32>
    %1185 = arith.mulf %1184, %813 : vector<1x128xf32>
    %1186 = arith.addf %1183, %1185 : vector<1x128xf32>
    %1187 = vector.extract_strided_slice %423 {offsets = [2, 0], sizes = [1, 128], strides = [1, 1]} : vector<10x128xf32> to vector<1x128xf32>
    %1188 = arith.addf %1076, %1187 : vector<1x128xf32>
    %1189 = vector.broadcast %102 : f32 to vector<1x128xf32>
    %1190 = arith.mulf %1189, %723 : vector<1x128xf32>
    %1191 = arith.addf %1188, %1190 : vector<1x128xf32>
    %1192 = vector.broadcast %103 : f32 to vector<1x128xf32>
    %1193 = arith.mulf %1192, %741 : vector<1x128xf32>
    %1194 = arith.addf %1191, %1193 : vector<1x128xf32>
    %1195 = vector.broadcast %104 : f32 to vector<1x128xf32>
    %1196 = arith.mulf %1195, %759 : vector<1x128xf32>
    %1197 = arith.addf %1194, %1196 : vector<1x128xf32>
    %1198 = vector.broadcast %105 : f32 to vector<1x128xf32>
    %1199 = arith.mulf %1198, %777 : vector<1x128xf32>
    %1200 = arith.addf %1197, %1199 : vector<1x128xf32>
    %1201 = vector.broadcast %106 : f32 to vector<1x128xf32>
    %1202 = arith.mulf %1201, %795 : vector<1x128xf32>
    %1203 = arith.addf %1200, %1202 : vector<1x128xf32>
    %1204 = vector.broadcast %107 : f32 to vector<1x128xf32>
    %1205 = arith.mulf %1204, %813 : vector<1x128xf32>
    %1206 = arith.addf %1203, %1205 : vector<1x128xf32>
    %cst_228 = arith.constant 0.000000e+00 : f32
    %1207 = vector.broadcast %cst_228 : f32 to vector<1x128xf32>
    %1208 = arith.subf %1207, %957 : vector<1x128xf32>
    %1209 = arith.addf %1208, %978 : vector<1x128xf32>
    %cst_229 = arith.constant 1.000000e-01 : f32
    %1210 = vector.broadcast %cst_229 : f32 to vector<1x128xf32>
    %1211 = arith.mulf %1210, %1209 : vector<1x128xf32>
    %1212 = arith.addf %957, %1211 : vector<1x128xf32>
    %cst_230 = arith.constant 8.000000e-01 : f32
    %1213 = vector.broadcast %cst_230 : f32 to vector<1x128xf32>
    %1214 = arith.mulf %978, %1213 : vector<1x128xf32>
    %cst_231 = arith.constant 1.000000e+00 : f32
    %1215 = vector.broadcast %cst_231 : f32 to vector<1x128xf32>
    %1216 = arith.cmpf ogt, %1212, %1215 : vector<1x128xf32>
    %1217 = arith.extui %1216 : vector<1x128xi1> to vector<1x128xi32>
    %1218 = arith.sitofp %1217 : vector<1x128xi32> to vector<1x128xf32>
    %cst_232 = arith.constant 1.000000e+00 : f32
    %1219 = vector.broadcast %cst_232 : f32 to vector<1x128xf32>
    %1220 = arith.subf %1219, %1218 : vector<1x128xf32>
    %1221 = arith.mulf %1220, %1212 : vector<1x128xf32>
    %cst_233 = arith.constant 0.000000e+00 : f32
    %1222 = vector.broadcast %cst_233 : f32 to vector<1x128xf32>
    %1223 = arith.mulf %1218, %1222 : vector<1x128xf32>
    %1224 = arith.addf %1221, %1223 : vector<1x128xf32>
    %1225 = vector.broadcast %114 : f32 to vector<1x128xf32>
    %1226 = arith.mulf %1225, %951 : vector<1x128xf32>
    %1227 = arith.addf %1214, %1226 : vector<1x128xf32>
    %1228 = vector.broadcast %108 : f32 to vector<1x128xf32>
    %1229 = arith.mulf %1228, %990 : vector<1x128xf32>
    %1230 = arith.addf %1227, %1229 : vector<1x128xf32>
    %1231 = vector.broadcast %109 : f32 to vector<1x128xf32>
    %1232 = arith.mulf %1231, %1008 : vector<1x128xf32>
    %1233 = arith.addf %1230, %1232 : vector<1x128xf32>
    %1234 = vector.broadcast %110 : f32 to vector<1x128xf32>
    %1235 = arith.mulf %1234, %1026 : vector<1x128xf32>
    %1236 = arith.addf %1233, %1235 : vector<1x128xf32>
    %1237 = vector.broadcast %111 : f32 to vector<1x128xf32>
    %1238 = arith.mulf %1237, %1044 : vector<1x128xf32>
    %1239 = arith.addf %1236, %1238 : vector<1x128xf32>
    %1240 = vector.broadcast %112 : f32 to vector<1x128xf32>
    %1241 = arith.mulf %1240, %1062 : vector<1x128xf32>
    %1242 = arith.addf %1239, %1241 : vector<1x128xf32>
    %1243 = vector.broadcast %113 : f32 to vector<1x128xf32>
    %1244 = arith.mulf %1243, %1080 : vector<1x128xf32>
    %1245 = arith.addf %1242, %1244 : vector<1x128xf32>
    %cst_234 = arith.constant 0.000000e+00 : f32
    %1246 = vector.broadcast %cst_234 : f32 to vector<1x128xf32>
    %1247 = arith.subf %1246, %996 : vector<1x128xf32>
    %1248 = arith.addf %1247, %1106 : vector<1x128xf32>
    %cst_235 = arith.constant 1.000000e-01 : f32
    %1249 = vector.broadcast %cst_235 : f32 to vector<1x128xf32>
    %1250 = arith.mulf %1249, %1248 : vector<1x128xf32>
    %1251 = arith.addf %996, %1250 : vector<1x128xf32>
    %cst_236 = arith.constant 8.000000e-01 : f32
    %1252 = vector.broadcast %cst_236 : f32 to vector<1x128xf32>
    %1253 = arith.mulf %1106, %1252 : vector<1x128xf32>
    %cst_237 = arith.constant 1.000000e+00 : f32
    %1254 = vector.broadcast %cst_237 : f32 to vector<1x128xf32>
    %1255 = arith.cmpf ogt, %1251, %1254 : vector<1x128xf32>
    %1256 = arith.extui %1255 : vector<1x128xi1> to vector<1x128xi32>
    %1257 = arith.sitofp %1256 : vector<1x128xi32> to vector<1x128xf32>
    %cst_238 = arith.constant 1.000000e+00 : f32
    %1258 = vector.broadcast %cst_238 : f32 to vector<1x128xf32>
    %1259 = arith.subf %1258, %1257 : vector<1x128xf32>
    %1260 = arith.mulf %1259, %1251 : vector<1x128xf32>
    %cst_239 = arith.constant 0.000000e+00 : f32
    %1261 = vector.broadcast %cst_239 : f32 to vector<1x128xf32>
    %1262 = arith.mulf %1257, %1261 : vector<1x128xf32>
    %1263 = arith.addf %1260, %1262 : vector<1x128xf32>
    %cst_240 = arith.constant 0.000000e+00 : f32
    %1264 = vector.broadcast %cst_240 : f32 to vector<1x128xf32>
    %1265 = arith.subf %1264, %1014 : vector<1x128xf32>
    %1266 = arith.addf %1265, %1126 : vector<1x128xf32>
    %cst_241 = arith.constant 1.000000e-01 : f32
    %1267 = vector.broadcast %cst_241 : f32 to vector<1x128xf32>
    %1268 = arith.mulf %1267, %1266 : vector<1x128xf32>
    %1269 = arith.addf %1014, %1268 : vector<1x128xf32>
    %cst_242 = arith.constant 8.000000e-01 : f32
    %1270 = vector.broadcast %cst_242 : f32 to vector<1x128xf32>
    %1271 = arith.mulf %1126, %1270 : vector<1x128xf32>
    %cst_243 = arith.constant 1.000000e+00 : f32
    %1272 = vector.broadcast %cst_243 : f32 to vector<1x128xf32>
    %1273 = arith.cmpf ogt, %1269, %1272 : vector<1x128xf32>
    %1274 = arith.extui %1273 : vector<1x128xi1> to vector<1x128xi32>
    %1275 = arith.sitofp %1274 : vector<1x128xi32> to vector<1x128xf32>
    %cst_244 = arith.constant 1.000000e+00 : f32
    %1276 = vector.broadcast %cst_244 : f32 to vector<1x128xf32>
    %1277 = arith.subf %1276, %1275 : vector<1x128xf32>
    %1278 = arith.mulf %1277, %1269 : vector<1x128xf32>
    %cst_245 = arith.constant 0.000000e+00 : f32
    %1279 = vector.broadcast %cst_245 : f32 to vector<1x128xf32>
    %1280 = arith.mulf %1275, %1279 : vector<1x128xf32>
    %1281 = arith.addf %1278, %1280 : vector<1x128xf32>
    %cst_246 = arith.constant 0.000000e+00 : f32
    %1282 = vector.broadcast %cst_246 : f32 to vector<1x128xf32>
    %1283 = arith.subf %1282, %1032 : vector<1x128xf32>
    %1284 = arith.addf %1283, %1146 : vector<1x128xf32>
    %cst_247 = arith.constant 1.000000e-01 : f32
    %1285 = vector.broadcast %cst_247 : f32 to vector<1x128xf32>
    %1286 = arith.mulf %1285, %1284 : vector<1x128xf32>
    %1287 = arith.addf %1032, %1286 : vector<1x128xf32>
    %cst_248 = arith.constant 8.000000e-01 : f32
    %1288 = vector.broadcast %cst_248 : f32 to vector<1x128xf32>
    %1289 = arith.mulf %1146, %1288 : vector<1x128xf32>
    %cst_249 = arith.constant 1.000000e+00 : f32
    %1290 = vector.broadcast %cst_249 : f32 to vector<1x128xf32>
    %1291 = arith.cmpf ogt, %1287, %1290 : vector<1x128xf32>
    %1292 = arith.extui %1291 : vector<1x128xi1> to vector<1x128xi32>
    %1293 = arith.sitofp %1292 : vector<1x128xi32> to vector<1x128xf32>
    %cst_250 = arith.constant 1.000000e+00 : f32
    %1294 = vector.broadcast %cst_250 : f32 to vector<1x128xf32>
    %1295 = arith.subf %1294, %1293 : vector<1x128xf32>
    %1296 = arith.mulf %1295, %1287 : vector<1x128xf32>
    %cst_251 = arith.constant 0.000000e+00 : f32
    %1297 = vector.broadcast %cst_251 : f32 to vector<1x128xf32>
    %1298 = arith.mulf %1293, %1297 : vector<1x128xf32>
    %1299 = arith.addf %1296, %1298 : vector<1x128xf32>
    %cst_252 = arith.constant 0.000000e+00 : f32
    %1300 = vector.broadcast %cst_252 : f32 to vector<1x128xf32>
    %1301 = arith.subf %1300, %1050 : vector<1x128xf32>
    %1302 = arith.addf %1301, %1166 : vector<1x128xf32>
    %cst_253 = arith.constant 1.000000e-01 : f32
    %1303 = vector.broadcast %cst_253 : f32 to vector<1x128xf32>
    %1304 = arith.mulf %1303, %1302 : vector<1x128xf32>
    %1305 = arith.addf %1050, %1304 : vector<1x128xf32>
    %cst_254 = arith.constant 8.000000e-01 : f32
    %1306 = vector.broadcast %cst_254 : f32 to vector<1x128xf32>
    %1307 = arith.mulf %1166, %1306 : vector<1x128xf32>
    %cst_255 = arith.constant 1.000000e+00 : f32
    %1308 = vector.broadcast %cst_255 : f32 to vector<1x128xf32>
    %1309 = arith.cmpf ogt, %1305, %1308 : vector<1x128xf32>
    %1310 = arith.extui %1309 : vector<1x128xi1> to vector<1x128xi32>
    %1311 = arith.sitofp %1310 : vector<1x128xi32> to vector<1x128xf32>
    %cst_256 = arith.constant 1.000000e+00 : f32
    %1312 = vector.broadcast %cst_256 : f32 to vector<1x128xf32>
    %1313 = arith.subf %1312, %1311 : vector<1x128xf32>
    %1314 = arith.mulf %1313, %1305 : vector<1x128xf32>
    %cst_257 = arith.constant 0.000000e+00 : f32
    %1315 = vector.broadcast %cst_257 : f32 to vector<1x128xf32>
    %1316 = arith.mulf %1311, %1315 : vector<1x128xf32>
    %1317 = arith.addf %1314, %1316 : vector<1x128xf32>
    %cst_258 = arith.constant 0.000000e+00 : f32
    %1318 = vector.broadcast %cst_258 : f32 to vector<1x128xf32>
    %1319 = arith.subf %1318, %1068 : vector<1x128xf32>
    %1320 = arith.addf %1319, %1186 : vector<1x128xf32>
    %cst_259 = arith.constant 1.000000e-01 : f32
    %1321 = vector.broadcast %cst_259 : f32 to vector<1x128xf32>
    %1322 = arith.mulf %1321, %1320 : vector<1x128xf32>
    %1323 = arith.addf %1068, %1322 : vector<1x128xf32>
    %cst_260 = arith.constant 8.000000e-01 : f32
    %1324 = vector.broadcast %cst_260 : f32 to vector<1x128xf32>
    %1325 = arith.mulf %1186, %1324 : vector<1x128xf32>
    %cst_261 = arith.constant 1.000000e+00 : f32
    %1326 = vector.broadcast %cst_261 : f32 to vector<1x128xf32>
    %1327 = arith.cmpf ogt, %1323, %1326 : vector<1x128xf32>
    %1328 = arith.extui %1327 : vector<1x128xi1> to vector<1x128xi32>
    %1329 = arith.sitofp %1328 : vector<1x128xi32> to vector<1x128xf32>
    %cst_262 = arith.constant 1.000000e+00 : f32
    %1330 = vector.broadcast %cst_262 : f32 to vector<1x128xf32>
    %1331 = arith.subf %1330, %1329 : vector<1x128xf32>
    %1332 = arith.mulf %1331, %1323 : vector<1x128xf32>
    %cst_263 = arith.constant 0.000000e+00 : f32
    %1333 = vector.broadcast %cst_263 : f32 to vector<1x128xf32>
    %1334 = arith.mulf %1329, %1333 : vector<1x128xf32>
    %1335 = arith.addf %1332, %1334 : vector<1x128xf32>
    %cst_264 = arith.constant 0.000000e+00 : f32
    %1336 = vector.broadcast %cst_264 : f32 to vector<1x128xf32>
    %1337 = arith.subf %1336, %1086 : vector<1x128xf32>
    %1338 = arith.addf %1337, %1206 : vector<1x128xf32>
    %cst_265 = arith.constant 1.000000e-01 : f32
    %1339 = vector.broadcast %cst_265 : f32 to vector<1x128xf32>
    %1340 = arith.mulf %1339, %1338 : vector<1x128xf32>
    %1341 = arith.addf %1086, %1340 : vector<1x128xf32>
    %cst_266 = arith.constant 8.000000e-01 : f32
    %1342 = vector.broadcast %cst_266 : f32 to vector<1x128xf32>
    %1343 = arith.mulf %1206, %1342 : vector<1x128xf32>
    %cst_267 = arith.constant 1.000000e+00 : f32
    %1344 = vector.broadcast %cst_267 : f32 to vector<1x128xf32>
    %1345 = arith.cmpf ogt, %1341, %1344 : vector<1x128xf32>
    %1346 = arith.extui %1345 : vector<1x128xi1> to vector<1x128xi32>
    %1347 = arith.sitofp %1346 : vector<1x128xi32> to vector<1x128xf32>
    %cst_268 = arith.constant 1.000000e+00 : f32
    %1348 = vector.broadcast %cst_268 : f32 to vector<1x128xf32>
    %1349 = arith.subf %1348, %1347 : vector<1x128xf32>
    %1350 = arith.mulf %1349, %1341 : vector<1x128xf32>
    %cst_269 = arith.constant 0.000000e+00 : f32
    %1351 = vector.broadcast %cst_269 : f32 to vector<1x128xf32>
    %1352 = arith.mulf %1347, %1351 : vector<1x128xf32>
    %1353 = arith.addf %1350, %1352 : vector<1x128xf32>
    %1354 = vector.extract_strided_slice %408 {offsets = [3, 0], sizes = [1, 128], strides = [1, 1]} : vector<10x128xf32> to vector<1x128xf32>
    %1355 = arith.addf %1253, %1354 : vector<1x128xf32>
    %1356 = vector.broadcast %72 : f32 to vector<1x128xf32>
    %1357 = arith.mulf %1356, %990 : vector<1x128xf32>
    %1358 = arith.addf %1355, %1357 : vector<1x128xf32>
    %1359 = vector.broadcast %73 : f32 to vector<1x128xf32>
    %1360 = arith.mulf %1359, %1008 : vector<1x128xf32>
    %1361 = arith.addf %1358, %1360 : vector<1x128xf32>
    %1362 = vector.broadcast %74 : f32 to vector<1x128xf32>
    %1363 = arith.mulf %1362, %1026 : vector<1x128xf32>
    %1364 = arith.addf %1361, %1363 : vector<1x128xf32>
    %1365 = vector.broadcast %75 : f32 to vector<1x128xf32>
    %1366 = arith.mulf %1365, %1044 : vector<1x128xf32>
    %1367 = arith.addf %1364, %1366 : vector<1x128xf32>
    %1368 = vector.broadcast %76 : f32 to vector<1x128xf32>
    %1369 = arith.mulf %1368, %1062 : vector<1x128xf32>
    %1370 = arith.addf %1367, %1369 : vector<1x128xf32>
    %1371 = vector.broadcast %77 : f32 to vector<1x128xf32>
    %1372 = arith.mulf %1371, %1080 : vector<1x128xf32>
    %1373 = arith.addf %1370, %1372 : vector<1x128xf32>
    %1374 = vector.extract_strided_slice %411 {offsets = [3, 0], sizes = [1, 128], strides = [1, 1]} : vector<10x128xf32> to vector<1x128xf32>
    %1375 = arith.addf %1271, %1374 : vector<1x128xf32>
    %1376 = vector.broadcast %78 : f32 to vector<1x128xf32>
    %1377 = arith.mulf %1376, %990 : vector<1x128xf32>
    %1378 = arith.addf %1375, %1377 : vector<1x128xf32>
    %1379 = vector.broadcast %79 : f32 to vector<1x128xf32>
    %1380 = arith.mulf %1379, %1008 : vector<1x128xf32>
    %1381 = arith.addf %1378, %1380 : vector<1x128xf32>
    %1382 = vector.broadcast %80 : f32 to vector<1x128xf32>
    %1383 = arith.mulf %1382, %1026 : vector<1x128xf32>
    %1384 = arith.addf %1381, %1383 : vector<1x128xf32>
    %1385 = vector.broadcast %81 : f32 to vector<1x128xf32>
    %1386 = arith.mulf %1385, %1044 : vector<1x128xf32>
    %1387 = arith.addf %1384, %1386 : vector<1x128xf32>
    %1388 = vector.broadcast %82 : f32 to vector<1x128xf32>
    %1389 = arith.mulf %1388, %1062 : vector<1x128xf32>
    %1390 = arith.addf %1387, %1389 : vector<1x128xf32>
    %1391 = vector.broadcast %83 : f32 to vector<1x128xf32>
    %1392 = arith.mulf %1391, %1080 : vector<1x128xf32>
    %1393 = arith.addf %1390, %1392 : vector<1x128xf32>
    %1394 = vector.extract_strided_slice %414 {offsets = [3, 0], sizes = [1, 128], strides = [1, 1]} : vector<10x128xf32> to vector<1x128xf32>
    %1395 = arith.addf %1289, %1394 : vector<1x128xf32>
    %1396 = vector.broadcast %84 : f32 to vector<1x128xf32>
    %1397 = arith.mulf %1396, %990 : vector<1x128xf32>
    %1398 = arith.addf %1395, %1397 : vector<1x128xf32>
    %1399 = vector.broadcast %85 : f32 to vector<1x128xf32>
    %1400 = arith.mulf %1399, %1008 : vector<1x128xf32>
    %1401 = arith.addf %1398, %1400 : vector<1x128xf32>
    %1402 = vector.broadcast %86 : f32 to vector<1x128xf32>
    %1403 = arith.mulf %1402, %1026 : vector<1x128xf32>
    %1404 = arith.addf %1401, %1403 : vector<1x128xf32>
    %1405 = vector.broadcast %87 : f32 to vector<1x128xf32>
    %1406 = arith.mulf %1405, %1044 : vector<1x128xf32>
    %1407 = arith.addf %1404, %1406 : vector<1x128xf32>
    %1408 = vector.broadcast %88 : f32 to vector<1x128xf32>
    %1409 = arith.mulf %1408, %1062 : vector<1x128xf32>
    %1410 = arith.addf %1407, %1409 : vector<1x128xf32>
    %1411 = vector.broadcast %89 : f32 to vector<1x128xf32>
    %1412 = arith.mulf %1411, %1080 : vector<1x128xf32>
    %1413 = arith.addf %1410, %1412 : vector<1x128xf32>
    %1414 = vector.extract_strided_slice %417 {offsets = [3, 0], sizes = [1, 128], strides = [1, 1]} : vector<10x128xf32> to vector<1x128xf32>
    %1415 = arith.addf %1307, %1414 : vector<1x128xf32>
    %1416 = vector.broadcast %90 : f32 to vector<1x128xf32>
    %1417 = arith.mulf %1416, %990 : vector<1x128xf32>
    %1418 = arith.addf %1415, %1417 : vector<1x128xf32>
    %1419 = vector.broadcast %91 : f32 to vector<1x128xf32>
    %1420 = arith.mulf %1419, %1008 : vector<1x128xf32>
    %1421 = arith.addf %1418, %1420 : vector<1x128xf32>
    %1422 = vector.broadcast %92 : f32 to vector<1x128xf32>
    %1423 = arith.mulf %1422, %1026 : vector<1x128xf32>
    %1424 = arith.addf %1421, %1423 : vector<1x128xf32>
    %1425 = vector.broadcast %93 : f32 to vector<1x128xf32>
    %1426 = arith.mulf %1425, %1044 : vector<1x128xf32>
    %1427 = arith.addf %1424, %1426 : vector<1x128xf32>
    %1428 = vector.broadcast %94 : f32 to vector<1x128xf32>
    %1429 = arith.mulf %1428, %1062 : vector<1x128xf32>
    %1430 = arith.addf %1427, %1429 : vector<1x128xf32>
    %1431 = vector.broadcast %95 : f32 to vector<1x128xf32>
    %1432 = arith.mulf %1431, %1080 : vector<1x128xf32>
    %1433 = arith.addf %1430, %1432 : vector<1x128xf32>
    %1434 = vector.extract_strided_slice %420 {offsets = [3, 0], sizes = [1, 128], strides = [1, 1]} : vector<10x128xf32> to vector<1x128xf32>
    %1435 = arith.addf %1325, %1434 : vector<1x128xf32>
    %1436 = vector.broadcast %96 : f32 to vector<1x128xf32>
    %1437 = arith.mulf %1436, %990 : vector<1x128xf32>
    %1438 = arith.addf %1435, %1437 : vector<1x128xf32>
    %1439 = vector.broadcast %97 : f32 to vector<1x128xf32>
    %1440 = arith.mulf %1439, %1008 : vector<1x128xf32>
    %1441 = arith.addf %1438, %1440 : vector<1x128xf32>
    %1442 = vector.broadcast %98 : f32 to vector<1x128xf32>
    %1443 = arith.mulf %1442, %1026 : vector<1x128xf32>
    %1444 = arith.addf %1441, %1443 : vector<1x128xf32>
    %1445 = vector.broadcast %99 : f32 to vector<1x128xf32>
    %1446 = arith.mulf %1445, %1044 : vector<1x128xf32>
    %1447 = arith.addf %1444, %1446 : vector<1x128xf32>
    %1448 = vector.broadcast %100 : f32 to vector<1x128xf32>
    %1449 = arith.mulf %1448, %1062 : vector<1x128xf32>
    %1450 = arith.addf %1447, %1449 : vector<1x128xf32>
    %1451 = vector.broadcast %101 : f32 to vector<1x128xf32>
    %1452 = arith.mulf %1451, %1080 : vector<1x128xf32>
    %1453 = arith.addf %1450, %1452 : vector<1x128xf32>
    %1454 = vector.extract_strided_slice %423 {offsets = [3, 0], sizes = [1, 128], strides = [1, 1]} : vector<10x128xf32> to vector<1x128xf32>
    %1455 = arith.addf %1343, %1454 : vector<1x128xf32>
    %1456 = vector.broadcast %102 : f32 to vector<1x128xf32>
    %1457 = arith.mulf %1456, %990 : vector<1x128xf32>
    %1458 = arith.addf %1455, %1457 : vector<1x128xf32>
    %1459 = vector.broadcast %103 : f32 to vector<1x128xf32>
    %1460 = arith.mulf %1459, %1008 : vector<1x128xf32>
    %1461 = arith.addf %1458, %1460 : vector<1x128xf32>
    %1462 = vector.broadcast %104 : f32 to vector<1x128xf32>
    %1463 = arith.mulf %1462, %1026 : vector<1x128xf32>
    %1464 = arith.addf %1461, %1463 : vector<1x128xf32>
    %1465 = vector.broadcast %105 : f32 to vector<1x128xf32>
    %1466 = arith.mulf %1465, %1044 : vector<1x128xf32>
    %1467 = arith.addf %1464, %1466 : vector<1x128xf32>
    %1468 = vector.broadcast %106 : f32 to vector<1x128xf32>
    %1469 = arith.mulf %1468, %1062 : vector<1x128xf32>
    %1470 = arith.addf %1467, %1469 : vector<1x128xf32>
    %1471 = vector.broadcast %107 : f32 to vector<1x128xf32>
    %1472 = arith.mulf %1471, %1080 : vector<1x128xf32>
    %1473 = arith.addf %1470, %1472 : vector<1x128xf32>
    %cst_270 = arith.constant 0.000000e+00 : f32
    %1474 = vector.broadcast %cst_270 : f32 to vector<1x128xf32>
    %1475 = arith.subf %1474, %1224 : vector<1x128xf32>
    %1476 = arith.addf %1475, %1245 : vector<1x128xf32>
    %cst_271 = arith.constant 1.000000e-01 : f32
    %1477 = vector.broadcast %cst_271 : f32 to vector<1x128xf32>
    %1478 = arith.mulf %1477, %1476 : vector<1x128xf32>
    %1479 = arith.addf %1224, %1478 : vector<1x128xf32>
    %cst_272 = arith.constant 8.000000e-01 : f32
    %1480 = vector.broadcast %cst_272 : f32 to vector<1x128xf32>
    %1481 = arith.mulf %1245, %1480 : vector<1x128xf32>
    %cst_273 = arith.constant 1.000000e+00 : f32
    %1482 = vector.broadcast %cst_273 : f32 to vector<1x128xf32>
    %1483 = arith.cmpf ogt, %1479, %1482 : vector<1x128xf32>
    %1484 = arith.extui %1483 : vector<1x128xi1> to vector<1x128xi32>
    %1485 = arith.sitofp %1484 : vector<1x128xi32> to vector<1x128xf32>
    %cst_274 = arith.constant 1.000000e+00 : f32
    %1486 = vector.broadcast %cst_274 : f32 to vector<1x128xf32>
    %1487 = arith.subf %1486, %1485 : vector<1x128xf32>
    %1488 = arith.mulf %1487, %1479 : vector<1x128xf32>
    %cst_275 = arith.constant 0.000000e+00 : f32
    %1489 = vector.broadcast %cst_275 : f32 to vector<1x128xf32>
    %1490 = arith.mulf %1485, %1489 : vector<1x128xf32>
    %1491 = arith.addf %1488, %1490 : vector<1x128xf32>
    %1492 = vector.broadcast %114 : f32 to vector<1x128xf32>
    %1493 = arith.mulf %1492, %1218 : vector<1x128xf32>
    %1494 = arith.addf %1481, %1493 : vector<1x128xf32>
    %1495 = vector.broadcast %108 : f32 to vector<1x128xf32>
    %1496 = arith.mulf %1495, %1257 : vector<1x128xf32>
    %1497 = arith.addf %1494, %1496 : vector<1x128xf32>
    %1498 = vector.broadcast %109 : f32 to vector<1x128xf32>
    %1499 = arith.mulf %1498, %1275 : vector<1x128xf32>
    %1500 = arith.addf %1497, %1499 : vector<1x128xf32>
    %1501 = vector.broadcast %110 : f32 to vector<1x128xf32>
    %1502 = arith.mulf %1501, %1293 : vector<1x128xf32>
    %1503 = arith.addf %1500, %1502 : vector<1x128xf32>
    %1504 = vector.broadcast %111 : f32 to vector<1x128xf32>
    %1505 = arith.mulf %1504, %1311 : vector<1x128xf32>
    %1506 = arith.addf %1503, %1505 : vector<1x128xf32>
    %1507 = vector.broadcast %112 : f32 to vector<1x128xf32>
    %1508 = arith.mulf %1507, %1329 : vector<1x128xf32>
    %1509 = arith.addf %1506, %1508 : vector<1x128xf32>
    %1510 = vector.broadcast %113 : f32 to vector<1x128xf32>
    %1511 = arith.mulf %1510, %1347 : vector<1x128xf32>
    %1512 = arith.addf %1509, %1511 : vector<1x128xf32>
    %cst_276 = arith.constant 0.000000e+00 : f32
    %1513 = vector.broadcast %cst_276 : f32 to vector<1x128xf32>
    %1514 = arith.subf %1513, %1263 : vector<1x128xf32>
    %1515 = arith.addf %1514, %1373 : vector<1x128xf32>
    %cst_277 = arith.constant 1.000000e-01 : f32
    %1516 = vector.broadcast %cst_277 : f32 to vector<1x128xf32>
    %1517 = arith.mulf %1516, %1515 : vector<1x128xf32>
    %1518 = arith.addf %1263, %1517 : vector<1x128xf32>
    %cst_278 = arith.constant 8.000000e-01 : f32
    %1519 = vector.broadcast %cst_278 : f32 to vector<1x128xf32>
    %1520 = arith.mulf %1373, %1519 : vector<1x128xf32>
    %cst_279 = arith.constant 1.000000e+00 : f32
    %1521 = vector.broadcast %cst_279 : f32 to vector<1x128xf32>
    %1522 = arith.cmpf ogt, %1518, %1521 : vector<1x128xf32>
    %1523 = arith.extui %1522 : vector<1x128xi1> to vector<1x128xi32>
    %1524 = arith.sitofp %1523 : vector<1x128xi32> to vector<1x128xf32>
    %cst_280 = arith.constant 1.000000e+00 : f32
    %1525 = vector.broadcast %cst_280 : f32 to vector<1x128xf32>
    %1526 = arith.subf %1525, %1524 : vector<1x128xf32>
    %1527 = arith.mulf %1526, %1518 : vector<1x128xf32>
    %cst_281 = arith.constant 0.000000e+00 : f32
    %1528 = vector.broadcast %cst_281 : f32 to vector<1x128xf32>
    %1529 = arith.mulf %1524, %1528 : vector<1x128xf32>
    %1530 = arith.addf %1527, %1529 : vector<1x128xf32>
    %cst_282 = arith.constant 0.000000e+00 : f32
    %1531 = vector.broadcast %cst_282 : f32 to vector<1x128xf32>
    %1532 = arith.subf %1531, %1281 : vector<1x128xf32>
    %1533 = arith.addf %1532, %1393 : vector<1x128xf32>
    %cst_283 = arith.constant 1.000000e-01 : f32
    %1534 = vector.broadcast %cst_283 : f32 to vector<1x128xf32>
    %1535 = arith.mulf %1534, %1533 : vector<1x128xf32>
    %1536 = arith.addf %1281, %1535 : vector<1x128xf32>
    %cst_284 = arith.constant 8.000000e-01 : f32
    %1537 = vector.broadcast %cst_284 : f32 to vector<1x128xf32>
    %1538 = arith.mulf %1393, %1537 : vector<1x128xf32>
    %cst_285 = arith.constant 1.000000e+00 : f32
    %1539 = vector.broadcast %cst_285 : f32 to vector<1x128xf32>
    %1540 = arith.cmpf ogt, %1536, %1539 : vector<1x128xf32>
    %1541 = arith.extui %1540 : vector<1x128xi1> to vector<1x128xi32>
    %1542 = arith.sitofp %1541 : vector<1x128xi32> to vector<1x128xf32>
    %cst_286 = arith.constant 1.000000e+00 : f32
    %1543 = vector.broadcast %cst_286 : f32 to vector<1x128xf32>
    %1544 = arith.subf %1543, %1542 : vector<1x128xf32>
    %1545 = arith.mulf %1544, %1536 : vector<1x128xf32>
    %cst_287 = arith.constant 0.000000e+00 : f32
    %1546 = vector.broadcast %cst_287 : f32 to vector<1x128xf32>
    %1547 = arith.mulf %1542, %1546 : vector<1x128xf32>
    %1548 = arith.addf %1545, %1547 : vector<1x128xf32>
    %cst_288 = arith.constant 0.000000e+00 : f32
    %1549 = vector.broadcast %cst_288 : f32 to vector<1x128xf32>
    %1550 = arith.subf %1549, %1299 : vector<1x128xf32>
    %1551 = arith.addf %1550, %1413 : vector<1x128xf32>
    %cst_289 = arith.constant 1.000000e-01 : f32
    %1552 = vector.broadcast %cst_289 : f32 to vector<1x128xf32>
    %1553 = arith.mulf %1552, %1551 : vector<1x128xf32>
    %1554 = arith.addf %1299, %1553 : vector<1x128xf32>
    %cst_290 = arith.constant 8.000000e-01 : f32
    %1555 = vector.broadcast %cst_290 : f32 to vector<1x128xf32>
    %1556 = arith.mulf %1413, %1555 : vector<1x128xf32>
    %cst_291 = arith.constant 1.000000e+00 : f32
    %1557 = vector.broadcast %cst_291 : f32 to vector<1x128xf32>
    %1558 = arith.cmpf ogt, %1554, %1557 : vector<1x128xf32>
    %1559 = arith.extui %1558 : vector<1x128xi1> to vector<1x128xi32>
    %1560 = arith.sitofp %1559 : vector<1x128xi32> to vector<1x128xf32>
    %cst_292 = arith.constant 1.000000e+00 : f32
    %1561 = vector.broadcast %cst_292 : f32 to vector<1x128xf32>
    %1562 = arith.subf %1561, %1560 : vector<1x128xf32>
    %1563 = arith.mulf %1562, %1554 : vector<1x128xf32>
    %cst_293 = arith.constant 0.000000e+00 : f32
    %1564 = vector.broadcast %cst_293 : f32 to vector<1x128xf32>
    %1565 = arith.mulf %1560, %1564 : vector<1x128xf32>
    %1566 = arith.addf %1563, %1565 : vector<1x128xf32>
    %cst_294 = arith.constant 0.000000e+00 : f32
    %1567 = vector.broadcast %cst_294 : f32 to vector<1x128xf32>
    %1568 = arith.subf %1567, %1317 : vector<1x128xf32>
    %1569 = arith.addf %1568, %1433 : vector<1x128xf32>
    %cst_295 = arith.constant 1.000000e-01 : f32
    %1570 = vector.broadcast %cst_295 : f32 to vector<1x128xf32>
    %1571 = arith.mulf %1570, %1569 : vector<1x128xf32>
    %1572 = arith.addf %1317, %1571 : vector<1x128xf32>
    %cst_296 = arith.constant 8.000000e-01 : f32
    %1573 = vector.broadcast %cst_296 : f32 to vector<1x128xf32>
    %1574 = arith.mulf %1433, %1573 : vector<1x128xf32>
    %cst_297 = arith.constant 1.000000e+00 : f32
    %1575 = vector.broadcast %cst_297 : f32 to vector<1x128xf32>
    %1576 = arith.cmpf ogt, %1572, %1575 : vector<1x128xf32>
    %1577 = arith.extui %1576 : vector<1x128xi1> to vector<1x128xi32>
    %1578 = arith.sitofp %1577 : vector<1x128xi32> to vector<1x128xf32>
    %cst_298 = arith.constant 1.000000e+00 : f32
    %1579 = vector.broadcast %cst_298 : f32 to vector<1x128xf32>
    %1580 = arith.subf %1579, %1578 : vector<1x128xf32>
    %1581 = arith.mulf %1580, %1572 : vector<1x128xf32>
    %cst_299 = arith.constant 0.000000e+00 : f32
    %1582 = vector.broadcast %cst_299 : f32 to vector<1x128xf32>
    %1583 = arith.mulf %1578, %1582 : vector<1x128xf32>
    %1584 = arith.addf %1581, %1583 : vector<1x128xf32>
    %cst_300 = arith.constant 0.000000e+00 : f32
    %1585 = vector.broadcast %cst_300 : f32 to vector<1x128xf32>
    %1586 = arith.subf %1585, %1335 : vector<1x128xf32>
    %1587 = arith.addf %1586, %1453 : vector<1x128xf32>
    %cst_301 = arith.constant 1.000000e-01 : f32
    %1588 = vector.broadcast %cst_301 : f32 to vector<1x128xf32>
    %1589 = arith.mulf %1588, %1587 : vector<1x128xf32>
    %1590 = arith.addf %1335, %1589 : vector<1x128xf32>
    %cst_302 = arith.constant 8.000000e-01 : f32
    %1591 = vector.broadcast %cst_302 : f32 to vector<1x128xf32>
    %1592 = arith.mulf %1453, %1591 : vector<1x128xf32>
    %cst_303 = arith.constant 1.000000e+00 : f32
    %1593 = vector.broadcast %cst_303 : f32 to vector<1x128xf32>
    %1594 = arith.cmpf ogt, %1590, %1593 : vector<1x128xf32>
    %1595 = arith.extui %1594 : vector<1x128xi1> to vector<1x128xi32>
    %1596 = arith.sitofp %1595 : vector<1x128xi32> to vector<1x128xf32>
    %cst_304 = arith.constant 1.000000e+00 : f32
    %1597 = vector.broadcast %cst_304 : f32 to vector<1x128xf32>
    %1598 = arith.subf %1597, %1596 : vector<1x128xf32>
    %1599 = arith.mulf %1598, %1590 : vector<1x128xf32>
    %cst_305 = arith.constant 0.000000e+00 : f32
    %1600 = vector.broadcast %cst_305 : f32 to vector<1x128xf32>
    %1601 = arith.mulf %1596, %1600 : vector<1x128xf32>
    %1602 = arith.addf %1599, %1601 : vector<1x128xf32>
    %cst_306 = arith.constant 0.000000e+00 : f32
    %1603 = vector.broadcast %cst_306 : f32 to vector<1x128xf32>
    %1604 = arith.subf %1603, %1353 : vector<1x128xf32>
    %1605 = arith.addf %1604, %1473 : vector<1x128xf32>
    %cst_307 = arith.constant 1.000000e-01 : f32
    %1606 = vector.broadcast %cst_307 : f32 to vector<1x128xf32>
    %1607 = arith.mulf %1606, %1605 : vector<1x128xf32>
    %1608 = arith.addf %1353, %1607 : vector<1x128xf32>
    %cst_308 = arith.constant 8.000000e-01 : f32
    %1609 = vector.broadcast %cst_308 : f32 to vector<1x128xf32>
    %1610 = arith.mulf %1473, %1609 : vector<1x128xf32>
    %cst_309 = arith.constant 1.000000e+00 : f32
    %1611 = vector.broadcast %cst_309 : f32 to vector<1x128xf32>
    %1612 = arith.cmpf ogt, %1608, %1611 : vector<1x128xf32>
    %1613 = arith.extui %1612 : vector<1x128xi1> to vector<1x128xi32>
    %1614 = arith.sitofp %1613 : vector<1x128xi32> to vector<1x128xf32>
    %cst_310 = arith.constant 1.000000e+00 : f32
    %1615 = vector.broadcast %cst_310 : f32 to vector<1x128xf32>
    %1616 = arith.subf %1615, %1614 : vector<1x128xf32>
    %1617 = arith.mulf %1616, %1608 : vector<1x128xf32>
    %cst_311 = arith.constant 0.000000e+00 : f32
    %1618 = vector.broadcast %cst_311 : f32 to vector<1x128xf32>
    %1619 = arith.mulf %1614, %1618 : vector<1x128xf32>
    %1620 = arith.addf %1617, %1619 : vector<1x128xf32>
    %1621 = vector.extract_strided_slice %408 {offsets = [4, 0], sizes = [1, 128], strides = [1, 1]} : vector<10x128xf32> to vector<1x128xf32>
    %1622 = arith.addf %1520, %1621 : vector<1x128xf32>
    %1623 = vector.broadcast %72 : f32 to vector<1x128xf32>
    %1624 = arith.mulf %1623, %1257 : vector<1x128xf32>
    %1625 = arith.addf %1622, %1624 : vector<1x128xf32>
    %1626 = vector.broadcast %73 : f32 to vector<1x128xf32>
    %1627 = arith.mulf %1626, %1275 : vector<1x128xf32>
    %1628 = arith.addf %1625, %1627 : vector<1x128xf32>
    %1629 = vector.broadcast %74 : f32 to vector<1x128xf32>
    %1630 = arith.mulf %1629, %1293 : vector<1x128xf32>
    %1631 = arith.addf %1628, %1630 : vector<1x128xf32>
    %1632 = vector.broadcast %75 : f32 to vector<1x128xf32>
    %1633 = arith.mulf %1632, %1311 : vector<1x128xf32>
    %1634 = arith.addf %1631, %1633 : vector<1x128xf32>
    %1635 = vector.broadcast %76 : f32 to vector<1x128xf32>
    %1636 = arith.mulf %1635, %1329 : vector<1x128xf32>
    %1637 = arith.addf %1634, %1636 : vector<1x128xf32>
    %1638 = vector.broadcast %77 : f32 to vector<1x128xf32>
    %1639 = arith.mulf %1638, %1347 : vector<1x128xf32>
    %1640 = arith.addf %1637, %1639 : vector<1x128xf32>
    %1641 = vector.extract_strided_slice %411 {offsets = [4, 0], sizes = [1, 128], strides = [1, 1]} : vector<10x128xf32> to vector<1x128xf32>
    %1642 = arith.addf %1538, %1641 : vector<1x128xf32>
    %1643 = vector.broadcast %78 : f32 to vector<1x128xf32>
    %1644 = arith.mulf %1643, %1257 : vector<1x128xf32>
    %1645 = arith.addf %1642, %1644 : vector<1x128xf32>
    %1646 = vector.broadcast %79 : f32 to vector<1x128xf32>
    %1647 = arith.mulf %1646, %1275 : vector<1x128xf32>
    %1648 = arith.addf %1645, %1647 : vector<1x128xf32>
    %1649 = vector.broadcast %80 : f32 to vector<1x128xf32>
    %1650 = arith.mulf %1649, %1293 : vector<1x128xf32>
    %1651 = arith.addf %1648, %1650 : vector<1x128xf32>
    %1652 = vector.broadcast %81 : f32 to vector<1x128xf32>
    %1653 = arith.mulf %1652, %1311 : vector<1x128xf32>
    %1654 = arith.addf %1651, %1653 : vector<1x128xf32>
    %1655 = vector.broadcast %82 : f32 to vector<1x128xf32>
    %1656 = arith.mulf %1655, %1329 : vector<1x128xf32>
    %1657 = arith.addf %1654, %1656 : vector<1x128xf32>
    %1658 = vector.broadcast %83 : f32 to vector<1x128xf32>
    %1659 = arith.mulf %1658, %1347 : vector<1x128xf32>
    %1660 = arith.addf %1657, %1659 : vector<1x128xf32>
    %1661 = vector.extract_strided_slice %414 {offsets = [4, 0], sizes = [1, 128], strides = [1, 1]} : vector<10x128xf32> to vector<1x128xf32>
    %1662 = arith.addf %1556, %1661 : vector<1x128xf32>
    %1663 = vector.broadcast %84 : f32 to vector<1x128xf32>
    %1664 = arith.mulf %1663, %1257 : vector<1x128xf32>
    %1665 = arith.addf %1662, %1664 : vector<1x128xf32>
    %1666 = vector.broadcast %85 : f32 to vector<1x128xf32>
    %1667 = arith.mulf %1666, %1275 : vector<1x128xf32>
    %1668 = arith.addf %1665, %1667 : vector<1x128xf32>
    %1669 = vector.broadcast %86 : f32 to vector<1x128xf32>
    %1670 = arith.mulf %1669, %1293 : vector<1x128xf32>
    %1671 = arith.addf %1668, %1670 : vector<1x128xf32>
    %1672 = vector.broadcast %87 : f32 to vector<1x128xf32>
    %1673 = arith.mulf %1672, %1311 : vector<1x128xf32>
    %1674 = arith.addf %1671, %1673 : vector<1x128xf32>
    %1675 = vector.broadcast %88 : f32 to vector<1x128xf32>
    %1676 = arith.mulf %1675, %1329 : vector<1x128xf32>
    %1677 = arith.addf %1674, %1676 : vector<1x128xf32>
    %1678 = vector.broadcast %89 : f32 to vector<1x128xf32>
    %1679 = arith.mulf %1678, %1347 : vector<1x128xf32>
    %1680 = arith.addf %1677, %1679 : vector<1x128xf32>
    %1681 = vector.extract_strided_slice %417 {offsets = [4, 0], sizes = [1, 128], strides = [1, 1]} : vector<10x128xf32> to vector<1x128xf32>
    %1682 = arith.addf %1574, %1681 : vector<1x128xf32>
    %1683 = vector.broadcast %90 : f32 to vector<1x128xf32>
    %1684 = arith.mulf %1683, %1257 : vector<1x128xf32>
    %1685 = arith.addf %1682, %1684 : vector<1x128xf32>
    %1686 = vector.broadcast %91 : f32 to vector<1x128xf32>
    %1687 = arith.mulf %1686, %1275 : vector<1x128xf32>
    %1688 = arith.addf %1685, %1687 : vector<1x128xf32>
    %1689 = vector.broadcast %92 : f32 to vector<1x128xf32>
    %1690 = arith.mulf %1689, %1293 : vector<1x128xf32>
    %1691 = arith.addf %1688, %1690 : vector<1x128xf32>
    %1692 = vector.broadcast %93 : f32 to vector<1x128xf32>
    %1693 = arith.mulf %1692, %1311 : vector<1x128xf32>
    %1694 = arith.addf %1691, %1693 : vector<1x128xf32>
    %1695 = vector.broadcast %94 : f32 to vector<1x128xf32>
    %1696 = arith.mulf %1695, %1329 : vector<1x128xf32>
    %1697 = arith.addf %1694, %1696 : vector<1x128xf32>
    %1698 = vector.broadcast %95 : f32 to vector<1x128xf32>
    %1699 = arith.mulf %1698, %1347 : vector<1x128xf32>
    %1700 = arith.addf %1697, %1699 : vector<1x128xf32>
    %1701 = vector.extract_strided_slice %420 {offsets = [4, 0], sizes = [1, 128], strides = [1, 1]} : vector<10x128xf32> to vector<1x128xf32>
    %1702 = arith.addf %1592, %1701 : vector<1x128xf32>
    %1703 = vector.broadcast %96 : f32 to vector<1x128xf32>
    %1704 = arith.mulf %1703, %1257 : vector<1x128xf32>
    %1705 = arith.addf %1702, %1704 : vector<1x128xf32>
    %1706 = vector.broadcast %97 : f32 to vector<1x128xf32>
    %1707 = arith.mulf %1706, %1275 : vector<1x128xf32>
    %1708 = arith.addf %1705, %1707 : vector<1x128xf32>
    %1709 = vector.broadcast %98 : f32 to vector<1x128xf32>
    %1710 = arith.mulf %1709, %1293 : vector<1x128xf32>
    %1711 = arith.addf %1708, %1710 : vector<1x128xf32>
    %1712 = vector.broadcast %99 : f32 to vector<1x128xf32>
    %1713 = arith.mulf %1712, %1311 : vector<1x128xf32>
    %1714 = arith.addf %1711, %1713 : vector<1x128xf32>
    %1715 = vector.broadcast %100 : f32 to vector<1x128xf32>
    %1716 = arith.mulf %1715, %1329 : vector<1x128xf32>
    %1717 = arith.addf %1714, %1716 : vector<1x128xf32>
    %1718 = vector.broadcast %101 : f32 to vector<1x128xf32>
    %1719 = arith.mulf %1718, %1347 : vector<1x128xf32>
    %1720 = arith.addf %1717, %1719 : vector<1x128xf32>
    %1721 = vector.extract_strided_slice %423 {offsets = [4, 0], sizes = [1, 128], strides = [1, 1]} : vector<10x128xf32> to vector<1x128xf32>
    %1722 = arith.addf %1610, %1721 : vector<1x128xf32>
    %1723 = vector.broadcast %102 : f32 to vector<1x128xf32>
    %1724 = arith.mulf %1723, %1257 : vector<1x128xf32>
    %1725 = arith.addf %1722, %1724 : vector<1x128xf32>
    %1726 = vector.broadcast %103 : f32 to vector<1x128xf32>
    %1727 = arith.mulf %1726, %1275 : vector<1x128xf32>
    %1728 = arith.addf %1725, %1727 : vector<1x128xf32>
    %1729 = vector.broadcast %104 : f32 to vector<1x128xf32>
    %1730 = arith.mulf %1729, %1293 : vector<1x128xf32>
    %1731 = arith.addf %1728, %1730 : vector<1x128xf32>
    %1732 = vector.broadcast %105 : f32 to vector<1x128xf32>
    %1733 = arith.mulf %1732, %1311 : vector<1x128xf32>
    %1734 = arith.addf %1731, %1733 : vector<1x128xf32>
    %1735 = vector.broadcast %106 : f32 to vector<1x128xf32>
    %1736 = arith.mulf %1735, %1329 : vector<1x128xf32>
    %1737 = arith.addf %1734, %1736 : vector<1x128xf32>
    %1738 = vector.broadcast %107 : f32 to vector<1x128xf32>
    %1739 = arith.mulf %1738, %1347 : vector<1x128xf32>
    %1740 = arith.addf %1737, %1739 : vector<1x128xf32>
    %cst_312 = arith.constant 0.000000e+00 : f32
    %1741 = vector.broadcast %cst_312 : f32 to vector<1x128xf32>
    %1742 = arith.subf %1741, %1491 : vector<1x128xf32>
    %1743 = arith.addf %1742, %1512 : vector<1x128xf32>
    %cst_313 = arith.constant 1.000000e-01 : f32
    %1744 = vector.broadcast %cst_313 : f32 to vector<1x128xf32>
    %1745 = arith.mulf %1744, %1743 : vector<1x128xf32>
    %1746 = arith.addf %1491, %1745 : vector<1x128xf32>
    %cst_314 = arith.constant 8.000000e-01 : f32
    %1747 = vector.broadcast %cst_314 : f32 to vector<1x128xf32>
    %1748 = arith.mulf %1512, %1747 : vector<1x128xf32>
    %cst_315 = arith.constant 1.000000e+00 : f32
    %1749 = vector.broadcast %cst_315 : f32 to vector<1x128xf32>
    %1750 = arith.cmpf ogt, %1746, %1749 : vector<1x128xf32>
    %1751 = arith.extui %1750 : vector<1x128xi1> to vector<1x128xi32>
    %1752 = arith.sitofp %1751 : vector<1x128xi32> to vector<1x128xf32>
    %cst_316 = arith.constant 1.000000e+00 : f32
    %1753 = vector.broadcast %cst_316 : f32 to vector<1x128xf32>
    %1754 = arith.subf %1753, %1752 : vector<1x128xf32>
    %1755 = arith.mulf %1754, %1746 : vector<1x128xf32>
    %cst_317 = arith.constant 0.000000e+00 : f32
    %1756 = vector.broadcast %cst_317 : f32 to vector<1x128xf32>
    %1757 = arith.mulf %1752, %1756 : vector<1x128xf32>
    %1758 = arith.addf %1755, %1757 : vector<1x128xf32>
    %1759 = vector.broadcast %114 : f32 to vector<1x128xf32>
    %1760 = arith.mulf %1759, %1485 : vector<1x128xf32>
    %1761 = arith.addf %1748, %1760 : vector<1x128xf32>
    %1762 = vector.broadcast %108 : f32 to vector<1x128xf32>
    %1763 = arith.mulf %1762, %1524 : vector<1x128xf32>
    %1764 = arith.addf %1761, %1763 : vector<1x128xf32>
    %1765 = vector.broadcast %109 : f32 to vector<1x128xf32>
    %1766 = arith.mulf %1765, %1542 : vector<1x128xf32>
    %1767 = arith.addf %1764, %1766 : vector<1x128xf32>
    %1768 = vector.broadcast %110 : f32 to vector<1x128xf32>
    %1769 = arith.mulf %1768, %1560 : vector<1x128xf32>
    %1770 = arith.addf %1767, %1769 : vector<1x128xf32>
    %1771 = vector.broadcast %111 : f32 to vector<1x128xf32>
    %1772 = arith.mulf %1771, %1578 : vector<1x128xf32>
    %1773 = arith.addf %1770, %1772 : vector<1x128xf32>
    %1774 = vector.broadcast %112 : f32 to vector<1x128xf32>
    %1775 = arith.mulf %1774, %1596 : vector<1x128xf32>
    %1776 = arith.addf %1773, %1775 : vector<1x128xf32>
    %1777 = vector.broadcast %113 : f32 to vector<1x128xf32>
    %1778 = arith.mulf %1777, %1614 : vector<1x128xf32>
    %1779 = arith.addf %1776, %1778 : vector<1x128xf32>
    %cst_318 = arith.constant 0.000000e+00 : f32
    %1780 = vector.broadcast %cst_318 : f32 to vector<1x128xf32>
    %1781 = arith.subf %1780, %1530 : vector<1x128xf32>
    %1782 = arith.addf %1781, %1640 : vector<1x128xf32>
    %cst_319 = arith.constant 1.000000e-01 : f32
    %1783 = vector.broadcast %cst_319 : f32 to vector<1x128xf32>
    %1784 = arith.mulf %1783, %1782 : vector<1x128xf32>
    %1785 = arith.addf %1530, %1784 : vector<1x128xf32>
    %cst_320 = arith.constant 8.000000e-01 : f32
    %1786 = vector.broadcast %cst_320 : f32 to vector<1x128xf32>
    %1787 = arith.mulf %1640, %1786 : vector<1x128xf32>
    %cst_321 = arith.constant 1.000000e+00 : f32
    %1788 = vector.broadcast %cst_321 : f32 to vector<1x128xf32>
    %1789 = arith.cmpf ogt, %1785, %1788 : vector<1x128xf32>
    %1790 = arith.extui %1789 : vector<1x128xi1> to vector<1x128xi32>
    %1791 = arith.sitofp %1790 : vector<1x128xi32> to vector<1x128xf32>
    %cst_322 = arith.constant 1.000000e+00 : f32
    %1792 = vector.broadcast %cst_322 : f32 to vector<1x128xf32>
    %1793 = arith.subf %1792, %1791 : vector<1x128xf32>
    %1794 = arith.mulf %1793, %1785 : vector<1x128xf32>
    %cst_323 = arith.constant 0.000000e+00 : f32
    %1795 = vector.broadcast %cst_323 : f32 to vector<1x128xf32>
    %1796 = arith.mulf %1791, %1795 : vector<1x128xf32>
    %1797 = arith.addf %1794, %1796 : vector<1x128xf32>
    %cst_324 = arith.constant 0.000000e+00 : f32
    %1798 = vector.broadcast %cst_324 : f32 to vector<1x128xf32>
    %1799 = arith.subf %1798, %1548 : vector<1x128xf32>
    %1800 = arith.addf %1799, %1660 : vector<1x128xf32>
    %cst_325 = arith.constant 1.000000e-01 : f32
    %1801 = vector.broadcast %cst_325 : f32 to vector<1x128xf32>
    %1802 = arith.mulf %1801, %1800 : vector<1x128xf32>
    %1803 = arith.addf %1548, %1802 : vector<1x128xf32>
    %cst_326 = arith.constant 8.000000e-01 : f32
    %1804 = vector.broadcast %cst_326 : f32 to vector<1x128xf32>
    %1805 = arith.mulf %1660, %1804 : vector<1x128xf32>
    %cst_327 = arith.constant 1.000000e+00 : f32
    %1806 = vector.broadcast %cst_327 : f32 to vector<1x128xf32>
    %1807 = arith.cmpf ogt, %1803, %1806 : vector<1x128xf32>
    %1808 = arith.extui %1807 : vector<1x128xi1> to vector<1x128xi32>
    %1809 = arith.sitofp %1808 : vector<1x128xi32> to vector<1x128xf32>
    %cst_328 = arith.constant 1.000000e+00 : f32
    %1810 = vector.broadcast %cst_328 : f32 to vector<1x128xf32>
    %1811 = arith.subf %1810, %1809 : vector<1x128xf32>
    %1812 = arith.mulf %1811, %1803 : vector<1x128xf32>
    %cst_329 = arith.constant 0.000000e+00 : f32
    %1813 = vector.broadcast %cst_329 : f32 to vector<1x128xf32>
    %1814 = arith.mulf %1809, %1813 : vector<1x128xf32>
    %1815 = arith.addf %1812, %1814 : vector<1x128xf32>
    %cst_330 = arith.constant 0.000000e+00 : f32
    %1816 = vector.broadcast %cst_330 : f32 to vector<1x128xf32>
    %1817 = arith.subf %1816, %1566 : vector<1x128xf32>
    %1818 = arith.addf %1817, %1680 : vector<1x128xf32>
    %cst_331 = arith.constant 1.000000e-01 : f32
    %1819 = vector.broadcast %cst_331 : f32 to vector<1x128xf32>
    %1820 = arith.mulf %1819, %1818 : vector<1x128xf32>
    %1821 = arith.addf %1566, %1820 : vector<1x128xf32>
    %cst_332 = arith.constant 8.000000e-01 : f32
    %1822 = vector.broadcast %cst_332 : f32 to vector<1x128xf32>
    %1823 = arith.mulf %1680, %1822 : vector<1x128xf32>
    %cst_333 = arith.constant 1.000000e+00 : f32
    %1824 = vector.broadcast %cst_333 : f32 to vector<1x128xf32>
    %1825 = arith.cmpf ogt, %1821, %1824 : vector<1x128xf32>
    %1826 = arith.extui %1825 : vector<1x128xi1> to vector<1x128xi32>
    %1827 = arith.sitofp %1826 : vector<1x128xi32> to vector<1x128xf32>
    %cst_334 = arith.constant 1.000000e+00 : f32
    %1828 = vector.broadcast %cst_334 : f32 to vector<1x128xf32>
    %1829 = arith.subf %1828, %1827 : vector<1x128xf32>
    %1830 = arith.mulf %1829, %1821 : vector<1x128xf32>
    %cst_335 = arith.constant 0.000000e+00 : f32
    %1831 = vector.broadcast %cst_335 : f32 to vector<1x128xf32>
    %1832 = arith.mulf %1827, %1831 : vector<1x128xf32>
    %1833 = arith.addf %1830, %1832 : vector<1x128xf32>
    %cst_336 = arith.constant 0.000000e+00 : f32
    %1834 = vector.broadcast %cst_336 : f32 to vector<1x128xf32>
    %1835 = arith.subf %1834, %1584 : vector<1x128xf32>
    %1836 = arith.addf %1835, %1700 : vector<1x128xf32>
    %cst_337 = arith.constant 1.000000e-01 : f32
    %1837 = vector.broadcast %cst_337 : f32 to vector<1x128xf32>
    %1838 = arith.mulf %1837, %1836 : vector<1x128xf32>
    %1839 = arith.addf %1584, %1838 : vector<1x128xf32>
    %cst_338 = arith.constant 8.000000e-01 : f32
    %1840 = vector.broadcast %cst_338 : f32 to vector<1x128xf32>
    %1841 = arith.mulf %1700, %1840 : vector<1x128xf32>
    %cst_339 = arith.constant 1.000000e+00 : f32
    %1842 = vector.broadcast %cst_339 : f32 to vector<1x128xf32>
    %1843 = arith.cmpf ogt, %1839, %1842 : vector<1x128xf32>
    %1844 = arith.extui %1843 : vector<1x128xi1> to vector<1x128xi32>
    %1845 = arith.sitofp %1844 : vector<1x128xi32> to vector<1x128xf32>
    %cst_340 = arith.constant 1.000000e+00 : f32
    %1846 = vector.broadcast %cst_340 : f32 to vector<1x128xf32>
    %1847 = arith.subf %1846, %1845 : vector<1x128xf32>
    %1848 = arith.mulf %1847, %1839 : vector<1x128xf32>
    %cst_341 = arith.constant 0.000000e+00 : f32
    %1849 = vector.broadcast %cst_341 : f32 to vector<1x128xf32>
    %1850 = arith.mulf %1845, %1849 : vector<1x128xf32>
    %1851 = arith.addf %1848, %1850 : vector<1x128xf32>
    %cst_342 = arith.constant 0.000000e+00 : f32
    %1852 = vector.broadcast %cst_342 : f32 to vector<1x128xf32>
    %1853 = arith.subf %1852, %1602 : vector<1x128xf32>
    %1854 = arith.addf %1853, %1720 : vector<1x128xf32>
    %cst_343 = arith.constant 1.000000e-01 : f32
    %1855 = vector.broadcast %cst_343 : f32 to vector<1x128xf32>
    %1856 = arith.mulf %1855, %1854 : vector<1x128xf32>
    %1857 = arith.addf %1602, %1856 : vector<1x128xf32>
    %cst_344 = arith.constant 8.000000e-01 : f32
    %1858 = vector.broadcast %cst_344 : f32 to vector<1x128xf32>
    %1859 = arith.mulf %1720, %1858 : vector<1x128xf32>
    %cst_345 = arith.constant 1.000000e+00 : f32
    %1860 = vector.broadcast %cst_345 : f32 to vector<1x128xf32>
    %1861 = arith.cmpf ogt, %1857, %1860 : vector<1x128xf32>
    %1862 = arith.extui %1861 : vector<1x128xi1> to vector<1x128xi32>
    %1863 = arith.sitofp %1862 : vector<1x128xi32> to vector<1x128xf32>
    %cst_346 = arith.constant 1.000000e+00 : f32
    %1864 = vector.broadcast %cst_346 : f32 to vector<1x128xf32>
    %1865 = arith.subf %1864, %1863 : vector<1x128xf32>
    %1866 = arith.mulf %1865, %1857 : vector<1x128xf32>
    %cst_347 = arith.constant 0.000000e+00 : f32
    %1867 = vector.broadcast %cst_347 : f32 to vector<1x128xf32>
    %1868 = arith.mulf %1863, %1867 : vector<1x128xf32>
    %1869 = arith.addf %1866, %1868 : vector<1x128xf32>
    %cst_348 = arith.constant 0.000000e+00 : f32
    %1870 = vector.broadcast %cst_348 : f32 to vector<1x128xf32>
    %1871 = arith.subf %1870, %1620 : vector<1x128xf32>
    %1872 = arith.addf %1871, %1740 : vector<1x128xf32>
    %cst_349 = arith.constant 1.000000e-01 : f32
    %1873 = vector.broadcast %cst_349 : f32 to vector<1x128xf32>
    %1874 = arith.mulf %1873, %1872 : vector<1x128xf32>
    %1875 = arith.addf %1620, %1874 : vector<1x128xf32>
    %cst_350 = arith.constant 8.000000e-01 : f32
    %1876 = vector.broadcast %cst_350 : f32 to vector<1x128xf32>
    %1877 = arith.mulf %1740, %1876 : vector<1x128xf32>
    %cst_351 = arith.constant 1.000000e+00 : f32
    %1878 = vector.broadcast %cst_351 : f32 to vector<1x128xf32>
    %1879 = arith.cmpf ogt, %1875, %1878 : vector<1x128xf32>
    %1880 = arith.extui %1879 : vector<1x128xi1> to vector<1x128xi32>
    %1881 = arith.sitofp %1880 : vector<1x128xi32> to vector<1x128xf32>
    %cst_352 = arith.constant 1.000000e+00 : f32
    %1882 = vector.broadcast %cst_352 : f32 to vector<1x128xf32>
    %1883 = arith.subf %1882, %1881 : vector<1x128xf32>
    %1884 = arith.mulf %1883, %1875 : vector<1x128xf32>
    %cst_353 = arith.constant 0.000000e+00 : f32
    %1885 = vector.broadcast %cst_353 : f32 to vector<1x128xf32>
    %1886 = arith.mulf %1881, %1885 : vector<1x128xf32>
    %1887 = arith.addf %1884, %1886 : vector<1x128xf32>
    %1888 = vector.extract_strided_slice %408 {offsets = [5, 0], sizes = [1, 128], strides = [1, 1]} : vector<10x128xf32> to vector<1x128xf32>
    %1889 = arith.addf %1787, %1888 : vector<1x128xf32>
    %1890 = vector.broadcast %72 : f32 to vector<1x128xf32>
    %1891 = arith.mulf %1890, %1524 : vector<1x128xf32>
    %1892 = arith.addf %1889, %1891 : vector<1x128xf32>
    %1893 = vector.broadcast %73 : f32 to vector<1x128xf32>
    %1894 = arith.mulf %1893, %1542 : vector<1x128xf32>
    %1895 = arith.addf %1892, %1894 : vector<1x128xf32>
    %1896 = vector.broadcast %74 : f32 to vector<1x128xf32>
    %1897 = arith.mulf %1896, %1560 : vector<1x128xf32>
    %1898 = arith.addf %1895, %1897 : vector<1x128xf32>
    %1899 = vector.broadcast %75 : f32 to vector<1x128xf32>
    %1900 = arith.mulf %1899, %1578 : vector<1x128xf32>
    %1901 = arith.addf %1898, %1900 : vector<1x128xf32>
    %1902 = vector.broadcast %76 : f32 to vector<1x128xf32>
    %1903 = arith.mulf %1902, %1596 : vector<1x128xf32>
    %1904 = arith.addf %1901, %1903 : vector<1x128xf32>
    %1905 = vector.broadcast %77 : f32 to vector<1x128xf32>
    %1906 = arith.mulf %1905, %1614 : vector<1x128xf32>
    %1907 = arith.addf %1904, %1906 : vector<1x128xf32>
    %1908 = vector.extract_strided_slice %411 {offsets = [5, 0], sizes = [1, 128], strides = [1, 1]} : vector<10x128xf32> to vector<1x128xf32>
    %1909 = arith.addf %1805, %1908 : vector<1x128xf32>
    %1910 = vector.broadcast %78 : f32 to vector<1x128xf32>
    %1911 = arith.mulf %1910, %1524 : vector<1x128xf32>
    %1912 = arith.addf %1909, %1911 : vector<1x128xf32>
    %1913 = vector.broadcast %79 : f32 to vector<1x128xf32>
    %1914 = arith.mulf %1913, %1542 : vector<1x128xf32>
    %1915 = arith.addf %1912, %1914 : vector<1x128xf32>
    %1916 = vector.broadcast %80 : f32 to vector<1x128xf32>
    %1917 = arith.mulf %1916, %1560 : vector<1x128xf32>
    %1918 = arith.addf %1915, %1917 : vector<1x128xf32>
    %1919 = vector.broadcast %81 : f32 to vector<1x128xf32>
    %1920 = arith.mulf %1919, %1578 : vector<1x128xf32>
    %1921 = arith.addf %1918, %1920 : vector<1x128xf32>
    %1922 = vector.broadcast %82 : f32 to vector<1x128xf32>
    %1923 = arith.mulf %1922, %1596 : vector<1x128xf32>
    %1924 = arith.addf %1921, %1923 : vector<1x128xf32>
    %1925 = vector.broadcast %83 : f32 to vector<1x128xf32>
    %1926 = arith.mulf %1925, %1614 : vector<1x128xf32>
    %1927 = arith.addf %1924, %1926 : vector<1x128xf32>
    %1928 = vector.extract_strided_slice %414 {offsets = [5, 0], sizes = [1, 128], strides = [1, 1]} : vector<10x128xf32> to vector<1x128xf32>
    %1929 = arith.addf %1823, %1928 : vector<1x128xf32>
    %1930 = vector.broadcast %84 : f32 to vector<1x128xf32>
    %1931 = arith.mulf %1930, %1524 : vector<1x128xf32>
    %1932 = arith.addf %1929, %1931 : vector<1x128xf32>
    %1933 = vector.broadcast %85 : f32 to vector<1x128xf32>
    %1934 = arith.mulf %1933, %1542 : vector<1x128xf32>
    %1935 = arith.addf %1932, %1934 : vector<1x128xf32>
    %1936 = vector.broadcast %86 : f32 to vector<1x128xf32>
    %1937 = arith.mulf %1936, %1560 : vector<1x128xf32>
    %1938 = arith.addf %1935, %1937 : vector<1x128xf32>
    %1939 = vector.broadcast %87 : f32 to vector<1x128xf32>
    %1940 = arith.mulf %1939, %1578 : vector<1x128xf32>
    %1941 = arith.addf %1938, %1940 : vector<1x128xf32>
    %1942 = vector.broadcast %88 : f32 to vector<1x128xf32>
    %1943 = arith.mulf %1942, %1596 : vector<1x128xf32>
    %1944 = arith.addf %1941, %1943 : vector<1x128xf32>
    %1945 = vector.broadcast %89 : f32 to vector<1x128xf32>
    %1946 = arith.mulf %1945, %1614 : vector<1x128xf32>
    %1947 = arith.addf %1944, %1946 : vector<1x128xf32>
    %1948 = vector.extract_strided_slice %417 {offsets = [5, 0], sizes = [1, 128], strides = [1, 1]} : vector<10x128xf32> to vector<1x128xf32>
    %1949 = arith.addf %1841, %1948 : vector<1x128xf32>
    %1950 = vector.broadcast %90 : f32 to vector<1x128xf32>
    %1951 = arith.mulf %1950, %1524 : vector<1x128xf32>
    %1952 = arith.addf %1949, %1951 : vector<1x128xf32>
    %1953 = vector.broadcast %91 : f32 to vector<1x128xf32>
    %1954 = arith.mulf %1953, %1542 : vector<1x128xf32>
    %1955 = arith.addf %1952, %1954 : vector<1x128xf32>
    %1956 = vector.broadcast %92 : f32 to vector<1x128xf32>
    %1957 = arith.mulf %1956, %1560 : vector<1x128xf32>
    %1958 = arith.addf %1955, %1957 : vector<1x128xf32>
    %1959 = vector.broadcast %93 : f32 to vector<1x128xf32>
    %1960 = arith.mulf %1959, %1578 : vector<1x128xf32>
    %1961 = arith.addf %1958, %1960 : vector<1x128xf32>
    %1962 = vector.broadcast %94 : f32 to vector<1x128xf32>
    %1963 = arith.mulf %1962, %1596 : vector<1x128xf32>
    %1964 = arith.addf %1961, %1963 : vector<1x128xf32>
    %1965 = vector.broadcast %95 : f32 to vector<1x128xf32>
    %1966 = arith.mulf %1965, %1614 : vector<1x128xf32>
    %1967 = arith.addf %1964, %1966 : vector<1x128xf32>
    %1968 = vector.extract_strided_slice %420 {offsets = [5, 0], sizes = [1, 128], strides = [1, 1]} : vector<10x128xf32> to vector<1x128xf32>
    %1969 = arith.addf %1859, %1968 : vector<1x128xf32>
    %1970 = vector.broadcast %96 : f32 to vector<1x128xf32>
    %1971 = arith.mulf %1970, %1524 : vector<1x128xf32>
    %1972 = arith.addf %1969, %1971 : vector<1x128xf32>
    %1973 = vector.broadcast %97 : f32 to vector<1x128xf32>
    %1974 = arith.mulf %1973, %1542 : vector<1x128xf32>
    %1975 = arith.addf %1972, %1974 : vector<1x128xf32>
    %1976 = vector.broadcast %98 : f32 to vector<1x128xf32>
    %1977 = arith.mulf %1976, %1560 : vector<1x128xf32>
    %1978 = arith.addf %1975, %1977 : vector<1x128xf32>
    %1979 = vector.broadcast %99 : f32 to vector<1x128xf32>
    %1980 = arith.mulf %1979, %1578 : vector<1x128xf32>
    %1981 = arith.addf %1978, %1980 : vector<1x128xf32>
    %1982 = vector.broadcast %100 : f32 to vector<1x128xf32>
    %1983 = arith.mulf %1982, %1596 : vector<1x128xf32>
    %1984 = arith.addf %1981, %1983 : vector<1x128xf32>
    %1985 = vector.broadcast %101 : f32 to vector<1x128xf32>
    %1986 = arith.mulf %1985, %1614 : vector<1x128xf32>
    %1987 = arith.addf %1984, %1986 : vector<1x128xf32>
    %1988 = vector.extract_strided_slice %423 {offsets = [5, 0], sizes = [1, 128], strides = [1, 1]} : vector<10x128xf32> to vector<1x128xf32>
    %1989 = arith.addf %1877, %1988 : vector<1x128xf32>
    %1990 = vector.broadcast %102 : f32 to vector<1x128xf32>
    %1991 = arith.mulf %1990, %1524 : vector<1x128xf32>
    %1992 = arith.addf %1989, %1991 : vector<1x128xf32>
    %1993 = vector.broadcast %103 : f32 to vector<1x128xf32>
    %1994 = arith.mulf %1993, %1542 : vector<1x128xf32>
    %1995 = arith.addf %1992, %1994 : vector<1x128xf32>
    %1996 = vector.broadcast %104 : f32 to vector<1x128xf32>
    %1997 = arith.mulf %1996, %1560 : vector<1x128xf32>
    %1998 = arith.addf %1995, %1997 : vector<1x128xf32>
    %1999 = vector.broadcast %105 : f32 to vector<1x128xf32>
    %2000 = arith.mulf %1999, %1578 : vector<1x128xf32>
    %2001 = arith.addf %1998, %2000 : vector<1x128xf32>
    %2002 = vector.broadcast %106 : f32 to vector<1x128xf32>
    %2003 = arith.mulf %2002, %1596 : vector<1x128xf32>
    %2004 = arith.addf %2001, %2003 : vector<1x128xf32>
    %2005 = vector.broadcast %107 : f32 to vector<1x128xf32>
    %2006 = arith.mulf %2005, %1614 : vector<1x128xf32>
    %2007 = arith.addf %2004, %2006 : vector<1x128xf32>
    %cst_354 = arith.constant 0.000000e+00 : f32
    %2008 = vector.broadcast %cst_354 : f32 to vector<1x128xf32>
    %2009 = arith.subf %2008, %1758 : vector<1x128xf32>
    %2010 = arith.addf %2009, %1779 : vector<1x128xf32>
    %cst_355 = arith.constant 1.000000e-01 : f32
    %2011 = vector.broadcast %cst_355 : f32 to vector<1x128xf32>
    %2012 = arith.mulf %2011, %2010 : vector<1x128xf32>
    %2013 = arith.addf %1758, %2012 : vector<1x128xf32>
    %cst_356 = arith.constant 8.000000e-01 : f32
    %2014 = vector.broadcast %cst_356 : f32 to vector<1x128xf32>
    %2015 = arith.mulf %1779, %2014 : vector<1x128xf32>
    %cst_357 = arith.constant 1.000000e+00 : f32
    %2016 = vector.broadcast %cst_357 : f32 to vector<1x128xf32>
    %2017 = arith.cmpf ogt, %2013, %2016 : vector<1x128xf32>
    %2018 = arith.extui %2017 : vector<1x128xi1> to vector<1x128xi32>
    %2019 = arith.sitofp %2018 : vector<1x128xi32> to vector<1x128xf32>
    %cst_358 = arith.constant 1.000000e+00 : f32
    %2020 = vector.broadcast %cst_358 : f32 to vector<1x128xf32>
    %2021 = arith.subf %2020, %2019 : vector<1x128xf32>
    %2022 = arith.mulf %2021, %2013 : vector<1x128xf32>
    %cst_359 = arith.constant 0.000000e+00 : f32
    %2023 = vector.broadcast %cst_359 : f32 to vector<1x128xf32>
    %2024 = arith.mulf %2019, %2023 : vector<1x128xf32>
    %2025 = arith.addf %2022, %2024 : vector<1x128xf32>
    %2026 = vector.broadcast %114 : f32 to vector<1x128xf32>
    %2027 = arith.mulf %2026, %1752 : vector<1x128xf32>
    %2028 = arith.addf %2015, %2027 : vector<1x128xf32>
    %2029 = vector.broadcast %108 : f32 to vector<1x128xf32>
    %2030 = arith.mulf %2029, %1791 : vector<1x128xf32>
    %2031 = arith.addf %2028, %2030 : vector<1x128xf32>
    %2032 = vector.broadcast %109 : f32 to vector<1x128xf32>
    %2033 = arith.mulf %2032, %1809 : vector<1x128xf32>
    %2034 = arith.addf %2031, %2033 : vector<1x128xf32>
    %2035 = vector.broadcast %110 : f32 to vector<1x128xf32>
    %2036 = arith.mulf %2035, %1827 : vector<1x128xf32>
    %2037 = arith.addf %2034, %2036 : vector<1x128xf32>
    %2038 = vector.broadcast %111 : f32 to vector<1x128xf32>
    %2039 = arith.mulf %2038, %1845 : vector<1x128xf32>
    %2040 = arith.addf %2037, %2039 : vector<1x128xf32>
    %2041 = vector.broadcast %112 : f32 to vector<1x128xf32>
    %2042 = arith.mulf %2041, %1863 : vector<1x128xf32>
    %2043 = arith.addf %2040, %2042 : vector<1x128xf32>
    %2044 = vector.broadcast %113 : f32 to vector<1x128xf32>
    %2045 = arith.mulf %2044, %1881 : vector<1x128xf32>
    %2046 = arith.addf %2043, %2045 : vector<1x128xf32>
    %cst_360 = arith.constant 0.000000e+00 : f32
    %2047 = vector.broadcast %cst_360 : f32 to vector<1x128xf32>
    %2048 = arith.subf %2047, %1797 : vector<1x128xf32>
    %2049 = arith.addf %2048, %1907 : vector<1x128xf32>
    %cst_361 = arith.constant 1.000000e-01 : f32
    %2050 = vector.broadcast %cst_361 : f32 to vector<1x128xf32>
    %2051 = arith.mulf %2050, %2049 : vector<1x128xf32>
    %2052 = arith.addf %1797, %2051 : vector<1x128xf32>
    %cst_362 = arith.constant 8.000000e-01 : f32
    %2053 = vector.broadcast %cst_362 : f32 to vector<1x128xf32>
    %2054 = arith.mulf %1907, %2053 : vector<1x128xf32>
    %cst_363 = arith.constant 1.000000e+00 : f32
    %2055 = vector.broadcast %cst_363 : f32 to vector<1x128xf32>
    %2056 = arith.cmpf ogt, %2052, %2055 : vector<1x128xf32>
    %2057 = arith.extui %2056 : vector<1x128xi1> to vector<1x128xi32>
    %2058 = arith.sitofp %2057 : vector<1x128xi32> to vector<1x128xf32>
    %cst_364 = arith.constant 1.000000e+00 : f32
    %2059 = vector.broadcast %cst_364 : f32 to vector<1x128xf32>
    %2060 = arith.subf %2059, %2058 : vector<1x128xf32>
    %2061 = arith.mulf %2060, %2052 : vector<1x128xf32>
    %cst_365 = arith.constant 0.000000e+00 : f32
    %2062 = vector.broadcast %cst_365 : f32 to vector<1x128xf32>
    %2063 = arith.mulf %2058, %2062 : vector<1x128xf32>
    %2064 = arith.addf %2061, %2063 : vector<1x128xf32>
    %cst_366 = arith.constant 0.000000e+00 : f32
    %2065 = vector.broadcast %cst_366 : f32 to vector<1x128xf32>
    %2066 = arith.subf %2065, %1815 : vector<1x128xf32>
    %2067 = arith.addf %2066, %1927 : vector<1x128xf32>
    %cst_367 = arith.constant 1.000000e-01 : f32
    %2068 = vector.broadcast %cst_367 : f32 to vector<1x128xf32>
    %2069 = arith.mulf %2068, %2067 : vector<1x128xf32>
    %2070 = arith.addf %1815, %2069 : vector<1x128xf32>
    %cst_368 = arith.constant 8.000000e-01 : f32
    %2071 = vector.broadcast %cst_368 : f32 to vector<1x128xf32>
    %2072 = arith.mulf %1927, %2071 : vector<1x128xf32>
    %cst_369 = arith.constant 1.000000e+00 : f32
    %2073 = vector.broadcast %cst_369 : f32 to vector<1x128xf32>
    %2074 = arith.cmpf ogt, %2070, %2073 : vector<1x128xf32>
    %2075 = arith.extui %2074 : vector<1x128xi1> to vector<1x128xi32>
    %2076 = arith.sitofp %2075 : vector<1x128xi32> to vector<1x128xf32>
    %cst_370 = arith.constant 1.000000e+00 : f32
    %2077 = vector.broadcast %cst_370 : f32 to vector<1x128xf32>
    %2078 = arith.subf %2077, %2076 : vector<1x128xf32>
    %2079 = arith.mulf %2078, %2070 : vector<1x128xf32>
    %cst_371 = arith.constant 0.000000e+00 : f32
    %2080 = vector.broadcast %cst_371 : f32 to vector<1x128xf32>
    %2081 = arith.mulf %2076, %2080 : vector<1x128xf32>
    %2082 = arith.addf %2079, %2081 : vector<1x128xf32>
    %cst_372 = arith.constant 0.000000e+00 : f32
    %2083 = vector.broadcast %cst_372 : f32 to vector<1x128xf32>
    %2084 = arith.subf %2083, %1833 : vector<1x128xf32>
    %2085 = arith.addf %2084, %1947 : vector<1x128xf32>
    %cst_373 = arith.constant 1.000000e-01 : f32
    %2086 = vector.broadcast %cst_373 : f32 to vector<1x128xf32>
    %2087 = arith.mulf %2086, %2085 : vector<1x128xf32>
    %2088 = arith.addf %1833, %2087 : vector<1x128xf32>
    %cst_374 = arith.constant 8.000000e-01 : f32
    %2089 = vector.broadcast %cst_374 : f32 to vector<1x128xf32>
    %2090 = arith.mulf %1947, %2089 : vector<1x128xf32>
    %cst_375 = arith.constant 1.000000e+00 : f32
    %2091 = vector.broadcast %cst_375 : f32 to vector<1x128xf32>
    %2092 = arith.cmpf ogt, %2088, %2091 : vector<1x128xf32>
    %2093 = arith.extui %2092 : vector<1x128xi1> to vector<1x128xi32>
    %2094 = arith.sitofp %2093 : vector<1x128xi32> to vector<1x128xf32>
    %cst_376 = arith.constant 1.000000e+00 : f32
    %2095 = vector.broadcast %cst_376 : f32 to vector<1x128xf32>
    %2096 = arith.subf %2095, %2094 : vector<1x128xf32>
    %2097 = arith.mulf %2096, %2088 : vector<1x128xf32>
    %cst_377 = arith.constant 0.000000e+00 : f32
    %2098 = vector.broadcast %cst_377 : f32 to vector<1x128xf32>
    %2099 = arith.mulf %2094, %2098 : vector<1x128xf32>
    %2100 = arith.addf %2097, %2099 : vector<1x128xf32>
    %cst_378 = arith.constant 0.000000e+00 : f32
    %2101 = vector.broadcast %cst_378 : f32 to vector<1x128xf32>
    %2102 = arith.subf %2101, %1851 : vector<1x128xf32>
    %2103 = arith.addf %2102, %1967 : vector<1x128xf32>
    %cst_379 = arith.constant 1.000000e-01 : f32
    %2104 = vector.broadcast %cst_379 : f32 to vector<1x128xf32>
    %2105 = arith.mulf %2104, %2103 : vector<1x128xf32>
    %2106 = arith.addf %1851, %2105 : vector<1x128xf32>
    %cst_380 = arith.constant 8.000000e-01 : f32
    %2107 = vector.broadcast %cst_380 : f32 to vector<1x128xf32>
    %2108 = arith.mulf %1967, %2107 : vector<1x128xf32>
    %cst_381 = arith.constant 1.000000e+00 : f32
    %2109 = vector.broadcast %cst_381 : f32 to vector<1x128xf32>
    %2110 = arith.cmpf ogt, %2106, %2109 : vector<1x128xf32>
    %2111 = arith.extui %2110 : vector<1x128xi1> to vector<1x128xi32>
    %2112 = arith.sitofp %2111 : vector<1x128xi32> to vector<1x128xf32>
    %cst_382 = arith.constant 1.000000e+00 : f32
    %2113 = vector.broadcast %cst_382 : f32 to vector<1x128xf32>
    %2114 = arith.subf %2113, %2112 : vector<1x128xf32>
    %2115 = arith.mulf %2114, %2106 : vector<1x128xf32>
    %cst_383 = arith.constant 0.000000e+00 : f32
    %2116 = vector.broadcast %cst_383 : f32 to vector<1x128xf32>
    %2117 = arith.mulf %2112, %2116 : vector<1x128xf32>
    %2118 = arith.addf %2115, %2117 : vector<1x128xf32>
    %cst_384 = arith.constant 0.000000e+00 : f32
    %2119 = vector.broadcast %cst_384 : f32 to vector<1x128xf32>
    %2120 = arith.subf %2119, %1869 : vector<1x128xf32>
    %2121 = arith.addf %2120, %1987 : vector<1x128xf32>
    %cst_385 = arith.constant 1.000000e-01 : f32
    %2122 = vector.broadcast %cst_385 : f32 to vector<1x128xf32>
    %2123 = arith.mulf %2122, %2121 : vector<1x128xf32>
    %2124 = arith.addf %1869, %2123 : vector<1x128xf32>
    %cst_386 = arith.constant 8.000000e-01 : f32
    %2125 = vector.broadcast %cst_386 : f32 to vector<1x128xf32>
    %2126 = arith.mulf %1987, %2125 : vector<1x128xf32>
    %cst_387 = arith.constant 1.000000e+00 : f32
    %2127 = vector.broadcast %cst_387 : f32 to vector<1x128xf32>
    %2128 = arith.cmpf ogt, %2124, %2127 : vector<1x128xf32>
    %2129 = arith.extui %2128 : vector<1x128xi1> to vector<1x128xi32>
    %2130 = arith.sitofp %2129 : vector<1x128xi32> to vector<1x128xf32>
    %cst_388 = arith.constant 1.000000e+00 : f32
    %2131 = vector.broadcast %cst_388 : f32 to vector<1x128xf32>
    %2132 = arith.subf %2131, %2130 : vector<1x128xf32>
    %2133 = arith.mulf %2132, %2124 : vector<1x128xf32>
    %cst_389 = arith.constant 0.000000e+00 : f32
    %2134 = vector.broadcast %cst_389 : f32 to vector<1x128xf32>
    %2135 = arith.mulf %2130, %2134 : vector<1x128xf32>
    %2136 = arith.addf %2133, %2135 : vector<1x128xf32>
    %cst_390 = arith.constant 0.000000e+00 : f32
    %2137 = vector.broadcast %cst_390 : f32 to vector<1x128xf32>
    %2138 = arith.subf %2137, %1887 : vector<1x128xf32>
    %2139 = arith.addf %2138, %2007 : vector<1x128xf32>
    %cst_391 = arith.constant 1.000000e-01 : f32
    %2140 = vector.broadcast %cst_391 : f32 to vector<1x128xf32>
    %2141 = arith.mulf %2140, %2139 : vector<1x128xf32>
    %2142 = arith.addf %1887, %2141 : vector<1x128xf32>
    %cst_392 = arith.constant 8.000000e-01 : f32
    %2143 = vector.broadcast %cst_392 : f32 to vector<1x128xf32>
    %2144 = arith.mulf %2007, %2143 : vector<1x128xf32>
    %cst_393 = arith.constant 1.000000e+00 : f32
    %2145 = vector.broadcast %cst_393 : f32 to vector<1x128xf32>
    %2146 = arith.cmpf ogt, %2142, %2145 : vector<1x128xf32>
    %2147 = arith.extui %2146 : vector<1x128xi1> to vector<1x128xi32>
    %2148 = arith.sitofp %2147 : vector<1x128xi32> to vector<1x128xf32>
    %cst_394 = arith.constant 1.000000e+00 : f32
    %2149 = vector.broadcast %cst_394 : f32 to vector<1x128xf32>
    %2150 = arith.subf %2149, %2148 : vector<1x128xf32>
    %2151 = arith.mulf %2150, %2142 : vector<1x128xf32>
    %cst_395 = arith.constant 0.000000e+00 : f32
    %2152 = vector.broadcast %cst_395 : f32 to vector<1x128xf32>
    %2153 = arith.mulf %2148, %2152 : vector<1x128xf32>
    %2154 = arith.addf %2151, %2153 : vector<1x128xf32>
    %2155 = vector.extract_strided_slice %408 {offsets = [6, 0], sizes = [1, 128], strides = [1, 1]} : vector<10x128xf32> to vector<1x128xf32>
    %2156 = arith.addf %2054, %2155 : vector<1x128xf32>
    %2157 = vector.broadcast %72 : f32 to vector<1x128xf32>
    %2158 = arith.mulf %2157, %1791 : vector<1x128xf32>
    %2159 = arith.addf %2156, %2158 : vector<1x128xf32>
    %2160 = vector.broadcast %73 : f32 to vector<1x128xf32>
    %2161 = arith.mulf %2160, %1809 : vector<1x128xf32>
    %2162 = arith.addf %2159, %2161 : vector<1x128xf32>
    %2163 = vector.broadcast %74 : f32 to vector<1x128xf32>
    %2164 = arith.mulf %2163, %1827 : vector<1x128xf32>
    %2165 = arith.addf %2162, %2164 : vector<1x128xf32>
    %2166 = vector.broadcast %75 : f32 to vector<1x128xf32>
    %2167 = arith.mulf %2166, %1845 : vector<1x128xf32>
    %2168 = arith.addf %2165, %2167 : vector<1x128xf32>
    %2169 = vector.broadcast %76 : f32 to vector<1x128xf32>
    %2170 = arith.mulf %2169, %1863 : vector<1x128xf32>
    %2171 = arith.addf %2168, %2170 : vector<1x128xf32>
    %2172 = vector.broadcast %77 : f32 to vector<1x128xf32>
    %2173 = arith.mulf %2172, %1881 : vector<1x128xf32>
    %2174 = arith.addf %2171, %2173 : vector<1x128xf32>
    %2175 = vector.extract_strided_slice %411 {offsets = [6, 0], sizes = [1, 128], strides = [1, 1]} : vector<10x128xf32> to vector<1x128xf32>
    %2176 = arith.addf %2072, %2175 : vector<1x128xf32>
    %2177 = vector.broadcast %78 : f32 to vector<1x128xf32>
    %2178 = arith.mulf %2177, %1791 : vector<1x128xf32>
    %2179 = arith.addf %2176, %2178 : vector<1x128xf32>
    %2180 = vector.broadcast %79 : f32 to vector<1x128xf32>
    %2181 = arith.mulf %2180, %1809 : vector<1x128xf32>
    %2182 = arith.addf %2179, %2181 : vector<1x128xf32>
    %2183 = vector.broadcast %80 : f32 to vector<1x128xf32>
    %2184 = arith.mulf %2183, %1827 : vector<1x128xf32>
    %2185 = arith.addf %2182, %2184 : vector<1x128xf32>
    %2186 = vector.broadcast %81 : f32 to vector<1x128xf32>
    %2187 = arith.mulf %2186, %1845 : vector<1x128xf32>
    %2188 = arith.addf %2185, %2187 : vector<1x128xf32>
    %2189 = vector.broadcast %82 : f32 to vector<1x128xf32>
    %2190 = arith.mulf %2189, %1863 : vector<1x128xf32>
    %2191 = arith.addf %2188, %2190 : vector<1x128xf32>
    %2192 = vector.broadcast %83 : f32 to vector<1x128xf32>
    %2193 = arith.mulf %2192, %1881 : vector<1x128xf32>
    %2194 = arith.addf %2191, %2193 : vector<1x128xf32>
    %2195 = vector.extract_strided_slice %414 {offsets = [6, 0], sizes = [1, 128], strides = [1, 1]} : vector<10x128xf32> to vector<1x128xf32>
    %2196 = arith.addf %2090, %2195 : vector<1x128xf32>
    %2197 = vector.broadcast %84 : f32 to vector<1x128xf32>
    %2198 = arith.mulf %2197, %1791 : vector<1x128xf32>
    %2199 = arith.addf %2196, %2198 : vector<1x128xf32>
    %2200 = vector.broadcast %85 : f32 to vector<1x128xf32>
    %2201 = arith.mulf %2200, %1809 : vector<1x128xf32>
    %2202 = arith.addf %2199, %2201 : vector<1x128xf32>
    %2203 = vector.broadcast %86 : f32 to vector<1x128xf32>
    %2204 = arith.mulf %2203, %1827 : vector<1x128xf32>
    %2205 = arith.addf %2202, %2204 : vector<1x128xf32>
    %2206 = vector.broadcast %87 : f32 to vector<1x128xf32>
    %2207 = arith.mulf %2206, %1845 : vector<1x128xf32>
    %2208 = arith.addf %2205, %2207 : vector<1x128xf32>
    %2209 = vector.broadcast %88 : f32 to vector<1x128xf32>
    %2210 = arith.mulf %2209, %1863 : vector<1x128xf32>
    %2211 = arith.addf %2208, %2210 : vector<1x128xf32>
    %2212 = vector.broadcast %89 : f32 to vector<1x128xf32>
    %2213 = arith.mulf %2212, %1881 : vector<1x128xf32>
    %2214 = arith.addf %2211, %2213 : vector<1x128xf32>
    %2215 = vector.extract_strided_slice %417 {offsets = [6, 0], sizes = [1, 128], strides = [1, 1]} : vector<10x128xf32> to vector<1x128xf32>
    %2216 = arith.addf %2108, %2215 : vector<1x128xf32>
    %2217 = vector.broadcast %90 : f32 to vector<1x128xf32>
    %2218 = arith.mulf %2217, %1791 : vector<1x128xf32>
    %2219 = arith.addf %2216, %2218 : vector<1x128xf32>
    %2220 = vector.broadcast %91 : f32 to vector<1x128xf32>
    %2221 = arith.mulf %2220, %1809 : vector<1x128xf32>
    %2222 = arith.addf %2219, %2221 : vector<1x128xf32>
    %2223 = vector.broadcast %92 : f32 to vector<1x128xf32>
    %2224 = arith.mulf %2223, %1827 : vector<1x128xf32>
    %2225 = arith.addf %2222, %2224 : vector<1x128xf32>
    %2226 = vector.broadcast %93 : f32 to vector<1x128xf32>
    %2227 = arith.mulf %2226, %1845 : vector<1x128xf32>
    %2228 = arith.addf %2225, %2227 : vector<1x128xf32>
    %2229 = vector.broadcast %94 : f32 to vector<1x128xf32>
    %2230 = arith.mulf %2229, %1863 : vector<1x128xf32>
    %2231 = arith.addf %2228, %2230 : vector<1x128xf32>
    %2232 = vector.broadcast %95 : f32 to vector<1x128xf32>
    %2233 = arith.mulf %2232, %1881 : vector<1x128xf32>
    %2234 = arith.addf %2231, %2233 : vector<1x128xf32>
    %2235 = vector.extract_strided_slice %420 {offsets = [6, 0], sizes = [1, 128], strides = [1, 1]} : vector<10x128xf32> to vector<1x128xf32>
    %2236 = arith.addf %2126, %2235 : vector<1x128xf32>
    %2237 = vector.broadcast %96 : f32 to vector<1x128xf32>
    %2238 = arith.mulf %2237, %1791 : vector<1x128xf32>
    %2239 = arith.addf %2236, %2238 : vector<1x128xf32>
    %2240 = vector.broadcast %97 : f32 to vector<1x128xf32>
    %2241 = arith.mulf %2240, %1809 : vector<1x128xf32>
    %2242 = arith.addf %2239, %2241 : vector<1x128xf32>
    %2243 = vector.broadcast %98 : f32 to vector<1x128xf32>
    %2244 = arith.mulf %2243, %1827 : vector<1x128xf32>
    %2245 = arith.addf %2242, %2244 : vector<1x128xf32>
    %2246 = vector.broadcast %99 : f32 to vector<1x128xf32>
    %2247 = arith.mulf %2246, %1845 : vector<1x128xf32>
    %2248 = arith.addf %2245, %2247 : vector<1x128xf32>
    %2249 = vector.broadcast %100 : f32 to vector<1x128xf32>
    %2250 = arith.mulf %2249, %1863 : vector<1x128xf32>
    %2251 = arith.addf %2248, %2250 : vector<1x128xf32>
    %2252 = vector.broadcast %101 : f32 to vector<1x128xf32>
    %2253 = arith.mulf %2252, %1881 : vector<1x128xf32>
    %2254 = arith.addf %2251, %2253 : vector<1x128xf32>
    %2255 = vector.extract_strided_slice %423 {offsets = [6, 0], sizes = [1, 128], strides = [1, 1]} : vector<10x128xf32> to vector<1x128xf32>
    %2256 = arith.addf %2144, %2255 : vector<1x128xf32>
    %2257 = vector.broadcast %102 : f32 to vector<1x128xf32>
    %2258 = arith.mulf %2257, %1791 : vector<1x128xf32>
    %2259 = arith.addf %2256, %2258 : vector<1x128xf32>
    %2260 = vector.broadcast %103 : f32 to vector<1x128xf32>
    %2261 = arith.mulf %2260, %1809 : vector<1x128xf32>
    %2262 = arith.addf %2259, %2261 : vector<1x128xf32>
    %2263 = vector.broadcast %104 : f32 to vector<1x128xf32>
    %2264 = arith.mulf %2263, %1827 : vector<1x128xf32>
    %2265 = arith.addf %2262, %2264 : vector<1x128xf32>
    %2266 = vector.broadcast %105 : f32 to vector<1x128xf32>
    %2267 = arith.mulf %2266, %1845 : vector<1x128xf32>
    %2268 = arith.addf %2265, %2267 : vector<1x128xf32>
    %2269 = vector.broadcast %106 : f32 to vector<1x128xf32>
    %2270 = arith.mulf %2269, %1863 : vector<1x128xf32>
    %2271 = arith.addf %2268, %2270 : vector<1x128xf32>
    %2272 = vector.broadcast %107 : f32 to vector<1x128xf32>
    %2273 = arith.mulf %2272, %1881 : vector<1x128xf32>
    %2274 = arith.addf %2271, %2273 : vector<1x128xf32>
    %cst_396 = arith.constant 0.000000e+00 : f32
    %2275 = vector.broadcast %cst_396 : f32 to vector<1x128xf32>
    %2276 = arith.subf %2275, %2025 : vector<1x128xf32>
    %2277 = arith.addf %2276, %2046 : vector<1x128xf32>
    %cst_397 = arith.constant 1.000000e-01 : f32
    %2278 = vector.broadcast %cst_397 : f32 to vector<1x128xf32>
    %2279 = arith.mulf %2278, %2277 : vector<1x128xf32>
    %2280 = arith.addf %2025, %2279 : vector<1x128xf32>
    %cst_398 = arith.constant 8.000000e-01 : f32
    %2281 = vector.broadcast %cst_398 : f32 to vector<1x128xf32>
    %2282 = arith.mulf %2046, %2281 : vector<1x128xf32>
    %cst_399 = arith.constant 1.000000e+00 : f32
    %2283 = vector.broadcast %cst_399 : f32 to vector<1x128xf32>
    %2284 = arith.cmpf ogt, %2280, %2283 : vector<1x128xf32>
    %2285 = arith.extui %2284 : vector<1x128xi1> to vector<1x128xi32>
    %2286 = arith.sitofp %2285 : vector<1x128xi32> to vector<1x128xf32>
    %cst_400 = arith.constant 1.000000e+00 : f32
    %2287 = vector.broadcast %cst_400 : f32 to vector<1x128xf32>
    %2288 = arith.subf %2287, %2286 : vector<1x128xf32>
    %2289 = arith.mulf %2288, %2280 : vector<1x128xf32>
    %cst_401 = arith.constant 0.000000e+00 : f32
    %2290 = vector.broadcast %cst_401 : f32 to vector<1x128xf32>
    %2291 = arith.mulf %2286, %2290 : vector<1x128xf32>
    %2292 = arith.addf %2289, %2291 : vector<1x128xf32>
    %2293 = vector.broadcast %114 : f32 to vector<1x128xf32>
    %2294 = arith.mulf %2293, %2019 : vector<1x128xf32>
    %2295 = arith.addf %2282, %2294 : vector<1x128xf32>
    %2296 = vector.broadcast %108 : f32 to vector<1x128xf32>
    %2297 = arith.mulf %2296, %2058 : vector<1x128xf32>
    %2298 = arith.addf %2295, %2297 : vector<1x128xf32>
    %2299 = vector.broadcast %109 : f32 to vector<1x128xf32>
    %2300 = arith.mulf %2299, %2076 : vector<1x128xf32>
    %2301 = arith.addf %2298, %2300 : vector<1x128xf32>
    %2302 = vector.broadcast %110 : f32 to vector<1x128xf32>
    %2303 = arith.mulf %2302, %2094 : vector<1x128xf32>
    %2304 = arith.addf %2301, %2303 : vector<1x128xf32>
    %2305 = vector.broadcast %111 : f32 to vector<1x128xf32>
    %2306 = arith.mulf %2305, %2112 : vector<1x128xf32>
    %2307 = arith.addf %2304, %2306 : vector<1x128xf32>
    %2308 = vector.broadcast %112 : f32 to vector<1x128xf32>
    %2309 = arith.mulf %2308, %2130 : vector<1x128xf32>
    %2310 = arith.addf %2307, %2309 : vector<1x128xf32>
    %2311 = vector.broadcast %113 : f32 to vector<1x128xf32>
    %2312 = arith.mulf %2311, %2148 : vector<1x128xf32>
    %2313 = arith.addf %2310, %2312 : vector<1x128xf32>
    %cst_402 = arith.constant 0.000000e+00 : f32
    %2314 = vector.broadcast %cst_402 : f32 to vector<1x128xf32>
    %2315 = arith.subf %2314, %2064 : vector<1x128xf32>
    %2316 = arith.addf %2315, %2174 : vector<1x128xf32>
    %cst_403 = arith.constant 1.000000e-01 : f32
    %2317 = vector.broadcast %cst_403 : f32 to vector<1x128xf32>
    %2318 = arith.mulf %2317, %2316 : vector<1x128xf32>
    %2319 = arith.addf %2064, %2318 : vector<1x128xf32>
    %cst_404 = arith.constant 8.000000e-01 : f32
    %2320 = vector.broadcast %cst_404 : f32 to vector<1x128xf32>
    %2321 = arith.mulf %2174, %2320 : vector<1x128xf32>
    %cst_405 = arith.constant 1.000000e+00 : f32
    %2322 = vector.broadcast %cst_405 : f32 to vector<1x128xf32>
    %2323 = arith.cmpf ogt, %2319, %2322 : vector<1x128xf32>
    %2324 = arith.extui %2323 : vector<1x128xi1> to vector<1x128xi32>
    %2325 = arith.sitofp %2324 : vector<1x128xi32> to vector<1x128xf32>
    %cst_406 = arith.constant 1.000000e+00 : f32
    %2326 = vector.broadcast %cst_406 : f32 to vector<1x128xf32>
    %2327 = arith.subf %2326, %2325 : vector<1x128xf32>
    %2328 = arith.mulf %2327, %2319 : vector<1x128xf32>
    %cst_407 = arith.constant 0.000000e+00 : f32
    %2329 = vector.broadcast %cst_407 : f32 to vector<1x128xf32>
    %2330 = arith.mulf %2325, %2329 : vector<1x128xf32>
    %2331 = arith.addf %2328, %2330 : vector<1x128xf32>
    %cst_408 = arith.constant 0.000000e+00 : f32
    %2332 = vector.broadcast %cst_408 : f32 to vector<1x128xf32>
    %2333 = arith.subf %2332, %2082 : vector<1x128xf32>
    %2334 = arith.addf %2333, %2194 : vector<1x128xf32>
    %cst_409 = arith.constant 1.000000e-01 : f32
    %2335 = vector.broadcast %cst_409 : f32 to vector<1x128xf32>
    %2336 = arith.mulf %2335, %2334 : vector<1x128xf32>
    %2337 = arith.addf %2082, %2336 : vector<1x128xf32>
    %cst_410 = arith.constant 8.000000e-01 : f32
    %2338 = vector.broadcast %cst_410 : f32 to vector<1x128xf32>
    %2339 = arith.mulf %2194, %2338 : vector<1x128xf32>
    %cst_411 = arith.constant 1.000000e+00 : f32
    %2340 = vector.broadcast %cst_411 : f32 to vector<1x128xf32>
    %2341 = arith.cmpf ogt, %2337, %2340 : vector<1x128xf32>
    %2342 = arith.extui %2341 : vector<1x128xi1> to vector<1x128xi32>
    %2343 = arith.sitofp %2342 : vector<1x128xi32> to vector<1x128xf32>
    %cst_412 = arith.constant 1.000000e+00 : f32
    %2344 = vector.broadcast %cst_412 : f32 to vector<1x128xf32>
    %2345 = arith.subf %2344, %2343 : vector<1x128xf32>
    %2346 = arith.mulf %2345, %2337 : vector<1x128xf32>
    %cst_413 = arith.constant 0.000000e+00 : f32
    %2347 = vector.broadcast %cst_413 : f32 to vector<1x128xf32>
    %2348 = arith.mulf %2343, %2347 : vector<1x128xf32>
    %2349 = arith.addf %2346, %2348 : vector<1x128xf32>
    %cst_414 = arith.constant 0.000000e+00 : f32
    %2350 = vector.broadcast %cst_414 : f32 to vector<1x128xf32>
    %2351 = arith.subf %2350, %2100 : vector<1x128xf32>
    %2352 = arith.addf %2351, %2214 : vector<1x128xf32>
    %cst_415 = arith.constant 1.000000e-01 : f32
    %2353 = vector.broadcast %cst_415 : f32 to vector<1x128xf32>
    %2354 = arith.mulf %2353, %2352 : vector<1x128xf32>
    %2355 = arith.addf %2100, %2354 : vector<1x128xf32>
    %cst_416 = arith.constant 8.000000e-01 : f32
    %2356 = vector.broadcast %cst_416 : f32 to vector<1x128xf32>
    %2357 = arith.mulf %2214, %2356 : vector<1x128xf32>
    %cst_417 = arith.constant 1.000000e+00 : f32
    %2358 = vector.broadcast %cst_417 : f32 to vector<1x128xf32>
    %2359 = arith.cmpf ogt, %2355, %2358 : vector<1x128xf32>
    %2360 = arith.extui %2359 : vector<1x128xi1> to vector<1x128xi32>
    %2361 = arith.sitofp %2360 : vector<1x128xi32> to vector<1x128xf32>
    %cst_418 = arith.constant 1.000000e+00 : f32
    %2362 = vector.broadcast %cst_418 : f32 to vector<1x128xf32>
    %2363 = arith.subf %2362, %2361 : vector<1x128xf32>
    %2364 = arith.mulf %2363, %2355 : vector<1x128xf32>
    %cst_419 = arith.constant 0.000000e+00 : f32
    %2365 = vector.broadcast %cst_419 : f32 to vector<1x128xf32>
    %2366 = arith.mulf %2361, %2365 : vector<1x128xf32>
    %2367 = arith.addf %2364, %2366 : vector<1x128xf32>
    %cst_420 = arith.constant 0.000000e+00 : f32
    %2368 = vector.broadcast %cst_420 : f32 to vector<1x128xf32>
    %2369 = arith.subf %2368, %2118 : vector<1x128xf32>
    %2370 = arith.addf %2369, %2234 : vector<1x128xf32>
    %cst_421 = arith.constant 1.000000e-01 : f32
    %2371 = vector.broadcast %cst_421 : f32 to vector<1x128xf32>
    %2372 = arith.mulf %2371, %2370 : vector<1x128xf32>
    %2373 = arith.addf %2118, %2372 : vector<1x128xf32>
    %cst_422 = arith.constant 8.000000e-01 : f32
    %2374 = vector.broadcast %cst_422 : f32 to vector<1x128xf32>
    %2375 = arith.mulf %2234, %2374 : vector<1x128xf32>
    %cst_423 = arith.constant 1.000000e+00 : f32
    %2376 = vector.broadcast %cst_423 : f32 to vector<1x128xf32>
    %2377 = arith.cmpf ogt, %2373, %2376 : vector<1x128xf32>
    %2378 = arith.extui %2377 : vector<1x128xi1> to vector<1x128xi32>
    %2379 = arith.sitofp %2378 : vector<1x128xi32> to vector<1x128xf32>
    %cst_424 = arith.constant 1.000000e+00 : f32
    %2380 = vector.broadcast %cst_424 : f32 to vector<1x128xf32>
    %2381 = arith.subf %2380, %2379 : vector<1x128xf32>
    %2382 = arith.mulf %2381, %2373 : vector<1x128xf32>
    %cst_425 = arith.constant 0.000000e+00 : f32
    %2383 = vector.broadcast %cst_425 : f32 to vector<1x128xf32>
    %2384 = arith.mulf %2379, %2383 : vector<1x128xf32>
    %2385 = arith.addf %2382, %2384 : vector<1x128xf32>
    %cst_426 = arith.constant 0.000000e+00 : f32
    %2386 = vector.broadcast %cst_426 : f32 to vector<1x128xf32>
    %2387 = arith.subf %2386, %2136 : vector<1x128xf32>
    %2388 = arith.addf %2387, %2254 : vector<1x128xf32>
    %cst_427 = arith.constant 1.000000e-01 : f32
    %2389 = vector.broadcast %cst_427 : f32 to vector<1x128xf32>
    %2390 = arith.mulf %2389, %2388 : vector<1x128xf32>
    %2391 = arith.addf %2136, %2390 : vector<1x128xf32>
    %cst_428 = arith.constant 8.000000e-01 : f32
    %2392 = vector.broadcast %cst_428 : f32 to vector<1x128xf32>
    %2393 = arith.mulf %2254, %2392 : vector<1x128xf32>
    %cst_429 = arith.constant 1.000000e+00 : f32
    %2394 = vector.broadcast %cst_429 : f32 to vector<1x128xf32>
    %2395 = arith.cmpf ogt, %2391, %2394 : vector<1x128xf32>
    %2396 = arith.extui %2395 : vector<1x128xi1> to vector<1x128xi32>
    %2397 = arith.sitofp %2396 : vector<1x128xi32> to vector<1x128xf32>
    %cst_430 = arith.constant 1.000000e+00 : f32
    %2398 = vector.broadcast %cst_430 : f32 to vector<1x128xf32>
    %2399 = arith.subf %2398, %2397 : vector<1x128xf32>
    %2400 = arith.mulf %2399, %2391 : vector<1x128xf32>
    %cst_431 = arith.constant 0.000000e+00 : f32
    %2401 = vector.broadcast %cst_431 : f32 to vector<1x128xf32>
    %2402 = arith.mulf %2397, %2401 : vector<1x128xf32>
    %2403 = arith.addf %2400, %2402 : vector<1x128xf32>
    %cst_432 = arith.constant 0.000000e+00 : f32
    %2404 = vector.broadcast %cst_432 : f32 to vector<1x128xf32>
    %2405 = arith.subf %2404, %2154 : vector<1x128xf32>
    %2406 = arith.addf %2405, %2274 : vector<1x128xf32>
    %cst_433 = arith.constant 1.000000e-01 : f32
    %2407 = vector.broadcast %cst_433 : f32 to vector<1x128xf32>
    %2408 = arith.mulf %2407, %2406 : vector<1x128xf32>
    %2409 = arith.addf %2154, %2408 : vector<1x128xf32>
    %cst_434 = arith.constant 8.000000e-01 : f32
    %2410 = vector.broadcast %cst_434 : f32 to vector<1x128xf32>
    %2411 = arith.mulf %2274, %2410 : vector<1x128xf32>
    %cst_435 = arith.constant 1.000000e+00 : f32
    %2412 = vector.broadcast %cst_435 : f32 to vector<1x128xf32>
    %2413 = arith.cmpf ogt, %2409, %2412 : vector<1x128xf32>
    %2414 = arith.extui %2413 : vector<1x128xi1> to vector<1x128xi32>
    %2415 = arith.sitofp %2414 : vector<1x128xi32> to vector<1x128xf32>
    %cst_436 = arith.constant 1.000000e+00 : f32
    %2416 = vector.broadcast %cst_436 : f32 to vector<1x128xf32>
    %2417 = arith.subf %2416, %2415 : vector<1x128xf32>
    %2418 = arith.mulf %2417, %2409 : vector<1x128xf32>
    %cst_437 = arith.constant 0.000000e+00 : f32
    %2419 = vector.broadcast %cst_437 : f32 to vector<1x128xf32>
    %2420 = arith.mulf %2415, %2419 : vector<1x128xf32>
    %2421 = arith.addf %2418, %2420 : vector<1x128xf32>
    %2422 = vector.extract_strided_slice %408 {offsets = [7, 0], sizes = [1, 128], strides = [1, 1]} : vector<10x128xf32> to vector<1x128xf32>
    %2423 = arith.addf %2321, %2422 : vector<1x128xf32>
    %2424 = vector.broadcast %72 : f32 to vector<1x128xf32>
    %2425 = arith.mulf %2424, %2058 : vector<1x128xf32>
    %2426 = arith.addf %2423, %2425 : vector<1x128xf32>
    %2427 = vector.broadcast %73 : f32 to vector<1x128xf32>
    %2428 = arith.mulf %2427, %2076 : vector<1x128xf32>
    %2429 = arith.addf %2426, %2428 : vector<1x128xf32>
    %2430 = vector.broadcast %74 : f32 to vector<1x128xf32>
    %2431 = arith.mulf %2430, %2094 : vector<1x128xf32>
    %2432 = arith.addf %2429, %2431 : vector<1x128xf32>
    %2433 = vector.broadcast %75 : f32 to vector<1x128xf32>
    %2434 = arith.mulf %2433, %2112 : vector<1x128xf32>
    %2435 = arith.addf %2432, %2434 : vector<1x128xf32>
    %2436 = vector.broadcast %76 : f32 to vector<1x128xf32>
    %2437 = arith.mulf %2436, %2130 : vector<1x128xf32>
    %2438 = arith.addf %2435, %2437 : vector<1x128xf32>
    %2439 = vector.broadcast %77 : f32 to vector<1x128xf32>
    %2440 = arith.mulf %2439, %2148 : vector<1x128xf32>
    %2441 = arith.addf %2438, %2440 : vector<1x128xf32>
    %2442 = vector.extract_strided_slice %411 {offsets = [7, 0], sizes = [1, 128], strides = [1, 1]} : vector<10x128xf32> to vector<1x128xf32>
    %2443 = arith.addf %2339, %2442 : vector<1x128xf32>
    %2444 = vector.broadcast %78 : f32 to vector<1x128xf32>
    %2445 = arith.mulf %2444, %2058 : vector<1x128xf32>
    %2446 = arith.addf %2443, %2445 : vector<1x128xf32>
    %2447 = vector.broadcast %79 : f32 to vector<1x128xf32>
    %2448 = arith.mulf %2447, %2076 : vector<1x128xf32>
    %2449 = arith.addf %2446, %2448 : vector<1x128xf32>
    %2450 = vector.broadcast %80 : f32 to vector<1x128xf32>
    %2451 = arith.mulf %2450, %2094 : vector<1x128xf32>
    %2452 = arith.addf %2449, %2451 : vector<1x128xf32>
    %2453 = vector.broadcast %81 : f32 to vector<1x128xf32>
    %2454 = arith.mulf %2453, %2112 : vector<1x128xf32>
    %2455 = arith.addf %2452, %2454 : vector<1x128xf32>
    %2456 = vector.broadcast %82 : f32 to vector<1x128xf32>
    %2457 = arith.mulf %2456, %2130 : vector<1x128xf32>
    %2458 = arith.addf %2455, %2457 : vector<1x128xf32>
    %2459 = vector.broadcast %83 : f32 to vector<1x128xf32>
    %2460 = arith.mulf %2459, %2148 : vector<1x128xf32>
    %2461 = arith.addf %2458, %2460 : vector<1x128xf32>
    %2462 = vector.extract_strided_slice %414 {offsets = [7, 0], sizes = [1, 128], strides = [1, 1]} : vector<10x128xf32> to vector<1x128xf32>
    %2463 = arith.addf %2357, %2462 : vector<1x128xf32>
    %2464 = vector.broadcast %84 : f32 to vector<1x128xf32>
    %2465 = arith.mulf %2464, %2058 : vector<1x128xf32>
    %2466 = arith.addf %2463, %2465 : vector<1x128xf32>
    %2467 = vector.broadcast %85 : f32 to vector<1x128xf32>
    %2468 = arith.mulf %2467, %2076 : vector<1x128xf32>
    %2469 = arith.addf %2466, %2468 : vector<1x128xf32>
    %2470 = vector.broadcast %86 : f32 to vector<1x128xf32>
    %2471 = arith.mulf %2470, %2094 : vector<1x128xf32>
    %2472 = arith.addf %2469, %2471 : vector<1x128xf32>
    %2473 = vector.broadcast %87 : f32 to vector<1x128xf32>
    %2474 = arith.mulf %2473, %2112 : vector<1x128xf32>
    %2475 = arith.addf %2472, %2474 : vector<1x128xf32>
    %2476 = vector.broadcast %88 : f32 to vector<1x128xf32>
    %2477 = arith.mulf %2476, %2130 : vector<1x128xf32>
    %2478 = arith.addf %2475, %2477 : vector<1x128xf32>
    %2479 = vector.broadcast %89 : f32 to vector<1x128xf32>
    %2480 = arith.mulf %2479, %2148 : vector<1x128xf32>
    %2481 = arith.addf %2478, %2480 : vector<1x128xf32>
    %2482 = vector.extract_strided_slice %417 {offsets = [7, 0], sizes = [1, 128], strides = [1, 1]} : vector<10x128xf32> to vector<1x128xf32>
    %2483 = arith.addf %2375, %2482 : vector<1x128xf32>
    %2484 = vector.broadcast %90 : f32 to vector<1x128xf32>
    %2485 = arith.mulf %2484, %2058 : vector<1x128xf32>
    %2486 = arith.addf %2483, %2485 : vector<1x128xf32>
    %2487 = vector.broadcast %91 : f32 to vector<1x128xf32>
    %2488 = arith.mulf %2487, %2076 : vector<1x128xf32>
    %2489 = arith.addf %2486, %2488 : vector<1x128xf32>
    %2490 = vector.broadcast %92 : f32 to vector<1x128xf32>
    %2491 = arith.mulf %2490, %2094 : vector<1x128xf32>
    %2492 = arith.addf %2489, %2491 : vector<1x128xf32>
    %2493 = vector.broadcast %93 : f32 to vector<1x128xf32>
    %2494 = arith.mulf %2493, %2112 : vector<1x128xf32>
    %2495 = arith.addf %2492, %2494 : vector<1x128xf32>
    %2496 = vector.broadcast %94 : f32 to vector<1x128xf32>
    %2497 = arith.mulf %2496, %2130 : vector<1x128xf32>
    %2498 = arith.addf %2495, %2497 : vector<1x128xf32>
    %2499 = vector.broadcast %95 : f32 to vector<1x128xf32>
    %2500 = arith.mulf %2499, %2148 : vector<1x128xf32>
    %2501 = arith.addf %2498, %2500 : vector<1x128xf32>
    %2502 = vector.extract_strided_slice %420 {offsets = [7, 0], sizes = [1, 128], strides = [1, 1]} : vector<10x128xf32> to vector<1x128xf32>
    %2503 = arith.addf %2393, %2502 : vector<1x128xf32>
    %2504 = vector.broadcast %96 : f32 to vector<1x128xf32>
    %2505 = arith.mulf %2504, %2058 : vector<1x128xf32>
    %2506 = arith.addf %2503, %2505 : vector<1x128xf32>
    %2507 = vector.broadcast %97 : f32 to vector<1x128xf32>
    %2508 = arith.mulf %2507, %2076 : vector<1x128xf32>
    %2509 = arith.addf %2506, %2508 : vector<1x128xf32>
    %2510 = vector.broadcast %98 : f32 to vector<1x128xf32>
    %2511 = arith.mulf %2510, %2094 : vector<1x128xf32>
    %2512 = arith.addf %2509, %2511 : vector<1x128xf32>
    %2513 = vector.broadcast %99 : f32 to vector<1x128xf32>
    %2514 = arith.mulf %2513, %2112 : vector<1x128xf32>
    %2515 = arith.addf %2512, %2514 : vector<1x128xf32>
    %2516 = vector.broadcast %100 : f32 to vector<1x128xf32>
    %2517 = arith.mulf %2516, %2130 : vector<1x128xf32>
    %2518 = arith.addf %2515, %2517 : vector<1x128xf32>
    %2519 = vector.broadcast %101 : f32 to vector<1x128xf32>
    %2520 = arith.mulf %2519, %2148 : vector<1x128xf32>
    %2521 = arith.addf %2518, %2520 : vector<1x128xf32>
    %2522 = vector.extract_strided_slice %423 {offsets = [7, 0], sizes = [1, 128], strides = [1, 1]} : vector<10x128xf32> to vector<1x128xf32>
    %2523 = arith.addf %2411, %2522 : vector<1x128xf32>
    %2524 = vector.broadcast %102 : f32 to vector<1x128xf32>
    %2525 = arith.mulf %2524, %2058 : vector<1x128xf32>
    %2526 = arith.addf %2523, %2525 : vector<1x128xf32>
    %2527 = vector.broadcast %103 : f32 to vector<1x128xf32>
    %2528 = arith.mulf %2527, %2076 : vector<1x128xf32>
    %2529 = arith.addf %2526, %2528 : vector<1x128xf32>
    %2530 = vector.broadcast %104 : f32 to vector<1x128xf32>
    %2531 = arith.mulf %2530, %2094 : vector<1x128xf32>
    %2532 = arith.addf %2529, %2531 : vector<1x128xf32>
    %2533 = vector.broadcast %105 : f32 to vector<1x128xf32>
    %2534 = arith.mulf %2533, %2112 : vector<1x128xf32>
    %2535 = arith.addf %2532, %2534 : vector<1x128xf32>
    %2536 = vector.broadcast %106 : f32 to vector<1x128xf32>
    %2537 = arith.mulf %2536, %2130 : vector<1x128xf32>
    %2538 = arith.addf %2535, %2537 : vector<1x128xf32>
    %2539 = vector.broadcast %107 : f32 to vector<1x128xf32>
    %2540 = arith.mulf %2539, %2148 : vector<1x128xf32>
    %2541 = arith.addf %2538, %2540 : vector<1x128xf32>
    %cst_438 = arith.constant 0.000000e+00 : f32
    %2542 = vector.broadcast %cst_438 : f32 to vector<1x128xf32>
    %2543 = arith.subf %2542, %2292 : vector<1x128xf32>
    %2544 = arith.addf %2543, %2313 : vector<1x128xf32>
    %cst_439 = arith.constant 1.000000e-01 : f32
    %2545 = vector.broadcast %cst_439 : f32 to vector<1x128xf32>
    %2546 = arith.mulf %2545, %2544 : vector<1x128xf32>
    %2547 = arith.addf %2292, %2546 : vector<1x128xf32>
    %cst_440 = arith.constant 8.000000e-01 : f32
    %2548 = vector.broadcast %cst_440 : f32 to vector<1x128xf32>
    %2549 = arith.mulf %2313, %2548 : vector<1x128xf32>
    %cst_441 = arith.constant 1.000000e+00 : f32
    %2550 = vector.broadcast %cst_441 : f32 to vector<1x128xf32>
    %2551 = arith.cmpf ogt, %2547, %2550 : vector<1x128xf32>
    %2552 = arith.extui %2551 : vector<1x128xi1> to vector<1x128xi32>
    %2553 = arith.sitofp %2552 : vector<1x128xi32> to vector<1x128xf32>
    %cst_442 = arith.constant 1.000000e+00 : f32
    %2554 = vector.broadcast %cst_442 : f32 to vector<1x128xf32>
    %2555 = arith.subf %2554, %2553 : vector<1x128xf32>
    %2556 = arith.mulf %2555, %2547 : vector<1x128xf32>
    %cst_443 = arith.constant 0.000000e+00 : f32
    %2557 = vector.broadcast %cst_443 : f32 to vector<1x128xf32>
    %2558 = arith.mulf %2553, %2557 : vector<1x128xf32>
    %2559 = arith.addf %2556, %2558 : vector<1x128xf32>
    %2560 = vector.broadcast %114 : f32 to vector<1x128xf32>
    %2561 = arith.mulf %2560, %2286 : vector<1x128xf32>
    %2562 = arith.addf %2549, %2561 : vector<1x128xf32>
    %2563 = vector.broadcast %108 : f32 to vector<1x128xf32>
    %2564 = arith.mulf %2563, %2325 : vector<1x128xf32>
    %2565 = arith.addf %2562, %2564 : vector<1x128xf32>
    %2566 = vector.broadcast %109 : f32 to vector<1x128xf32>
    %2567 = arith.mulf %2566, %2343 : vector<1x128xf32>
    %2568 = arith.addf %2565, %2567 : vector<1x128xf32>
    %2569 = vector.broadcast %110 : f32 to vector<1x128xf32>
    %2570 = arith.mulf %2569, %2361 : vector<1x128xf32>
    %2571 = arith.addf %2568, %2570 : vector<1x128xf32>
    %2572 = vector.broadcast %111 : f32 to vector<1x128xf32>
    %2573 = arith.mulf %2572, %2379 : vector<1x128xf32>
    %2574 = arith.addf %2571, %2573 : vector<1x128xf32>
    %2575 = vector.broadcast %112 : f32 to vector<1x128xf32>
    %2576 = arith.mulf %2575, %2397 : vector<1x128xf32>
    %2577 = arith.addf %2574, %2576 : vector<1x128xf32>
    %2578 = vector.broadcast %113 : f32 to vector<1x128xf32>
    %2579 = arith.mulf %2578, %2415 : vector<1x128xf32>
    %2580 = arith.addf %2577, %2579 : vector<1x128xf32>
    %cst_444 = arith.constant 0.000000e+00 : f32
    %2581 = vector.broadcast %cst_444 : f32 to vector<1x128xf32>
    %2582 = arith.subf %2581, %2331 : vector<1x128xf32>
    %2583 = arith.addf %2582, %2441 : vector<1x128xf32>
    %cst_445 = arith.constant 1.000000e-01 : f32
    %2584 = vector.broadcast %cst_445 : f32 to vector<1x128xf32>
    %2585 = arith.mulf %2584, %2583 : vector<1x128xf32>
    %2586 = arith.addf %2331, %2585 : vector<1x128xf32>
    %cst_446 = arith.constant 1.000000e+00 : f32
    %2587 = vector.broadcast %cst_446 : f32 to vector<1x128xf32>
    %2588 = arith.cmpf ogt, %2586, %2587 : vector<1x128xf32>
    %2589 = arith.extui %2588 : vector<1x128xi1> to vector<1x128xi32>
    %2590 = arith.sitofp %2589 : vector<1x128xi32> to vector<1x128xf32>
    %cst_447 = arith.constant 0.000000e+00 : f32
    %2591 = vector.broadcast %cst_447 : f32 to vector<1x128xf32>
    %2592 = arith.subf %2591, %2349 : vector<1x128xf32>
    %2593 = arith.addf %2592, %2461 : vector<1x128xf32>
    %cst_448 = arith.constant 1.000000e-01 : f32
    %2594 = vector.broadcast %cst_448 : f32 to vector<1x128xf32>
    %2595 = arith.mulf %2594, %2593 : vector<1x128xf32>
    %2596 = arith.addf %2349, %2595 : vector<1x128xf32>
    %cst_449 = arith.constant 1.000000e+00 : f32
    %2597 = vector.broadcast %cst_449 : f32 to vector<1x128xf32>
    %2598 = arith.cmpf ogt, %2596, %2597 : vector<1x128xf32>
    %2599 = arith.extui %2598 : vector<1x128xi1> to vector<1x128xi32>
    %2600 = arith.sitofp %2599 : vector<1x128xi32> to vector<1x128xf32>
    %cst_450 = arith.constant 0.000000e+00 : f32
    %2601 = vector.broadcast %cst_450 : f32 to vector<1x128xf32>
    %2602 = arith.subf %2601, %2367 : vector<1x128xf32>
    %2603 = arith.addf %2602, %2481 : vector<1x128xf32>
    %cst_451 = arith.constant 1.000000e-01 : f32
    %2604 = vector.broadcast %cst_451 : f32 to vector<1x128xf32>
    %2605 = arith.mulf %2604, %2603 : vector<1x128xf32>
    %2606 = arith.addf %2367, %2605 : vector<1x128xf32>
    %cst_452 = arith.constant 1.000000e+00 : f32
    %2607 = vector.broadcast %cst_452 : f32 to vector<1x128xf32>
    %2608 = arith.cmpf ogt, %2606, %2607 : vector<1x128xf32>
    %2609 = arith.extui %2608 : vector<1x128xi1> to vector<1x128xi32>
    %2610 = arith.sitofp %2609 : vector<1x128xi32> to vector<1x128xf32>
    %cst_453 = arith.constant 0.000000e+00 : f32
    %2611 = vector.broadcast %cst_453 : f32 to vector<1x128xf32>
    %2612 = arith.subf %2611, %2385 : vector<1x128xf32>
    %2613 = arith.addf %2612, %2501 : vector<1x128xf32>
    %cst_454 = arith.constant 1.000000e-01 : f32
    %2614 = vector.broadcast %cst_454 : f32 to vector<1x128xf32>
    %2615 = arith.mulf %2614, %2613 : vector<1x128xf32>
    %2616 = arith.addf %2385, %2615 : vector<1x128xf32>
    %cst_455 = arith.constant 1.000000e+00 : f32
    %2617 = vector.broadcast %cst_455 : f32 to vector<1x128xf32>
    %2618 = arith.cmpf ogt, %2616, %2617 : vector<1x128xf32>
    %2619 = arith.extui %2618 : vector<1x128xi1> to vector<1x128xi32>
    %2620 = arith.sitofp %2619 : vector<1x128xi32> to vector<1x128xf32>
    %cst_456 = arith.constant 0.000000e+00 : f32
    %2621 = vector.broadcast %cst_456 : f32 to vector<1x128xf32>
    %2622 = arith.subf %2621, %2403 : vector<1x128xf32>
    %2623 = arith.addf %2622, %2521 : vector<1x128xf32>
    %cst_457 = arith.constant 1.000000e-01 : f32
    %2624 = vector.broadcast %cst_457 : f32 to vector<1x128xf32>
    %2625 = arith.mulf %2624, %2623 : vector<1x128xf32>
    %2626 = arith.addf %2403, %2625 : vector<1x128xf32>
    %cst_458 = arith.constant 1.000000e+00 : f32
    %2627 = vector.broadcast %cst_458 : f32 to vector<1x128xf32>
    %2628 = arith.cmpf ogt, %2626, %2627 : vector<1x128xf32>
    %2629 = arith.extui %2628 : vector<1x128xi1> to vector<1x128xi32>
    %2630 = arith.sitofp %2629 : vector<1x128xi32> to vector<1x128xf32>
    %cst_459 = arith.constant 0.000000e+00 : f32
    %2631 = vector.broadcast %cst_459 : f32 to vector<1x128xf32>
    %2632 = arith.subf %2631, %2421 : vector<1x128xf32>
    %2633 = arith.addf %2632, %2541 : vector<1x128xf32>
    %cst_460 = arith.constant 1.000000e-01 : f32
    %2634 = vector.broadcast %cst_460 : f32 to vector<1x128xf32>
    %2635 = arith.mulf %2634, %2633 : vector<1x128xf32>
    %2636 = arith.addf %2421, %2635 : vector<1x128xf32>
    %cst_461 = arith.constant 1.000000e+00 : f32
    %2637 = vector.broadcast %cst_461 : f32 to vector<1x128xf32>
    %2638 = arith.cmpf ogt, %2636, %2637 : vector<1x128xf32>
    %2639 = arith.extui %2638 : vector<1x128xi1> to vector<1x128xi32>
    %2640 = arith.sitofp %2639 : vector<1x128xi32> to vector<1x128xf32>
    %cst_462 = arith.constant 0.000000e+00 : f32
    %2641 = vector.broadcast %cst_462 : f32 to vector<1x128xf32>
    %2642 = arith.subf %2641, %2559 : vector<1x128xf32>
    %2643 = arith.addf %2642, %2580 : vector<1x128xf32>
    %cst_463 = arith.constant 1.000000e-01 : f32
    %2644 = vector.broadcast %cst_463 : f32 to vector<1x128xf32>
    %2645 = arith.mulf %2644, %2643 : vector<1x128xf32>
    %2646 = arith.addf %2559, %2645 : vector<1x128xf32>
    %cst_464 = arith.constant 8.000000e-01 : f32
    %2647 = vector.broadcast %cst_464 : f32 to vector<1x128xf32>
    %2648 = arith.mulf %2580, %2647 : vector<1x128xf32>
    %cst_465 = arith.constant 1.000000e+00 : f32
    %2649 = vector.broadcast %cst_465 : f32 to vector<1x128xf32>
    %2650 = arith.cmpf ogt, %2646, %2649 : vector<1x128xf32>
    %2651 = arith.extui %2650 : vector<1x128xi1> to vector<1x128xi32>
    %2652 = arith.sitofp %2651 : vector<1x128xi32> to vector<1x128xf32>
    %cst_466 = arith.constant 1.000000e+00 : f32
    %2653 = vector.broadcast %cst_466 : f32 to vector<1x128xf32>
    %2654 = arith.subf %2653, %2652 : vector<1x128xf32>
    %2655 = arith.mulf %2654, %2646 : vector<1x128xf32>
    %cst_467 = arith.constant 0.000000e+00 : f32
    %2656 = vector.broadcast %cst_467 : f32 to vector<1x128xf32>
    %2657 = arith.mulf %2652, %2656 : vector<1x128xf32>
    %2658 = arith.addf %2655, %2657 : vector<1x128xf32>
    %2659 = vector.broadcast %114 : f32 to vector<1x128xf32>
    %2660 = arith.mulf %2659, %2553 : vector<1x128xf32>
    %2661 = arith.addf %2648, %2660 : vector<1x128xf32>
    %2662 = vector.broadcast %108 : f32 to vector<1x128xf32>
    %2663 = arith.mulf %2662, %2590 : vector<1x128xf32>
    %2664 = arith.addf %2661, %2663 : vector<1x128xf32>
    %2665 = vector.broadcast %109 : f32 to vector<1x128xf32>
    %2666 = arith.mulf %2665, %2600 : vector<1x128xf32>
    %2667 = arith.addf %2664, %2666 : vector<1x128xf32>
    %2668 = vector.broadcast %110 : f32 to vector<1x128xf32>
    %2669 = arith.mulf %2668, %2610 : vector<1x128xf32>
    %2670 = arith.addf %2667, %2669 : vector<1x128xf32>
    %2671 = vector.broadcast %111 : f32 to vector<1x128xf32>
    %2672 = arith.mulf %2671, %2620 : vector<1x128xf32>
    %2673 = arith.addf %2670, %2672 : vector<1x128xf32>
    %2674 = vector.broadcast %112 : f32 to vector<1x128xf32>
    %2675 = arith.mulf %2674, %2630 : vector<1x128xf32>
    %2676 = arith.addf %2673, %2675 : vector<1x128xf32>
    %2677 = vector.broadcast %113 : f32 to vector<1x128xf32>
    %2678 = arith.mulf %2677, %2640 : vector<1x128xf32>
    %2679 = arith.addf %2676, %2678 : vector<1x128xf32>
    %cst_468 = arith.constant 0.000000e+00 : f32
    %2680 = vector.broadcast %cst_468 : f32 to vector<1x128xf32>
    %2681 = arith.subf %2680, %2658 : vector<1x128xf32>
    %2682 = arith.addf %2681, %2679 : vector<1x128xf32>
    %cst_469 = arith.constant 1.000000e-01 : f32
    %2683 = vector.broadcast %cst_469 : f32 to vector<1x128xf32>
    %2684 = arith.mulf %2683, %2682 : vector<1x128xf32>
    %2685 = arith.addf %2658, %2684 : vector<1x128xf32>
    %cst_470 = arith.constant 1.000000e+00 : f32
    %2686 = vector.broadcast %cst_470 : f32 to vector<1x128xf32>
    %2687 = arith.cmpf ogt, %2685, %2686 : vector<1x128xf32>
    %2688 = arith.extui %2687 : vector<1x128xi1> to vector<1x128xi32>
    %2689 = arith.sitofp %2688 : vector<1x128xi32> to vector<1x128xf32>
    %c0_471 = arith.constant 0 : index
    %c0_472 = arith.constant 0 : index
    %2690 = vector.load %arg7[%c0_471, %c0_472] : memref<1x128xf32, #tpu.memory_space<vmem>>, vector<1x128xf32>
    tpu.vector_store %arg7[%c0_471, %c0_472], %2689 {strides = array<i32>} : memref<1x128xf32, #tpu.memory_space<vmem>>, vector<1x128xf32>,
    return
  }
  func.func @transform_0(%arg0: i32) -> (i32, i32) {
    %c0_i32 = arith.constant 0 : i32
    %c0_i32_0 = arith.constant 0 : i32
    return %c0_i32, %arg0 : i32, i32
  }
  func.func @transform_1(%arg0: i32) -> (i32, i32, i32) {
    %c0_i32 = arith.constant 0 : i32
    %c0_i32_0 = arith.constant 0 : i32
    %c0_i32_1 = arith.constant 0 : i32
    return %c0_i32, %c0_i32_0, %arg0 : i32, i32, i32
  }
  func.func @transform_2(%arg0: i32) -> i32 {
    %c0_i32 = arith.constant 0 : i32
    %c0_i32_0 = arith.constant 0 : i32
    return %c0_i32 : i32
  }
  func.func @transform_3(%arg0: i32) -> i32 {
    %c0_i32 = arith.constant 0 : i32
    %c0_i32_0 = arith.constant 0 : i32
    return %c0_i32 : i32
  }
  func.func @transform_4(%arg0: i32) -> i32 {
    %c0_i32 = arith.constant 0 : i32
    %c0_i32_0 = arith.constant 0 : i32
    return %c0_i32 : i32
  }
  func.func @transform_5(%arg0: i32) -> i32 {
    %c0_i32 = arith.constant 0 : i32
    %c0_i32_0 = arith.constant 0 : i32
    return %c0_i32 : i32
  }
  func.func @transform_6(%arg0: i32) -> (i32, i32) {
    %c0_i32 = arith.constant 0 : i32
    %c0_i32_0 = arith.constant 0 : i32
    return %c0_i32, %arg0 : i32, i32
  }
}

</mosaic_0001>

<bundles_post_ra>
// kernel: tpu_custom_call.1
= control target key start
LH: loop header
LB: loop body
LE: loop exit
PB: predicated region body
PF: predicated region fallthrough
CT: control target
= control target key end

     0   :  { %s4240_s0 = inlined_call_operand.vmem [shape: f32[12,128], index: 0, kind: input, shape index: {}]   ;;  %s4241_s1 = inlined_call_operand.vmem [shape: f32[12,10,128], index: 1, kind: input, shape index: {}]   ;;  %s4242_s2 = inlined_call_operand.vmem [shape: f32[72], index: 2, kind: input, shape index: {}]   ;;  %s4243_s3 = inlined_call_operand.vmem [shape: f32[36], index: 3, kind: input, shape index: {}]   ;;  %s4244_s4 = inlined_call_operand.vmem [shape: f32[6], index: 4, kind: input, shape index: {}]   ;;  %s4245_s5 = inlined_call_operand.<no memory space> [shape: f32[1], index: 5, kind: input, shape index: {}]   ;;  %s4246_s6 = inlined_call_operand.hbm [shape: f32[1,128], index: 6, kind: output, shape index: {}]  }
   0x1   :  { %4442 = sst [smem:[#allocation86_spill]] %s4245_s5 }
   0x2   :  { %4443 = sst [smem:[#allocation87_spill]] %s4246_s6 }
   0x3   :  { %12 = vsyncpa [#allocation5], 0 }
   0x4   :  { %13 = vsyncpa [#allocation7], 0  ;;  %s33_s23 = sshll.u32 %s4243_s3, 4  ;;  %s34_s23 = int_to_ptr.vmem [resolvable:$true] %s33_s23 }
   0x5   :  { %14 = vsyncpa [#allocation4], 0  ;;  %s24_s26 = sshll.u32 %s4242_s2, 4  ;;  %s2279_s27 = smov [#allocation6]   ;;  %s25_s26 = int_to_ptr.vmem [resolvable:$true] %s24_s26 }
   0x6   :  { %36 = dma.vmem_to_smem %s34_s23, 16, %s2279_s27, [#allocation7]  }
   0x7   :  { %s2280_s28 = smov [#allocation3]   ;;  %s42_s7 = sshll.u32 %s4244_s4, 4  ;;  %s43_s7 = int_to_ptr.vmem [resolvable:$true] %s42_s7 }
   0x8   :  { %27 = dma.vmem_to_smem %s25_s26, 16, %s2280_s28, [#allocation5]  }
   0x9   :  { %s2281_s8 = smov [#allocation8]  }
   0xa   :  { %45 = dma.vmem_to_smem %s43_s7, 16, %s2281_s8, [#allocation7]  }
   0xb   :  { %2273 = dma.done.wait [#allocation5], 16  }
   0xc   :  { %2274 = vsyncadd [#allocation5], 4294967280 }
   0xd   :  { %2275 = dma.done.wait [#allocation7], 32  }
   0xe   :  { %2276 = vsyncadd [#allocation7], 4294967264 }
   0xf   :  { %60 = sfence }
  0x10   :  { %s2328_s3 = sld [smem:[#allocation3]]  ;;  %v2389_v0 = vld [vmem:[%s4240_s0] sm:$0xff]  ;;  %v2129_v4 = vld [vmem:[%s4241_s1 + $0x10] sm:$0xff]  ;;  %v4247_v6 = vmov 0.0  }
  0x11   :  { %s2330_s2 = sld [smem:[#allocation3 + $0x1]]  ;;  %v179_v1 = vperm.slane %v2389_v0, 0  ;;  %v203_v2 = vperm.slane %v2389_v0, 1  ;;  %v178_v3 = vld [vmem:[%s4241_s1] sm:$0xff]  ;;  %v227_v5 = vperm.slane %v2389_v0, 2  ;;  %v251_v14 = vperm.slane %v2389_v0, 3 }
  0x12   :  { %s2332_s9 = sld [smem:[#allocation3 + $0x2]]  ;;  %v2131_v11 = vld [vmem:[%s4241_s1 + $0x20] sm:$0xff]  ;;  %v2133_v19 = vld [vmem:[%s4241_s1 + $0x30] sm:$0xff] }
  0x13   :  { %s2334_s10 = sld [smem:[#allocation3 + $0x3]]  ;;  %vm180_vm0 = vcmp.lt.f32.partialorder %v178_v3, %v179_v1  ;;  %vm204_vm1 = vcmp.lt.f32.partialorder %v2129_v4, %v203_v2  ;;  %vm228_vm2 = vcmp.lt.f32.partialorder %v2131_v11, %v227_v5  ;;  %vm2445_vm3 = vcmp.lt.f32.partialorder %v2133_v19, %v251_v14  ;;  %v2135_v14 = vld [vmem:[%s4241_s1 + $0x40] sm:$0xff] }
  0x14   :  { %s2336_s11 = sld [smem:[#allocation3 + $0x4]]  ;;  %v2409_v7 = vsel %vm180_vm0, 1.0, %v4247_v6  ;;  %v2413_v9 = vsel %vm204_vm1, 1.0, %v4247_v6  ;;  %v2429_v17 = vsel %vm228_vm2, 1.0, %v4247_v6  ;;  %v2134_v50 = vsel %vm2445_vm3, 1.0, %v4247_v6 }
  0x15   :  { %s2338_s12 = sld [smem:[#allocation3 + $0x5]] }
  0x16   :  { %s2340_s4 = sld [smem:[#allocation3 + $0x6]]  ;;  %v183_v8 = vstv %s2328_s3 }
  0x17   :  { %s2342_s13 = sld [smem:[#allocation3 + $0x7]]  ;;  %v207_v10 = vstv %s2330_s2  ;;  %v184_v12 = vmul.f32 %v2409_v7, %v183_v8 }
  0x18   :  { %s2344_s14 = sld [smem:[#allocation3 + $0x8]]  ;;  %v208_v13 = vmul.f32 %v2413_v9, %v207_v10  ;;  %v231_v18 = vstv %s2332_s9 }
  0x19   :  { %s2346_s15 = sld [smem:[#allocation3 + $0x9]]  ;;  %v232_v23 = vmul.f32 %v2429_v17, %v231_v18  ;;  %v255_v51 = vstv %s2334_s10 }
  0x1a   :  { %s2348_s16 = sld [smem:[#allocation3 + $0xa]]  ;;  %v209_v21 = vadd.f32 %v208_v13, %v184_v12  ;;  %v256_v54 = vmul.f32 %v2134_v50, %v255_v51 }
  0x1b   :  { %s2350_s17 = sld [smem:[#allocation3 + $0xb]] }
  0x1c   :  { %s2352_s18 = sld [smem:[#allocation3 + $0xc]]  ;;  %v233_v31 = vadd.f32 %v232_v23, %v209_v21 }
  0x1d   :  { %s2354_s19 = sld [smem:[#allocation3 + $0xd]] }
  0x1e   :  { %4444 = sst [smem:[#allocation13_spill]] %s2344_s14  ;;  %v257_v63 = vadd.f32 %v256_v54, %v233_v31  ;;  %v323_v54 = vperm.slane %v2389_v0, 6 }
  0x1f   :  { %4445 = sst [smem:[#allocation14_spill]] %s2346_s15 }
  0x20   :  { %4446 = sst [smem:[#allocation15_spill]] %s2348_s16 }
  0x21   :  { %4447 = sst [smem:[#allocation16_spill]] %s2350_s17 }
  0x22   :  { %s2356_s20 = sld [smem:[#allocation3 + $0xe]]  ;;  %v186_v15 = vstv %s2352_s18 }
  0x23   :  { %s2358_s21 = sld [smem:[#allocation3 + $0xf]]  ;;  %v210_v16 = vstv %s2354_s19  ;;  %v187_v20 = vmul.f32 %v2409_v7, %v186_v15 }
  0x24   :  { %s2360_s22 = sld [smem:[#allocation3 + $0x10]]  ;;  %v211_v22 = vmul.f32 %v2413_v9, %v210_v16  ;;  %v275_v16 = vperm.slane %v2389_v0, 4 }
  0x25   :  { %s2362_s23 = sld [smem:[#allocation3 + $0x11]] }
  0x26   :  { %s2364_s24 = sld [smem:[#allocation3 + $0x12]]  ;;  %v212_v29 = vadd.f32 %v211_v22, %v187_v20  ;;  %vm276_vm4 = vcmp.lt.f32.partialorder %v2135_v14, %v275_v16 }
  0x27   :  { %s2366_s25 = sld [smem:[#allocation3 + $0x13]] }
  0x28   :  { %s2368_s26 = sld [smem:[#allocation3 + $0x14]]  ;;  %v234_v26 = vstv %s2356_s20 }
  0x29   :  { %s2370_s27 = sld [smem:[#allocation3 + $0x15]]  ;;  %v235_v34 = vmul.f32 %v2429_v17, %v234_v26  ;;  %v258_v55 = vstv %s2358_s21  ;;  %v2137_v26 = vld [vmem:[%s4241_s1 + $0x50] sm:$0xff] }
  0x2a   :  { %s2372_s28 = sld [smem:[#allocation3 + $0x16]]  ;;  %v259_v58 = vmul.f32 %v2134_v50, %v258_v55  ;;  %v282_v18 = vstv %s2360_s22 }
  0x2b   :  { %s2374_s29 = sld [smem:[#allocation3 + $0x17]]  ;;  %v236_v42 = vadd.f32 %v235_v34, %v212_v29  ;;  %v299_v29 = vperm.slane %v2389_v0, 5 }
  0x2c   :  { %s2376_s30 = sld [smem:[#allocation3 + $0x18]] }
  0x2d   :  { %s2378_s7 = sld [smem:[#allocation3 + $0x19]]  ;;  %v260_v3 = vadd.f32 %v259_v58, %v236_v42  ;;  %vm300_vm5 = vcmp.lt.f32.partialorder %v2137_v26, %v299_v29 }
  0x2e   :  { %4448 = sst [smem:[#allocation17_spill]] %s2368_s26 }
  0x2f   :  { %4449 = sst [smem:[#allocation18_spill]] %s2370_s27 }
  0x30   :  { %4450 = sst [smem:[#allocation19_spill]] %s2372_s28 }
  0x31   :  { %4451 = sst [smem:[#allocation20_spill]] %s2374_s29 }
  0x32   :  { %s2380_s8 = sld [smem:[#allocation3 + $0x1a]]  ;;  %v189_v24 = vstv %s2376_s30 }
  0x33   :  { %s2382_s6 = sld [smem:[#allocation3 + $0x1b]]  ;;  %v213_v25 = vstv %s2378_s7  ;;  %v190_v28 = vmul.f32 %v2409_v7, %v189_v24 }
  0x34   :  { %s2384_s5 = sld [smem:[#allocation3 + $0x24]]  ;;  %v214_v30 = vmul.f32 %v2413_v9, %v213_v25 }
  0x35   :  { %s2391_s28 = sld [smem:[#allocation3 + $0x25]] }
  0x36   :  { %s2395_s29 = sld [smem:[#allocation3 + $0x26]]  ;;  %v215_v37 = vadd.f32 %v214_v30, %v190_v28  ;;  %v2136_v28 = vsel %vm276_vm4, 1.0, %v4247_v6  ;;  %v303_v30 = vstv %s2338_s12 }
  0x37   :  { %s2403_s16 = sld [smem:[#allocation3 + $0x30]] }
  0x38   :  { %s2406_s17 = sld [smem:[#allocation3 + $0x31]]  ;;  %v237_v35 = vstv %s2380_s8 }
  0x39   :  { %s2419_s26 = sld [smem:[#allocation3 + $0x1c]]  ;;  %v238_v39 = vmul.f32 %v2429_v17, %v237_v35  ;;  %v261_v59 = vstv %s2382_s6 }
  0x3a   :  { %s2424_s3 = sld [smem:[#allocation3 + $0x32]]  ;;  %v192_v32 = vstv %s2384_s5  ;;  %v262_v4 = vmul.f32 %v2134_v50, %v261_v59 }
  0x3b   :  { %s2435_s14 = sld [smem:[#allocation3 + $0x27]]  ;;  %v216_v33 = vstv %s2391_s28  ;;  %v193_v36 = vmul.f32 %v2409_v7, %v192_v32  ;;  %v239_v47 = vadd.f32 %v238_v39, %v215_v37  ;;  %v283_v32 = vmul.f32 %v2136_v28, %v282_v18 }
  0x3c   :  { %s2440_s18 = sld [smem:[#allocation3 + $0x28]]  ;;  %v217_v38 = vmul.f32 %v2413_v9, %v216_v33  ;;  %v240_v43 = vstv %s2395_s29  ;;  %v306_v37 = vstv %s2362_s23 }
  0x3d   :  { %s2449_s9 = sld [smem:[#allocation3 + $0x33]]  ;;  %v195_v40 = vstv %s2403_s16  ;;  %v241_v48 = vmul.f32 %v2429_v17, %v240_v43  ;;  %v263_v12 = vadd.f32 %v262_v4, %v239_v47  ;;  %v284_v39 = vadd.f32 %v283_v32, %v260_v3 }
  0x3e   :  { %s2453_s19 = sld [smem:[#allocation3 + $0x3c]]  ;;  %v219_v41 = vstv %s2406_s17  ;;  %v196_v44 = vmul.f32 %v2409_v7, %v195_v40  ;;  %v218_v45 = vadd.f32 %v217_v38, %v193_v36 }
  0x3f   :  { %s2459_s20 = sld [smem:[#allocation3 + $0x3d]]  ;;  %v220_v46 = vmul.f32 %v2413_v9, %v219_v41  ;;  %v285_v22 = vstv %s2419_s26 }
  0x40   :  { %s2464_s30 = sld [smem:[#allocation3 + $0x3e]]  ;;  %v243_v49 = vstv %s2424_s3  ;;  %v242_v57 = vadd.f32 %v241_v48, %v218_v45  ;;  %v286_v33 = vmul.f32 %v2136_v28, %v285_v22 }
  0x41   :  { %s2469_s5 = sld [smem:[#allocation3 + $0x3f]]  ;;  %v221_v52 = vadd.f32 %v220_v46, %v196_v44  ;;  %v244_v53 = vmul.f32 %v2429_v17, %v243_v49  ;;  %v264_v8 = vstv %s2435_s14  ;;  %v2138_v44 = vsel %vm300_vm5, 1.0, %v4247_v6 }
  0x42   :  { %s2473_s28 = sld [smem:[#allocation3 + $0x34]]  ;;  %v265_v13 = vmul.f32 %v2134_v50, %v264_v8  ;;  %v288_v23 = vstv %s2440_s18  ;;  %v287_v40 = vadd.f32 %v286_v33, %v263_v12  ;;  %v304_v46 = vmul.f32 %v2138_v44, %v303_v30 }
  0x43   :  { %s2481_s29 = sld [smem:[#allocation3 + $0x40]]  ;;  %v245_v62 = vadd.f32 %v244_v53, %v221_v52  ;;  %v267_v10 = vstv %s2449_s9  ;;  %v289_v34 = vmul.f32 %v2136_v28, %v288_v23  ;;  %v307_v47 = vmul.f32 %v2138_v44, %v306_v37  ;;  %v2587_v23 = vld [vmem:[%s4240_s0 + $0x8] sm:$0xf] }
  0x44   :  { %s2485_s7 = sld [smem:[#allocation3 + $0x1d]]  ;;  %v198_v56 = vstv %s2453_s19  ;;  %v266_v20 = vadd.f32 %v265_v13, %v242_v57  ;;  %v347_v13 = vperm.slane %v2389_v0, 7 }
  0x45   :  { %s2489_s8 = sld [smem:[#allocation3 + $0x1e]]  ;;  %v199_v60 = vmul.f32 %v2409_v7, %v198_v56  ;;  %v222_v61 = vstv %s2459_s20  ;;  %v308_v56 = vadd.f32 %v307_v47, %v284_v39  ;;  %v371_v39 = vperm.slane %v2587_v23, 0 }
  0x46   :  { %s2493_s10 = sld [smem:[#allocation3 + $0x1f]]  ;;  %v223_v1 = vmul.f32 %v2413_v9, %v222_v61  ;;  %v246_v2 = vstv %s2464_s30  ;;  %v268_v9 = vmul.f32 %v2134_v50, %v267_v10  ;;  %v290_v41 = vadd.f32 %v289_v34, %v266_v20  ;;  %v2141_v10 = vld [vmem:[%s4241_s1 + $0x70] sm:$0xff] }
  0x47   :  { %s2497_s21 = sld [smem:[#allocation3 + $0x20]]  ;;  %v247_v5 = vmul.f32 %v2429_v17, %v246_v2  ;;  %v270_v11 = vstv %s2469_s5  ;;  %v279_v17 = vstv %s2336_s11  ;;  %v327_v61 = vstv %s2340_s4 }
  0x48   :  { %s2503_s6 = sld [smem:[#allocation3 + $0x29]]  ;;  %v224_v7 = vadd.f32 %v223_v1, %v199_v60  ;;  %v271_v15 = vmul.f32 %v2134_v50, %v270_v11  ;;  %v269_v21 = vadd.f32 %v268_v9, %v245_v62  ;;  %v291_v24 = vstv %s2473_s28  ;;  %v2139_v50 = vld [vmem:[%s4241_s1 + $0x60] sm:$0xff] }
  0x49   :  { %s2508_s15 = sld [smem:[#allocation3 + $0x35]]  ;;  %v294_v25 = vstv %s2481_s29  ;;  %v280_v31 = vmul.f32 %v2136_v28, %v279_v17  ;;  %v292_v35 = vmul.f32 %v2136_v28, %v291_v24  ;;  %vm324_vm6 = vcmp.lt.f32.partialorder %v2139_v50, %v323_v54 }
  0x4a   :  { %s2513_s3 = sld [smem:[#allocation3 + $0x41]]  ;;  %v248_v19 = vadd.f32 %v247_v5, %v224_v7  ;;  %v295_v36 = vmul.f32 %v2136_v28, %v294_v25  ;;  %v309_v45 = vstv %s2485_s7  ;;  %v330_v1 = vstv %s2364_s24 }
  0x4b   :  { %s2516_s2 = sld [smem:[#allocation3 + $0x21]]  ;;  %v281_v38 = vadd.f32 %v280_v31, %v257_v63  ;;  %v293_v42 = vadd.f32 %v292_v35, %v269_v21  ;;  %v310_v48 = vmul.f32 %v2138_v44, %v309_v45  ;;  %v2140_v63 = vsel %vm324_vm6, 1.0, %v4247_v6 }
  0x4c   :  { %s2524_s11 = sld [smem:[#allocation3 + $0x22]]  ;;  %v272_v27 = vadd.f32 %v271_v15, %v248_v19  ;;  %v333_v2 = vstv %s2489_s8  ;;  %v328_v4 = vmul.f32 %v2140_v63, %v327_v61  ;;  %v331_v5 = vmul.f32 %v2140_v63, %v330_v1 }
  0x4d   :  { %s2529_s22 = sld [smem:[#allocation3 + $0x2a]]  ;;  %v305_v55 = vadd.f32 %v304_v46, %v281_v38  ;;  %v311_v57 = vadd.f32 %v310_v48, %v287_v40  ;;  %v334_v8 = vmul.f32 %v2140_v63, %v333_v2  ;;  %vm348_vm7 = vcmp.lt.f32.partialorder %v2141_v10, %v347_v13  ;;  %v2145_v48 = vld [vmem:[%s4241_s1 + $0x90] sm:$0xff] }
  0x4e   :  { %s2531_s26 = sld [smem:[#allocation3 + $0x36]]  ;;  %v296_v43 = vadd.f32 %v295_v36, %v272_v27  ;;  %v312_v49 = vstv %s2503_s6  ;;  %v332_v14 = vadd.f32 %v331_v5, %v308_v56  ;;  %v351_v19 = vstv %s2342_s13  ;;  %v2143_v36 = vld [vmem:[%s4241_s1 + $0x80] sm:$0xff] }
  0x4f   :  { %s2534_s18 = sld [smem:[#allocation3 + $0x42]]  ;;  %v313_v51 = vmul.f32 %v2138_v44, %v312_v49  ;;  %v315_v52 = vstv %s2508_s15  ;;  %v329_v9 = vadd.f32 %v328_v4, %v305_v55  ;;  %v335_v15 = vadd.f32 %v334_v8, %v311_v57 }
  0x50   :  { %s2536_s12 = sld [smem:[#allocation3 + $0x23]]  ;;  %v318_v53 = vstv %s2513_s3  ;;  %v316_v58 = vmul.f32 %v2138_v44, %v315_v52  ;;  %v2142_v0 = vsel %vm348_vm7, 1.0, %v4247_v6  ;;  %v354_v21 = vstv %s2366_s25 }
  0x51   :  { %s2540_s9 = sld [smem:[#allocation3 + $0x2b]]  ;;  %v314_v59 = vadd.f32 %v313_v51, %v290_v41  ;;  %v319_v60 = vmul.f32 %v2138_v44, %v318_v53  ;;  %v357_v22 = vstv %s2493_s10  ;;  %v352_v26 = vmul.f32 %v2142_v0, %v351_v19 }
  0x52   :  { %s2546_s20 = sld [smem:[#allocation3 + $0x2c]]  ;;  %v317_v62 = vadd.f32 %v316_v58, %v293_v42  ;;  %v355_v27 = vmul.f32 %v2142_v0, %v354_v21  ;;  %v358_v28 = vmul.f32 %v2142_v0, %v357_v22  ;;  %v381_v44 = vstv %s2497_s21 }
  0x53   :  { %s2551_s30 = sld [smem:[#allocation3 + $0x37]]  ;;  %v320_v3 = vadd.f32 %v319_v60, %v296_v43  ;;  %v336_v11 = vstv %s2529_s22  ;;  %v353_v32 = vadd.f32 %v352_v26, %v329_v9  ;;  %vm372_vm8 = vcmp.lt.f32.partialorder %v2143_v36, %v371_v39 }
  0x54   :  { %s2553_s5 = sld [smem:[#allocation3 + $0x43]]  ;;  %v339_v7 = vstv %s2531_s26  ;;  %v337_v16 = vmul.f32 %v2140_v63, %v336_v11  ;;  %v356_v33 = vadd.f32 %v355_v27, %v332_v14  ;;  %v359_v37 = vadd.f32 %v358_v28, %v335_v15 }
  0x55   :  { %s2556_s28 = sld [smem:[#allocation3 + $0x2d]]  ;;  %v342_v12 = vstv %s2534_s18  ;;  %v340_v17 = vmul.f32 %v2140_v63, %v339_v7  ;;  %v2144_v49 = vsel %vm372_vm8, 1.0, %v4247_v6  ;;  %v395_v51 = vperm.slane %v2587_v23, 1  ;;  %v2147_v7 = vld [vmem:[%s4241_s1 + $0xa0] sm:$0xff] }
  0x56   :  { %s2561_s29 = sld [smem:[#allocation3 + $0x2e]]  ;;  %v343_v18 = vmul.f32 %v2140_v63, %v342_v12  ;;  %v338_v20 = vadd.f32 %v337_v16, %v314_v59  ;;  %v382_v55 = vmul.f32 %v2144_v49, %v381_v44  ;;  %v405_v4 = vstv %s2516_s2 }
  0x57   :  { %s2566_s16 = sld [smem:[#allocation3 + $0x2f]]  ;;  %v341_v24 = vadd.f32 %v340_v17, %v317_v62  ;;  %v360_v29 = vstv %s2540_s9  ;;  %vm396_vm9 = vcmp.lt.f32.partialorder %v2145_v48, %v395_v51  ;;  %v419_v14 = vperm.slane %v2587_v23, 2 }
  0x58   :  { %s2572_s4 = sld [smem:[#allocation3 + $0x38]]  ;;  %v344_v25 = vadd.f32 %v343_v18, %v320_v3  ;;  %v361_v34 = vmul.f32 %v2142_v0, %v360_v29  ;;  %v384_v46 = vstv %s2546_s20  ;;  %v383_v62 = vadd.f32 %v382_v55, %v359_v37 }
  0x59   :  { %s2574_s24 = sld [smem:[#allocation3 + $0x44]]  ;;  %v363_v30 = vstv %s2551_s30  ;;  %v385_v56 = vmul.f32 %v2144_v49, %v384_v46  ;;  %v2146_v3 = vsel %vm396_vm9, 1.0, %v4247_v6  ;;  %vm420_vm10 = vcmp.lt.f32.partialorder %v2147_v7, %v419_v14 }
  0x5a   :  { %s2577_s8 = sld [smem:[#allocation3 + $0x39]]  ;;  %v366_v31 = vstv %s2553_s5  ;;  %v364_v35 = vmul.f32 %v2142_v0, %v363_v30  ;;  %v362_v41 = vadd.f32 %v361_v34, %v338_v20  ;;  %v406_v10 = vmul.f32 %v2146_v3, %v405_v4  ;;  %v2149_v30 = vld [vmem:[%s4241_s1 + $0xb0] sm:$0xff] }
  0x5b   :  { %s2582_s17 = sld [smem:[#allocation3 + $0x3a]]  ;;  %v367_v38 = vmul.f32 %v2142_v0, %v366_v31  ;;  %v408_v11 = vstv %s2556_s28  ;;  %v2148_v22 = vsel %vm420_vm10, 1.0, %v4247_v6  ;;  %v443_v34 = vperm.slane %v2587_v23, 3 }
  0x5c   :  { %s4454_s13 = sld [smem:[#allocation13_spill]]  ;;  %v365_v42 = vadd.f32 %v364_v35, %v341_v24  ;;  %v386_v63 = vadd.f32 %v385_v56, %v362_v41  ;;  %v409_v12 = vmul.f32 %v2146_v3, %v408_v11  ;;  %v407_v17 = vadd.f32 %v406_v10, %v383_v62 }
  0x5d   :  { %s2589_s27 = sld [smem:[#allocation3 + $0x3b]]  ;;  %v368_v45 = vadd.f32 %v367_v38, %v344_v25  ;;  %v429_v25 = vstv %s2524_s11  ;;  %v432_v31 = vstv %s2561_s29  ;;  %vm444_vm11 = vcmp.lt.f32.partialorder %v2149_v30, %v443_v34 }
  0x5e   :  { %s4455_s14 = sld [smem:[#allocation17_spill]]  ;;  %v387_v47 = vstv %s2572_s4  ;;  %v410_v19 = vadd.f32 %v409_v12, %v386_v63  ;;  %v430_v29 = vmul.f32 %v2148_v22, %v429_v25  ;;  %v433_v38 = vmul.f32 %v2148_v22, %v432_v31 }
  0x5f   :  { %s2594_s25 = sld [smem:[#allocation3 + $0x45]]  ;;  %v390_v50 = vstv %s2574_s24  ;;  %v388_v57 = vmul.f32 %v2144_v49, %v387_v47  ;;  %v2150_v23 = vsel %vm444_vm11, 1.0, %v4247_v6  ;;  %v453_v44 = vstv %s2536_s12 }
  0x60   :  { %s2599_s22 = sld [smem:[#allocation3 + $0x46]]  ;;  %v391_v58 = vmul.f32 %v2144_v49, %v390_v50  ;;  %v411_v13 = vstv %s2577_s8  ;;  %v431_v37 = vadd.f32 %v430_v29, %v407_v17  ;;  %v456_v50 = vstv %s2566_s16 }
  0x61   :  { %s4456_s26 = sld [smem:[#allocation14_spill]]  ;;  %v389_v1 = vadd.f32 %v388_v57, %v365_v42  ;;  %v412_v18 = vmul.f32 %v2146_v3, %v411_v13  ;;  %v434_v42 = vadd.f32 %v433_v38, %v410_v19  ;;  %v457_v55 = vmul.f32 %v2150_v23, %v456_v50 }
  0x62   :  { %v375_v40 = vstv %s4454_s13  ;;  %s2603_s18 = sld [smem:[#allocation3 + $0x47]]  ;;  %v392_v2 = vadd.f32 %v391_v58, %v368_v45 }
  0x63   :  { %s2607_s9 = sld [smem:[#allocation6]]  ;;  %v376_v53 = vmul.f32 %v2144_v49, %v375_v40  ;;  %v413_v21 = vadd.f32 %v412_v18, %v389_v1  ;;  %v459_v51 = vstv %s2589_s27 }
  0x64   :  { %v378_v43 = vstv %s4455_s14  ;;  %s4457_s30 = sld [smem:[#allocation18_spill]]  ;;  %v460_v56 = vmul.f32 %v2150_v23, %v459_v51 }
  0x65   :  { %s2614_s5 = sld [smem:[#allocation6 + $0x1]]  ;;  %v379_v54 = vmul.f32 %v2144_v49, %v378_v43  ;;  %v377_v60 = vadd.f32 %v376_v53, %v353_v32  ;;  %v414_v9 = vstv %s2594_s25  ;;  %v435_v32 = vstv %s2582_s17 }
  0x66   :  { %s2620_s21 = sld [smem:[#allocation6 + $0x2]]  ;;  %v415_v20 = vmul.f32 %v2146_v3, %v414_v9  ;;  %v436_v39 = vmul.f32 %v2148_v22, %v435_v32  ;;  %v454_v49 = vmul.f32 %v2150_v23, %v453_v44 }
  0x67   :  { %v399_v52 = vstv %s4456_s26  ;;  %s2622_s20 = sld [smem:[#allocation6 + $0x3]]  ;;  %v380_v61 = vadd.f32 %v379_v54, %v356_v33  ;;  %v438_v33 = vstv %s2599_s22 }
  0x68   :  { %s2625_s7 = sld [smem:[#allocation6 + $0x4]]  ;;  %v400_v5 = vmul.f32 %v2146_v3, %v399_v52  ;;  %v416_v26 = vadd.f32 %v415_v20, %v392_v2  ;;  %v439_v40 = vmul.f32 %v2148_v22, %v438_v33  ;;  %v437_v45 = vadd.f32 %v436_v39, %v413_v21 }
  0x69   :  { %s2627_s6 = sld [smem:[#allocation6 + $0x5]]  ;;  %v462_v52 = vstv %s2603_s18  ;;  %v2688_v57 = vadd.f32 %v454_v49, %v431_v37 }
  0x6a   :  { %v402_v59 = vstv %s4457_s30  ;;  %s2631_s4 = sld [smem:[#allocation6 + $0x6]]  ;;  %v401_v15 = vadd.f32 %v400_v5, %v377_v60  ;;  %v440_v46 = vadd.f32 %v439_v40, %v416_v26  ;;  %v463_v58 = vmul.f32 %v2150_v23, %v462_v52 }
  0x6b   :  { %v403_v8 = vmul.f32 %v2146_v3, %v402_v59  ;;  %s4458_s3 = sld [smem:[#allocation15_spill]]  ;;  %4464 = vst [vmem:[#allocation23_spill] sm:$0xff] %v2688_v57  ;;  %v2691_v59 = vstv %s2607_s9  ;;  %v2694_v60 = vstv %s2614_s5  ;;  %v2700_v62 = vadd.f32 %v460_v56, %v437_v45 }
  0x6c   :  { %s2637_s13 = sld [smem:[#allocation6 + $0x7]]  ;;  %4465 = vst [vmem:[#allocation24_spill] sm:$0xff] %v2691_v59  ;;  %v2703_v63 = vmul.f32 0.0, %v2691_v59  ;;  %v2706_v1 = vmul.f32 0.0, %v2694_v60  ;;  %v2710_v2 = vadd.f32 %v463_v58, %v440_v46  ;;  %v2713_v3 = vstv %s2620_s21 }
  0x6d   :  { %s4459_s14 = sld [smem:[#allocation19_spill]]  ;;  %v404_v16 = vadd.f32 %v403_v8, %v380_v61  ;;  %4466 = vst [vmem:[#allocation25_spill] sm:$0xff] %v2694_v60  ;;  %v2698_v61 = vadd.f32 %v457_v55, %v434_v42  ;;  %v2716_v4 = vstv %s2622_s20  ;;  %v2726_v10 = vmul.f32 0.0, %v2713_v3 }
  0x6e   :  { %s2642_s2 = sld [smem:[#allocation6 + $0x8]]  ;;  %4468 = vst [vmem:[#allocation27_spill] sm:$0xff] %v2700_v62  ;;  %v2719_v5 = vstv %s2625_s7  ;;  %v2729_v11 = vmul.f32 0.0, %v2716_v4 }
  0x6f   :  { %s2644_s28 = sld [smem:[#allocation6 + $0x9]]  ;;  %4467 = vst [vmem:[#allocation26_spill] sm:$0xff] %v2698_v61  ;;  %v2732_v7 = vmul.f32 0.0, %v2719_v5  ;;  %v2737_v12 = vstv %s2627_s6 }
  0x70   :  { %s2647_s8 = sld [smem:[#allocation6 + $0xa]]  ;;  %4469 = vst [vmem:[#allocation28_spill] sm:$0xff] %v2713_v3  ;;  %v2740_v13 = vstv %s2631_s4 }
  0x71   :  { %v423_v0 = vstv %s4458_s3  ;;  %s2652_s25 = sld [smem:[#allocation6 + $0xb]]  ;;  %4470 = vst [vmem:[#allocation29_spill] sm:$0xff] %v2716_v4  ;;  %v2755_v17 = vmul.f32 0.0, %v2740_v13 }
  0x72   :  { %v424_v27 = vmul.f32 %v2148_v22, %v423_v0  ;;  %s4460_s26 = sld [smem:[#allocation16_spill]]  ;;  %4471 = vst [vmem:[#allocation30_spill] sm:$0xff] %v2719_v5  ;;  %v2743_v9 = vstv %s2637_s13 }
  0x73   :  { %v426_v24 = vstv %s4459_s14  ;;  %s2657_s23 = sld [smem:[#allocation6 + $0xc]]  ;;  %4472 = vst [vmem:[#allocation31_spill] sm:$0xff] %v2737_v12  ;;  %v2758_v18 = vmul.f32 0.0, %v2743_v9 }
  0x74   :  { %v427_v28 = vmul.f32 %v2148_v22, %v426_v24  ;;  %s4461_s19 = sld [smem:[#allocation20_spill]]  ;;  %v425_v35 = vadd.f32 %v424_v27, %v401_v15  ;;  %4473 = vst [vmem:[#allocation32_spill] sm:$0xff] %v2740_v13  ;;  %v2746_v14 = vstv %s2642_s2 }
  0x75   :  { %s2663_s11 = sld [smem:[#allocation6 + $0xd]]  ;;  %4474 = vst [vmem:[#allocation33_spill] sm:$0xff] %v2743_v9  ;;  %v2763_v19 = vmul.f32 0.0, %v2746_v14  ;;  %v2766_v20 = vstv %s2644_s28 }
  0x76   :  { %v428_v36 = vadd.f32 %v427_v28, %v404_v16  ;;  %s2665_s30 = sld [smem:[#allocation6 + $0xe]]  ;;  %4475 = vst [vmem:[#allocation34_spill] sm:$0xff] %v2746_v14  ;;  %v2752_v16 = vmul.f32 0.0, %v2737_v12  ;;  %v2769_v0 = vstv %s2647_s8  ;;  %v2780_v25 = vmul.f32 0.0, %v2766_v20 }
  0x77   :  { %s2668_s1 = sld [smem:[#allocation6 + $0xf]]  ;;  %4476 = vst [vmem:[#allocation35_spill] sm:$0xff] %v2766_v20  ;;  %v2772_v21 = vstv %s2652_s25  ;;  %v2783_v26 = vmul.f32 0.0, %v2769_v0 }
  0x78   :  { %v447_v41 = vstv %s4460_s26  ;;  %s2673_s29 = sld [smem:[#allocation6 + $0x10]]  ;;  %4477 = vst [vmem:[#allocation36_spill] sm:$0xff] %v2769_v0  ;;  %v2788_v27 = vmul.f32 0.0, %v2772_v21 }
  0x79   :  { %v448_v47 = vmul.f32 %v2150_v23, %v447_v41  ;;  %s2675_s17 = sld [smem:[#allocation6 + $0x11]]  ;;  %4478 = vst [vmem:[#allocation37_spill] sm:$0xff] %v2772_v21  ;;  %v2791_v28 = vstv %s2657_s23 }
  0x7a   :  { %v450_v43 = vstv %s4461_s19  ;;  %s2680_s22 = sld [smem:[#allocation6 + $0x12]]  ;;  %4479 = vst [vmem:[#allocation38_spill] sm:$0xff] %v2788_v27  ;;  %v2804_v33 = vmul.f32 0.0, %v2791_v28 }
  0x7b   :  { %v451_v48 = vmul.f32 %v2150_v23, %v450_v43  ;;  %v2682_v53 = vadd.f32 %v448_v47, %v425_v35  ;;  %s2686_s12 = sld [smem:[#allocation6 + $0x13]]  ;;  %4480 = vst [vmem:[#allocation39_spill] sm:$0xff] %v2791_v28  ;;  %v2794_v29 = vstv %s2663_s11 }
  0x7c   :  { %s2696_s16 = sld [smem:[#allocation6 + $0x14]]  ;;  %4481 = vst [vmem:[#allocation40_spill] sm:$0xff] %v2794_v29  ;;  %v2797_v30 = vstv %s2665_s30  ;;  %v2807_v34 = vmul.f32 0.0, %v2794_v29  ;;  %v513_v41 = vadd.f32 %v2804_v33, %v2688_v57  ;;  %s2283_s30 = smov [#allocation9]  }
  0x7d   :  { %4462 = vst [vmem:[#allocation21_spill] sm:$0xff] %v2682_v53  ;;  %v2684_v54 = vadd.f32 %v451_v48, %v428_v36  ;;  %s2708_s27 = sld [smem:[#allocation6 + $0x15]]  ;;  %v475_v8 = vadd.f32 %v2703_v63, %v2682_v53  ;;  %v2812_v35 = vmul.f32 0.0, %v2797_v30  ;;  %v2815_v36 = vstv %s2668_s1  ;;  %s2004_s1 = sshll.u32 %s2283_s30, 4  ;;  %s2005_s1 = int_to_ptr.vmem [resolvable:$true] %s2004_s1 }
  0x7e   :  { %s2721_s18 = sld [smem:[#allocation6 + $0x16]]  ;;  %4482 = vst [vmem:[#allocation41_spill] sm:$0xff] %v2797_v30  ;;  %v2818_v37 = vstv %s2673_s29  ;;  %v2830_v42 = vmul.f32 0.0, %v2815_v36  ;;  %v516_v48 = vadd.f32 %v2807_v34, %v513_v41 }
  0x7f   :  { %4463 = vst [vmem:[#allocation22_spill] sm:$0xff] %v2684_v54  ;;  %s2734_s9 = sld [smem:[#allocation6 + $0x17]]  ;;  %v478_v15 = vadd.f32 %v2706_v1, %v475_v8  ;;  %v494_v24 = vadd.f32 %v2755_v17, %v2684_v54  ;;  %v2821_v38 = vstv %s2675_s17  ;;  %v2835_v23 = vmul.f32 0.0, %v2818_v37 }
  0x80   :  { %s2748_s5 = sld [smem:[#allocation6 + $0x18]]  ;;  %4483 = vst [vmem:[#allocation42_spill] sm:$0xff] %v2815_v36  ;;  %v2838_v43 = vmul.f32 0.0, %v2821_v38  ;;  %v2841_v44 = vstv %s2680_s22  ;;  %v519_v58 = vadd.f32 %v2812_v35, %v516_v48 }
  0x81   :  { %s2760_s21 = sld [smem:[#allocation6 + $0x19]]  ;;  %v481_v22 = vadd.f32 %v2726_v10, %v478_v15  ;;  %v497_v32 = vadd.f32 %v2758_v18, %v494_v24  ;;  %4484 = vst [vmem:[#allocation43_spill] sm:$0xff] %v2818_v37  ;;  %v2844_v45 = vstv %s2686_s12  ;;  %v2854_v49 = vmul.f32 0.0, %v2841_v44 }
  0x82   :  { %s2774_s20 = sld [smem:[#allocation6 + $0x1a]]  ;;  %4485 = vst [vmem:[#allocation44_spill] sm:$0xff] %v2821_v38  ;;  %v2859_v50 = vmul.f32 0.0, %v2844_v45  ;;  %v2862_v51 = vstv %s2696_s16 }
  0x83   :  { %s2785_s7 = sld [smem:[#allocation6 + $0x1b]]  ;;  %v484_v31 = vadd.f32 %v2729_v11, %v481_v22  ;;  %v500_v40 = vadd.f32 %v2763_v19, %v497_v32  ;;  %4486 = vst [vmem:[#allocation45_spill] sm:$0xff] %v2835_v23  ;;  %v2865_v52 = vstv %s2708_s27  ;;  %v532_v8 = vadd.f32 %v2854_v49, %v2698_v61 }
  0x84   :  { %s2799_s6 = sld [smem:[#allocation6 + $0x1c]]  ;;  %4487 = vst [vmem:[#allocation46_spill] sm:$0xff] %v2838_v43  ;;  %v2868_v55 = vstv %s2721_s18  ;;  %v2877_v15 = vmul.f32 0.0, %v2862_v51  ;;  %v2882_v22 = vmul.f32 0.0, %v2865_v52 }
  0x85   :  { %s2809_s4 = sld [smem:[#allocation6 + $0x1d]]  ;;  %v487_v39 = vadd.f32 %v2732_v7, %v484_v31  ;;  %4488 = vst [vmem:[#allocation47_spill] sm:$0xff] %v2841_v44  ;;  %v503_v47 = vadd.f32 %v2780_v25, %v500_v40  ;;  %v2885_v24 = vmul.f32 0.0, %v2868_v55  ;;  %v2888_v31 = vstv %s2734_s9 }
  0x86   :  { %s2823_s24 = sld [smem:[#allocation6 + $0x1e]]  ;;  %4489 = vst [vmem:[#allocation48_spill] sm:$0xff] %v2844_v45  ;;  %v2891_v32 = vstv %s2748_s5  ;;  %v522_v40 = vadd.f32 %v2830_v42, %v519_v58  ;;  %v535_v41 = vadd.f32 %v2859_v50, %v532_v8 }
  0x87   :  { %s2832_s15 = sld [smem:[#allocation6 + $0x1f]]  ;;  %v2849_v46 = vadd.f32 %v2752_v16, %v487_v39  ;;  %4490 = vst [vmem:[#allocation49_spill] sm:$0xff] %v2862_v51  ;;  %v506_v56 = vadd.f32 %v2783_v26, %v503_v47  ;;  %v2901_v47 = vmul.f32 0.0, %v2888_v31  ;;  %v2906_v48 = vmul.f32 0.0, %v2891_v32 }
  0x88   :  { %s2846_s3 = sld [smem:[#allocation6 + $0x20]]  ;;  %4491 = vst [vmem:[#allocation50_spill] sm:$0xff] %v2865_v52  ;;  %v2909_v6 = vstv %s2760_s21  ;;  %v525_v58 = vadd.f32 %v2835_v23, %v522_v40  ;;  %v538_v8 = vadd.f32 %v2877_v15, %v535_v41 }
  0x89   :  { %s2856_s13 = sld [smem:[#allocation6 + $0x21]]  ;;  %4492 = vst [vmem:[#allocation51_spill] sm:$0xff] %v2868_v55  ;;  %v2896_v39 = vadd.f32 %v2788_v27, %v506_v56  ;;  %v2912_v55 = vstv %s2774_s20  ;;  %v2915_v56 = vstv %s2785_s7  ;;  %v551_v52 = vadd.f32 %v2906_v48, %v2700_v62 }
  0x8a   :  { %s2870_s14 = sld [smem:[#allocation6 + $0x22]]  ;;  %4493 = vst [vmem:[#allocation52_spill] sm:$0xff] %v2885_v24  ;;  %v2932_v51 = vmul.f32 0.0, %v2915_v56  ;;  %v2935_v40 = vstv %s2799_s6  ;;  %v528_v41 = vadd.f32 %v2838_v43, %v525_v58 }
  0x8b   :  { %s2879_s2 = sld [smem:[#allocation6 + $0x23]]  ;;  %4494 = vst [vmem:[#allocation53_spill] sm:$0xff] %v2888_v31  ;;  %v2922_v31 = vmul.f32 0.0, %v2909_v6  ;;  %v2938_v45 = vstv %s2809_s4 }
  0x8c   :  { %4495 = vst [vmem:[#allocation54_spill] sm:$0xff] %v2891_v32  ;;  %s2893_s28 = sld [smem:[#allocation8]]  ;;  %v2925_v32 = vmul.f32 0.0, %v2912_v55  ;;  %v2948_v44 = vmul.f32 0.0, %v2938_v45  ;;  %v2954_v38 = vstv %s2823_s24 }
  0x8d   :  { %4496 = vst [vmem:[#allocation55_spill] sm:$0xff] %v2901_v47  ;;  %s2903_s8 = sld [smem:[#allocation8 + $0x1]]  ;;  %v2957_v37 = vstv %s2832_s15 }
  0x8e   :  { %4497 = vst [vmem:[#allocation56_spill] sm:$0xff] %v2909_v6  ;;  %s2917_s25 = sld [smem:[#allocation8 + $0x2]]  ;;  %v2945_v6 = vmul.f32 0.0, %v2935_v40  ;;  %v2960_v36 = vstv %s2846_s3 }
  0x8f   :  { %4498 = vst [vmem:[#allocation57_spill] sm:$0xff] %v2912_v55  ;;  %s2927_s0 = sld [smem:[#allocation8 + $0x3]]  ;;  %v541_v55 = vadd.f32 %v2882_v22, %v538_v8  ;;  %v2964_v8 = vmul.f32 0.0, %v2954_v38  ;;  %v2974_v30 = vstv %s2856_s13 }
  0x90   :  { %4499 = vst [vmem:[#allocation58_spill] sm:$0xff] %v2915_v56  ;;  %s2940_s10 = sld [smem:[#allocation8 + $0x4]]  ;;  %v554_v56 = vadd.f32 %v2922_v31, %v551_v52  ;;  %v2977_v29 = vstv %s2870_s14 }
  0x91   :  { %4500 = vst [vmem:[#allocation59_spill] sm:$0xff] %v2935_v40  ;;  %s2950_s26 = sld [smem:[#allocation8 + $0x5]]  ;;  %v544_v58 = vadd.f32 %v2885_v24, %v541_v55  ;;  %v2967_v40 = vmul.f32 0.0, %v2957_v37  ;;  %v2980_v28 = vstv %s2879_s2 }
  0x92   :  { %4501 = vst [vmem:[#allocation60_spill] sm:$0xff] %v2938_v45  ;;  %v2970_v45 = vmul.f32 0.0, %v2960_v36  ;;  %v557_v52 = vadd.f32 %v2925_v32, %v554_v56  ;;  %v2993_v21 = vmul.f32 0.0, %v2980_v28  ;;  %s4513_s11 = sld [smem:[#allocation86_spill]] }
  0x93   :  { %4502 = vst [vmem:[#allocation61_spill] sm:$0xff] %v2945_v6  ;;  %v547_v55 = vadd.f32 %v2901_v47, %v544_v58  ;;  %v3001_v58 = vstv %s2893_s28  ;;  %s4841_s22 = sld [smem:[#allocation87_spill]] }
  0x94   :  { %4503 = vst [vmem:[#allocation62_spill] sm:$0xff] %v2948_v44  ;;  %v560_v56 = vadd.f32 %v2932_v51, %v557_v52  ;;  %v3009_v52 = vstv %s2903_s8  ;;  %v3014_v9 = vstv %s2917_s25 }
  0x95   :  { %4504 = vst [vmem:[#allocation63_spill] sm:$0xff] %v2954_v38  ;;  %v2986_v38 = vmul.f32 0.0, %v2974_v30  ;;  %v593_v14 = vmul.f32 0.0, %v3009_v52  ;;  %v3017_v13 = vstv %s2927_s0  ;;  %v644_v24 = vmul.f32 0.8, %v547_v55 }
  0x96   :  { %4505 = vst [vmem:[#allocation64_spill] sm:$0xff] %v2957_v37  ;;  %v570_v37 = vadd.f32 %v2964_v8, %v2710_v2  ;;  %v3025_v3 = vstv %s2940_s10 }
  0x97   :  { %4506 = vst [vmem:[#allocation65_spill] sm:$0xff] %v2960_v36  ;;  %v2989_v36 = vmul.f32 0.0, %v2977_v29  ;;  %v3028_v60 = vstv %s2950_s26  ;;  %v602_v43 = vmul.f32 0.0, %v3025_v3 }
  0x98   :  { %4507 = vst [vmem:[#allocation66_spill] sm:$0xff] %v2974_v30  ;;  %v2998_v0 = vstv %s4513_s11  ;;  %v573_v30 = vadd.f32 %v2967_v40, %v570_v37  ;;  %v596_v37 = vmul.f32 0.0, %v3014_v9 }
  0x99   :  { %4508 = vst [vmem:[#allocation67_spill] sm:$0xff] %v2977_v29  ;;  %v3005_v20 = vmul.f32 0.0, %v2998_v0  ;;  %v590_v29 = vmul.f32 0.0, %v3001_v58  ;;  %s2006_s12 = sshll.u32 %s4841_s22, 4  ;;  %s2007_s12 = int_to_ptr.hbm [resolvable:$true] %s2006_s12 }
  0x9a   :  { %4509 = vst [vmem:[#allocation68_spill] sm:$0xff] %v2980_v28  ;;  %v563_v28 = vadd.f32 %v2945_v6, %v560_v56  ;;  %v576_v12 = vadd.f32 %v2970_v45, %v573_v30  ;;  %v609_v56 = vmul.f32 0.1, %v2849_v46  ;;  %v605_v30 = vmul.f32 0.0, %v3028_v60 }
  0x9b   :  { %4510 = vst [vmem:[#allocation69_spill] sm:$0xff] %v2986_v38  ;;  %v591_v5 = vadd.f32 %v590_v29, %v3005_v20  ;;  %v611_v29 = vmul.f32 0.8, %v2849_v46 }
  0x9c   :  { %4511 = vst [vmem:[#allocation70_spill] sm:$0xff] %v2989_v36  ;;  %v566_v4 = vadd.f32 %v2948_v44, %v563_v28  ;;  %v579_v59 = vadd.f32 %v2986_v38, %v576_v12  ;;  %vm612_vm12 = vcmp.gt.f32.partialorder %v609_v56, 1.0  ;;  %v675_v28 = vrot.slane %v2682_v53, 1 }
  0x9d   :  { %4512 = vst [vmem:[#allocation71_spill] sm:$0xff] %v2993_v21  ;;  %v594_v47 = vadd.f32 %v593_v14, %v591_v5  ;;  %v622_v12 = vmul.f32 0.8, %v2896_v39  ;;  %v633_v53 = vmul.f32 0.8, %v528_v41 }
  0x9e   :  { %4514 = vst [vmem:[#allocation72_spill] sm:$0xff] %v2998_v0  ;;  %v599_v0 = vmul.f32 0.0, %v3017_v13  ;;  %v582_v44 = vadd.f32 %v2989_v36, %v579_v59  ;;  %v642_v38 = vmul.f32 0.1, %v547_v55 }
  0x9f   :  { %4515 = vst [vmem:[#allocation73_spill] sm:$0xff] %v3001_v58 }
  0xa0   :  { %4516 = vst [vmem:[#allocation74_spill] sm:$0xff] %v3009_v52  ;;  %v4521_v52 = vmov 0.0   ;;  %v585_v46 = vadd.f32 %v2993_v21, %v582_v44  ;;  %vm645_vm15 = vcmp.gt.f32.partialorder %v642_v38, 1.0 }
  0xa1   :  { %4517 = vst [vmem:[#allocation75_spill] sm:$0xff] %v3014_v9  ;;  %v597_v9 = vadd.f32 %v596_v37, %v594_v47  ;;  %v3039_v6 = vsel %vm612_vm12, 1.0, %v4521_v52 }
  0xa2   :  { %4518 = vst [vmem:[#allocation76_spill] sm:$0xff] %v3017_v13  ;;  %v620_v13 = vmul.f32 0.1, %v2896_v39  ;;  %v615_v5 = vsub.f32 1.0, %v3039_v6  ;;  %v617_v14 = vmul.f32 0.0, %v3039_v6 }
  0xa3   :  { %4519 = vst [vmem:[#allocation77_spill] sm:$0xff] %v3025_v3  ;;  %v600_v3 = vadd.f32 %v599_v0, %v597_v9 }
  0xa4   :  { %4520 = vst [vmem:[#allocation78_spill] sm:$0xff] %v3028_v60  ;;  %vm623_vm13 = vcmp.gt.f32.partialorder %v620_v13, 1.0  ;;  %v631_v60 = vmul.f32 0.1, %v528_v41  ;;  %v616_v59 = vmul.f32 %v615_v5, %v609_v56  ;;  %v653_v56 = vmul.f32 0.1, %v566_v4 }
  0xa5   :  { %v3046_v27 = vsel %vm623_vm13, 1.0, %v4521_v52  ;;  %v603_v39 = vadd.f32 %v602_v43, %v600_v3  ;;  %v655_v5 = vmul.f32 0.8, %v566_v4  ;;  %v3060_v3 = vsel %vm645_vm15, 1.0, %v4521_v52 }
  0xa6   :  { %4522 = vst [vmem:[#allocation79_spill] sm:$0xff] %v3046_v27  ;;  %v626_v47 = vsub.f32 1.0, %v3046_v27  ;;  %v628_v37 = vmul.f32 0.0, %v3046_v27  ;;  %vm634_vm14 = vcmp.gt.f32.partialorder %v631_v60, 1.0  ;;  %v3053_v23 = vadd.f32 %v617_v14, %v616_v59 }
  0xa7   :  { %v3051_v36 = vsel %vm634_vm14, 1.0, %v4521_v52  ;;  %v606_v41 = vadd.f32 %v605_v30, %v603_v39  ;;  %4525 = vst [vmem:[#allocation82_spill] sm:$0xff] %v3060_v3  ;;  %v664_v43 = vmul.f32 0.1, %v585_v46  ;;  %v648_v55 = vsub.f32 1.0, %v3060_v3 }
  0xa8   :  { %4523 = vst [vmem:[#allocation80_spill] sm:$0xff] %v3053_v23  ;;  %v627_v44 = vmul.f32 %v626_v47, %v620_v13  ;;  %v637_v9 = vsub.f32 1.0, %v3051_v36  ;;  %v639_v0 = vmul.f32 0.0, %v3051_v36  ;;  %v650_v14 = vmul.f32 0.0, %v3060_v3 }
  0xa9   :  { %vm656_vm0 = vcmp.gt.f32.partialorder %v653_v56, 1.0  ;;  %v666_v13 = vmul.f32 0.8, %v585_v46  ;;  %vm667_vm1 = vcmp.gt.f32.partialorder %v664_v43, 1.0  ;;  %v677_v4 = vadd.f32 %v675_v28, %v611_v29 }
  0xaa   :  { %v3057_v21 = vadd.f32 %v628_v37, %v627_v44  ;;  %v638_v27 = vmul.f32 %v637_v9, %v631_v60  ;;  %v3067_v30 = vsel %vm656_vm0, 1.0, %v4521_v52  ;;  %v649_v47 = vmul.f32 %v648_v55, %v642_v38 }
  0xab   :  { %4527 = vst [vmem:[#allocation84_spill] sm:$0xff] %v3067_v30  ;;  %v659_v60 = vsub.f32 1.0, %v3067_v30  ;;  %v661_v37 = vmul.f32 0.0, %v3067_v30  ;;  %v3072_v39 = vsel %vm667_vm1, 1.0, %v4521_v52  ;;  %v691_v46 = vrot.slane %v2684_v54, 1 }
  0xac   :  { %4524 = vst [vmem:[#allocation81_spill] sm:$0xff] %v3057_v21  ;;  %v3064_v59 = vadd.f32 %v639_v0, %v638_v27  ;;  %v670_v44 = vsub.f32 1.0, %v3072_v39  ;;  %v672_v9 = vmul.f32 0.0, %v3072_v39  ;;  %v679_v27 = vadd.f32 %v677_v4, %v2703_v63 }
  0xad   :  { %4528 = vst [vmem:[#allocation85_spill] sm:$0xff] %v3072_v39  ;;  %v3078_v0 = vadd.f32 %v650_v14, %v649_v47  ;;  %v707_v38 = vrot.slane %v2688_v57, 1  ;;  %v723_v29 = vrot.slane %v2698_v61, 1  ;;  %v693_v21 = vadd.f32 %v691_v46, %v622_v12  ;;  %v4533_v46 = vld [vmem:[#allocation61_spill] sm:$0xff] }
  0xae   :  { %4526 = vst [vmem:[#allocation83_spill] sm:$0xff] %v3064_v59  ;;  %v660_v59 = vmul.f32 %v659_v60, %v653_v56  ;;  %v671_v28 = vmul.f32 %v670_v44, %v664_v43  ;;  %v681_v55 = vadd.f32 %v679_v27, %v2706_v1  ;;  %v739_v23 = vrot.slane %v2700_v62, 1 }
  0xaf   :  { %v709_v39 = vadd.f32 %v707_v38, %v633_v53  ;;  %v725_v3 = vadd.f32 %v723_v29, %v644_v24  ;;  %v755_v63 = vrot.slane %v2710_v2, 1  ;;  %v695_v14 = vadd.f32 %v693_v21, %v2755_v17  ;;  %v4534_v29 = vld [vmem:[#allocation74_spill] sm:$0xff] }
  0xb0   :  { %v3084_v30 = vadd.f32 %v661_v37, %v660_v59  ;;  %v3087_v4 = vadd.f32 %v672_v9, %v671_v28  ;;  %v683_v56 = vadd.f32 %v681_v55, %v2726_v10  ;;  %v741_v47 = vadd.f32 %v739_v23, %v655_v5  ;;  %v4531_v9 = vld [vmem:[#allocation69_spill] sm:$0xff] }
  0xb1   :  { %v711_v43 = vadd.f32 %v709_v39, %v2804_v33  ;;  %v727_v1 = vadd.f32 %v725_v3, %v2854_v49  ;;  %v757_v12 = vadd.f32 %v755_v63, %v666_v13  ;;  %v771_v60 = vmul.f32 0.1, %v606_v41  ;;  %v4530_v13 = vld [vmem:[#allocation52_spill] sm:$0xff]  ;;  %v4537_v63 = vld [vmem:[#allocation55_spill] sm:$0xff] }
  0xb2   :  { %v685_v59 = vadd.f32 %v683_v56, %v2729_v11  ;;  %v697_v53 = vadd.f32 %v695_v14, %v2758_v18  ;;  %v743_v24 = vadd.f32 %v741_v47, %v2906_v48  ;;  %v773_v37 = vmul.f32 0.8, %v606_v41  ;;  %v4538_v14 = vld [vmem:[#allocation70_spill] sm:$0xff] }
  0xb3   :  { %v713_v44 = vadd.f32 %v711_v43, %v2807_v34  ;;  %v729_v10 = vadd.f32 %v727_v1, %v2859_v50  ;;  %v759_v17 = vadd.f32 %v757_v12, %v2964_v8  ;;  %vm774_vm2 = vcmp.gt.f32.partialorder %v771_v60, 1.0  ;;  %v4539_v43 = vld [vmem:[#allocation75_spill] sm:$0xff]  ;;  %v4540_v12 = vld [vmem:[#allocation62_spill] sm:$0xff] }
  0xb4   :  { %v687_v21 = vadd.f32 %v685_v59, %v2732_v7  ;;  %v699_v33 = vadd.f32 %v697_v53, %v2763_v19  ;;  %v745_v23 = vadd.f32 %v743_v24, %v2922_v31  ;;  %v3103_v11 = vsel %vm774_vm2, 1.0, %v4521_v52  ;;  %v4541_v53 = vld [vmem:[#allocation76_spill] sm:$0xff]  ;;  %v4542_v24 = vld [vmem:[#allocation82_spill] sm:$0xff] }
  0xb5   :  { %v715_v18 = vadd.f32 %v713_v44, %v2812_v35  ;;  %v731_v49 = vadd.f32 %v729_v10, %v2877_v15  ;;  %v761_v34 = vadd.f32 %v759_v17, %v2967_v40  ;;  %v777_v50 = vsub.f32 1.0, %v3103_v11  ;;  %v4543_v44 = vld [vmem:[#allocation77_spill] sm:$0xff]  ;;  %v4544_v10 = vld [vmem:[#allocation84_spill] sm:$0xff] }
  0xb6   :  { %v689_v48 = vadd.f32 %v687_v21, %v2752_v16  ;;  %v701_v8 = vadd.f32 %v699_v33, %v2780_v25  ;;  %v747_v7 = vadd.f32 %v745_v23, %v2925_v32  ;;  %v779_v19 = vmul.f32 0.0, %v3103_v11  ;;  %v4529_v25 = vld [vmem:[#allocation45_spill] sm:$0xff]  ;;  %v4545_v21 = vld [vmem:[#allocation71_spill] sm:$0xff]  ;;  %v4546_v23 = vld [vmem:[#allocation78_spill] sm:$0xff] }
  0xb7   :  { %v717_v31 = vadd.f32 %v715_v18, %v2830_v42  ;;  %v733_v41 = vadd.f32 %v731_v49, %v2882_v22  ;;  %v763_v35 = vadd.f32 %v761_v34, %v2970_v45  ;;  %v778_v5 = vmul.f32 %v777_v50, %v771_v60  ;;  %v4532_v22 = vld [vmem:[#allocation38_spill] sm:$0xff]  ;;  %v4547_v18 = vld [vmem:[#allocation85_spill] sm:$0xff]  ;;  %v4548_v34 = vld [vmem:[#allocation80_spill] sm:$0xff] }
  0xb8   :  { %v703_v15 = vadd.f32 %v701_v8, %v2783_v26  ;;  %v749_v40 = vadd.f32 %v747_v7, %v2932_v51  ;;  %v782_v3 = vadd.f32 %v773_v37, %v3005_v20  ;;  %v783_v16 = vmul.f32 %v3039_v6, %v3001_v58  ;;  %v4535_v51 = vld [vmem:[#allocation79_spill] sm:$0xff]  ;;  %v4536_v20 = vld [vmem:[#allocation46_spill] sm:$0xff] }
  0xb9   :  { %v719_v32 = vadd.f32 %v717_v31, %v4529_v25  ;;  %v735_v39 = vadd.f32 %v733_v41, %v4530_v13  ;;  %v765_v42 = vadd.f32 %v763_v35, %v4531_v9  ;;  %v3124_v27 = vadd.f32 %v779_v19, %v778_v5  ;;  %v4549_v19 = vld [vmem:[#allocation81_spill] sm:$0xff]  ;;  %v4550_v35 = vld [vmem:[#allocation83_spill] sm:$0xff] }
  0xba   :  { %v705_v45 = vadd.f32 %v703_v15, %v4532_v22  ;;  %v751_v38 = vadd.f32 %v749_v40, %v4533_v46  ;;  %v784_v26 = vadd.f32 %v783_v16, %v782_v3  ;;  %v785_v28 = vmul.f32 %v4535_v51, %v4534_v29 }
  0xbb   :  { %v721_v55 = vadd.f32 %v719_v32, %v4536_v20  ;;  %v737_v56 = vadd.f32 %v735_v39, %v4537_v63  ;;  %v767_v47 = vadd.f32 %v765_v42, %v4538_v14  ;;  %v787_v1 = vmul.f32 %v3051_v36, %v4539_v43 }
  0xbc   :  { %v753_v60 = vadd.f32 %v751_v38, %v4540_v12  ;;  %v786_v59 = vadd.f32 %v785_v28, %v784_v26  ;;  %v789_v37 = vmul.f32 %v4542_v24, %v4541_v53  ;;  %v791_v17 = vmul.f32 %v4544_v10, %v4543_v44 }
  0xbd   :  { %v769_v33 = vadd.f32 %v767_v47, %v4545_v21  ;;  %v793_v49 = vmul.f32 %v4547_v18, %v4546_v23  ;;  %v795_v50 = vsub.f32 0.0, %v4548_v34  ;;  %v3144_v8 = vmul.f32 0.8, %v689_v48 }
  0xbe   :  { %v788_v7 = vadd.f32 %v787_v1, %v786_v59  ;;  %v807_v31 = vsub.f32 0.0, %v4549_v19  ;;  %v3147_v41 = vmul.f32 0.8, %v705_v45  ;;  %v819_v5 = vsub.f32 0.0, %v4550_v35 }
  0xbf   :  { %v796_v15 = vadd.f32 %v795_v50, %v689_v48  ;;  %v3150_v40 = vmul.f32 0.8, %v721_v55  ;;  %v831_v3 = vsub.f32 0.0, %v3078_v0  ;;  %v3153_v16 = vmul.f32 0.8, %v737_v56 }
  0xc0   :  { %v790_v25 = vadd.f32 %v789_v37, %v788_v7  ;;  %v808_v32 = vadd.f32 %v807_v31, %v705_v45  ;;  %v820_v13 = vadd.f32 %v819_v5, %v721_v55  ;;  %v843_v39 = vsub.f32 0.0, %v3084_v30  ;;  %v4551_v37 = vld [vmem:[#allocation21_spill] sm:$0xff] }
  0xc1   :  { %v797_v9 = vmul.f32 0.1, %v796_v15  ;;  %v832_v42 = vadd.f32 %v831_v3, %v737_v56  ;;  %v3156_v22 = vmul.f32 0.8, %v753_v60  ;;  %v855_v46 = vsub.f32 0.0, %v3087_v4 }
  0xc2   :  { %v792_v38 = vadd.f32 %v791_v17, %v790_v25  ;;  %v809_v26 = vmul.f32 0.1, %v808_v32  ;;  %v821_v48 = vmul.f32 0.1, %v820_v13  ;;  %v844_v28 = vadd.f32 %v843_v39, %v753_v60 }
  0xc3   :  { %v798_v20 = vadd.f32 %v797_v9, %v4548_v34  ;;  %v833_v63 = vmul.f32 0.1, %v832_v42  ;;  %v856_v14 = vadd.f32 %v855_v46, %v769_v33  ;;  %v3160_v47 = vmul.f32 0.8, %v769_v33 }
  0xc4   :  { %v3162_v45 = vadd.f32 %v793_v49, %v792_v38  ;;  %v810_v55 = vadd.f32 %v809_v26, %v4549_v19  ;;  %v822_v56 = vadd.f32 %v821_v48, %v4550_v35  ;;  %v845_v1 = vmul.f32 0.1, %v844_v28 }
  0xc5   :  { %vm800_vm3 = vcmp.gt.f32.partialorder %v798_v20, 1.0  ;;  %v834_v12 = vadd.f32 %v833_v63, %v3078_v0  ;;  %v857_v59 = vmul.f32 0.1, %v856_v14  ;;  %v867_v17 = vrot.slane %v4551_v37, 2  ;;  %v4552_v14 = vld [vmem:[#allocation24_spill] sm:$0xff] }
  0xc6   :  { %v3169_v60 = vsel %vm800_vm3, 1.0, %v4521_v52  ;;  %vm812_vm4 = vcmp.gt.f32.partialorder %v810_v55, 1.0  ;;  %vm824_vm5 = vcmp.gt.f32.partialorder %v822_v56, 1.0  ;;  %v846_v21 = vadd.f32 %v845_v1, %v3084_v30  ;;  %v4573_v37 = vld [vmem:[#allocation48_spill] sm:$0xff] }
  0xc7   :  { %v803_v33 = vsub.f32 1.0, %v3169_v60  ;;  %v805_v49 = vmul.f32 0.0, %v3169_v60  ;;  %v3175_v34 = vsel %vm812_vm4, 1.0, %v4521_v52  ;;  %v3178_v50 = vsel %vm824_vm5, 1.0, %v4521_v52 }
  0xc8   :  { %v815_v0 = vsub.f32 1.0, %v3175_v34  ;;  %v817_v7 = vmul.f32 0.0, %v3175_v34  ;;  %v827_v19 = vsub.f32 1.0, %v3178_v50  ;;  %v829_v31 = vmul.f32 0.0, %v3178_v50 }
  0xc9   :  { %v804_v35 = vmul.f32 %v803_v33, %v798_v20  ;;  %vm836_vm6 = vcmp.gt.f32.partialorder %v834_v12, 1.0  ;;  %vm848_vm7 = vcmp.gt.f32.partialorder %v846_v21, 1.0  ;;  %v858_v30 = vadd.f32 %v857_v59, %v3087_v4 }
  0xca   :  { %v816_v5 = vmul.f32 %v815_v0, %v810_v55  ;;  %v828_v15 = vmul.f32 %v827_v19, %v822_v56  ;;  %v3186_v3 = vsel %vm836_vm6, 1.0, %v4521_v52  ;;  %v3189_v25 = vsel %vm848_vm7, 1.0, %v4521_v52  ;;  %v4553_v56 = vld [vmem:[#allocation25_spill] sm:$0xff] }
  0xcb   :  { %v3191_v32 = vadd.f32 %v805_v49, %v804_v35  ;;  %v839_v13 = vsub.f32 1.0, %v3186_v3  ;;  %v841_v39 = vmul.f32 0.0, %v3186_v3  ;;  %v851_v9 = vsub.f32 1.0, %v3189_v25  ;;  %v4556_v49 = vld [vmem:[#allocation29_spill] sm:$0xff] }
  0xcc   :  { %v3196_v42 = vadd.f32 %v817_v7, %v816_v5  ;;  %v3198_v46 = vadd.f32 %v829_v31, %v828_v15  ;;  %v853_v4 = vmul.f32 0.0, %v3189_v25  ;;  %vm860_vm8 = vcmp.gt.f32.partialorder %v858_v30, 1.0  ;;  %v4557_v7 = vld [vmem:[#allocation30_spill] sm:$0xff]  ;;  %v4558_v31 = vld [vmem:[#allocation31_spill] sm:$0xff]  ;;  %v4559_v15 = vld [vmem:[#allocation32_spill] sm:$0xff] }
  0xcd   :  { %v840_v38 = vmul.f32 %v839_v13, %v834_v12  ;;  %v852_v26 = vmul.f32 %v851_v9, %v846_v21  ;;  %v3202_v48 = vsel %vm860_vm8, 1.0, %v4521_v52  ;;  %v869_v28 = vadd.f32 %v867_v17, %v3144_v8  ;;  %v4555_v12 = vld [vmem:[#allocation28_spill] sm:$0xff] }
  0xce   :  { %v863_v20 = vsub.f32 1.0, %v3202_v48  ;;  %v865_v63 = vmul.f32 0.0, %v3202_v48  ;;  %v870_v55 = vmul.f32 %v3039_v6, %v4552_v14  ;;  %v872_v1 = vmul.f32 %v4535_v51, %v4553_v56 }
  0xcf   :  { %v3211_v59 = vadd.f32 %v841_v39, %v840_v38  ;;  %v3213_v33 = vadd.f32 %v853_v4, %v852_v26  ;;  %v874_v21 = vmul.f32 %v3051_v36, %v4555_v12  ;;  %v876_v8 = vmul.f32 %v4542_v24, %v4556_v49  ;;  %v4560_v39 = vld [vmem:[#allocation33_spill] sm:$0xff]  ;;  %v4561_v4 = vld [vmem:[#allocation34_spill] sm:$0xff] }
  0xd0   :  { %v864_v17 = vmul.f32 %v863_v20, %v858_v30  ;;  %v871_v0 = vadd.f32 %v870_v55, %v869_v28  ;;  %v878_v19 = vmul.f32 %v4544_v10, %v4557_v7  ;;  %v880_v35 = vmul.f32 %v4547_v18, %v4558_v31  ;;  %v4563_v28 = vld [vmem:[#allocation35_spill] sm:$0xff]  ;;  %v4564_v55 = vld [vmem:[#allocation36_spill] sm:$0xff]  ;;  %v4565_v7 = vld [vmem:[#allocation37_spill] sm:$0xff] }
  0xd1   :  { %4554 = vst [vmem:[#allocation45_spill] sm:$0xff] %v3213_v33  ;;  %v882_v5 = vrot.slane %v2684_v54, 2  ;;  %v885_v13 = vmul.f32 %v3039_v6, %v4559_v15  ;;  %v887_v9 = vmul.f32 %v4535_v51, %v4560_v39  ;;  %v889_v38 = vmul.f32 %v3051_v36, %v4561_v4  ;;  %v4566_v39 = vld [vmem:[#allocation39_spill] sm:$0xff] }
  0xd2   :  { %v3230_v26 = vadd.f32 %v865_v63, %v864_v17  ;;  %v873_v30 = vadd.f32 %v872_v1, %v871_v0  ;;  %v891_v20 = vmul.f32 %v4542_v24, %v4563_v28  ;;  %v893_v31 = vmul.f32 %v4544_v10, %v4564_v55  ;;  %v4567_v63 = vld [vmem:[#allocation40_spill] sm:$0xff]  ;;  %v4568_v17 = vld [vmem:[#allocation41_spill] sm:$0xff]  ;;  %v4569_v28 = vld [vmem:[#allocation42_spill] sm:$0xff] }
  0xd3   :  { %v884_v54 = vadd.f32 %v882_v5, %v3147_v41  ;;  %v895_v15 = vmul.f32 %v4547_v18, %v4565_v7  ;;  %v897_v49 = vrot.slane %v2688_v57, 2  ;;  %v900_v12 = vmul.f32 %v3039_v6, %v4566_v39  ;;  %v4570_v5 = vld [vmem:[#allocation43_spill] sm:$0xff]  ;;  %v4571_v57 = vld [vmem:[#allocation44_spill] sm:$0xff] }
  0xd4   :  { %4562 = vst [vmem:[#allocation52_spill] sm:$0xff] %v3230_v26  ;;  %v875_v4 = vadd.f32 %v874_v21, %v873_v30  ;;  %v902_v1 = vmul.f32 %v4535_v51, %v4567_v63  ;;  %v904_v0 = vmul.f32 %v3051_v36, %v4568_v17  ;;  %v906_v55 = vmul.f32 %v4542_v24, %v4569_v28  ;;  %v4572_v30 = vld [vmem:[#allocation47_spill] sm:$0xff] }
  0xd5   :  { %v886_v56 = vadd.f32 %v885_v13, %v884_v54  ;;  %v899_v41 = vadd.f32 %v897_v49, %v3150_v40  ;;  %v908_v7 = vmul.f32 %v4544_v10, %v4570_v5  ;;  %v910_v14 = vmul.f32 %v4547_v18, %v4571_v57  ;;  %v4574_v54 = vld [vmem:[#allocation49_spill] sm:$0xff]  ;;  %v4575_v49 = vld [vmem:[#allocation50_spill] sm:$0xff] }
  0xd6   :  { %v877_v39 = vadd.f32 %v876_v8, %v875_v4  ;;  %v912_v21 = vrot.slane %v2698_v61, 2  ;;  %v915_v63 = vmul.f32 %v3039_v6, %v4572_v30  ;;  %v917_v17 = vmul.f32 %v4535_v51, %v4573_v37  ;;  %v4576_v8 = vld [vmem:[#allocation51_spill] sm:$0xff]  ;;  %v4577_v61 = vld [vmem:[#allocation53_spill] sm:$0xff]  ;;  %v4579_v37 = vld [vmem:[#allocation56_spill] sm:$0xff] }
  0xd7   :  { %v888_v26 = vadd.f32 %v887_v9, %v886_v56  ;;  %v901_v28 = vadd.f32 %v900_v12, %v899_v41  ;;  %v919_v40 = vmul.f32 %v3051_v36, %v4574_v54  ;;  %v921_v13 = vmul.f32 %v4542_v24, %v4575_v49  ;;  %v4578_v12 = vld [vmem:[#allocation54_spill] sm:$0xff] }
  0xd8   :  { %v879_v5 = vadd.f32 %v878_v19, %v877_v39  ;;  %v914_v57 = vadd.f32 %v912_v21, %v3153_v16  ;;  %v923_v4 = vmul.f32 %v4544_v10, %v4576_v8  ;;  %v925_v30 = vmul.f32 %v4547_v18, %v4577_v61  ;;  %v4580_v39 = vld [vmem:[#allocation57_spill] sm:$0xff]  ;;  %v4581_v61 = vld [vmem:[#allocation58_spill] sm:$0xff] }
  0xd9   :  { %v890_v33 = vadd.f32 %v889_v38, %v888_v26  ;;  %v903_v52 = vadd.f32 %v902_v1, %v901_v28  ;;  %v927_v56 = vrot.slane %v2700_v62, 2  ;;  %v930_v9 = vmul.f32 %v3039_v6, %v4578_v12  ;;  %v4582_v28 = vld [vmem:[#allocation59_spill] sm:$0xff]  ;;  %v4583_v12 = vld [vmem:[#allocation60_spill] sm:$0xff] }
  0xda   :  { %v881_v41 = vadd.f32 %v880_v35, %v879_v5  ;;  %v916_v54 = vadd.f32 %v915_v63, %v914_v57  ;;  %v932_v19 = vmul.f32 %v4535_v51, %v4579_v37  ;;  %v934_v16 = vmul.f32 %v3051_v36, %v4580_v39  ;;  %v4584_v39 = vld [vmem:[#allocation63_spill] sm:$0xff] }
  0xdb   :  { %v892_v21 = vadd.f32 %v891_v20, %v890_v33  ;;  %v905_v8 = vadd.f32 %v904_v0, %v903_v52  ;;  %v929_v49 = vadd.f32 %v927_v56, %v3156_v22  ;;  %v936_v38 = vmul.f32 %v4542_v24, %v4581_v61  ;;  %v4585_v20 = vld [vmem:[#allocation64_spill] sm:$0xff]  ;;  %v4586_v0 = vld [vmem:[#allocation65_spill] sm:$0xff]  ;;  %v4587_v61 = vld [vmem:[#allocation66_spill] sm:$0xff] }
  0xdc   :  { %v918_v26 = vadd.f32 %v917_v17, %v916_v54  ;;  %v938_v1 = vmul.f32 %v4544_v10, %v4582_v28  ;;  %v940_v57 = vmul.f32 %v4547_v18, %v4583_v12  ;;  %v942_v35 = vrot.slane %v2710_v2, 2 }
  0xdd   :  { %v894_v63 = vadd.f32 %v893_v31, %v892_v21  ;;  %v907_v5 = vadd.f32 %v906_v55, %v905_v8  ;;  %v931_v37 = vadd.f32 %v930_v9, %v929_v49  ;;  %v945_v52 = vmul.f32 %v3039_v6, %v4584_v39  ;;  %v4588_v8 = vld [vmem:[#allocation67_spill] sm:$0xff] }
  0xde   :  { %v920_v33 = vadd.f32 %v919_v40, %v918_v26  ;;  %v944_v22 = vadd.f32 %v942_v35, %v3160_v47  ;;  %v947_v17 = vmul.f32 %v4535_v51, %v4585_v20  ;;  %v949_v54 = vmul.f32 %v3051_v36, %v4586_v0  ;;  %v4589_v40 = vld [vmem:[#allocation68_spill] sm:$0xff] }
  0xdf   :  { %v896_v56 = vadd.f32 %v895_v15, %v894_v63  ;;  %v909_v28 = vadd.f32 %v908_v7, %v907_v5  ;;  %v933_v12 = vadd.f32 %v932_v19, %v931_v37  ;;  %v951_v31 = vmul.f32 %v4542_v24, %v4587_v61  ;;  %v4590_v37 = vld [vmem:[#allocation72_spill] sm:$0xff] }
  0xe0   :  { %v922_v55 = vadd.f32 %v921_v13, %v920_v33  ;;  %v946_v49 = vadd.f32 %v945_v52, %v944_v22  ;;  %v953_v6 = vmul.f32 %v4544_v10, %v4588_v8  ;;  %v955_v47 = vmul.f32 %v4547_v18, %v4589_v40 }
  0xe1   :  { %v911_v9 = vadd.f32 %v910_v14, %v909_v28  ;;  %v935_v21 = vadd.f32 %v934_v16, %v933_v12  ;;  %v957_v51 = vsub.f32 0.0, %v3124_v27  ;;  %v961_v36 = vmul.f32 0.8, %v3162_v45 }
  0xe2   :  { %v924_v15 = vadd.f32 %v923_v4, %v922_v55  ;;  %v948_v7 = vadd.f32 %v947_v17, %v946_v49  ;;  %v969_v19 = vmul.f32 %v3103_v11, %v4590_v37  ;;  %v971_v24 = vmul.f32 %v3169_v60, %v3001_v58 }
  0xe3   :  { %v937_v13 = vadd.f32 %v936_v38, %v935_v21  ;;  %v958_v10 = vadd.f32 %v957_v51, %v3162_v45  ;;  %v973_v18 = vmul.f32 %v3175_v34, %v4534_v29  ;;  %v975_v14 = vmul.f32 %v3178_v50, %v4539_v43 }
  0xe4   :  { %v926_v12 = vadd.f32 %v925_v30, %v924_v15  ;;  %v950_v16 = vadd.f32 %v949_v54, %v948_v7  ;;  %v970_v26 = vadd.f32 %v969_v19, %v961_v36  ;;  %v977_v4 = vmul.f32 %v3186_v3, %v4541_v53 }
  0xe5   :  { %v939_v28 = vadd.f32 %v938_v1, %v937_v13  ;;  %v959_v11 = vmul.f32 0.1, %v958_v10  ;;  %v979_v35 = vmul.f32 %v3189_v25, %v4543_v44  ;;  %v981_v45 = vmul.f32 %v3202_v48, %v4546_v23 }
  0xe6   :  { %v952_v38 = vadd.f32 %v951_v31, %v950_v16  ;;  %v972_v63 = vadd.f32 %v971_v24, %v970_v26  ;;  %v983_v5 = vsub.f32 0.0, %v3191_v32  ;;  %v3313_v52 = vmul.f32 0.8, %v881_v41 }
  0xe7   :  { %v941_v30 = vadd.f32 %v940_v57, %v939_v28  ;;  %v960_v33 = vadd.f32 %v959_v11, %v3124_v27  ;;  %v995_v22 = vsub.f32 0.0, %v3196_v42  ;;  %v3317_v17 = vmul.f32 0.8, %v896_v56  ;;  %v4592_v28 = vld [vmem:[#allocation45_spill] sm:$0xff] }
  0xe8   :  { %v954_v1 = vadd.f32 %v953_v6, %v952_v38  ;;  %v974_v54 = vadd.f32 %v973_v18, %v972_v63  ;;  %v984_v55 = vadd.f32 %v983_v5, %v881_v41  ;;  %v1007_v49 = vsub.f32 0.0, %v3198_v46 }
  0xe9   :  { %vm962_vm9 = vcmp.gt.f32.partialorder %v960_v33, 1.0  ;;  %v996_v21 = vadd.f32 %v995_v22, %v896_v56  ;;  %v3320_v31 = vmul.f32 0.8, %v911_v9  ;;  %v1019_v51 = vsub.f32 0.0, %v3211_v59 }
  0xea   :  { %v956_v36 = vadd.f32 %v955_v47, %v954_v1  ;;  %v4591_v15 = vmov 0.0   ;;  %v976_v27 = vadd.f32 %v975_v14, %v974_v54  ;;  %v985_v7 = vmul.f32 0.1, %v984_v55 }
  0xeb   :  { %v3324_v57 = vsel %vm962_vm9, 1.0, %v4591_v15  ;;  %v997_v24 = vmul.f32 0.1, %v996_v21  ;;  %v1008_v41 = vadd.f32 %v1007_v49, %v911_v9  ;;  %v1020_v56 = vadd.f32 %v1019_v51, %v926_v12 }
  0xec   :  { %v965_v19 = vsub.f32 1.0, %v3324_v57  ;;  %v967_v6 = vmul.f32 0.0, %v3324_v57  ;;  %v978_v13 = vadd.f32 %v977_v4, %v976_v27  ;;  %v986_v10 = vadd.f32 %v985_v7, %v3191_v32 }
  0xed   :  { %v3329_v18 = vmul.f32 0.8, %v926_v12  ;;  %v998_v47 = vadd.f32 %v997_v24, %v3196_v42  ;;  %v1009_v26 = vmul.f32 0.1, %v1008_v41  ;;  %v1031_v11 = vsub.f32 0.0, %v4592_v28 }
  0xee   :  { %v966_v16 = vmul.f32 %v965_v19, %v960_v33  ;;  %v980_v14 = vadd.f32 %v979_v35, %v978_v13  ;;  %vm988_vm10 = vcmp.gt.f32.partialorder %v986_v10, 1.0  ;;  %v1021_v38 = vmul.f32 0.1, %v1020_v56 }
  0xef   :  { %v3333_v63 = vmul.f32 0.8, %v941_v30  ;;  %v3338_v9 = vsel %vm988_vm10, 1.0, %v4591_v15  ;;  %vm1000_vm11 = vcmp.gt.f32.partialorder %v998_v47, 1.0  ;;  %v1010_v32 = vadd.f32 %v1009_v26, %v3198_v46 }
  0xf0   :  { %v3335_v5 = vadd.f32 %v967_v6, %v966_v16  ;;  %v3341_v12 = vadd.f32 %v981_v45, %v980_v14  ;;  %v991_v42 = vsub.f32 1.0, %v3338_v9  ;;  %v993_v4 = vmul.f32 0.0, %v3338_v9  ;;  %v4593_v45 = vld [vmem:[#allocation52_spill] sm:$0xff] }
  0xf1   :  { %v3346_v35 = vsel %vm1000_vm11, 1.0, %v4591_v15  ;;  %vm1012_vm12 = vcmp.gt.f32.partialorder %v1010_v32, 1.0  ;;  %v1022_v1 = vadd.f32 %v1021_v38, %v3211_v59  ;;  %v1032_v46 = vadd.f32 %v1031_v11, %v941_v30  ;;  %v4598_v38 = vld [vmem:[#allocation24_spill] sm:$0xff] }
  0xf2   :  { %v1003_v33 = vsub.f32 1.0, %v3346_v35  ;;  %v1005_v22 = vmul.f32 0.0, %v3346_v35  ;;  %v992_v54 = vmul.f32 %v991_v42, %v986_v10  ;;  %v3352_v55 = vsel %vm1012_vm12, 1.0, %v4591_v15 }
  0xf3   :  { %v1043_v49 = vsub.f32 0.0, %v4593_v45  ;;  %v1015_v51 = vsub.f32 1.0, %v3352_v55  ;;  %v1017_v27 = vmul.f32 0.0, %v3352_v55  ;;  %vm1024_vm13 = vcmp.gt.f32.partialorder %v1022_v1, 1.0 }
  0xf4   :  { %v1004_v21 = vmul.f32 %v1003_v33, %v998_v47  ;;  %v3357_v7 = vadd.f32 %v993_v4, %v992_v54  ;;  %v3360_v19 = vsel %vm1024_vm13, 1.0, %v4591_v15  ;;  %v1033_v6 = vmul.f32 0.1, %v1032_v46  ;;  %v4596_v47 = vld [vmem:[#allocation21_spill] sm:$0xff] }
  0xf5   :  { %v1044_v59 = vadd.f32 %v1043_v49, %v956_v36  ;;  %v1016_v41 = vmul.f32 %v1015_v51, %v1010_v32  ;;  %v1027_v30 = vsub.f32 1.0, %v3360_v19  ;;  %v1029_v13 = vmul.f32 0.0, %v3360_v19  ;;  %v4599_v4 = vld [vmem:[#allocation25_spill] sm:$0xff] }
  0xf6   :  { %4594 = vst [vmem:[#allocation69_spill] sm:$0xff] %v3357_v7  ;;  %v3362_v24 = vadd.f32 %v1005_v22, %v1004_v21  ;;  %v1034_v10 = vadd.f32 %v1033_v6, %v4592_v28  ;;  %v3367_v16 = vmul.f32 0.8, %v956_v36  ;;  %v1055_v26 = vrot.slane %v4596_v47, 3  ;;  %v4600_v28 = vld [vmem:[#allocation28_spill] sm:$0xff]  ;;  %v4603_v21 = vld [vmem:[#allocation30_spill] sm:$0xff] }
  0xf7   :  { %v1045_v56 = vmul.f32 0.1, %v1044_v59  ;;  %v3370_v11 = vadd.f32 %v1017_v27, %v1016_v41  ;;  %v1028_v14 = vmul.f32 %v1027_v30, %v1022_v1  ;;  %v1058_v42 = vmul.f32 %v3169_v60, %v4598_v38  ;;  %v4602_v1 = vld [vmem:[#allocation29_spill] sm:$0xff]  ;;  %v4604_v59 = vld [vmem:[#allocation31_spill] sm:$0xff]  ;;  %v4605_v30 = vld [vmem:[#allocation22_spill] sm:$0xff] }
  0xf8   :  { %4595 = vst [vmem:[#allocation38_spill] sm:$0xff] %v3362_v24  ;;  %v1060_v32 = vmul.f32 %v3175_v34, %v4599_v4  ;;  %vm1036_vm14 = vcmp.gt.f32.partialorder %v1034_v10, 1.0  ;;  %v1057_v22 = vadd.f32 %v1055_v26, %v3313_v52  ;;  %v1062_v36 = vmul.f32 %v3178_v50, %v4600_v28  ;;  %v4608_v38 = vld [vmem:[#allocation34_spill] sm:$0xff] }
  0xf9   :  { %4597 = vst [vmem:[#allocation61_spill] sm:$0xff] %v3370_v11  ;;  %v1046_v33 = vadd.f32 %v1045_v56, %v4593_v45  ;;  %v3380_v54 = vadd.f32 %v1029_v13, %v1028_v14  ;;  %v3383_v46 = vsel %vm1036_vm14, 1.0, %v4591_v15  ;;  %v1064_v49 = vmul.f32 %v3186_v3, %v4602_v1  ;;  %v4606_v56 = vld [vmem:[#allocation32_spill] sm:$0xff] }
  0xfa   :  { %v1066_v51 = vmul.f32 %v3189_v25, %v4603_v21  ;;  %v1039_v27 = vsub.f32 1.0, %v3383_v46  ;;  %v1041_v45 = vmul.f32 0.0, %v3383_v46  ;;  %v1059_v52 = vadd.f32 %v1058_v42, %v1057_v22  ;;  %v4607_v42 = vld [vmem:[#allocation33_spill] sm:$0xff] }
  0xfb   :  { %4601 = vst [vmem:[#allocation79_spill] sm:$0xff] %v3380_v54  ;;  %vm1048_vm15 = vcmp.gt.f32.partialorder %v1046_v33, 1.0  ;;  %v1068_v41 = vmul.f32 %v3202_v48, %v4604_v59  ;;  %v1070_v13 = vrot.slane %v4605_v30, 3  ;;  %v1073_v26 = vmul.f32 %v3169_v60, %v4606_v56  ;;  %v4609_v59 = vld [vmem:[#allocation35_spill] sm:$0xff] }
  0xfc   :  { %v3392_v6 = vsel %vm1048_vm15, 1.0, %v4591_v15  ;;  %v1040_v14 = vmul.f32 %v1039_v27, %v1034_v10  ;;  %v1061_v28 = vadd.f32 %v1060_v32, %v1059_v52  ;;  %v1075_v22 = vmul.f32 %v3175_v34, %v4607_v42  ;;  %v4611_v27 = vld [vmem:[#allocation36_spill] sm:$0xff]  ;;  %v4612_v32 = vld [vmem:[#allocation37_spill] sm:$0xff]  ;;  %v4613_v52 = vld [vmem:[#allocation23_spill] sm:$0xff] }
  0xfd   :  { %v1051_v21 = vsub.f32 1.0, %v3392_v6  ;;  %v1053_v1 = vmul.f32 0.0, %v3392_v6  ;;  %v1072_v4 = vadd.f32 %v1070_v13, %v3317_v17  ;;  %v1077_v47 = vmul.f32 %v3178_v50, %v4608_v38  ;;  %v4614_v42 = vld [vmem:[#allocation39_spill] sm:$0xff] }
  0xfe   :  { %v1079_v30 = vmul.f32 %v3186_v3, %v4609_v59  ;;  %v3408_v54 = vadd.f32 %v1041_v45, %v1040_v14  ;;  %v1063_v10 = vadd.f32 %v1062_v36, %v1061_v28  ;;  %v1081_v15 = vmul.f32 %v3189_v25, %v4611_v27  ;;  %v4616_v59 = vld [vmem:[#allocation40_spill] sm:$0xff]  ;;  %v4619_v14 = vld [vmem:[#allocation43_spill] sm:$0xff] }
  0xff   :  { %v1052_v56 = vmul.f32 %v1051_v21, %v1046_v33  ;;  %v1074_v11 = vadd.f32 %v1073_v26, %v1072_v4  ;;  %v1083_v17 = vmul.f32 %v3202_v48, %v4612_v32  ;;  %v1085_v13 = vrot.slane %v4613_v52, 3  ;;  %v4617_v33 = vld [vmem:[#allocation41_spill] sm:$0xff]  ;;  %v4618_v21 = vld [vmem:[#allocation42_spill] sm:$0xff] }
 0x100   :  { %4610 = vst [vmem:[#allocation46_spill] sm:$0xff] %v3408_v54  ;;  %v1088_v24 = vmul.f32 %v3169_v60, %v4614_v42  ;;  %v1065_v7 = vadd.f32 %v1064_v49, %v1063_v10  ;;  %v1090_v45 = vmul.f32 %v3175_v34, %v4616_v59  ;;  %v1092_v28 = vmul.f32 %v3178_v50, %v4617_v33  ;;  %v4620_v42 = vld [vmem:[#allocation44_spill] sm:$0xff]  ;;  %v4621_v49 = vld [vmem:[#allocation26_spill] sm:$0xff]  ;;  %v4622_v10 = vld [vmem:[#allocation47_spill] sm:$0xff] }
 0x101   :  { %v3417_v38 = vadd.f32 %v1053_v1, %v1052_v56  ;;  %v1076_v36 = vadd.f32 %v1075_v22, %v1074_v11  ;;  %v1087_v4 = vadd.f32 %v1085_v13, %v3320_v31  ;;  %v1094_v26 = vmul.f32 %v3186_v3, %v4618_v21  ;;  %v4623_v11 = vld [vmem:[#allocation48_spill] sm:$0xff]  ;;  %v4624_v22 = vld [vmem:[#allocation49_spill] sm:$0xff] }
 0x102   :  { %v1096_v52 = vmul.f32 %v3189_v25, %v4619_v14  ;;  %v1067_v32 = vadd.f32 %v1066_v51, %v1065_v7  ;;  %v1098_v1 = vmul.f32 %v3202_v48, %v4620_v42  ;;  %v1100_v56 = vrot.slane %v4621_v49, 3  ;;  %v4626_v51 = vld [vmem:[#allocation50_spill] sm:$0xff]  ;;  %v4627_v14 = vld [vmem:[#allocation51_spill] sm:$0xff] }
 0x103   :  { %4615 = vst [vmem:[#allocation55_spill] sm:$0xff] %v3417_v38  ;;  %v1103_v59 = vmul.f32 %v3169_v60, %v4622_v10  ;;  %v1078_v27 = vadd.f32 %v1077_v47, %v1076_v36  ;;  %v1089_v33 = vadd.f32 %v1088_v24, %v1087_v4  ;;  %v1105_v31 = vmul.f32 %v3175_v34, %v4623_v11  ;;  %v4628_v47 = vld [vmem:[#allocation53_spill] sm:$0xff]  ;;  %v4629_v11 = vld [vmem:[#allocation54_spill] sm:$0xff] }
 0x104   :  { %v1107_v13 = vmul.f32 %v3178_v50, %v4624_v22  ;;  %v3437_v21 = vadd.f32 %v1068_v41, %v1067_v32  ;;  %v1102_v7 = vadd.f32 %v1100_v56, %v3329_v18  ;;  %v1109_v42 = vmul.f32 %v3186_v3, %v4626_v51  ;;  %v4630_v32 = vld [vmem:[#allocation56_spill] sm:$0xff]  ;;  %v4631_v56 = vld [vmem:[#allocation57_spill] sm:$0xff] }
 0x105   :  { %v1111_v49 = vmul.f32 %v3189_v25, %v4627_v14  ;;  %v1080_v38 = vadd.f32 %v1079_v30, %v1078_v27  ;;  %v1091_v10 = vadd.f32 %v1090_v45, %v1089_v33  ;;  %v1113_v24 = vmul.f32 %v3202_v48, %v4628_v47  ;;  %v4632_v27 = vld [vmem:[#allocation58_spill] sm:$0xff]  ;;  %v4633_v47 = vld [vmem:[#allocation59_spill] sm:$0xff] }
 0x106   :  { %4625 = vst [vmem:[#allocation70_spill] sm:$0xff] %v3437_v21  ;;  %v1115_v36 = vrot.slane %v2700_v62, 3  ;;  %v1104_v4 = vadd.f32 %v1103_v59, %v1102_v7  ;;  %v1118_v41 = vmul.f32 %v3169_v60, %v4629_v11  ;;  %v1120_v18 = vmul.f32 %v3175_v34, %v4630_v32  ;;  %v4634_v7 = vld [vmem:[#allocation60_spill] sm:$0xff] }
 0x107   :  { %v1122_v51 = vmul.f32 %v3178_v50, %v4631_v56  ;;  %v1082_v22 = vadd.f32 %v1081_v15, %v1080_v38  ;;  %v1093_v54 = vadd.f32 %v1092_v28, %v1091_v10  ;;  %v1124_v45 = vmul.f32 %v3186_v3, %v4632_v27 }
 0x108   :  { %v1117_v30 = vadd.f32 %v1115_v36, %v3333_v63  ;;  %v1106_v33 = vadd.f32 %v1105_v31, %v1104_v4  ;;  %v1126_v59 = vmul.f32 %v3189_v25, %v4633_v47  ;;  %v1128_v11 = vmul.f32 %v3202_v48, %v4634_v7 }
 0x109   :  { %v1130_v62 = vrot.slane %v2710_v2, 3  ;;  %v1084_v32 = vadd.f32 %v1083_v17, %v1082_v22  ;;  %v1095_v14 = vadd.f32 %v1094_v26, %v1093_v54  ;;  %v1133_v15 = vmul.f32 %v3169_v60, %v4584_v39 }
 0x10a   :  { %v1119_v21 = vadd.f32 %v1118_v41, %v1117_v30  ;;  %v1108_v38 = vadd.f32 %v1107_v13, %v1106_v33  ;;  %v1135_v28 = vmul.f32 %v3175_v34, %v4585_v20  ;;  %v1137_v10 = vmul.f32 %v3178_v50, %v4586_v0 }
 0x10b   :  { %v1132_v63 = vadd.f32 %v1130_v62, %v3367_v16  ;;  %v1097_v31 = vadd.f32 %v1096_v52, %v1095_v14  ;;  %v1139_v4 = vmul.f32 %v3186_v3, %v4587_v61  ;;  %v1141_v54 = vmul.f32 %v3189_v25, %v4588_v8 }
 0x10c   :  { %v1121_v36 = vadd.f32 %v1120_v18, %v1119_v21  ;;  %v1110_v17 = vadd.f32 %v1109_v42, %v1108_v38  ;;  %v1143_v60 = vmul.f32 %v3202_v48, %v4589_v40  ;;  %v1145_v62 = vsub.f32 0.0, %v3335_v5 }
 0x10d   :  { %v1134_v26 = vadd.f32 %v1133_v15, %v1132_v63  ;;  %v1099_v16 = vadd.f32 %v1098_v1, %v1097_v31  ;;  %v1149_v22 = vmul.f32 0.8, %v3341_v12  ;;  %v1157_v50 = vmul.f32 %v3324_v57, %v4590_v37  ;;  %v4635_v15 = vld [vmem:[#allocation69_spill] sm:$0xff]  ;;  %v4636_v63 = vld [vmem:[#allocation70_spill] sm:$0xff] }
 0x10e   :  { %v1123_v34 = vadd.f32 %v1122_v51, %v1121_v36  ;;  %v1112_v52 = vadd.f32 %v1111_v49, %v1110_v17  ;;  %v1146_v3 = vadd.f32 %v1145_v62, %v3341_v12  ;;  %v1159_v25 = vmul.f32 %v3338_v9, %v3001_v58  ;;  %v4637_v31 = vld [vmem:[#allocation38_spill] sm:$0xff]  ;;  %v4638_v62 = vld [vmem:[#allocation61_spill] sm:$0xff] }
 0x10f   :  { %v1136_v21 = vadd.f32 %v1135_v28, %v1134_v26  ;;  %v1158_v14 = vadd.f32 %v1157_v50, %v1149_v22  ;;  %v1161_v48 = vmul.f32 %v3346_v35, %v4534_v29  ;;  %v1163_v1 = vmul.f32 %v3352_v55, %v4539_v43 }
 0x110   :  { %v1125_v42 = vadd.f32 %v1124_v45, %v1123_v34  ;;  %v1114_v13 = vadd.f32 %v1113_v24, %v1112_v52  ;;  %v1147_v41 = vmul.f32 0.1, %v1146_v3  ;;  %v1165_v57 = vmul.f32 %v3360_v19, %v4541_v53 }
 0x111   :  { %v1138_v51 = vadd.f32 %v1137_v10, %v1136_v21  ;;  %v1160_v18 = vadd.f32 %v1159_v25, %v1158_v14  ;;  %v1167_v12 = vmul.f32 %v3383_v46, %v4543_v44  ;;  %v1169_v30 = vmul.f32 %v3392_v6, %v4546_v23 }
 0x112   :  { %v1127_v49 = vadd.f32 %v1126_v59, %v1125_v42  ;;  %v1148_v33 = vadd.f32 %v1147_v41, %v3335_v5  ;;  %v1171_v38 = vsub.f32 0.0, %v4635_v15  ;;  %v3494_v24 = vmul.f32 0.8, %v4636_v63 }
 0x113   :  { %v1140_v45 = vadd.f32 %v1139_v4, %v1138_v51  ;;  %v1162_v10 = vadd.f32 %v1161_v48, %v1160_v18  ;;  %v1183_v36 = vsub.f32 0.0, %v4637_v31  ;;  %v3497_v59 = vmul.f32 0.8, %v1084_v32  ;;  %v4640_v48 = vld [vmem:[#allocation79_spill] sm:$0xff] }
 0x114   :  { %v1129_v28 = vadd.f32 %v1128_v11, %v1127_v49  ;;  %vm1150_vm0 = vcmp.gt.f32.partialorder %v1148_v33, 1.0  ;;  %v1172_v26 = vadd.f32 %v1171_v38, %v4636_v63  ;;  %v1195_v34 = vsub.f32 0.0, %v4638_v62 }
 0x115   :  { %v1142_v17 = vadd.f32 %v1141_v54, %v1140_v45  ;;  %v4639_v4 = vmov 0.0   ;;  %v1164_v5 = vadd.f32 %v1163_v1, %v1162_v10  ;;  %v1184_v50 = vadd.f32 %v1183_v36, %v1084_v32  ;;  %v4641_v1 = vld [vmem:[#allocation46_spill] sm:$0xff] }
 0x116   :  { %v3502_v22 = vsel %vm1150_vm0, 1.0, %v4639_v4  ;;  %v3504_v52 = vmul.f32 0.8, %v1099_v16  ;;  %v1173_v25 = vmul.f32 0.1, %v1172_v26  ;;  %v1196_v14 = vadd.f32 %v1195_v34, %v1099_v16 }
 0x117   :  { %v1144_v21 = vadd.f32 %v1143_v60, %v1142_v17  ;;  %v1153_v11 = vsub.f32 1.0, %v3502_v22  ;;  %v1155_v3 = vmul.f32 0.0, %v3502_v22  ;;  %v1166_v42 = vadd.f32 %v1165_v57, %v1164_v5 }
 0x118   :  { %v1185_v54 = vmul.f32 0.1, %v1184_v50  ;;  %v1207_v51 = vsub.f32 0.0, %v4640_v48  ;;  %v1174_v49 = vadd.f32 %v1173_v25, %v4635_v15  ;;  %v3510_v18 = vmul.f32 0.8, %v1114_v13  ;;  %v4642_v50 = vld [vmem:[#allocation55_spill] sm:$0xff] }
 0x119   :  { %v1154_v41 = vmul.f32 %v1153_v11, %v1148_v33  ;;  %v1219_v32 = vsub.f32 0.0, %v4641_v1  ;;  %v1168_v45 = vadd.f32 %v1167_v12, %v1166_v42  ;;  %v1197_v38 = vmul.f32 0.1, %v1196_v14 }
 0x11a   :  { %v1186_v60 = vadd.f32 %v1185_v54, %v4637_v31  ;;  %v1208_v63 = vadd.f32 %v1207_v51, %v1114_v13  ;;  %vm1176_vm1 = vcmp.gt.f32.partialorder %v1174_v49, 1.0  ;;  %v3516_v36 = vmul.f32 0.8, %v1129_v28 }
 0x11b   :  { %v3514_v10 = vadd.f32 %v1155_v3, %v1154_v41  ;;  %v1220_v57 = vadd.f32 %v1219_v32, %v1129_v28  ;;  %v3518_v16 = vadd.f32 %v1169_v30, %v1168_v45  ;;  %v3521_v33 = vsel %vm1176_vm1, 1.0, %v4639_v4 }
 0x11c   :  { %vm1188_vm2 = vcmp.gt.f32.partialorder %v1186_v60, 1.0  ;;  %v1198_v15 = vadd.f32 %v1197_v38, %v4638_v62  ;;  %v1179_v12 = vsub.f32 1.0, %v3521_v33  ;;  %v1181_v31 = vmul.f32 0.0, %v3521_v33 }
 0x11d   :  { %v3527_v13 = vsel %vm1188_vm2, 1.0, %v4639_v4  ;;  %v1209_v17 = vmul.f32 0.1, %v1208_v63  ;;  %v1221_v30 = vmul.f32 0.1, %v1220_v57  ;;  %v1231_v11 = vsub.f32 0.0, %v4642_v50 }
 0x11e   :  { %v1191_v26 = vsub.f32 1.0, %v3527_v13  ;;  %v1193_v28 = vmul.f32 0.0, %v3527_v13  ;;  %vm1200_vm3 = vcmp.gt.f32.partialorder %v1198_v15, 1.0  ;;  %v1180_v34 = vmul.f32 %v1179_v12, %v1174_v49  ;;  %v4648_v12 = vld [vmem:[#allocation21_spill] sm:$0xff] }
 0x11f   :  { %v3532_v5 = vsel %vm1200_vm3, 1.0, %v4639_v4  ;;  %v1210_v62 = vadd.f32 %v1209_v17, %v4640_v48  ;;  %v1222_v54 = vadd.f32 %v1221_v30, %v4641_v1  ;;  %v1232_v51 = vadd.f32 %v1231_v11, %v1144_v21  ;;  %v4650_v30 = vld [vmem:[#allocation25_spill] sm:$0xff] }
 0x120   :  { %v1192_v3 = vmul.f32 %v1191_v26, %v1186_v60  ;;  %v1203_v25 = vsub.f32 1.0, %v3532_v5  ;;  %v1205_v42 = vmul.f32 0.0, %v3532_v5  ;;  %v3539_v14 = vadd.f32 %v1181_v31, %v1180_v34  ;;  %v4649_v26 = vld [vmem:[#allocation24_spill] sm:$0xff] }
 0x121   :  { %vm1212_vm4 = vcmp.gt.f32.partialorder %v1210_v62, 1.0  ;;  %v3541_v41 = vmul.f32 0.8, %v1144_v21  ;;  %vm1224_vm5 = vcmp.gt.f32.partialorder %v1222_v54, 1.0  ;;  %v1233_v1 = vmul.f32 0.1, %v1232_v51 }
 0x122   :  { %4643 = vst [vmem:[#allocation62_spill] sm:$0xff] %v3539_v14  ;;  %v3543_v49 = vadd.f32 %v1193_v28, %v1192_v3  ;;  %v1204_v32 = vmul.f32 %v1203_v25, %v1198_v15  ;;  %v3546_v48 = vsel %vm1212_vm4, 1.0, %v4639_v4  ;;  %v3551_v38 = vsel %vm1224_vm5, 1.0, %v4639_v4  ;;  %v4651_v25 = vld [vmem:[#allocation28_spill] sm:$0xff]  ;;  %v4652_v51 = vld [vmem:[#allocation29_spill] sm:$0xff] }
 0x123   :  { %4645 = vst [vmem:[#allocation84_spill] sm:$0xff] %v3546_v48  ;;  %v1215_v45 = vsub.f32 1.0, %v3546_v48  ;;  %v1217_v60 = vmul.f32 0.0, %v3546_v48  ;;  %v1227_v21 = vsub.f32 1.0, %v3551_v38  ;;  %v1229_v57 = vmul.f32 0.0, %v3551_v38  ;;  %v4682_v48 = vld [vmem:[#allocation56_spill] sm:$0xff] }
 0x124   :  { %4644 = vst [vmem:[#allocation82_spill] sm:$0xff] %v3543_v49  ;;  %v3553_v63 = vadd.f32 %v1205_v42, %v1204_v32  ;;  %v1243_v15 = vrot.slane %v4648_v12, 4  ;;  %v1234_v17 = vadd.f32 %v1233_v1, %v4642_v50  ;;  %v1246_v28 = vmul.f32 %v3338_v9, %v4649_v26 }
 0x125   :  { %4646 = vst [vmem:[#allocation71_spill] sm:$0xff] %v3551_v38  ;;  %v1216_v31 = vmul.f32 %v1215_v45, %v1210_v62  ;;  %v1248_v34 = vmul.f32 %v3346_v35, %v4650_v30  ;;  %v1228_v11 = vmul.f32 %v1227_v21, %v1222_v54  ;;  %v1250_v42 = vmul.f32 %v3352_v55, %v4651_v25  ;;  %v4654_v62 = vld [vmem:[#allocation30_spill] sm:$0xff]  ;;  %v4655_v45 = vld [vmem:[#allocation31_spill] sm:$0xff]  ;;  %v4660_v30 = vld [vmem:[#allocation33_spill] sm:$0xff] }
 0x126   :  { %4647 = vst [vmem:[#allocation85_spill] sm:$0xff] %v3553_v63  ;;  %v1245_v3 = vadd.f32 %v1243_v15, %v3494_v24  ;;  %v1252_v32 = vmul.f32 %v3360_v19, %v4652_v51  ;;  %vm1236_vm6 = vcmp.gt.f32.partialorder %v1234_v17, 1.0  ;;  %v1254_v50 = vmul.f32 %v3383_v46, %v4654_v62  ;;  %v4658_v21 = vld [vmem:[#allocation22_spill] sm:$0xff] }
 0x127   :  { %v3568_v63 = vadd.f32 %v1217_v60, %v1216_v31  ;;  %v1256_v1 = vmul.f32 %v3392_v6, %v4655_v45  ;;  %v3574_v26 = vadd.f32 %v1229_v57, %v1228_v11  ;;  %v3577_v54 = vsel %vm1236_vm6, 1.0, %v4639_v4  ;;  %v4659_v31 = vld [vmem:[#allocation32_spill] sm:$0xff]  ;;  %v4661_v11 = vld [vmem:[#allocation34_spill] sm:$0xff]  ;;  %v4664_v4 = vld [vmem:[#allocation37_spill] sm:$0xff] }
 0x128   :  { %4657 = vst [vmem:[#allocation83_spill] sm:$0xff] %v3577_v54  ;;  %v1247_v24 = vadd.f32 %v1246_v28, %v1245_v3  ;;  %v1258_v15 = vrot.slane %v4658_v21, 4  ;;  %v1239_v25 = vsub.f32 1.0, %v3577_v54  ;;  %v1241_v60 = vmul.f32 0.0, %v3577_v54  ;;  %v4663_v21 = vld [vmem:[#allocation36_spill] sm:$0xff] }
 0x129   :  { %4653 = vst [vmem:[#allocation80_spill] sm:$0xff] %v3568_v63  ;;  %v1261_v51 = vmul.f32 %v3338_v9, %v4659_v31  ;;  %v1263_v62 = vmul.f32 %v3346_v35, %v4660_v30  ;;  %v1265_v45 = vmul.f32 %v3352_v55, %v4661_v11  ;;  %v1269_v63 = vmul.f32 %v3383_v46, %v4663_v21  ;;  %v4665_v31 = vld [vmem:[#allocation23_spill] sm:$0xff] }
 0x12a   :  { %4656 = vst [vmem:[#allocation81_spill] sm:$0xff] %v3574_v26  ;;  %v1249_v12 = vadd.f32 %v1248_v34, %v1247_v24  ;;  %v1260_v57 = vadd.f32 %v1258_v15, %v3497_v59  ;;  %v4662_v26 = vld [vmem:[#allocation35_spill] sm:$0xff]  ;;  %v1240_v3 = vmul.f32 %v1239_v25, %v1234_v17  ;;  %v1271_v49 = vmul.f32 %v3392_v6, %v4664_v4  ;;  %v4667_v24 = vld [vmem:[#allocation40_spill] sm:$0xff]  ;;  %v4669_v25 = vld [vmem:[#allocation41_spill] sm:$0xff] }
 0x12b   :  { %v1267_v28 = vmul.f32 %v3360_v19, %v4662_v26  ;;  %v1273_v14 = vrot.slane %v4665_v31, 4  ;;  %v4666_v34 = vld [vmem:[#allocation39_spill] sm:$0xff]  ;;  %v1278_v15 = vmul.f32 %v3346_v35, %v4667_v24  ;;  %v1280_v21 = vmul.f32 %v3352_v55, %v4669_v25  ;;  %v4670_v26 = vld [vmem:[#allocation42_spill] sm:$0xff] }
 0x12c   :  { %v1251_v54 = vadd.f32 %v1250_v42, %v1249_v12  ;;  %v1262_v30 = vadd.f32 %v1261_v51, %v1260_v57  ;;  %v1276_v59 = vmul.f32 %v3338_v9, %v4666_v34  ;;  %v3600_v11 = vadd.f32 %v1241_v60, %v1240_v3  ;;  %v4671_v12 = vld [vmem:[#allocation43_spill] sm:$0xff]  ;;  %v4672_v51 = vld [vmem:[#allocation44_spill] sm:$0xff]  ;;  %v4673_v24 = vld [vmem:[#allocation26_spill] sm:$0xff] }
 0x12d   :  { %v1275_v17 = vadd.f32 %v1273_v14, %v3504_v52  ;;  %v1282_v4 = vmul.f32 %v3360_v19, %v4670_v26  ;;  %v1284_v42 = vmul.f32 %v3383_v46, %v4671_v12  ;;  %v1286_v57 = vmul.f32 %v3392_v6, %v4672_v51  ;;  %v4674_v3 = vld [vmem:[#allocation47_spill] sm:$0xff]  ;;  %v4675_v14 = vld [vmem:[#allocation48_spill] sm:$0xff]  ;;  %v4676_v26 = vld [vmem:[#allocation49_spill] sm:$0xff] }
 0x12e   :  { %4668 = vst [vmem:[#allocation63_spill] sm:$0xff] %v3600_v11  ;;  %v1253_v23 = vadd.f32 %v1252_v32, %v1251_v54  ;;  %v1264_v31 = vadd.f32 %v1263_v62, %v1262_v30  ;;  %v1288_v60 = vrot.slane %v4673_v24, 4  ;;  %v1291_v52 = vmul.f32 %v3338_v9, %v4674_v3  ;;  %v4677_v32 = vld [vmem:[#allocation50_spill] sm:$0xff]  ;;  %v4679_v24 = vld [vmem:[#allocation53_spill] sm:$0xff] }
 0x12f   :  { %v1277_v34 = vadd.f32 %v1276_v59, %v1275_v17  ;;  %v1293_v25 = vmul.f32 %v3346_v35, %v4675_v14  ;;  %v1295_v30 = vmul.f32 %v3352_v55, %v4676_v26  ;;  %v1297_v62 = vmul.f32 %v3360_v19, %v4677_v32  ;;  %v4678_v59 = vld [vmem:[#allocation51_spill] sm:$0xff] }
 0x130   :  { %v1255_v11 = vadd.f32 %v1254_v50, %v1253_v23  ;;  %v1266_v38 = vadd.f32 %v1265_v45, %v1264_v31  ;;  %v1290_v51 = vadd.f32 %v1288_v60, %v3510_v18  ;;  %v1299_v17 = vmul.f32 %v3383_v46, %v4678_v59  ;;  %v4680_v14 = vld [vmem:[#allocation27_spill] sm:$0xff]  ;;  %v4681_v50 = vld [vmem:[#allocation54_spill] sm:$0xff] }
 0x131   :  { %v1279_v54 = vadd.f32 %v1278_v15, %v1277_v34  ;;  %v1301_v3 = vmul.f32 %v3392_v6, %v4679_v24  ;;  %v1303_v23 = vrot.slane %v4680_v14, 4  ;;  %v1306_v45 = vmul.f32 %v3338_v9, %v4681_v50 }
 0x132   :  { %v1257_v12 = vadd.f32 %v1256_v1, %v1255_v11  ;;  %v1268_v44 = vadd.f32 %v1267_v28, %v1266_v38  ;;  %v1292_v26 = vadd.f32 %v1291_v52, %v1290_v51  ;;  %v1308_v34 = vmul.f32 %v3346_v35, %v4682_v48 }
 0x133   :  { %v1281_v31 = vadd.f32 %v1280_v21, %v1279_v54  ;;  %v1310_v18 = vmul.f32 %v3352_v55, %v4631_v56  ;;  %v1305_v60 = vadd.f32 %v1303_v23, %v3516_v36  ;;  %v1312_v1 = vmul.f32 %v3360_v19, %v4632_v27 }
 0x134   :  { %v1270_v15 = vadd.f32 %v1269_v63, %v1268_v44  ;;  %v1314_v38 = vmul.f32 %v3383_v46, %v4633_v47  ;;  %v1294_v28 = vadd.f32 %v1293_v25, %v1292_v26  ;;  %v1316_v21 = vmul.f32 %v3392_v6, %v4634_v7 }
 0x135   :  { %v1283_v11 = vadd.f32 %v1282_v4, %v1281_v31  ;;  %v1318_v51 = vrot.slane %v2710_v2, 4  ;;  %v1307_v54 = vadd.f32 %v1306_v45, %v1305_v60  ;;  %v1321_v44 = vmul.f32 %v3338_v9, %v4584_v39 }
 0x136   :  { %v1272_v52 = vadd.f32 %v1271_v49, %v1270_v15  ;;  %v1323_v36 = vmul.f32 %v3346_v35, %v4585_v20  ;;  %v1296_v23 = vadd.f32 %v1295_v30, %v1294_v28  ;;  %v1325_v4 = vmul.f32 %v3352_v55, %v4586_v0 }
 0x137   :  { %v1285_v63 = vadd.f32 %v1284_v42, %v1283_v11  ;;  %v1320_v27 = vadd.f32 %v1318_v51, %v3541_v41  ;;  %v1309_v26 = vadd.f32 %v1308_v34, %v1307_v54  ;;  %v1327_v25 = vmul.f32 %v3360_v19, %v4587_v61  ;;  %v4684_v51 = vld [vmem:[#allocation77_spill] sm:$0xff]  ;;  %v4685_v54 = vld [vmem:[#allocation71_spill] sm:$0xff] }
 0x138   :  { %v1329_v49 = vmul.f32 %v3383_v46, %v4588_v8  ;;  %v1331_v9 = vmul.f32 %v3392_v6, %v4589_v40  ;;  %v1298_v31 = vadd.f32 %v1297_v62, %v1296_v23  ;;  %v1333_v42 = vsub.f32 0.0, %v3514_v10 }
 0x139   :  { %v1287_v45 = vadd.f32 %v1286_v57, %v1285_v63  ;;  %v1322_v35 = vadd.f32 %v1321_v44, %v1320_v27  ;;  %v1311_v30 = vadd.f32 %v1310_v18, %v1309_v26  ;;  %v1337_v41 = vmul.f32 0.8, %v3518_v16  ;;  %v4683_v18 = vld [vmem:[#allocation84_spill] sm:$0xff]  ;;  %v4687_v63 = vld [vmem:[#allocation83_spill] sm:$0xff]  ;;  %v4688_v26 = vld [vmem:[#allocation62_spill] sm:$0xff] }
 0x13a   :  { %v1345_v55 = vmul.f32 %v3502_v22, %v4590_v37  ;;  %v1347_v19 = vmul.f32 %v3521_v33, %v3001_v58  ;;  %v1300_v34 = vadd.f32 %v1299_v17, %v1298_v31  ;;  %v1334_v46 = vadd.f32 %v1333_v42, %v3518_v16  ;;  %v4686_v16 = vld [vmem:[#allocation78_spill] sm:$0xff] }
 0x13b   :  { %v1324_v15 = vadd.f32 %v1323_v36, %v1322_v35  ;;  %v1349_v6 = vmul.f32 %v3527_v13, %v4534_v29  ;;  %v1313_v57 = vadd.f32 %v1312_v1, %v1311_v30  ;;  %v1351_v62 = vmul.f32 %v3532_v5, %v4539_v43  ;;  %v4689_v30 = vld [vmem:[#allocation82_spill] sm:$0xff] }
 0x13c   :  { %v1346_v27 = vadd.f32 %v1345_v55, %v1337_v41  ;;  %v1353_v60 = vmul.f32 %v4683_v18, %v4541_v53  ;;  %v1302_v11 = vadd.f32 %v1301_v3, %v1300_v34  ;;  %v1335_v28 = vmul.f32 0.1, %v1334_v46 }
 0x13d   :  { %v1326_v22 = vadd.f32 %v1325_v4, %v1324_v15  ;;  %v1355_v17 = vmul.f32 %v4685_v54, %v4684_v51  ;;  %v1315_v44 = vadd.f32 %v1314_v38, %v1313_v57  ;;  %v1357_v23 = vmul.f32 %v4687_v63, %v4686_v16 }
 0x13e   :  { %v1348_v36 = vadd.f32 %v1347_v19, %v1346_v27  ;;  %v1359_v1 = vsub.f32 0.0, %v4688_v26  ;;  %v1336_v35 = vadd.f32 %v1335_v28, %v3514_v10  ;;  %v3672_v42 = vmul.f32 0.8, %v1257_v12  ;;  %v4690_v19 = vld [vmem:[#allocation85_spill] sm:$0xff] }
 0x13f   :  { %v1328_v31 = vadd.f32 %v1327_v25, %v1326_v22  ;;  %v1371_v41 = vsub.f32 0.0, %v4689_v30  ;;  %v1317_v3 = vadd.f32 %v1316_v21, %v1315_v44  ;;  %v3675_v34 = vmul.f32 0.8, %v1272_v52 }
 0x140   :  { %v1350_v4 = vadd.f32 %v1349_v6, %v1348_v36  ;;  %v1360_v55 = vadd.f32 %v1359_v1, %v1257_v12  ;;  %vm1338_vm7 = vcmp.gt.f32.partialorder %v1336_v35, 1.0  ;;  %v1383_v46 = vsub.f32 0.0, %v4690_v19 }
 0x141   :  { %v1330_v15 = vadd.f32 %v1329_v49, %v1328_v31  ;;  %v1372_v38 = vadd.f32 %v1371_v41, %v1272_v52  ;;  %v4691_v57 = vmov 0.0   ;;  %v3681_v10 = vmul.f32 0.8, %v1287_v45  ;;  %v4692_v52 = vld [vmem:[#allocation80_spill] sm:$0xff] }
 0x142   :  { %v3679_v27 = vsel %vm1338_vm7, 1.0, %v4691_v57  ;;  %v1352_v25 = vadd.f32 %v1351_v62, %v1350_v4  ;;  %v1361_v22 = vmul.f32 0.1, %v1360_v55  ;;  %v1384_v44 = vadd.f32 %v1383_v46, %v1287_v45  ;;  %v4693_v62 = vld [vmem:[#allocation81_spill] sm:$0xff] }
 0x143   :  { %v1332_v28 = vadd.f32 %v1331_v9, %v1330_v15  ;;  %v1341_v16 = vsub.f32 1.0, %v3679_v27  ;;  %v1343_v21 = vmul.f32 0.0, %v3679_v27  ;;  %v1373_v12 = vmul.f32 0.1, %v1372_v38 }
 0x144   :  { %v1354_v6 = vadd.f32 %v1353_v60, %v1352_v25  ;;  %v1362_v49 = vadd.f32 %v1361_v22, %v4688_v26  ;;  %v1395_v36 = vsub.f32 0.0, %v4692_v52  ;;  %v3688_v41 = vmul.f32 0.8, %v1302_v11 }
 0x145   :  { %v1342_v1 = vmul.f32 %v1341_v16, %v1336_v35  ;;  %v1374_v31 = vadd.f32 %v1373_v12, %v4689_v30  ;;  %v1407_v4 = vsub.f32 0.0, %v4693_v62  ;;  %v1385_v9 = vmul.f32 0.1, %v1384_v44 }
 0x146   :  { %v1356_v55 = vadd.f32 %v1355_v17, %v1354_v6  ;;  %vm1364_vm8 = vcmp.gt.f32.partialorder %v1362_v49, 1.0  ;;  %v1396_v15 = vadd.f32 %v1395_v36, %v1302_v11  ;;  %v3710_v36 = vmul.f32 0.8, %v1332_v28 }
 0x147   :  { %v3691_v51 = vadd.f32 %v1343_v21, %v1342_v1  ;;  %v3694_v60 = vsel %vm1364_vm8, 1.0, %v4691_v57  ;;  %vm1376_vm9 = vcmp.gt.f32.partialorder %v1374_v31, 1.0  ;;  %v1408_v45 = vadd.f32 %v1407_v4, %v1317_v3 }
 0x148   :  { %v3696_v26 = vadd.f32 %v1357_v23, %v1356_v55  ;;  %v1367_v16 = vsub.f32 1.0, %v3694_v60  ;;  %v1369_v35 = vmul.f32 0.0, %v3694_v60  ;;  %v3701_v30 = vsel %vm1376_vm9, 1.0, %v4691_v57  ;;  %v4694_v23 = vld [vmem:[#allocation63_spill] sm:$0xff] }
 0x149   :  { %v1379_v17 = vsub.f32 1.0, %v3701_v30  ;;  %v1381_v11 = vmul.f32 0.0, %v3701_v30  ;;  %v1386_v38 = vadd.f32 %v1385_v9, %v4690_v19  ;;  %v1397_v46 = vmul.f32 0.1, %v1396_v15  ;;  %v4699_v15 = vld [vmem:[#allocation21_spill] sm:$0xff] }
 0x14a   :  { %v1368_v25 = vmul.f32 %v1367_v16, %v1362_v49  ;;  %v1409_v22 = vmul.f32 0.1, %v1408_v45  ;;  %v3706_v21 = vmul.f32 0.8, %v1317_v3  ;;  %v1419_v12 = vsub.f32 0.0, %v4694_v23 }
 0x14b   :  { %v1380_v6 = vmul.f32 %v1379_v17, %v1374_v31  ;;  %vm1388_vm10 = vcmp.gt.f32.partialorder %v1386_v38, 1.0  ;;  %v1398_v44 = vadd.f32 %v1397_v46, %v4692_v52  ;;  %v1431_v45 = vrot.slane %v4699_v15, 5 }
 0x14c   :  { %v3712_v1 = vadd.f32 %v1369_v35, %v1368_v25  ;;  %v3715_v4 = vsel %vm1388_vm10, 1.0, %v4691_v57  ;;  %v1410_v19 = vadd.f32 %v1409_v22, %v4693_v62  ;;  %v1420_v55 = vadd.f32 %v1419_v12, %v1332_v28 }
 0x14d   :  { %4696 = vst [vmem:[#allocation65_spill] sm:$0xff] %v3715_v4  ;;  %v3718_v49 = vadd.f32 %v1381_v11, %v1380_v6  ;;  %v1391_v3 = vsub.f32 1.0, %v3715_v4  ;;  %v1393_v9 = vmul.f32 0.0, %v3715_v4  ;;  %vm1400_vm11 = vcmp.gt.f32.partialorder %v1398_v44, 1.0  ;;  %v4702_v6 = vld [vmem:[#allocation24_spill] sm:$0xff]  ;;  %v4727_v4 = vld [vmem:[#allocation47_spill] sm:$0xff] }
 0x14e   :  { %4695 = vst [vmem:[#allocation64_spill] sm:$0xff] %v3712_v1  ;;  %v3723_v31 = vsel %vm1400_vm11, 1.0, %v4691_v57  ;;  %vm1412_vm12 = vcmp.gt.f32.partialorder %v1410_v19, 1.0  ;;  %v1421_v52 = vmul.f32 0.1, %v1420_v55  ;;  %v1433_v25 = vadd.f32 %v1431_v45, %v3672_v42  ;;  %v4703_v55 = vld [vmem:[#allocation25_spill] sm:$0xff] }
 0x14f   :  { %4697 = vst [vmem:[#allocation66_spill] sm:$0xff] %v3718_v49  ;;  %v1392_v16 = vmul.f32 %v1391_v3, %v1386_v38  ;;  %v1403_v35 = vsub.f32 1.0, %v3723_v31  ;;  %v1405_v62 = vmul.f32 0.0, %v3723_v31  ;;  %v3729_v28 = vsel %vm1412_vm12, 1.0, %v4691_v57  ;;  %v4704_v49 = vld [vmem:[#allocation28_spill] sm:$0xff] }
 0x150   :  { %4698 = vst [vmem:[#allocation45_spill] sm:$0xff] %v3723_v31  ;;  %v1415_v17 = vsub.f32 1.0, %v3729_v28  ;;  %v1417_v11 = vmul.f32 0.0, %v3729_v28  ;;  %v1422_v46 = vadd.f32 %v1421_v52, %v4694_v23  ;;  %v1434_v38 = vmul.f32 %v3521_v33, %v4702_v6  ;;  %v4705_v31 = vld [vmem:[#allocation29_spill] sm:$0xff] }
 0x151   :  { %4700 = vst [vmem:[#allocation52_spill] sm:$0xff] %v3729_v28  ;;  %v3735_v22 = vadd.f32 %v1393_v9, %v1392_v16  ;;  %v1404_v12 = vmul.f32 %v1403_v35, %v1398_v44  ;;  %v1436_v3 = vmul.f32 %v3527_v13, %v4703_v55  ;;  %v1438_v1 = vmul.f32 %v3532_v5, %v4704_v49  ;;  %v4708_v9 = vld [vmem:[#allocation30_spill] sm:$0xff]  ;;  %v4710_v35 = vld [vmem:[#allocation31_spill] sm:$0xff]  ;;  %v4713_v6 = vld [vmem:[#allocation33_spill] sm:$0xff] }
 0x152   :  { %v1416_v15 = vmul.f32 %v1415_v17, %v1410_v19  ;;  %vm1424_vm13 = vcmp.gt.f32.partialorder %v1422_v46, 1.0  ;;  %v1440_v28 = vmul.f32 %v4683_v18, %v4705_v31  ;;  %v1435_v44 = vadd.f32 %v1434_v38, %v1433_v25  ;;  %v4711_v31 = vld [vmem:[#allocation22_spill] sm:$0xff] }
 0x153   :  { %4701 = vst [vmem:[#allocation57_spill] sm:$0xff] %v3735_v22  ;;  %v3745_v23 = vadd.f32 %v1405_v62, %v1404_v12  ;;  %v3748_v42 = vsel %vm1424_vm13, 1.0, %v4691_v57  ;;  %v1442_v52 = vmul.f32 %v4685_v54, %v4708_v9  ;;  %v1444_v17 = vmul.f32 %v4687_v63, %v4710_v35  ;;  %v4712_v12 = vld [vmem:[#allocation32_spill] sm:$0xff]  ;;  %v4714_v9 = vld [vmem:[#allocation34_spill] sm:$0xff] }
 0x154   :  { %4707 = vst [vmem:[#allocation69_spill] sm:$0xff] %v3748_v42  ;;  %v3752_v45 = vadd.f32 %v1417_v11, %v1416_v15  ;;  %v1427_v19 = vsub.f32 1.0, %v3748_v42  ;;  %v1429_v16 = vmul.f32 0.0, %v3748_v42  ;;  %v1437_v49 = vadd.f32 %v1436_v3, %v1435_v44  ;;  %v4715_v11 = vld [vmem:[#allocation35_spill] sm:$0xff]  ;;  %v4717_v44 = vld [vmem:[#allocation37_spill] sm:$0xff] }
 0x155   :  { %4706 = vst [vmem:[#allocation60_spill] sm:$0xff] %v3745_v23  ;;  %v1446_v62 = vrot.slane %v4711_v31, 5  ;;  %v1449_v55 = vmul.f32 %v3521_v33, %v4712_v12  ;;  %v1451_v25 = vmul.f32 %v3527_v13, %v4713_v6  ;;  %v1453_v15 = vmul.f32 %v3532_v5, %v4714_v9  ;;  %v4716_v23 = vld [vmem:[#allocation36_spill] sm:$0xff]  ;;  %v4718_v12 = vld [vmem:[#allocation23_spill] sm:$0xff] }
 0x156   :  { %4709 = vst [vmem:[#allocation70_spill] sm:$0xff] %v3752_v45  ;;  %v1428_v38 = vmul.f32 %v1427_v19, %v1422_v46  ;;  %v1455_v45 = vmul.f32 %v4683_v18, %v4715_v11  ;;  %v1457_v57 = vmul.f32 %v4685_v54, %v4716_v23  ;;  %v1439_v35 = vadd.f32 %v1438_v1, %v1437_v49  ;;  %v4720_v46 = vld [vmem:[#allocation39_spill] sm:$0xff]  ;;  %v4721_v9 = vld [vmem:[#allocation40_spill] sm:$0xff]  ;;  %v4722_v11 = vld [vmem:[#allocation41_spill] sm:$0xff] }
 0x157   :  { %v1448_v3 = vadd.f32 %v1446_v62, %v3675_v34  ;;  %v1459_v31 = vmul.f32 %v4687_v63, %v4717_v44  ;;  %v1461_v22 = vrot.slane %v4718_v12, 5  ;;  %v1464_v19 = vmul.f32 %v3521_v33, %v4720_v46  ;;  %v4723_v49 = vld [vmem:[#allocation42_spill] sm:$0xff]  ;;  %v4724_v44 = vld [vmem:[#allocation43_spill] sm:$0xff] }
 0x158   :  { %v3773_v42 = vadd.f32 %v1429_v16, %v1428_v38  ;;  %v1466_v6 = vmul.f32 %v3527_v13, %v4721_v9  ;;  %v1468_v53 = vmul.f32 %v3532_v5, %v4722_v11  ;;  %v1441_v23 = vadd.f32 %v1440_v28, %v1439_v35  ;;  %v4725_v38 = vld [vmem:[#allocation44_spill] sm:$0xff]  ;;  %v4726_v46 = vld [vmem:[#allocation26_spill] sm:$0xff]  ;;  %v4729_v35 = vld [vmem:[#allocation49_spill] sm:$0xff] }
 0x159   :  { %v1450_v1 = vadd.f32 %v1449_v55, %v1448_v3  ;;  %v1463_v34 = vadd.f32 %v1461_v22, %v3681_v10  ;;  %v1470_v62 = vmul.f32 %v4683_v18, %v4723_v49  ;;  %v1472_v16 = vmul.f32 %v4685_v54, %v4724_v44  ;;  %v4728_v55 = vld [vmem:[#allocation48_spill] sm:$0xff] }
 0x15a   :  { %4719 = vst [vmem:[#allocation38_spill] sm:$0xff] %v3773_v42  ;;  %v1474_v12 = vmul.f32 %v4687_v63, %v4725_v38  ;;  %v1476_v42 = vrot.slane %v4726_v46, 5  ;;  %v1479_v9 = vmul.f32 %v3521_v33, %v4727_v4  ;;  %v1443_v43 = vadd.f32 %v1442_v52, %v1441_v23 }
 0x15b   :  { %v1452_v11 = vadd.f32 %v1451_v25, %v1450_v1  ;;  %v1465_v28 = vadd.f32 %v1464_v19, %v1463_v34  ;;  %v1481_v10 = vmul.f32 %v3527_v13, %v4728_v55  ;;  %v1483_v3 = vmul.f32 %v3532_v5, %v4729_v35 }
 0x15c   :  { %v1478_v22 = vadd.f32 %v1476_v42, %v3688_v41  ;;  %v1485_v44 = vmul.f32 %v4683_v18, %v4677_v32  ;;  %v1487_v46 = vmul.f32 %v4685_v54, %v4678_v59  ;;  %v1445_v38 = vadd.f32 %v1444_v17, %v1443_v43  ;;  %v4730_v43 = vld [vmem:[#allocation58_spill] sm:$0xff] }
 0x15d   :  { %v1454_v49 = vadd.f32 %v1453_v15, %v1452_v11  ;;  %v1467_v4 = vadd.f32 %v1466_v6, %v1465_v28  ;;  %v1489_v23 = vmul.f32 %v4687_v63, %v4679_v24  ;;  %v1491_v25 = vrot.slane %v4680_v14, 5 }
 0x15e   :  { %v1480_v52 = vadd.f32 %v1479_v9, %v1478_v22  ;;  %v1494_v41 = vmul.f32 %v3521_v33, %v4681_v50  ;;  %v1496_v42 = vmul.f32 %v3527_v13, %v4682_v48  ;;  %v1498_v34 = vmul.f32 %v3532_v5, %v4631_v56 }
 0x15f   :  { %v1456_v19 = vadd.f32 %v1455_v45, %v1454_v49  ;;  %v1469_v1 = vadd.f32 %v1468_v53, %v1467_v4  ;;  %v1500_v6 = vmul.f32 %v4683_v18, %v4730_v43  ;;  %v1493_v15 = vadd.f32 %v1491_v25, %v3706_v21 }
 0x160   :  { %v1482_v17 = vadd.f32 %v1481_v10, %v1480_v52  ;;  %v1502_v9 = vmul.f32 %v4685_v54, %v4633_v47  ;;  %v1504_v11 = vmul.f32 %v4687_v63, %v4634_v7  ;;  %v1506_v45 = vrot.slane %v2710_v2, 5 }
 0x161   :  { %v1458_v28 = vadd.f32 %v1457_v57, %v1456_v19  ;;  %v1471_v22 = vadd.f32 %v1470_v62, %v1469_v1  ;;  %v1509_v53 = vmul.f32 %v3521_v33, %v4584_v39  ;;  %v1495_v49 = vadd.f32 %v1494_v41, %v1493_v15 }
 0x162   :  { %v1484_v4 = vadd.f32 %v1483_v3, %v1482_v17  ;;  %v1511_v10 = vmul.f32 %v3527_v13, %v4585_v20  ;;  %v1513_v21 = vmul.f32 %v3532_v5, %v4586_v0  ;;  %v1508_v47 = vadd.f32 %v1506_v45, %v3710_v36 }
 0x163   :  { %v1460_v52 = vadd.f32 %v1459_v31, %v1458_v28  ;;  %v1473_v25 = vadd.f32 %v1472_v16, %v1471_v22  ;;  %v1515_v57 = vmul.f32 %v4683_v18, %v4587_v61  ;;  %v1497_v19 = vadd.f32 %v1496_v42, %v1495_v49 }
 0x164   :  { %v1486_v62 = vadd.f32 %v1485_v44, %v1484_v4  ;;  %v1517_v33 = vmul.f32 %v4685_v54, %v4588_v8  ;;  %v1519_v3 = vmul.f32 %v4687_v63, %v4589_v40  ;;  %v1510_v13 = vadd.f32 %v1509_v53, %v1508_v47  ;;  %v4732_v47 = vld [vmem:[#allocation65_spill] sm:$0xff]  ;;  %v4736_v4 = vld [vmem:[#allocation52_spill] sm:$0xff] }
 0x165   :  { %v1475_v41 = vadd.f32 %v1474_v12, %v1473_v25  ;;  %v1521_v1 = vsub.f32 0.0, %v3691_v51  ;;  %v1525_v5 = vmul.f32 0.8, %v3696_v26  ;;  %v1499_v16 = vadd.f32 %v1498_v34, %v1497_v19  ;;  %v4731_v12 = vld [vmem:[#allocation75_spill] sm:$0xff]  ;;  %v4734_v34 = vld [vmem:[#allocation45_spill] sm:$0xff] }
 0x166   :  { %v1488_v31 = vadd.f32 %v1487_v46, %v1486_v62  ;;  %v1533_v36 = vmul.f32 %v3679_v27, %v4590_v37  ;;  %v1535_v18 = vmul.f32 %v3694_v60, %v3001_v58  ;;  %v1512_v44 = vadd.f32 %v1511_v10, %v1510_v13  ;;  %v4733_v46 = vld [vmem:[#allocation76_spill] sm:$0xff]  ;;  %v4735_v53 = vld [vmem:[#allocation77_spill] sm:$0xff]  ;;  %v4737_v10 = vld [vmem:[#allocation78_spill] sm:$0xff] }
 0x167   :  { %v1522_v54 = vadd.f32 %v1521_v1, %v3696_v26  ;;  %v1537_v63 = vmul.f32 %v3701_v30, %v4534_v29  ;;  %v1539_v42 = vmul.f32 %v4732_v47, %v4731_v12  ;;  %v1501_v15 = vadd.f32 %v1500_v6, %v1499_v16  ;;  %v4738_v25 = vld [vmem:[#allocation69_spill] sm:$0xff]  ;;  %v4739_v13 = vld [vmem:[#allocation64_spill] sm:$0xff] }
 0x168   :  { %v1490_v17 = vadd.f32 %v1489_v23, %v1488_v31  ;;  %v1534_v28 = vadd.f32 %v1533_v36, %v1525_v5  ;;  %v1541_v22 = vmul.f32 %v4734_v34, %v4733_v46  ;;  %v1514_v45 = vadd.f32 %v1513_v21, %v1512_v44  ;;  %v4740_v5 = vld [vmem:[#allocation66_spill] sm:$0xff]  ;;  %v4773_v12 = vld [vmem:[#allocation41_spill] sm:$0xff] }
 0x169   :  { %v1523_v27 = vmul.f32 0.1, %v1522_v54  ;;  %v1543_v49 = vmul.f32 %v4736_v4, %v4735_v53  ;;  %v1545_v26 = vmul.f32 %v4738_v25, %v4737_v10  ;;  %v1503_v62 = vadd.f32 %v1502_v9, %v1501_v15  ;;  %v4741_v54 = vld [vmem:[#allocation57_spill] sm:$0xff] }
 0x16a   :  { %v1536_v19 = vadd.f32 %v1535_v18, %v1534_v28  ;;  %v1547_v1 = vsub.f32 0.0, %v4739_v13  ;;  %v3848_v29 = vmul.f32 0.8, %v1445_v38  ;;  %v1516_v23 = vadd.f32 %v1515_v57, %v1514_v45 }
 0x16b   :  { %v1524_v6 = vadd.f32 %v1523_v27, %v3691_v51  ;;  %v1559_v31 = vsub.f32 0.0, %v4740_v5  ;;  %v3852_v16 = vmul.f32 0.8, %v1460_v52  ;;  %v1505_v21 = vadd.f32 %v1504_v11, %v1503_v62 }
 0x16c   :  { %v1538_v36 = vadd.f32 %v1537_v63, %v1536_v19  ;;  %v1548_v44 = vadd.f32 %v1547_v1, %v1445_v38  ;;  %v1571_v53 = vsub.f32 0.0, %v4741_v54  ;;  %v1518_v46 = vadd.f32 %v1517_v33, %v1516_v23  ;;  %v4743_v19 = vld [vmem:[#allocation60_spill] sm:$0xff] }
 0x16d   :  { %vm1526_vm14 = vcmp.gt.f32.partialorder %v1524_v6, 1.0  ;;  %v1560_v9 = vadd.f32 %v1559_v31, %v1460_v52  ;;  %v3855_v18 = vmul.f32 0.8, %v1475_v41  ;;  %v4742_v15 = vmov 0.0  }
 0x16e   :  { %v3858_v28 = vsel %vm1526_vm14, 1.0, %v4742_v15  ;;  %v1540_v57 = vadd.f32 %v1539_v42, %v1538_v36  ;;  %v1549_v45 = vmul.f32 0.1, %v1548_v44  ;;  %v1572_v51 = vadd.f32 %v1571_v53, %v1475_v41  ;;  %v4744_v42 = vld [vmem:[#allocation70_spill] sm:$0xff] }
 0x16f   :  { %v1520_v27 = vadd.f32 %v1519_v3, %v1518_v46  ;;  %v1529_v10 = vsub.f32 1.0, %v3858_v28  ;;  %v1531_v11 = vmul.f32 0.0, %v3858_v28  ;;  %v1561_v63 = vmul.f32 0.1, %v1560_v9 }
 0x170   :  { %v1542_v38 = vadd.f32 %v1541_v22, %v1540_v57  ;;  %v1550_v62 = vadd.f32 %v1549_v45, %v4739_v13  ;;  %v1573_v33 = vmul.f32 0.1, %v1572_v51  ;;  %v1583_v52 = vsub.f32 0.0, %v4743_v19 }
 0x171   :  { %v1530_v1 = vmul.f32 %v1529_v10, %v1524_v6  ;;  %v1562_v23 = vadd.f32 %v1561_v63, %v4740_v5  ;;  %v3865_v31 = vmul.f32 0.8, %v1490_v17  ;;  %v1595_v36 = vsub.f32 0.0, %v4744_v42 }
 0x172   :  { %v1544_v41 = vadd.f32 %v1543_v49, %v1542_v38  ;;  %vm1552_vm15 = vcmp.gt.f32.partialorder %v1550_v62, 1.0  ;;  %v1574_v3 = vadd.f32 %v1573_v33, %v4741_v54  ;;  %v1584_v46 = vadd.f32 %v1583_v52, %v1490_v17 }
 0x173   :  { %v3869_v53 = vadd.f32 %v1531_v11, %v1530_v1  ;;  %v3872_v22 = vsel %vm1552_vm15, 1.0, %v4742_v15  ;;  %vm1564_vm0 = vcmp.gt.f32.partialorder %v1562_v23, 1.0  ;;  %v1596_v13 = vadd.f32 %v1595_v36, %v1505_v21  ;;  %v4748_v1 = vld [vmem:[#allocation38_spill] sm:$0xff] }
 0x174   :  { %v3874_v44 = vadd.f32 %v1545_v26, %v1544_v41  ;;  %v1555_v10 = vsub.f32 1.0, %v3872_v22  ;;  %v1557_v6 = vmul.f32 0.0, %v3872_v22  ;;  %v3879_v5 = vsel %vm1564_vm0, 1.0, %v4742_v15 }
 0x175   :  { %4745 = vst [vmem:[#allocation61_spill] sm:$0xff] %v3879_v5  ;;  %v1567_v49 = vsub.f32 1.0, %v3879_v5  ;;  %v1569_v17 = vmul.f32 0.0, %v3879_v5  ;;  %vm1576_vm1 = vcmp.gt.f32.partialorder %v1574_v3, 1.0  ;;  %v1585_v54 = vmul.f32 0.1, %v1584_v46 }
 0x176   :  { %v1556_v9 = vmul.f32 %v1555_v10, %v1550_v62  ;;  %v3884_v57 = vsel %vm1576_vm1, 1.0, %v4742_v15  ;;  %v1597_v45 = vmul.f32 0.1, %v1596_v13  ;;  %v3886_v26 = vmul.f32 0.8, %v1505_v21  ;;  %v4750_v21 = vld [vmem:[#allocation21_spill] sm:$0xff] }
 0x177   :  { %4746 = vst [vmem:[#allocation79_spill] sm:$0xff] %v3884_v57  ;;  %v1568_v51 = vmul.f32 %v1567_v49, %v1562_v23  ;;  %v1579_v11 = vsub.f32 1.0, %v3884_v57  ;;  %v1581_v63 = vmul.f32 0.0, %v3884_v57  ;;  %v1586_v38 = vadd.f32 %v1585_v54, %v4743_v19  ;;  %v4752_v19 = vld [vmem:[#allocation24_spill] sm:$0xff] }
 0x178   :  { %v3891_v33 = vadd.f32 %v1557_v6, %v1556_v9  ;;  %v1598_v52 = vadd.f32 %v1597_v45, %v4744_v42  ;;  %v1607_v36 = vsub.f32 0.0, %v4748_v1  ;;  %v3895_v62 = vmul.f32 0.8, %v1520_v27 }
 0x179   :  { %v3897_v41 = vadd.f32 %v1569_v17, %v1568_v51  ;;  %v1580_v46 = vmul.f32 %v1579_v11, %v1574_v3  ;;  %vm1588_vm2 = vcmp.gt.f32.partialorder %v1586_v38, 1.0  ;;  %v1619_v23 = vrot.slane %v4750_v21, 6  ;;  %v4755_v11 = vld [vmem:[#allocation25_spill] sm:$0xff] }
 0x17a   :  { %4747 = vst [vmem:[#allocation46_spill] sm:$0xff] %v3891_v33  ;;  %v3901_v13 = vsel %vm1588_vm2, 1.0, %v4742_v15  ;;  %vm1600_vm3 = vcmp.gt.f32.partialorder %v1598_v52, 1.0  ;;  %v1608_v10 = vadd.f32 %v1607_v36, %v1520_v27  ;;  %v1622_v6 = vmul.f32 %v3694_v60, %v4752_v19  ;;  %v4757_v19 = vld [vmem:[#allocation29_spill] sm:$0xff] }
 0x17b   :  { %4749 = vst [vmem:[#allocation55_spill] sm:$0xff] %v3897_v41  ;;  %v3905_v49 = vadd.f32 %v1581_v63, %v1580_v46  ;;  %v1591_v42 = vsub.f32 1.0, %v3901_v13  ;;  %v1593_v54 = vmul.f32 0.0, %v3901_v13  ;;  %v3910_v17 = vsel %vm1600_vm3, 1.0, %v4742_v15  ;;  %v4756_v63 = vld [vmem:[#allocation28_spill] sm:$0xff] }
 0x17c   :  { %4751 = vst [vmem:[#allocation50_spill] sm:$0xff] %v3901_v13  ;;  %v1603_v3 = vsub.f32 1.0, %v3910_v17  ;;  %v1605_v9 = vmul.f32 0.0, %v3910_v17  ;;  %v1609_v45 = vmul.f32 0.1, %v1608_v10  ;;  %v1621_v51 = vadd.f32 %v1619_v23, %v3848_v29  ;;  %v4758_v13 = vld [vmem:[#allocation30_spill] sm:$0xff] }
 0x17d   :  { %4753 = vst [vmem:[#allocation51_spill] sm:$0xff] %v3905_v49  ;;  %v1592_v27 = vmul.f32 %v1591_v42, %v1586_v38  ;;  %v1624_v36 = vmul.f32 %v3701_v30, %v4755_v11  ;;  %v1626_v46 = vmul.f32 %v4732_v47, %v4756_v63  ;;  %v1628_v21 = vmul.f32 %v4734_v34, %v4757_v19  ;;  %v4760_v29 = vld [vmem:[#allocation31_spill] sm:$0xff]  ;;  %v4761_v23 = vld [vmem:[#allocation22_spill] sm:$0xff]  ;;  %v4762_v11 = vld [vmem:[#allocation32_spill] sm:$0xff] }
 0x17e   :  { %4754 = vst [vmem:[#allocation56_spill] sm:$0xff] %v3910_v17  ;;  %v1604_v49 = vmul.f32 %v1603_v3, %v1598_v52  ;;  %v1610_v41 = vadd.f32 %v1609_v45, %v4748_v1  ;;  %v1623_v33 = vadd.f32 %v1622_v6, %v1621_v51  ;;  %v1630_v17 = vmul.f32 %v4736_v4, %v4758_v13  ;;  %v4764_v3 = vld [vmem:[#allocation33_spill] sm:$0xff]  ;;  %v4766_v45 = vld [vmem:[#allocation34_spill] sm:$0xff]  ;;  %v4770_v19 = vld [vmem:[#allocation23_spill] sm:$0xff] }
 0x17f   :  { %v3924_v10 = vadd.f32 %v1593_v54, %v1592_v27  ;;  %v1632_v38 = vmul.f32 %v4738_v25, %v4760_v29  ;;  %v1634_v42 = vrot.slane %v4761_v23, 6  ;;  %v1637_v63 = vmul.f32 %v3694_v60, %v4762_v11  ;;  %v4767_v27 = vld [vmem:[#allocation35_spill] sm:$0xff]  ;;  %v4769_v29 = vld [vmem:[#allocation37_spill] sm:$0xff] }
 0x180   :  { %v3931_v57 = vadd.f32 %v1605_v9, %v1604_v49  ;;  %vm1612_vm4 = vcmp.gt.f32.partialorder %v1610_v41, 1.0  ;;  %v1625_v52 = vadd.f32 %v1624_v36, %v1623_v33  ;;  %v1639_v1 = vmul.f32 %v3701_v30, %v4764_v3  ;;  %v4768_v33 = vld [vmem:[#allocation36_spill] sm:$0xff] }
 0x181   :  { %4759 = vst [vmem:[#allocation84_spill] sm:$0xff] %v3924_v10  ;;  %v3936_v6 = vsel %vm1612_vm4, 1.0, %v4742_v15  ;;  %v1636_v54 = vadd.f32 %v1634_v42, %v3852_v16  ;;  %v1641_v51 = vmul.f32 %v4732_v47, %v4766_v45  ;;  %v1643_v23 = vmul.f32 %v4734_v34, %v4767_v27  ;;  %v4771_v42 = vld [vmem:[#allocation39_spill] sm:$0xff]  ;;  %v4772_v27 = vld [vmem:[#allocation40_spill] sm:$0xff] }
 0x182   :  { %4763 = vst [vmem:[#allocation71_spill] sm:$0xff] %v3931_v57  ;;  %v1615_v11 = vsub.f32 1.0, %v3936_v6  ;;  %v1617_v49 = vmul.f32 0.0, %v3936_v6  ;;  %v1627_v9 = vadd.f32 %v1626_v46, %v1625_v52  ;;  %v1645_v36 = vmul.f32 %v4736_v4, %v4768_v33 }
 0x183   :  { %4765 = vst [vmem:[#allocation83_spill] sm:$0xff] %v3936_v6  ;;  %v1638_v3 = vadd.f32 %v1637_v63, %v1636_v54  ;;  %v1647_v13 = vmul.f32 %v4738_v25, %v4769_v29  ;;  %v1649_v16 = vrot.slane %v4770_v19, 6  ;;  %v1652_v45 = vmul.f32 %v3694_v60, %v4771_v42  ;;  %v4774_v63 = vld [vmem:[#allocation42_spill] sm:$0xff]  ;;  %v4775_v29 = vld [vmem:[#allocation43_spill] sm:$0xff] }
 0x184   :  { %v1616_v57 = vmul.f32 %v1615_v11, %v1610_v41  ;;  %v1629_v10 = vadd.f32 %v1628_v21, %v1627_v9  ;;  %v1654_v15 = vmul.f32 %v3701_v30, %v4772_v27  ;;  %v1656_v46 = vmul.f32 %v4732_v47, %v4773_v12  ;;  %v4776_v41 = vld [vmem:[#allocation44_spill] sm:$0xff]  ;;  %v4777_v11 = vld [vmem:[#allocation26_spill] sm:$0xff]  ;;  %v4778_v12 = vld [vmem:[#allocation47_spill] sm:$0xff] }
 0x185   :  { %v1640_v52 = vadd.f32 %v1639_v1, %v1638_v3  ;;  %v1651_v33 = vadd.f32 %v1649_v16, %v3855_v18  ;;  %v1658_v54 = vmul.f32 %v4734_v34, %v4774_v63  ;;  %v1660_v19 = vmul.f32 %v4736_v4, %v4775_v29 }
 0x186   :  { %v3961_v6 = vadd.f32 %v1617_v49, %v1616_v57  ;;  %v1631_v42 = vadd.f32 %v1630_v17, %v1629_v10  ;;  %v1662_v21 = vmul.f32 %v4738_v25, %v4776_v41  ;;  %v1664_v9 = vrot.slane %v4777_v11, 6 }
 0x187   :  { %v1642_v27 = vadd.f32 %v1641_v51, %v1640_v52  ;;  %v1653_v5 = vadd.f32 %v1652_v45, %v1651_v33  ;;  %v1667_v3 = vmul.f32 %v3694_v60, %v4778_v12  ;;  %v1669_v18 = vmul.f32 %v3701_v30, %v4728_v55 }
 0x188   :  { %v3970_v1 = vadd.f32 %v1632_v38, %v1631_v42  ;;  %v1666_v16 = vadd.f32 %v1664_v9, %v3865_v31  ;;  %v1671_v57 = vmul.f32 %v4732_v47, %v4729_v35  ;;  %v1673_v17 = vmul.f32 %v4734_v34, %v4677_v32 }
 0x189   :  { %v1644_v10 = vadd.f32 %v1643_v23, %v1642_v27  ;;  %v1655_v49 = vadd.f32 %v1654_v15, %v1653_v5  ;;  %v1675_v45 = vmul.f32 %v4736_v4, %v4678_v59  ;;  %v1677_v51 = vmul.f32 %v4738_v25, %v4679_v24 }
 0x18a   :  { %v1668_v33 = vadd.f32 %v1667_v3, %v1666_v16  ;;  %v1679_v38 = vrot.slane %v4680_v14, 6  ;;  %v1682_v31 = vmul.f32 %v3694_v60, %v4681_v50  ;;  %v1684_v42 = vmul.f32 %v3701_v30, %v4682_v48  ;;  %v4779_v3 = vld [vmem:[#allocation59_spill] sm:$0xff] }
 0x18b   :  { %v1646_v52 = vadd.f32 %v1645_v36, %v1644_v10  ;;  %v1657_v9 = vadd.f32 %v1656_v46, %v1655_v49  ;;  %v1686_v15 = vmul.f32 %v4732_v47, %v4631_v56  ;;  %v1688_v5 = vmul.f32 %v4734_v34, %v4730_v43 }
 0x18c   :  { %v1670_v23 = vadd.f32 %v1669_v18, %v1668_v33  ;;  %v1681_v27 = vadd.f32 %v1679_v38, %v3886_v26  ;;  %v1690_v16 = vmul.f32 %v4736_v4, %v4779_v3  ;;  %v1692_v50 = vmul.f32 %v4738_v25, %v4634_v7 }
 0x18d   :  { %v1648_v14 = vadd.f32 %v1647_v13, %v1646_v52  ;;  %v1659_v24 = vadd.f32 %v1658_v54, %v1657_v9  ;;  %v1694_v36 = vrot.slane %v2710_v2, 6  ;;  %v1697_v46 = vmul.f32 %v3694_v60, %v4584_v39 }
 0x18e   :  { %v1672_v10 = vadd.f32 %v1671_v57, %v1670_v23  ;;  %v1683_v49 = vadd.f32 %v1682_v31, %v1681_v27  ;;  %v1699_v18 = vmul.f32 %v3701_v30, %v4585_v20  ;;  %v1701_v26 = vmul.f32 %v4732_v47, %v4586_v0  ;;  %v4780_v23 = vld [vmem:[#allocation74_spill] sm:$0xff] }
 0x18f   :  { %v1661_v33 = vadd.f32 %v1660_v19, %v1659_v24  ;;  %v1696_v38 = vadd.f32 %v1694_v36, %v3895_v62  ;;  %v1703_v13 = vmul.f32 %v4734_v34, %v4587_v61  ;;  %v1705_v54 = vmul.f32 %v4736_v4, %v4588_v8  ;;  %v4782_v36 = vld [vmem:[#allocation75_spill] sm:$0xff] }
 0x190   :  { %v1674_v52 = vadd.f32 %v1673_v17, %v1672_v10  ;;  %v1685_v9 = vadd.f32 %v1684_v42, %v1683_v49  ;;  %v1707_v60 = vmul.f32 %v4738_v25, %v4589_v40  ;;  %v1709_v57 = vsub.f32 0.0, %v3869_v53  ;;  %v4781_v25 = vld [vmem:[#allocation61_spill] sm:$0xff] }
 0x191   :  { %v1663_v30 = vadd.f32 %v1662_v21, %v1661_v33  ;;  %v1698_v31 = vadd.f32 %v1697_v46, %v1696_v38  ;;  %v1713_v47 = vmul.f32 0.8, %v3874_v44  ;;  %v1721_v24 = vmul.f32 %v3858_v28, %v4590_v37  ;;  %v4783_v21 = vld [vmem:[#allocation79_spill] sm:$0xff]  ;;  %v4784_v38 = vld [vmem:[#allocation76_spill] sm:$0xff]  ;;  %v4785_v28 = vld [vmem:[#allocation50_spill] sm:$0xff] }
 0x192   :  { %v1676_v62 = vadd.f32 %v1675_v45, %v1674_v52  ;;  %v1687_v19 = vadd.f32 %v1686_v15, %v1685_v9  ;;  %v1710_v34 = vadd.f32 %v1709_v57, %v3874_v44  ;;  %v1723_v4 = vmul.f32 %v3872_v22, %v3001_v58  ;;  %v4786_v44 = vld [vmem:[#allocation77_spill] sm:$0xff]  ;;  %v4787_v9 = vld [vmem:[#allocation56_spill] sm:$0xff]  ;;  %v4788_v58 = vld [vmem:[#allocation78_spill] sm:$0xff] }
 0x193   :  { %v1700_v17 = vadd.f32 %v1699_v18, %v1698_v31  ;;  %v1722_v42 = vadd.f32 %v1721_v24, %v1713_v47  ;;  %v1725_v27 = vmul.f32 %v4781_v25, %v4780_v23  ;;  %v1727_v46 = vmul.f32 %v4783_v21, %v4782_v36  ;;  %v4789_v18 = vld [vmem:[#allocation83_spill] sm:$0xff]  ;;  %v4790_v23 = vld [vmem:[#allocation46_spill] sm:$0xff] }
 0x194   :  { %v1678_v10 = vadd.f32 %v1677_v51, %v1676_v62  ;;  %v1689_v49 = vadd.f32 %v1688_v5, %v1687_v19  ;;  %v1711_v33 = vmul.f32 0.1, %v1710_v34  ;;  %v1729_v45 = vmul.f32 %v4785_v28, %v4784_v38  ;;  %v4791_v19 = vld [vmem:[#allocation55_spill] sm:$0xff] }
 0x195   :  { %v1702_v15 = vadd.f32 %v1701_v26, %v1700_v17  ;;  %v1724_v52 = vadd.f32 %v1723_v4, %v1722_v42  ;;  %v1731_v57 = vmul.f32 %v4787_v9, %v4786_v44  ;;  %v1733_v31 = vmul.f32 %v4789_v18, %v4788_v58  ;;  %v4792_v42 = vld [vmem:[#allocation51_spill] sm:$0xff] }
 0x196   :  { %v1691_v47 = vadd.f32 %v1690_v16, %v1689_v49  ;;  %v1712_v24 = vadd.f32 %v1711_v33, %v3869_v53  ;;  %v1735_v37 = vsub.f32 0.0, %v4790_v23  ;;  %v4029_v51 = vmul.f32 0.8, %v3970_v1 }
 0x197   :  { %v1704_v5 = vadd.f32 %v1703_v13, %v1702_v15  ;;  %v1726_v62 = vadd.f32 %v1725_v27, %v1724_v52  ;;  %v1747_v34 = vsub.f32 0.0, %v4791_v19  ;;  %v4032_v26 = vmul.f32 0.8, %v1648_v14 }
 0x198   :  { %v1693_v4 = vadd.f32 %v1692_v50, %v1691_v47  ;;  %vm1714_vm5 = vcmp.gt.f32.partialorder %v1712_v24, 1.0  ;;  %v1736_v17 = vadd.f32 %v1735_v37, %v3970_v1  ;;  %v1759_v58 = vsub.f32 0.0, %v4792_v42 }
 0x199   :  { %v1706_v16 = vadd.f32 %v1705_v54, %v1704_v5  ;;  %v4793_v49 = vmov 0.0   ;;  %v1728_v33 = vadd.f32 %v1727_v46, %v1726_v62  ;;  %v1748_v44 = vadd.f32 %v1747_v34, %v1648_v14  ;;  %v4794_v5 = vld [vmem:[#allocation84_spill] sm:$0xff]  ;;  %v4795_v62 = vld [vmem:[#allocation71_spill] sm:$0xff] }
 0x19a   :  { %v4037_v53 = vsel %vm1714_vm5, 1.0, %v4793_v49  ;;  %v1737_v27 = vmul.f32 0.1, %v1736_v17  ;;  %v1760_v15 = vadd.f32 %v1759_v58, %v1663_v30  ;;  %v4041_v47 = vmul.f32 0.8, %v1663_v30 }
 0x19b   :  { %v1717_v38 = vsub.f32 1.0, %v4037_v53  ;;  %v1719_v13 = vmul.f32 0.0, %v4037_v53  ;;  %v1708_v52 = vadd.f32 %v1707_v60, %v1706_v16  ;;  %v1730_v36 = vadd.f32 %v1729_v45, %v1728_v33 }
 0x19c   :  { %v1749_v50 = vmul.f32 0.1, %v1748_v44  ;;  %v1738_v1 = vadd.f32 %v1737_v27, %v4790_v23  ;;  %v1761_v54 = vmul.f32 0.1, %v1760_v15  ;;  %v1771_v40 = vsub.f32 0.0, %v4794_v5 }
 0x19d   :  { %v1718_v37 = vmul.f32 %v1717_v38, %v1712_v24  ;;  %v1732_v8 = vadd.f32 %v1731_v57, %v1730_v36  ;;  %v4046_v46 = vmul.f32 0.8, %v1678_v10  ;;  %v1783_v34 = vsub.f32 0.0, %v4795_v62 }
 0x19e   :  { %v1750_v14 = vadd.f32 %v1749_v50, %v4791_v19  ;;  %vm1740_vm6 = vcmp.gt.f32.partialorder %v1738_v1, 1.0  ;;  %v1762_v58 = vadd.f32 %v1761_v54, %v4792_v42  ;;  %v1772_v60 = vadd.f32 %v1771_v40, %v1678_v10 }
 0x19f   :  { %v4049_v17 = vadd.f32 %v1719_v13, %v1718_v37  ;;  %v4052_v30 = vadd.f32 %v1733_v31, %v1732_v8  ;;  %v4055_v23 = vsel %vm1740_vm6, 1.0, %v4793_v49  ;;  %v1784_v38 = vadd.f32 %v1783_v34, %v1693_v4 }
 0x1a0   :  { %vm1752_vm7 = vcmp.gt.f32.partialorder %v1750_v14, 1.0  ;;  %v1743_v36 = vsub.f32 1.0, %v4055_v23  ;;  %v1745_v45 = vmul.f32 0.0, %v4055_v23  ;;  %vm1764_vm8 = vcmp.gt.f32.partialorder %v1762_v58, 1.0 }
 0x1a1   :  { %v4060_v44 = vsel %vm1752_vm7, 1.0, %v4793_v49  ;;  %v4065_v8 = vsel %vm1764_vm8, 1.0, %v4793_v49  ;;  %v1773_v40 = vmul.f32 0.1, %v1772_v60  ;;  %v1785_v42 = vmul.f32 0.1, %v1784_v38 }
 0x1a2   :  { %v1755_v57 = vsub.f32 1.0, %v4060_v44  ;;  %v1757_v24 = vmul.f32 0.0, %v4060_v44  ;;  %v1744_v10 = vmul.f32 %v1743_v36, %v1738_v1  ;;  %v1767_v31 = vsub.f32 1.0, %v4065_v8  ;;  %v4798_v60 = vld [vmem:[#allocation21_spill] sm:$0xff] }
 0x1a3   :  { %v1769_v19 = vmul.f32 0.0, %v4065_v8  ;;  %v1774_v33 = vadd.f32 %v1773_v40, %v4794_v5  ;;  %v4070_v13 = vmul.f32 0.8, %v1693_v4  ;;  %v1795_v27 = vsub.f32 0.0, %v3961_v6  ;;  %v4800_v5 = vld [vmem:[#allocation24_spill] sm:$0xff] }
 0x1a4   :  { %v1756_v16 = vmul.f32 %v1755_v57, %v1750_v14  ;;  %v4073_v15 = vadd.f32 %v1745_v45, %v1744_v10  ;;  %v1768_v50 = vmul.f32 %v1767_v31, %v1762_v58  ;;  %v1786_v37 = vadd.f32 %v1785_v42, %v4795_v62  ;;  %v4802_v10 = vld [vmem:[#allocation25_spill] sm:$0xff] }
 0x1a5   :  { %v4076_v54 = vmul.f32 0.8, %v1708_v52  ;;  %vm1776_vm9 = vcmp.gt.f32.partialorder %v1774_v33, 1.0  ;;  %v1796_v34 = vadd.f32 %v1795_v27, %v1708_v52  ;;  %v1807_v38 = vrot.slane %v4798_v60, 7 }
 0x1a6   :  { %4796 = vst [vmem:[#allocation62_spill] sm:$0xff] %v4073_v15  ;;  %v4078_v1 = vadd.f32 %v1757_v24, %v1756_v16  ;;  %v4081_v14 = vadd.f32 %v1769_v19, %v1768_v50  ;;  %v4084_v4 = vsel %vm1776_vm9, 1.0, %v4793_v49  ;;  %vm1788_vm10 = vcmp.gt.f32.partialorder %v1786_v37, 1.0  ;;  %v4803_v16 = vld [vmem:[#allocation28_spill] sm:$0xff]  ;;  %v4804_v50 = vld [vmem:[#allocation29_spill] sm:$0xff]  ;;  %v4806_v15 = vld [vmem:[#allocation31_spill] sm:$0xff] }
 0x1a7   :  { %v1810_v36 = vmul.f32 %v3872_v22, %v4800_v5  ;;  %v1779_v58 = vsub.f32 1.0, %v4084_v4  ;;  %v1781_v62 = vmul.f32 0.0, %v4084_v4  ;;  %v4091_v45 = vsel %vm1788_vm10, 1.0, %v4793_v49 }
 0x1a8   :  { %4797 = vst [vmem:[#allocation82_spill] sm:$0xff] %v4078_v1  ;;  %v1797_v57 = vmul.f32 0.1, %v1796_v34  ;;  %v1791_v52 = vsub.f32 1.0, %v4091_v45  ;;  %v1793_v24 = vmul.f32 0.0, %v4091_v45  ;;  %v1809_v40 = vadd.f32 %v1807_v38, %v4029_v51 }
 0x1a9   :  { %4799 = vst [vmem:[#allocation85_spill] sm:$0xff] %v4081_v14  ;;  %v1812_v31 = vmul.f32 %v4781_v25, %v4802_v10  ;;  %v1780_v19 = vmul.f32 %v1779_v58, %v1774_v33  ;;  %v1814_v27 = vmul.f32 %v4783_v21, %v4803_v16  ;;  %v1816_v60 = vmul.f32 %v4785_v28, %v4804_v50  ;;  %v4805_v14 = vld [vmem:[#allocation30_spill] sm:$0xff] }
 0x1aa   :  { %4801 = vst [vmem:[#allocation80_spill] sm:$0xff] %v4091_v45  ;;  %v1798_v42 = vadd.f32 %v1797_v57, %v3961_v6  ;;  %v1792_v5 = vmul.f32 %v1791_v52, %v1786_v37  ;;  %v1811_v34 = vadd.f32 %v1810_v36, %v1809_v40  ;;  %v1818_v1 = vmul.f32 %v4787_v9, %v4805_v14  ;;  %v4808_v33 = vld [vmem:[#allocation22_spill] sm:$0xff]  ;;  %v4809_v6 = vld [vmem:[#allocation32_spill] sm:$0xff]  ;;  %v4812_v36 = vld [vmem:[#allocation33_spill] sm:$0xff] }
 0x1ab   :  { %v1820_v51 = vmul.f32 %v4789_v18, %v4806_v15  ;;  %v4107_v38 = vadd.f32 %v1781_v62, %v1780_v19  ;;  %v1822_v58 = vrot.slane %v4808_v33, 7  ;;  %v1825_v57 = vmul.f32 %v3872_v22, %v4809_v6  ;;  %v4813_v40 = vld [vmem:[#allocation34_spill] sm:$0xff]  ;;  %v4814_v33 = vld [vmem:[#allocation35_spill] sm:$0xff]  ;;  %v4819_v45 = vld [vmem:[#allocation40_spill] sm:$0xff] }
 0x1ac   :  { %vm1800_vm11 = vcmp.gt.f32.partialorder %v1798_v42, 1.0  ;;  %v4112_v10 = vadd.f32 %v1793_v24, %v1792_v5  ;;  %v1813_v37 = vadd.f32 %v1812_v31, %v1811_v34  ;;  %v1827_v14 = vmul.f32 %v4781_v25, %v4812_v36  ;;  %v4815_v5 = vld [vmem:[#allocation36_spill] sm:$0xff]  ;;  %v4816_v31 = vld [vmem:[#allocation37_spill] sm:$0xff] }
 0x1ad   :  { %4807 = vst [vmem:[#allocation81_spill] sm:$0xff] %v4107_v38  ;;  %v4115_v16 = vsel %vm1800_vm11, 1.0, %v4793_v49  ;;  %v1824_v62 = vadd.f32 %v1822_v58, %v4032_v26  ;;  %v1829_v19 = vmul.f32 %v4783_v21, %v4813_v40  ;;  %v1831_v24 = vmul.f32 %v4785_v28, %v4814_v33  ;;  %v4817_v49 = vld [vmem:[#allocation23_spill] sm:$0xff] }
 0x1ae   :  { %4810 = vst [vmem:[#allocation63_spill] sm:$0xff] %v4112_v10  ;;  %v1803_v52 = vsub.f32 1.0, %v4115_v16  ;;  %v1805_v15 = vmul.f32 0.0, %v4115_v16  ;;  %v1815_v50 = vadd.f32 %v1814_v27, %v1813_v37  ;;  %v1833_v6 = vmul.f32 %v4787_v9, %v4815_v5  ;;  %v4820_v37 = vld [vmem:[#allocation41_spill] sm:$0xff] }
 0x1af   :  { %4811 = vst [vmem:[#allocation48_spill] sm:$0xff] %v4115_v16  ;;  %v1835_v34 = vmul.f32 %v4789_v18, %v4816_v31  ;;  %v1826_v10 = vadd.f32 %v1825_v57, %v1824_v62  ;;  %v1837_v38 = vrot.slane %v4817_v49, 7  ;;  %v4818_v16 = vld [vmem:[#allocation39_spill] sm:$0xff]  ;;  %v1842_v27 = vmul.f32 %v4781_v25, %v4819_v45 }
 0x1b0   :  { %v1804_v36 = vmul.f32 %v1803_v52, %v1798_v42  ;;  %v1840_v26 = vmul.f32 %v3872_v22, %v4818_v16  ;;  %v1817_v58 = vadd.f32 %v1816_v60, %v1815_v50  ;;  %v1844_v40 = vmul.f32 %v4783_v21, %v4820_v37  ;;  %v4823_v50 = vld [vmem:[#allocation54_spill] sm:$0xff] }
 0x1b1   :  { %v1846_v33 = vmul.f32 %v4785_v28, %v4774_v63  ;;  %v1828_v31 = vadd.f32 %v1827_v14, %v1826_v10  ;;  %v1839_v42 = vadd.f32 %v1837_v38, %v4041_v47  ;;  %v1848_v49 = vmul.f32 %v4787_v9, %v4775_v29  ;;  %v4821_v10 = vld [vmem:[#allocation53_spill] sm:$0xff] }
 0x1b2   :  { %v4139_v5 = vadd.f32 %v1805_v15, %v1804_v36  ;;  %v1819_v57 = vadd.f32 %v1818_v1, %v1817_v58  ;;  %v1850_v60 = vmul.f32 %v4789_v18, %v4776_v41  ;;  %v1852_v45 = vrot.slane %v4777_v11, 7  ;;  %v4822_v15 = vld [vmem:[#allocation27_spill] sm:$0xff] }
 0x1b3   :  { %v1855_v16 = vmul.f32 %v3872_v22, %v4778_v12  ;;  %v1830_v52 = vadd.f32 %v1829_v19, %v1828_v31  ;;  %v1841_v62 = vadd.f32 %v1840_v26, %v1839_v42  ;;  %v1857_v63 = vmul.f32 %v4781_v25, %v4728_v55 }
 0x1b4   :  { %v1859_v47 = vmul.f32 %v4783_v21, %v4729_v35  ;;  %v4153_v38 = vadd.f32 %v1820_v51, %v1819_v57  ;;  %v1854_v29 = vadd.f32 %v1852_v45, %v4046_v46  ;;  %v1861_v41 = vmul.f32 %v4785_v28, %v4677_v32 }
 0x1b5   :  { %v1863_v11 = vmul.f32 %v4787_v9, %v4678_v59  ;;  %v1832_v1 = vadd.f32 %v1831_v24, %v1830_v52  ;;  %v1843_v12 = vadd.f32 %v1842_v27, %v1841_v62  ;;  %v1865_v14 = vmul.f32 %v4789_v18, %v4821_v10  ;;  %v4830_v10 = vld [vmem:[#allocation76_spill] sm:$0xff] }
 0x1b6   :  { %v1867_v55 = vrot.slane %v4822_v15, 7  ;;  %v1856_v19 = vadd.f32 %v1855_v16, %v1854_v29  ;;  %v1870_v35 = vmul.f32 %v3872_v22, %v4823_v50  ;;  %v1872_v46 = vmul.f32 %v4781_v25, %v4682_v48  ;;  %v4829_v29 = vld [vmem:[#allocation75_spill] sm:$0xff]  ;;  %v4834_v50 = vld [vmem:[#allocation48_spill] sm:$0xff] }
 0x1b7   :  { %v1874_v32 = vmul.f32 %v4783_v21, %v4631_v56  ;;  %v1834_v51 = vadd.f32 %v1833_v6, %v1832_v1  ;;  %v1845_v36 = vadd.f32 %v1844_v40, %v1843_v12  ;;  %v1876_v24 = vmul.f32 %v4785_v28, %v4730_v43 }
 0x1b8   :  { %v1869_v59 = vadd.f32 %v1867_v55, %v4070_v13  ;;  %v1858_v26 = vadd.f32 %v1857_v63, %v1856_v19  ;;  %v1878_v58 = vmul.f32 %v4787_v9, %v4779_v3  ;;  %v1880_v27 = vmul.f32 %v4789_v18, %v4634_v7  ;;  %v4824_v7 = vld [vmem:[#allocation67_spill] sm:$0xff]  ;;  %v4832_v55 = vld [vmem:[#allocation80_spill] sm:$0xff] }
 0x1b9   :  { %v1882_v37 = vrot.slane %v2710_v2, 7  ;;  %v1836_v48 = vadd.f32 %v1835_v34, %v1834_v51  ;;  %v1847_v31 = vadd.f32 %v1846_v33, %v1845_v36  ;;  %v1885_v56 = vmul.f32 %v3872_v22, %v4584_v39  ;;  %v4825_v39 = vld [vmem:[#allocation68_spill] sm:$0xff] }
 0x1ba   :  { %v1871_v42 = vadd.f32 %v1870_v35, %v1869_v59  ;;  %v1860_v6 = vadd.f32 %v1859_v47, %v1858_v26  ;;  %v1887_v43 = vmul.f32 %v4781_v25, %v4585_v20  ;;  %v1889_v3 = vmul.f32 %v4783_v21, %v4586_v0  ;;  %v4826_v0 = vld [vmem:[#allocation72_spill] sm:$0xff]  ;;  %v4828_v47 = vld [vmem:[#allocation74_spill] sm:$0xff] }
 0x1bb   :  { %v1884_v13 = vadd.f32 %v1882_v37, %v4076_v54  ;;  %v1849_v40 = vadd.f32 %v1848_v49, %v1847_v31  ;;  %v1891_v2 = vmul.f32 %v4785_v28, %v4587_v61  ;;  %v1893_v34 = vmul.f32 %v4787_v9, %v4824_v7  ;;  %v4827_v28 = vld [vmem:[#allocation73_spill] sm:$0xff] }
 0x1bc   :  { %v1873_v57 = vadd.f32 %v1872_v46, %v1871_v42  ;;  %v1862_v33 = vadd.f32 %v1861_v41, %v1860_v6  ;;  %v1895_v22 = vmul.f32 %v4789_v18, %v4825_v39  ;;  %v1897_v54 = vsub.f32 0.0, %v4049_v17 }
 0x1bd   :  { %v1886_v45 = vadd.f32 %v1885_v56, %v1884_v13  ;;  %v1851_v16 = vadd.f32 %v1850_v60, %v1849_v40  ;;  %v1901_v25 = vmul.f32 0.8, %v4052_v30  ;;  %v1909_v21 = vmul.f32 %v4037_v53, %v4826_v0 }
 0x1be   :  { %v1875_v20 = vadd.f32 %v1874_v32, %v1873_v57  ;;  %v1864_v49 = vadd.f32 %v1863_v11, %v1862_v33  ;;  %v1898_v61 = vadd.f32 %v1897_v54, %v4052_v30  ;;  %v1911_v9 = vmul.f32 %v4055_v23, %v4827_v28  ;;  %v4831_v30 = vld [vmem:[#allocation77_spill] sm:$0xff]  ;;  %v4833_v23 = vld [vmem:[#allocation78_spill] sm:$0xff]  ;;  %v4840_v54 = vld [vmem:[#allocation63_spill] sm:$0xff] }
 0x1bf   :  { %v1888_v52 = vadd.f32 %v1887_v43, %v1886_v45  ;;  %v1910_v63 = vadd.f32 %v1909_v21, %v1901_v25  ;;  %v1913_v18 = vmul.f32 %v4060_v44, %v4828_v47  ;;  %v1915_v60 = vmul.f32 %v4065_v8, %v4829_v29  ;;  %v4835_v32 = vld [vmem:[#allocation62_spill] sm:$0xff] }
 0x1c0   :  { %v1877_v62 = vadd.f32 %v1876_v24, %v1875_v20  ;;  %v1866_v41 = vadd.f32 %v1865_v14, %v1864_v49  ;;  %v1899_v12 = vmul.f32 0.1, %v1898_v61  ;;  %v1917_v53 = vmul.f32 %v4084_v4, %v4830_v10  ;;  %v4836_v8 = vld [vmem:[#allocation82_spill] sm:$0xff]  ;;  %v4837_v24 = vld [vmem:[#allocation85_spill] sm:$0xff] }
 0x1c1   :  { %v1890_v1 = vadd.f32 %v1889_v3, %v1888_v52  ;;  %v1912_v15 = vadd.f32 %v1911_v9, %v1910_v63  ;;  %v1919_v19 = vmul.f32 %v4832_v55, %v4831_v30  ;;  %v1921_v35 = vmul.f32 %v4834_v50, %v4833_v23  ;;  %v4838_v4 = vld [vmem:[#allocation81_spill] sm:$0xff] }
 0x1c2   :  { %v1879_v11 = vadd.f32 %v1878_v58, %v1877_v62  ;;  %v1900_v44 = vadd.f32 %v1899_v12, %v4049_v17  ;;  %v1923_v51 = vsub.f32 0.0, %v4835_v32  ;;  %v1930_v14 = vsub.f32 0.0, %v4836_v8 }
 0x1c3   :  { %v1892_v46 = vadd.f32 %v1891_v2, %v1890_v1  ;;  %v1914_v59 = vadd.f32 %v1913_v18, %v1912_v15  ;;  %v1937_v26 = vsub.f32 0.0, %v4837_v24  ;;  %v1944_v58 = vsub.f32 0.0, %v4838_v4 }
 0x1c4   :  { %v1881_v36 = vadd.f32 %v1880_v27, %v1879_v11  ;;  %vm1902_vm12 = vcmp.gt.f32.partialorder %v1900_v44, 1.0  ;;  %v1924_v31 = vadd.f32 %v1923_v51, %v4153_v38  ;;  %v1931_v42 = vadd.f32 %v1930_v14, %v1836_v48 }
 0x1c5   :  { %v1894_v37 = vadd.f32 %v1893_v34, %v1892_v46  ;;  %v4839_v56 = vmov 0.0   ;;  %v1916_v13 = vadd.f32 %v1915_v60, %v1914_v59  ;;  %v1938_v43 = vadd.f32 %v1937_v26, %v1851_v16 }
 0x1c6   :  { %v2199_v6 = vsel %vm1902_vm12, 1.0, %v4839_v56  ;;  %v1945_v17 = vadd.f32 %v1944_v58, %v1866_v41  ;;  %v1925_v2 = vmul.f32 0.1, %v1924_v31  ;;  %v1932_v7 = vmul.f32 0.1, %v1931_v42 }
 0x1c7   :  { %v1896_v3 = vadd.f32 %v1895_v22, %v1894_v37  ;;  %v1905_v40 = vsub.f32 1.0, %v2199_v6  ;;  %v1907_v57 = vmul.f32 0.0, %v2199_v6  ;;  %v1918_v27 = vadd.f32 %v1917_v53, %v1916_v13 }
 0x1c8   :  { %v1939_v33 = vmul.f32 0.1, %v1938_v43  ;;  %v1946_v45 = vmul.f32 0.1, %v1945_v17  ;;  %v1926_v34 = vadd.f32 %v1925_v2, %v4835_v32  ;;  %v1951_v20 = vsub.f32 0.0, %v4840_v54 }
 0x1c9   :  { %v1906_v39 = vmul.f32 %v1905_v40, %v1900_v44  ;;  %v1958_v38 = vsub.f32 0.0, %v4139_v5  ;;  %v1920_v48 = vadd.f32 %v1919_v19, %v1918_v27  ;;  %v1933_v25 = vadd.f32 %v1932_v7, %v4836_v8 }
 0x1ca   :  { %v1940_v16 = vadd.f32 %v1939_v33, %v4837_v24  ;;  %v1947_v22 = vadd.f32 %v1946_v45, %v4838_v4  ;;  %vm1927_vm13 = vcmp.gt.f32.partialorder %v1926_v34, 1.0  ;;  %v1952_v49 = vadd.f32 %v1951_v20, %v1881_v36 }
 0x1cb   :  { %v1908_v21 = vadd.f32 %v1907_v57, %v1906_v39  ;;  %v1959_v52 = vadd.f32 %v1958_v38, %v1896_v3  ;;  %v1922_v61 = vadd.f32 %v1921_v35, %v1920_v48  ;;  %v2200_v9 = vsel %vm1927_vm13, 1.0, %v4839_v56 }
 0x1cc   :  { %vm1934_vm14 = vcmp.gt.f32.partialorder %v1933_v25, 1.0  ;;  %vm1941_vm15 = vcmp.gt.f32.partialorder %v1940_v16, 1.0  ;;  %v1953_v62 = vmul.f32 0.1, %v1952_v49  ;;  %vm1948_vm0 = vcmp.gt.f32.partialorder %v1947_v22, 1.0 }
 0x1cd   :  { %v2201_v63 = vsel %vm1934_vm14, 1.0, %v4839_v56  ;;  %v1960_v18 = vmul.f32 0.1, %v1959_v52  ;;  %v1965_v60 = vsub.f32 0.0, %v1908_v21  ;;  %v1969_v41 = vmul.f32 0.8, %v1922_v61 }
 0x1ce   :  { %v1954_v1 = vadd.f32 %v1953_v62, %v4840_v54  ;;  %v1977_v12 = vmul.f32 %v2199_v6, %v4826_v0  ;;  %v1979_v53 = vmul.f32 %v2200_v9, %v4827_v28  ;;  %v2202_v11 = vsel %vm1941_vm15, 1.0, %v4839_v56 }
 0x1cf   :  { %v1961_v15 = vadd.f32 %v1960_v18, %v4139_v5  ;;  %v1966_v55 = vadd.f32 %v1965_v60, %v1922_v61  ;;  %v1981_v50 = vmul.f32 %v2201_v63, %v4828_v47  ;;  %v2203_v35 = vsel %vm1948_vm0, 1.0, %v4839_v56 }
 0x1d0   :  { %vm1955_vm1 = vcmp.gt.f32.partialorder %v1954_v1, 1.0  ;;  %v1978_v19 = vadd.f32 %v1977_v12, %v1969_v41  ;;  %v1983_v32 = vmul.f32 %v2202_v11, %v4829_v29  ;;  %v1985_v8 = vmul.f32 %v2203_v35, %v4830_v10 }
 0x1d1   :  { %v1967_v46 = vmul.f32 0.1, %v1966_v55  ;;  %vm1962_vm2 = vcmp.gt.f32.partialorder %v1961_v15, 1.0  ;;  %v2204_v0 = vsel %vm1955_vm1, 1.0, %v4839_v56 }
 0x1d2   :  { %v1980_v44 = vadd.f32 %v1979_v53, %v1978_v19  ;;  %v2205_v5 = vsel %vm1962_vm2, 1.0, %v4839_v56  ;;  %v1987_v47 = vmul.f32 %v2204_v0, %v4831_v30 }
 0x1d3   :  { %v1968_v51 = vadd.f32 %v1967_v46, %v1908_v21  ;;  %v1989_v4 = vmul.f32 %v2205_v5, %v4833_v23 }
 0x1d4   :  { %v1982_v28 = vadd.f32 %v1981_v50, %v1980_v44 }
 0x1d5   :  { %vm1970_vm3 = vcmp.gt.f32.partialorder %v1968_v51, 1.0 }
 0x1d6   :  { %v2206_v14 = vsel %vm1970_vm3, 1.0, %v4839_v56  ;;  %v1984_v36 = vadd.f32 %v1983_v32, %v1982_v28 }
 0x1d7   :  { %v1973_v59 = vsub.f32 1.0, %v2206_v14  ;;  %v1975_v24 = vmul.f32 0.0, %v2206_v14 }
 0x1d8   :  { %v1986_v26 = vadd.f32 %v1985_v8, %v1984_v36 }
 0x1d9   :  { %v1974_v29 = vmul.f32 %v1973_v59, %v1968_v51 }
 0x1da   :  { %v1988_v58 = vadd.f32 %v1987_v47, %v1986_v26 }
 0x1db   :  { %v1976_v37 = vadd.f32 %v1975_v24, %v1974_v29 }
 0x1dc   :  { %v1990_v31 = vadd.f32 %v1989_v4, %v1988_v58 }
 0x1dd   :  { %v1991_v42 = vsub.f32 0.0, %v1976_v37 }
 0x1df   :  { %v1992_v6 = vadd.f32 %v1991_v42, %v1990_v31 }
 0x1e1   :  { %v1993_v10 = vmul.f32 0.1, %v1992_v6 }
 0x1e3   :  { %v1994_v13 = vadd.f32 %v1993_v10, %v1976_v37 }
 0x1e5   :  { %vm1995_vm4 = vcmp.gt.f32.partialorder %v1994_v13, 1.0 }
 0x1e6   :  { %v2207_v30 = vsel %vm1995_vm4, 1.0, %v4839_v56 }
 0x1e7   :  { %1998 = vst [vmem:[#allocation9] sm:$0x1] %v2207_v30 }
 0x1e8   :  { %2009 = dma.vmem_to_hbm [thread:$0]  %s2005_s1, 16, %s2007_s12, [#allocation4]  }
 0x1e9   :  { %2277 = dma.done.wait [#allocation4], 16  }
 0x1ea   :  { %2278 = vsyncadd [#allocation4], 4294967280 }
 0x1eb   :  { %2014 = vsyncpa [#allocation4], 1 }
 0x1ec   :  { %2015 = vsyncpa [#allocation5], 1 }
 0x1ed   :  { %2016 = vsyncpa [#allocation7], 1 }

</bundles_post_ra>
